<compile_context>
chip_gen: v7x
topology: tpu7x:2x2x1
jax: 0.10.0
libtpu: 0.0.40
codegen_flags: <defaults>
</compile_context>

<pallas_src>
import jax
import jax.numpy as jnp
from jax import lax
from jax.experimental import pallas as pl
from jax.experimental.pallas import tpu as pltpu

TIME_BLOCK = 32                 # max timesteps per (sequential) grid step
LANE = 128                      # hidden dim padded to a multiple of this
SUBLANE = 8                     # batch / time padded to a multiple of this
VMEM_LIMIT = 32 * 1024 * 1024   # safe on v5e/v6e/v7x


def _round_up(x, m):
    return -(-x // m) * m


# ----------------------------------------------------------------------------
# In-kernel GRU cell + fused bidirectional time scan
# ----------------------------------------------------------------------------
def _gru_cell(xg, h, whh, bhh, hp):
    """One GRU step; gate layout (r|z|n), each gate Hp wide -> lane-aligned."""
    hg = jnp.dot(h, whh, preferred_element_type=jnp.float32) + bhh
    r = jax.nn.sigmoid(xg[:, :hp] + hg[:, :hp])
    z = jax.nn.sigmoid(xg[:, hp:2 * hp] + hg[:, hp:2 * hp])
    n = jnp.tanh(xg[:, 2 * hp:] + r * hg[:, 2 * hp:])
    return (1.0 - z) * n + z * h


def _bidir_scan(xgf, xgb, lens_b, base_f, base_b, hf_scr, hb_scr,
                whh_f, bhh_f, whh_b, bhh_b, hp, tb,
                outf_ref=None, outb_ref=None):
    """Interleaved fwd+bwd recurrence over one block of `tb` timesteps.

    xgf/xgb : (tb, Bp, 3Hp) precomputed input gates (fwd block / reverse block)
    lens_b  : (Bp, Hp) int32 broadcast of the valid lengths (hoisted)
    """
    h_f = hf_scr[...]
    h_b = hb_scr[...]
    # Fully unrolled with static indices (tb <= TIME_BLOCK): same schedule
    # visibility as fori_loop(unroll=True) but every slice/store stays static
    # and aligned.
    for i in range(tb):
        # ---- forward direction, local step i -------------------------------
        h_new = _gru_cell(xgf[i], h_f, whh_f, bhh_f, hp)
        m = (base_f + i) < lens_b
        h_f = jnp.where(m, h_new, h_f)          # packed semantics: freeze past len
        if outf_ref is not None:
            outf_ref[i] = jnp.where(m, h_new, 0.0).astype(outf_ref.dtype)
        # ---- backward direction, local step tb-1-i -------------------------
        li = tb - 1 - i
        h_new = _gru_cell(xgb[li], h_b, whh_b, bhh_b, hp)
        m = (base_b + li) < lens_b
        h_b = jnp.where(m, h_new, h_b)
        if outb_ref is not None:
            outb_ref[li] = jnp.where(m, h_new, 0.0).astype(outb_ref.dtype)

    hf_scr[...] = h_f
    hb_scr[...] = h_b
    return h_f, h_b


# ----------------------------------------------------------------------------
# Layer 0: fused (one_hot -> embed -> W_ih) table matmul + bidirectional GRU
# ----------------------------------------------------------------------------
def gru_layer0_kernel(lens_ref, seqf_ref, seqb_ref, tabf_ref, tabb_ref,
                      whhf_ref, whhb_ref, bhhf_ref, bhhb_ref,
                      outf_ref, outb_ref, hf_scr, hb_scr):
    g = pl.program_id(0)
    nblk = pl.num_programs(0)
    tb, bp, _ = seqf_ref.shape
    n_char = tabf_ref.shape[0]
    hp = whhf_ref.shape[0]

    @pl.when(g == 0)
    def _():
        hf_scr[...] = jnp.zeros_like(hf_scr)
        hb_scr[...] = jnp.zeros_like(hb_scr)

    lens_b = jnp.broadcast_to(lens_ref[...], (bp, hp))          # hoisted

    # In-kernel "gather": one-hot tokens against the VMEM-resident folded table
    # (exactly table[token]); the (B,T,3H) gate tensor never touches HBM.
    iota = lax.broadcasted_iota(jnp.int32, (tb, bp, n_char), 2)
    ohf = (seqf_ref[...] == iota).astype(jnp.float32).reshape(tb * bp, n_char)
    ohb = (seqb_ref[...] == iota).astype(jnp.float32).reshape(tb * bp, n_char)
    xgf = jnp.dot(ohf, tabf_ref[...],
                  preferred_element_type=jnp.float32).reshape(tb, bp, 3 * hp)
    xgb = jnp.dot(ohb, tabb_ref[...],
                  preferred_element_type=jnp.float32).reshape(tb, bp, 3 * hp)

    _bidir_scan(xgf, xgb, lens_b, g * tb, (nblk - 1 - g) * tb,
                hf_scr, hb_scr,
                whhf_ref[...], bhhf_ref[...], whhb_ref[...], bhhb_ref[...],
                hp, tb, outf_ref=outf_ref, outb_ref=outb_ref)


def gru_layer0(seq_tm, lens, p, *, tb):
    Tp, Bp, _ = seq_tm.shape
    nblk = Tp // tb
    n_char, G3 = p["tab_f"].shape
    Hp = G3 // 3
    const = lambda g: (0, 0)
    fwd = lambda g: (g, 0, 0)
    rev = lambda g: (nblk - 1 - g, 0, 0)
    oshape = jax.ShapeDtypeStruct((Tp, Bp, Hp), jnp.float32)
    return pl.pallas_call(
        gru_layer0_kernel,
        out_shape=(oshape, oshape),
        grid_spec=pltpu.PrefetchScalarGridSpec(
            num_scalar_prefetch=0,
            grid=(nblk,),
            in_specs=[
                pl.BlockSpec((Bp, 1), const),          # lengths
                pl.BlockSpec((tb, Bp, 1), fwd),        # tokens, fwd-ordered
                pl.BlockSpec((tb, Bp, 1), rev),        # tokens, reverse-ordered
                pl.BlockSpec((n_char, G3), const),     # folded table (fwd dir)
                pl.BlockSpec((n_char, G3), const),     # folded table (bwd dir)
                pl.BlockSpec((Hp, G3), const),         # W_hh^T fwd
                pl.BlockSpec((Hp, G3), const),         # W_hh^T bwd
                pl.BlockSpec((1, G3), const),          # b_hh fwd
                pl.BlockSpec((1, G3), const),          # b_hh bwd
            ],
            out_specs=(
                pl.BlockSpec((tb, Bp, Hp), fwd),       # fwd per-step outputs
                pl.BlockSpec((tb, Bp, Hp), rev),       # bwd per-step outputs
            ),
            scratch_shapes=[pltpu.VMEM((Bp, Hp), jnp.float32),
                            pltpu.VMEM((Bp, Hp), jnp.float32)],
        ),
        compiler_params=pltpu.CompilerParams(
            dimension_semantics=("arbitrary",),
            vmem_limit_bytes=VMEM_LIMIT),
    )(lens, seq_tm, seq_tm, p["tab_f"], p["tab_b"],
      p["whh_f"], p["whh_b"], p["bhh_f"], p["bhh_b"])


# ----------------------------------------------------------------------------
# Layer 1: fused input projection + bidirectional GRU, final-hidden-only
# ----------------------------------------------------------------------------
def gru_layer1_kernel(lens_ref, x0ff_ref, x0bf_ref, x0fr_ref, x0br_ref,
                      wihf_ref, wihb_ref, bihf_ref, bihb_ref,
                      whhf_ref, whhb_ref, bhhf_ref, bhhb_ref,
                      hff_ref, hfb_ref, hf_scr, hb_scr):
    g = pl.program_id(0)
    nblk = pl.num_programs(0)
    tb, bp, hp = x0ff_ref.shape

    @pl.when(g == 0)
    def _():
        hf_scr[...] = jnp.zeros_like(hf_scr)
        hb_scr[...] = jnp.zeros_like(hb_scr)

    lens_b = jnp.broadcast_to(lens_ref[...], (bp, hp))          # hoisted

    # Fused input projection: layer-0 fwd/bwd outputs consumed directly as two
    # dots summed (no (B,T,2H) concat, no (B,T,3H) gates in HBM).  The block
    # matmul is big independent MXU work that overlaps the serial recurrence.
    wf = wihf_ref[...]
    wb = wihb_ref[...]
    xgf = (jnp.dot(x0ff_ref[...].reshape(tb * bp, hp), wf[:hp],
                   preferred_element_type=jnp.float32)
           + jnp.dot(x0bf_ref[...].reshape(tb * bp, hp), wf[hp:],
                     preferred_element_type=jnp.float32)
           + bihf_ref[...]).reshape(tb, bp, 3 * hp)
    xgb = (jnp.dot(x0fr_ref[...].reshape(tb * bp, hp), wb[:hp],
                   preferred_element_type=jnp.float32)
           + jnp.dot(x0br_ref[...].reshape(tb * bp, hp), wb[hp:],
                     preferred_element_type=jnp.float32)
           + bihb_ref[...]).reshape(tb, bp, 3 * hp)

    h_f, h_b = _bidir_scan(xgf, xgb, lens_b, g * tb, (nblk - 1 - g) * tb,
                           hf_scr, hb_scr,
                           whhf_ref[...], bhhf_ref[...],
                           whhb_ref[...], bhhb_ref[...], hp, tb)

    # Only the final hidden states feed the fc head; no per-step HBM writeback.
    hff_ref[...] = h_f
    hfb_ref[...] = h_b


def gru_layer1(x0f, x0b, lens, p, *, tb):
    Tp, Bp, Hp = x0f.shape
    nblk = Tp // tb
    G3 = 3 * Hp
    const = lambda g: (0, 0)
    fwd = lambda g: (g, 0, 0)
    rev = lambda g: (nblk - 1 - g, 0, 0)
    hshape = jax.ShapeDtypeStruct((Bp, Hp), jnp.float32)
    return pl.pallas_call(
        gru_layer1_kernel,
        out_shape=(hshape, hshape),
        grid_spec=pltpu.PrefetchScalarGridSpec(
            num_scalar_prefetch=0,
            grid=(nblk,),
            in_specs=[
                pl.BlockSpec((Bp, 1), const),          # lengths
                pl.BlockSpec((tb, Bp, Hp), fwd),       # layer-0 fwd out, fwd order
                pl.BlockSpec((tb, Bp, Hp), fwd),       # layer-0 bwd out, fwd order
                pl.BlockSpec((tb, Bp, Hp), rev),       # layer-0 fwd out, rev order
                pl.BlockSpec((tb, Bp, Hp), rev),       # layer-0 bwd out, rev order
                pl.BlockSpec((2 * Hp, G3), const),     # W_ih^T fwd dir
                pl.BlockSpec((2 * Hp, G3), const),     # W_ih^T bwd dir
                pl.BlockSpec((1, G3), const),          # b_ih fwd
                pl.BlockSpec((1, G3), const),          # b_ih bwd
                pl.BlockSpec((Hp, G3), const),         # W_hh^T fwd
                pl.BlockSpec((Hp, G3), const),         # W_hh^T bwd
                pl.BlockSpec((1, G3), const),          # b_hh fwd
                pl.BlockSpec((1, G3), const),          # b_hh bwd
            ],
            out_specs=(
                pl.BlockSpec((Bp, Hp), const),
                pl.BlockSpec((Bp, Hp), const),
            ),
            scratch_shapes=[pltpu.VMEM((Bp, Hp), jnp.float32),
                            pltpu.VMEM((Bp, Hp), jnp.float32)],
        ),
        compiler_params=pltpu.CompilerParams(
            dimension_semantics=("arbitrary",),
            vmem_limit_bytes=VMEM_LIMIT),
    )(lens, x0f, x0b, x0f, x0b,
      p["wih_f"], p["wih_b"], p["bih_f"], p["bih_b"],
      p["whh_f"], p["whh_b"], p["bhh_f"], p["bhh_b"])


# ----------------------------------------------------------------------------
# Fused fc head: [Linear -> ReLU] x2 -> Linear (eval-mode BN pre-folded)
# ----------------------------------------------------------------------------
def fc_head_kernel(hf_ref, hb_ref, w1f_ref, w1b_ref, b1_ref,
                   w2_ref, b2_ref, w3_ref, b3_ref, o_ref):
    h = (jnp.dot(hf_ref[...], w1f_ref[...], preferred_element_type=jnp.float32)
         + jnp.dot(hb_ref[...], w1b_ref[...], preferred_element_type=jnp.float32)
         + b1_ref[...])
    h = jnp.maximum(h, 0.0)
    h = jnp.dot(h, w2_ref[...], preferred_element_type=jnp.float32) + b2_ref[...]
    h = jnp.maximum(h, 0.0)
    o_ref[...] = jnp.dot(h, w3_ref[...],
                         preferred_element_type=jnp.float32) + b3_ref[...]


def pallas_fc_head(h_f, h_b, fc):
    Bp = h_f.shape[0]
    H = fc["w2_t"].shape[0]
    return pl.pallas_call(
        fc_head_kernel,
        out_shape=jax.ShapeDtypeStruct((Bp, H), jnp.float32),
    )(h_f, h_b, fc["w1f_t"], fc["w1b_t"], fc["b1"],
      fc["w2_t"], fc["b2"], fc["w3_t"], fc["b3"])


# ----------------------------------------------------------------------------
# Forward pass (glue: tiny int padding/transpose only; no large HBM copies)
# ----------------------------------------------------------------------------
@jax.jit
def language_model_forward(params, seq, length):
    B, T = seq.shape
    Bp = _round_up(max(B, SUBLANE), SUBLANE)
    tb = min(TIME_BLOCK, _round_up(T, SUBLANE))
    Tp = _round_up(T, tb)

    # time-major padded token ids; trailing singleton keeps the lane dim = 1 so
    # the in-kernel one-hot broadcast is a cheap lane-broadcast.
    seq_tm = jnp.zeros((Tp, Bp, 1), jnp.int32).at[:T, :B, 0].set(seq.T)
    lens = jnp.zeros((Bp, 1), jnp.int32).at[:B, 0].set(length.astype(jnp.int32))

    x0f, x0b = gru_layer0(seq_tm, lens, params["gru0"], tb=tb)
    hff, hfb = gru_layer1(x0f, x0b, lens, params["gru1"], tb=tb)
    z = pallas_fc_head(hff, hfb, params["fc"])
    return z[:B]


# ----------------------------------------------------------------------------
# Deterministic parameter init (PyTorch shapes), with offline folding of
# one_hot/embedding into the layer-0 gate tables, eval-mode BatchNorm into the
# fc-head Linears, and zero-padding of the hidden dim to Hp (multiple of 128)
# so all gate slices / stores are lane-aligned.
# ----------------------------------------------------------------------------
def init_params(key, n_char, hid_dim, n_layer=2):
    if n_layer != 2:
        raise NotImplementedError("kernel implements the module default n_layer=2")
    H = hid_dim
    Hp = _round_up(H, LANE)
    keys = iter(jax.random.split(key, 64))

    def nrm(shape, scale=0.1):
        return (scale * jax.random.normal(next(keys), shape)).astype(jnp.float32)

    def pad_gate_cols(w):
        # (..., 3H) -> (..., 3Hp): zero-pad each (r|z|n) gate slice to Hp lanes
        pads = [(0, 0)] * (w.ndim - 1) + [(0, Hp - H)]
        return jnp.concatenate(
            [jnp.pad(w[..., i * H:(i + 1) * H], pads) for i in range(3)], axis=-1)

    def pad_rows(w, rows):
        return jnp.pad(w, ((0, rows - w.shape[0]), (0, 0)))

    embed_w = nrm((H, n_char))            # nn.Linear(n_char, H, bias=False).weight
    embed_wt = embed_w.T                  # (n_char, H): one_hot(c) @ W^T == W^T[c]

    def gru_dir(in_dim):
        return (nrm((3 * H, in_dim)), nrm((3 * H, H)),
                nrm((3 * H,)), nrm((3 * H,)))

    p = {"gru0": {}, "gru1": {}, "fc": {}}

    for tag in ("f", "b"):                                       # ---- layer 0
        w_ih, w_hh, b_ih, b_hh = gru_dir(H)
        tab = embed_wt @ w_ih.T + b_ih[None, :]                  # exact fold
        p["gru0"]["tab_" + tag] = pad_gate_cols(tab)             # (n_char, 3Hp)
        p["gru0"]["whh_" + tag] = pad_rows(pad_gate_cols(w_hh.T), Hp)
        p["gru0"]["bhh_" + tag] = pad_gate_cols(b_hh[None, :])

    for tag in ("f", "b"):                                       # ---- layer 1
        w_ih, w_hh, b_ih, b_hh = gru_dir(2 * H)
        wih_t = pad_gate_cols(w_ih.T)                            # (2H, 3Hp)
        wih_p = jnp.zeros((2 * Hp, 3 * Hp), jnp.float32)
        wih_p = wih_p.at[:H].set(wih_t[:H]).at[Hp:Hp + H].set(wih_t[H:])
        p["gru1"]["wih_" + tag] = wih_p                          # (2Hp, 3Hp)
        p["gru1"]["bih_" + tag] = pad_gate_cols(b_ih[None, :])
        p["gru1"]["whh_" + tag] = pad_rows(pad_gate_cols(w_hh.T), Hp)
        p["gru1"]["bhh_" + tag] = pad_gate_cols(b_hh[None, :])

    eps = 1e-5

    def bn_fold(w_t, b, feats, affine=True):
        mu = nrm((feats,))
        var = jax.random.uniform(next(keys), (feats,), minval=0.5,
                                 maxval=1.5).astype(jnp.float32)
        if affine:
            gamma = 1.0 + nrm((feats,))
            beta = nrm((feats,))
        else:
            gamma = jnp.ones((feats,), jnp.float32)
            beta = jnp.zeros((feats,), jnp.float32)
        scale = gamma / jnp.sqrt(var + eps)
        shift = beta - mu * scale
        return w_t * scale[None, :], (b * scale + shift).reshape(1, feats)

    fc = p["fc"]
    w1_t, fc["b1"] = bn_fold(nrm((H, 2 * H)).T, nrm((H,)), H)    # (2H, H)
    fc["w1f_t"] = jnp.zeros((Hp, H), jnp.float32).at[:H].set(w1_t[:H])
    fc["w1b_t"] = jnp.zeros((Hp, H), jnp.float32).at[:H].set(w1_t[H:])
    fc["w2_t"], fc["b2"] = bn_fold(nrm((H, H)).T, nrm((H,)), H)
    fc["w3_t"], fc["b3"] = bn_fold(nrm((H, H)).T, nrm((H,)), H, affine=False)
    return p


# ----------------------------------------------------------------------------
if __name__ == "__main__":
    N_CHAR = 16
    HID_DIM = 32
    B, T = 2, 8

    root = jax.random.PRNGKey(0)
    k_param, k_seq = jax.random.split(root)

    params = init_params(k_param, N_CHAR, HID_DIM, n_layer=2)
    seq = jax.random.randint(k_seq, (B, T), 0, N_CHAR, dtype=jnp.int32)
    length = jnp.array([T, 5], dtype=jnp.int32)   # per-sequence valid lengths

    z = language_model_forward(params, seq, length)
    jax.block_until_ready(z)
    assert z.shape == (B, HID_DIM) and z.dtype == jnp.float32
    print("KERNEL_OK")
</pallas_src>

<mosaic_0001>
module attributes {stable_mosaic.version = 11 : i64} {
  func.func @fc_head_kernel(%arg0: memref<8x128xf32, #tpu.memory_space<vmem>>, %arg1: memref<8x128xf32, #tpu.memory_space<vmem>>, %arg2: memref<128x32xf32, #tpu.memory_space<vmem>>, %arg3: memref<128x32xf32, #tpu.memory_space<vmem>>, %arg4: memref<1x32xf32, #tpu.memory_space<vmem>>, %arg5: memref<32x32xf32, #tpu.memory_space<vmem>>, %arg6: memref<1x32xf32, #tpu.memory_space<vmem>>, %arg7: memref<32x32xf32, #tpu.memory_space<vmem>>, %arg8: memref<1x32xf32, #tpu.memory_space<vmem>>, %arg9: memref<8x32xf32, #tpu.memory_space<vmem>>) attributes {dimension_semantics = [], scalar_prefetch = 0 : i64, scratch_operands = 0 : i64, tpu.core_type = #tpu.core_type<tc>} {
    %c0 = arith.constant 0 : index
    %c0_0 = arith.constant 0 : index
    %0 = vector.load %arg0[%c0, %c0_0] : memref<8x128xf32, #tpu.memory_space<vmem>>, vector<8x128xf32>
    %c0_1 = arith.constant 0 : index
    %c0_2 = arith.constant 0 : index
    %1 = vector.load %arg2[%c0_1, %c0_2] : memref<128x32xf32, #tpu.memory_space<vmem>>, vector<128x32xf32>
    %cst = arith.constant dense<0.000000e+00> : vector<8x32xf32>
    %2 = tpu.matmul %0, %1, %cst {dimension_numbers = #tpu.dot_dimension_numbers<[1], [0], [0], [1], [0, 0, 1, 1], [], []>} : vector<8x128xf32>, vector<128x32xf32>, vector<8x32xf32> -> vector<8x32xf32>
    %c0_3 = arith.constant 0 : index
    %c0_4 = arith.constant 0 : index
    %3 = vector.load %arg1[%c0_3, %c0_4] : memref<8x128xf32, #tpu.memory_space<vmem>>, vector<8x128xf32>
    %c0_5 = arith.constant 0 : index
    %c0_6 = arith.constant 0 : index
    %4 = vector.load %arg3[%c0_5, %c0_6] : memref<128x32xf32, #tpu.memory_space<vmem>>, vector<128x32xf32>
    %cst_7 = arith.constant dense<0.000000e+00> : vector<8x32xf32>
    %5 = tpu.matmul %3, %4, %cst_7 {dimension_numbers = #tpu.dot_dimension_numbers<[1], [0], [0], [1], [0, 0, 1, 1], [], []>} : vector<8x128xf32>, vector<128x32xf32>, vector<8x32xf32> -> vector<8x32xf32>
    %6 = arith.addf %2, %5 : vector<8x32xf32>
    %c0_8 = arith.constant 0 : index
    %c0_9 = arith.constant 0 : index
    %7 = vector.load %arg4[%c0_8, %c0_9] : memref<1x32xf32, #tpu.memory_space<vmem>>, vector<1x32xf32>
    %8 = vector.broadcast %7 : vector<1x32xf32> to vector<8x32xf32>
    %9 = arith.addf %6, %8 : vector<8x32xf32>
    %cst_10 = arith.constant 0.000000e+00 : f32
    %10 = vector.broadcast %cst_10 : f32 to vector<8x32xf32>
    %11 = arith.maximumf %9, %10 : vector<8x32xf32>
    %c0_11 = arith.constant 0 : index
    %c0_12 = arith.constant 0 : index
    %12 = vector.load %arg5[%c0_11, %c0_12] : memref<32x32xf32, #tpu.memory_space<vmem>>, vector<32x32xf32>
    %cst_13 = arith.constant dense<0.000000e+00> : vector<8x32xf32>
    %13 = tpu.matmul %11, %12, %cst_13 {dimension_numbers = #tpu.dot_dimension_numbers<[1], [0], [0], [1], [0, 0, 1, 1], [], []>} : vector<8x32xf32>, vector<32x32xf32>, vector<8x32xf32> -> vector<8x32xf32>
    %c0_14 = arith.constant 0 : index
    %c0_15 = arith.constant 0 : index
    %14 = vector.load %arg6[%c0_14, %c0_15] : memref<1x32xf32, #tpu.memory_space<vmem>>, vector<1x32xf32>
    %15 = vector.broadcast %14 : vector<1x32xf32> to vector<8x32xf32>
    %16 = arith.addf %13, %15 : vector<8x32xf32>
    %cst_16 = arith.constant 0.000000e+00 : f32
    %17 = vector.broadcast %cst_16 : f32 to vector<8x32xf32>
    %18 = arith.maximumf %16, %17 : vector<8x32xf32>
    %c0_17 = arith.constant 0 : index
    %c0_18 = arith.constant 0 : index
    %19 = vector.load %arg7[%c0_17, %c0_18] : memref<32x32xf32, #tpu.memory_space<vmem>>, vector<32x32xf32>
    %cst_19 = arith.constant dense<0.000000e+00> : vector<8x32xf32>
    %20 = tpu.matmul %18, %19, %cst_19 {dimension_numbers = #tpu.dot_dimension_numbers<[1], [0], [0], [1], [0, 0, 1, 1], [], []>} : vector<8x32xf32>, vector<32x32xf32>, vector<8x32xf32> -> vector<8x32xf32>
    %c0_20 = arith.constant 0 : index
    %c0_21 = arith.constant 0 : index
    %21 = vector.load %arg8[%c0_20, %c0_21] : memref<1x32xf32, #tpu.memory_space<vmem>>, vector<1x32xf32>
    %22 = vector.broadcast %21 : vector<1x32xf32> to vector<8x32xf32>
    %23 = arith.addf %20, %22 : vector<8x32xf32>
    %c0_22 = arith.constant 0 : index
    %c0_23 = arith.constant 0 : index
    %24 = vector.load %arg9[%c0_22, %c0_23] : memref<8x32xf32, #tpu.memory_space<vmem>>, vector<8x32xf32>
    tpu.vector_store %arg9[%c0_22, %c0_23], %23 {strides = array<i32>} : memref<8x32xf32, #tpu.memory_space<vmem>>, vector<8x32xf32>,
    return
  }
}

module attributes {stable_mosaic.version = 11 : i64} {
  func.func @gru_layer1_kernel(%arg0: i32, %arg1: memref<8x1xi32, #tpu.memory_space<vmem>>, %arg2: memref<8x8x128xf32, #tpu.memory_space<vmem>>, %arg3: memref<8x8x128xf32, #tpu.memory_space<vmem>>, %arg4: memref<8x8x128xf32, #tpu.memory_space<vmem>>, %arg5: memref<8x8x128xf32, #tpu.memory_space<vmem>>, %arg6: memref<256x384xf32, #tpu.memory_space<vmem>>, %arg7: memref<256x384xf32, #tpu.memory_space<vmem>>, %arg8: memref<1x384xf32, #tpu.memory_space<vmem>>, %arg9: memref<1x384xf32, #tpu.memory_space<vmem>>, %arg10: memref<128x384xf32, #tpu.memory_space<vmem>>, %arg11: memref<128x384xf32, #tpu.memory_space<vmem>>, %arg12: memref<1x384xf32, #tpu.memory_space<vmem>>, %arg13: memref<1x384xf32, #tpu.memory_space<vmem>>, %arg14: memref<8x128xf32, #tpu.memory_space<vmem>>, %arg15: memref<8x128xf32, #tpu.memory_space<vmem>>, %arg16: memref<8x128xf32, #tpu.memory_space<vmem>>, %arg17: memref<8x128xf32, #tpu.memory_space<vmem>>) attributes {dimension_semantics = [#tpu.dimension_semantics<arbitrary>], iteration_bounds = array<i64: 1>, scalar_prefetch = 0 : i64, scratch_operands = 2 : i64, tpu.core_type = #tpu.core_type<tc>, window_params = [{pipeline_mode = #tpu.pipeline_mode<synchronous>, transform_indices = @transform_0, window_bounds = array<i64: 8, 1>}, {transform_indices = @transform_1, window_bounds = array<i64: 8, 8, 128>}, {transform_indices = @transform_2, window_bounds = array<i64: 8, 8, 128>}, {transform_indices = @transform_3, window_bounds = array<i64: 8, 8, 128>}, {transform_indices = @transform_4, window_bounds = array<i64: 8, 8, 128>}, {pipeline_mode = #tpu.pipeline_mode<synchronous>, transform_indices = @transform_5, window_bounds = array<i64: 256, 384>}, {pipeline_mode = #tpu.pipeline_mode<synchronous>, transform_indices = @transform_6, window_bounds = array<i64: 256, 384>}, {pipeline_mode = #tpu.pipeline_mode<synchronous>, transform_indices = @transform_7, window_bounds = array<i64: 1, 384>}, {pipeline_mode = #tpu.pipeline_mode<synchronous>, transform_indices = @transform_8, window_bounds = array<i64: 1, 384>}, {pipeline_mode = #tpu.pipeline_mode<synchronous>, transform_indices = @transform_9, window_bounds = array<i64: 128, 384>}, {pipeline_mode = #tpu.pipeline_mode<synchronous>, transform_indices = @transform_10, window_bounds = array<i64: 128, 384>}, {pipeline_mode = #tpu.pipeline_mode<synchronous>, transform_indices = @transform_11, window_bounds = array<i64: 1, 384>}, {pipeline_mode = #tpu.pipeline_mode<synchronous>, transform_indices = @transform_12, window_bounds = array<i64: 1, 384>}, {pipeline_mode = #tpu.pipeline_mode<synchronous>, transform_indices = @transform_13, window_bounds = array<i64: 8, 128>}, {pipeline_mode = #tpu.pipeline_mode<synchronous>, transform_indices = @transform_14, window_bounds = array<i64: 8, 128>}]} {
    %c0_i32 = arith.constant 0 : i32
    %0 = arith.cmpi eq, %arg0, %c0_i32 : i32
    %1 = arith.extui %0 : i1 to i32
    %c0_i32_0 = arith.constant 0 : i32
    %2 = arith.cmpi ne, %1, %c0_i32_0 : i32
    scf.if %2 {
      %cst_120 = arith.constant 0.000000e+00 : f32
      %607 = vector.broadcast %cst_120 : f32 to vector<8x128xf32>
      %c0_121 = arith.constant 0 : index
      %c0_122 = arith.constant 0 : index
      %608 = vector.load %arg16[%c0_121, %c0_122] : memref<8x128xf32, #tpu.memory_space<vmem>>, vector<8x128xf32>
      tpu.vector_store %arg16[%c0_121, %c0_122], %607 {strides = array<i32>} : memref<8x128xf32, #tpu.memory_space<vmem>>, vector<8x128xf32>,
      %cst_123 = arith.constant 0.000000e+00 : f32
      %609 = vector.broadcast %cst_123 : f32 to vector<8x128xf32>
      %c0_124 = arith.constant 0 : index
      %c0_125 = arith.constant 0 : index
      %610 = vector.load %arg17[%c0_124, %c0_125] : memref<8x128xf32, #tpu.memory_space<vmem>>, vector<8x128xf32>
      tpu.vector_store %arg17[%c0_124, %c0_125], %609 {strides = array<i32>} : memref<8x128xf32, #tpu.memory_space<vmem>>, vector<8x128xf32>,
    } else {
    }
    %c0 = arith.constant 0 : index
    %c0_1 = arith.constant 0 : index
    %3 = vector.load %arg1[%c0, %c0_1] : memref<8x1xi32, #tpu.memory_space<vmem>>, vector<8x1xi32>
    %4 = vector.shape_cast %3 : vector<8x1xi32> to vector<8x1xi32>
    %5 = vector.broadcast %4 : vector<8x1xi32> to vector<8x128xi32>
    %c0_2 = arith.constant 0 : index
    %c0_3 = arith.constant 0 : index
    %6 = vector.load %arg6[%c0_2, %c0_3] : memref<256x384xf32, #tpu.memory_space<vmem>>, vector<256x384xf32>
    %c0_4 = arith.constant 0 : index
    %c0_5 = arith.constant 0 : index
    %7 = vector.load %arg7[%c0_4, %c0_5] : memref<256x384xf32, #tpu.memory_space<vmem>>, vector<256x384xf32>
    %c0_6 = arith.constant 0 : index
    %c0_7 = arith.constant 0 : index
    %c0_8 = arith.constant 0 : index
    %8 = vector.load %arg2[%c0_6, %c0_7, %c0_8] : memref<8x8x128xf32, #tpu.memory_space<vmem>>, vector<8x8x128xf32>
    %9 = vector.shape_cast %8 : vector<8x8x128xf32> to vector<64x128xf32>
    %10 = vector.extract_strided_slice %6 {offsets = [0, 0], sizes = [128, 384], strides = [1, 1]} : vector<256x384xf32> to vector<128x384xf32>
    %cst = arith.constant dense<0.000000e+00> : vector<64x384xf32>
    %11 = tpu.matmul %9, %10, %cst {dimension_numbers = #tpu.dot_dimension_numbers<[1], [0], [0], [1], [0, 0, 1, 1], [], []>} : vector<64x128xf32>, vector<128x384xf32>, vector<64x384xf32> -> vector<64x384xf32>
    %c0_9 = arith.constant 0 : index
    %c0_10 = arith.constant 0 : index
    %c0_11 = arith.constant 0 : index
    %12 = vector.load %arg3[%c0_9, %c0_10, %c0_11] : memref<8x8x128xf32, #tpu.memory_space<vmem>>, vector<8x8x128xf32>
    %13 = vector.shape_cast %12 : vector<8x8x128xf32> to vector<64x128xf32>
    %14 = vector.extract_strided_slice %6 {offsets = [128, 0], sizes = [128, 384], strides = [1, 1]} : vector<256x384xf32> to vector<128x384xf32>
    %cst_12 = arith.constant dense<0.000000e+00> : vector<64x384xf32>
    %15 = tpu.matmul %13, %14, %cst_12 {dimension_numbers = #tpu.dot_dimension_numbers<[1], [0], [0], [1], [0, 0, 1, 1], [], []>} : vector<64x128xf32>, vector<128x384xf32>, vector<64x384xf32> -> vector<64x384xf32>
    %16 = arith.addf %11, %15 : vector<64x384xf32>
    %c0_13 = arith.constant 0 : index
    %c0_14 = arith.constant 0 : index
    %17 = vector.load %arg8[%c0_13, %c0_14] : memref<1x384xf32, #tpu.memory_space<vmem>>, vector<1x384xf32>
    %18 = vector.broadcast %17 : vector<1x384xf32> to vector<64x384xf32>
    %19 = arith.addf %16, %18 : vector<64x384xf32>
    %20 = vector.shape_cast %19 : vector<64x384xf32> to vector<8x8x384xf32>
    %c0_15 = arith.constant 0 : index
    %c0_16 = arith.constant 0 : index
    %c0_17 = arith.constant 0 : index
    %21 = vector.load %arg4[%c0_15, %c0_16, %c0_17] : memref<8x8x128xf32, #tpu.memory_space<vmem>>, vector<8x8x128xf32>
    %22 = vector.shape_cast %21 : vector<8x8x128xf32> to vector<64x128xf32>
    %23 = vector.extract_strided_slice %7 {offsets = [0, 0], sizes = [128, 384], strides = [1, 1]} : vector<256x384xf32> to vector<128x384xf32>
    %cst_18 = arith.constant dense<0.000000e+00> : vector<64x384xf32>
    %24 = tpu.matmul %22, %23, %cst_18 {dimension_numbers = #tpu.dot_dimension_numbers<[1], [0], [0], [1], [0, 0, 1, 1], [], []>} : vector<64x128xf32>, vector<128x384xf32>, vector<64x384xf32> -> vector<64x384xf32>
    %c0_19 = arith.constant 0 : index
    %c0_20 = arith.constant 0 : index
    %c0_21 = arith.constant 0 : index
    %25 = vector.load %arg5[%c0_19, %c0_20, %c0_21] : memref<8x8x128xf32, #tpu.memory_space<vmem>>, vector<8x8x128xf32>
    %26 = vector.shape_cast %25 : vector<8x8x128xf32> to vector<64x128xf32>
    %27 = vector.extract_strided_slice %7 {offsets = [128, 0], sizes = [128, 384], strides = [1, 1]} : vector<256x384xf32> to vector<128x384xf32>
    %cst_22 = arith.constant dense<0.000000e+00> : vector<64x384xf32>
    %28 = tpu.matmul %26, %27, %cst_22 {dimension_numbers = #tpu.dot_dimension_numbers<[1], [0], [0], [1], [0, 0, 1, 1], [], []>} : vector<64x128xf32>, vector<128x384xf32>, vector<64x384xf32> -> vector<64x384xf32>
    %29 = arith.addf %24, %28 : vector<64x384xf32>
    %c0_23 = arith.constant 0 : index
    %c0_24 = arith.constant 0 : index
    %30 = vector.load %arg9[%c0_23, %c0_24] : memref<1x384xf32, #tpu.memory_space<vmem>>, vector<1x384xf32>
    %31 = vector.broadcast %30 : vector<1x384xf32> to vector<64x384xf32>
    %32 = arith.addf %29, %31 : vector<64x384xf32>
    %33 = vector.shape_cast %32 : vector<64x384xf32> to vector<8x8x384xf32>
    %c8_i32 = arith.constant 8 : i32
    %34 = arith.muli %arg0, %c8_i32 : i32
    %c0_i32_25 = arith.constant 0 : i32
    %35 = arith.subi %c0_i32_25, %arg0 : i32
    %c8_i32_26 = arith.constant 8 : i32
    %36 = arith.muli %35, %c8_i32_26 : i32
    %c0_27 = arith.constant 0 : index
    %c0_28 = arith.constant 0 : index
    %37 = vector.load %arg10[%c0_27, %c0_28] : memref<128x384xf32, #tpu.memory_space<vmem>>, vector<128x384xf32>
    %c0_29 = arith.constant 0 : index
    %c0_30 = arith.constant 0 : index
    %38 = vector.load %arg12[%c0_29, %c0_30] : memref<1x384xf32, #tpu.memory_space<vmem>>, vector<1x384xf32>
    %c0_31 = arith.constant 0 : index
    %c0_32 = arith.constant 0 : index
    %39 = vector.load %arg11[%c0_31, %c0_32] : memref<128x384xf32, #tpu.memory_space<vmem>>, vector<128x384xf32>
    %c0_33 = arith.constant 0 : index
    %c0_34 = arith.constant 0 : index
    %40 = vector.load %arg13[%c0_33, %c0_34] : memref<1x384xf32, #tpu.memory_space<vmem>>, vector<1x384xf32>
    %c0_35 = arith.constant 0 : index
    %c0_36 = arith.constant 0 : index
    %41 = vector.load %arg16[%c0_35, %c0_36] : memref<8x128xf32, #tpu.memory_space<vmem>>, vector<8x128xf32>
    %c0_37 = arith.constant 0 : index
    %c0_38 = arith.constant 0 : index
    %42 = vector.load %arg17[%c0_37, %c0_38] : memref<8x128xf32, #tpu.memory_space<vmem>>, vector<8x128xf32>
    %43 = vector.extract_strided_slice %20 {offsets = [0, 0, 0], sizes = [1, 8, 384], strides = [1, 1, 1]} : vector<8x8x384xf32> to vector<1x8x384xf32>
    %44 = vector.shape_cast %43 : vector<1x8x384xf32> to vector<8x384xf32>
    %cst_39 = arith.constant dense<0.000000e+00> : vector<8x384xf32>
    %45 = tpu.matmul %41, %37, %cst_39 {dimension_numbers = #tpu.dot_dimension_numbers<[1], [0], [0], [1], [0, 0, 1, 1], [], []>} : vector<8x128xf32>, vector<128x384xf32>, vector<8x384xf32> -> vector<8x384xf32>
    %46 = vector.broadcast %38 : vector<1x384xf32> to vector<8x384xf32>
    %47 = arith.addf %45, %46 : vector<8x384xf32>
    %48 = vector.extract_strided_slice %44 {offsets = [0, 0], sizes = [8, 128], strides = [1, 1]} : vector<8x384xf32> to vector<8x128xf32>
    %49 = vector.extract_strided_slice %47 {offsets = [0, 0], sizes = [8, 128], strides = [1, 1]} : vector<8x384xf32> to vector<8x128xf32>
    %50 = arith.addf %48, %49 : vector<8x128xf32>
    %51 = arith.negf %50 : vector<8x128xf32>
    %52 = math.exp %51 : vector<8x128xf32>
    %cst_40 = arith.constant 1.000000e+00 : f32
    %53 = vector.broadcast %cst_40 : f32 to vector<8x128xf32>
    %54 = arith.addf %53, %52 : vector<8x128xf32>
    %55 = arith.divf %53, %54 : vector<8x128xf32>
    %56 = vector.extract_strided_slice %44 {offsets = [0, 128], sizes = [8, 128], strides = [1, 1]} : vector<8x384xf32> to vector<8x128xf32>
    %57 = vector.extract_strided_slice %47 {offsets = [0, 128], sizes = [8, 128], strides = [1, 1]} : vector<8x384xf32> to vector<8x128xf32>
    %58 = arith.addf %56, %57 : vector<8x128xf32>
    %59 = arith.negf %58 : vector<8x128xf32>
    %60 = math.exp %59 : vector<8x128xf32>
    %cst_41 = arith.constant 1.000000e+00 : f32
    %61 = vector.broadcast %cst_41 : f32 to vector<8x128xf32>
    %62 = arith.addf %61, %60 : vector<8x128xf32>
    %63 = arith.divf %61, %62 : vector<8x128xf32>
    %64 = vector.extract_strided_slice %44 {offsets = [0, 256], sizes = [8, 128], strides = [1, 1]} : vector<8x384xf32> to vector<8x128xf32>
    %65 = vector.extract_strided_slice %47 {offsets = [0, 256], sizes = [8, 128], strides = [1, 1]} : vector<8x384xf32> to vector<8x128xf32>
    %66 = arith.mulf %55, %65 : vector<8x128xf32>
    %67 = arith.addf %64, %66 : vector<8x128xf32>
    %68 = math.tanh %67 : vector<8x128xf32>
    %cst_42 = arith.constant 1.000000e+00 : f32
    %69 = vector.broadcast %cst_42 : f32 to vector<8x128xf32>
    %70 = arith.subf %69, %63 : vector<8x128xf32>
    %71 = arith.mulf %70, %68 : vector<8x128xf32>
    %72 = arith.mulf %63, %41 : vector<8x128xf32>
    %73 = arith.addf %71, %72 : vector<8x128xf32>
    %c0_i32_43 = arith.constant 0 : i32
    %74 = arith.addi %34, %c0_i32_43 : i32
    %75 = vector.broadcast %74 : i32 to vector<8x128xi32>
    %76 = arith.cmpi slt, %75, %5 : vector<8x128xi32>
    %77 = arith.select %76, %73, %41 : vector<8x128xi1>, vector<8x128xf32>
    %78 = vector.extract_strided_slice %33 {offsets = [7, 0, 0], sizes = [1, 8, 384], strides = [1, 1, 1]} : vector<8x8x384xf32> to vector<1x8x384xf32>
    %79 = vector.shape_cast %78 : vector<1x8x384xf32> to vector<8x384xf32>
    %cst_44 = arith.constant dense<0.000000e+00> : vector<8x384xf32>
    %80 = tpu.matmul %42, %39, %cst_44 {dimension_numbers = #tpu.dot_dimension_numbers<[1], [0], [0], [1], [0, 0, 1, 1], [], []>} : vector<8x128xf32>, vector<128x384xf32>, vector<8x384xf32> -> vector<8x384xf32>
    %81 = vector.broadcast %40 : vector<1x384xf32> to vector<8x384xf32>
    %82 = arith.addf %80, %81 : vector<8x384xf32>
    %83 = vector.extract_strided_slice %79 {offsets = [0, 0], sizes = [8, 128], strides = [1, 1]} : vector<8x384xf32> to vector<8x128xf32>
    %84 = vector.extract_strided_slice %82 {offsets = [0, 0], sizes = [8, 128], strides = [1, 1]} : vector<8x384xf32> to vector<8x128xf32>
    %85 = arith.addf %83, %84 : vector<8x128xf32>
    %86 = arith.negf %85 : vector<8x128xf32>
    %87 = math.exp %86 : vector<8x128xf32>
    %cst_45 = arith.constant 1.000000e+00 : f32
    %88 = vector.broadcast %cst_45 : f32 to vector<8x128xf32>
    %89 = arith.addf %88, %87 : vector<8x128xf32>
    %90 = arith.divf %88, %89 : vector<8x128xf32>
    %91 = vector.extract_strided_slice %79 {offsets = [0, 128], sizes = [8, 128], strides = [1, 1]} : vector<8x384xf32> to vector<8x128xf32>
    %92 = vector.extract_strided_slice %82 {offsets = [0, 128], sizes = [8, 128], strides = [1, 1]} : vector<8x384xf32> to vector<8x128xf32>
    %93 = arith.addf %91, %92 : vector<8x128xf32>
    %94 = arith.negf %93 : vector<8x128xf32>
    %95 = math.exp %94 : vector<8x128xf32>
    %cst_46 = arith.constant 1.000000e+00 : f32
    %96 = vector.broadcast %cst_46 : f32 to vector<8x128xf32>
    %97 = arith.addf %96, %95 : vector<8x128xf32>
    %98 = arith.divf %96, %97 : vector<8x128xf32>
    %99 = vector.extract_strided_slice %79 {offsets = [0, 256], sizes = [8, 128], strides = [1, 1]} : vector<8x384xf32> to vector<8x128xf32>
    %100 = vector.extract_strided_slice %82 {offsets = [0, 256], sizes = [8, 128], strides = [1, 1]} : vector<8x384xf32> to vector<8x128xf32>
    %101 = arith.mulf %90, %100 : vector<8x128xf32>
    %102 = arith.addf %99, %101 : vector<8x128xf32>
    %103 = math.tanh %102 : vector<8x128xf32>
    %cst_47 = arith.constant 1.000000e+00 : f32
    %104 = vector.broadcast %cst_47 : f32 to vector<8x128xf32>
    %105 = arith.subf %104, %98 : vector<8x128xf32>
    %106 = arith.mulf %105, %103 : vector<8x128xf32>
    %107 = arith.mulf %98, %42 : vector<8x128xf32>
    %108 = arith.addf %106, %107 : vector<8x128xf32>
    %c7_i32 = arith.constant 7 : i32
    %109 = arith.addi %36, %c7_i32 : i32
    %110 = vector.broadcast %109 : i32 to vector<8x128xi32>
    %111 = arith.cmpi slt, %110, %5 : vector<8x128xi32>
    %112 = arith.select %111, %108, %42 : vector<8x128xi1>, vector<8x128xf32>
    %113 = vector.extract_strided_slice %20 {offsets = [1, 0, 0], sizes = [1, 8, 384], strides = [1, 1, 1]} : vector<8x8x384xf32> to vector<1x8x384xf32>
    %114 = vector.shape_cast %113 : vector<1x8x384xf32> to vector<8x384xf32>
    %cst_48 = arith.constant dense<0.000000e+00> : vector<8x384xf32>
    %115 = tpu.matmul %77, %37, %cst_48 {dimension_numbers = #tpu.dot_dimension_numbers<[1], [0], [0], [1], [0, 0, 1, 1], [], []>} : vector<8x128xf32>, vector<128x384xf32>, vector<8x384xf32> -> vector<8x384xf32>
    %116 = vector.broadcast %38 : vector<1x384xf32> to vector<8x384xf32>
    %117 = arith.addf %115, %116 : vector<8x384xf32>
    %118 = vector.extract_strided_slice %114 {offsets = [0, 0], sizes = [8, 128], strides = [1, 1]} : vector<8x384xf32> to vector<8x128xf32>
    %119 = vector.extract_strided_slice %117 {offsets = [0, 0], sizes = [8, 128], strides = [1, 1]} : vector<8x384xf32> to vector<8x128xf32>
    %120 = arith.addf %118, %119 : vector<8x128xf32>
    %121 = arith.negf %120 : vector<8x128xf32>
    %122 = math.exp %121 : vector<8x128xf32>
    %cst_49 = arith.constant 1.000000e+00 : f32
    %123 = vector.broadcast %cst_49 : f32 to vector<8x128xf32>
    %124 = arith.addf %123, %122 : vector<8x128xf32>
    %125 = arith.divf %123, %124 : vector<8x128xf32>
    %126 = vector.extract_strided_slice %114 {offsets = [0, 128], sizes = [8, 128], strides = [1, 1]} : vector<8x384xf32> to vector<8x128xf32>
    %127 = vector.extract_strided_slice %117 {offsets = [0, 128], sizes = [8, 128], strides = [1, 1]} : vector<8x384xf32> to vector<8x128xf32>
    %128 = arith.addf %126, %127 : vector<8x128xf32>
    %129 = arith.negf %128 : vector<8x128xf32>
    %130 = math.exp %129 : vector<8x128xf32>
    %cst_50 = arith.constant 1.000000e+00 : f32
    %131 = vector.broadcast %cst_50 : f32 to vector<8x128xf32>
    %132 = arith.addf %131, %130 : vector<8x128xf32>
    %133 = arith.divf %131, %132 : vector<8x128xf32>
    %134 = vector.extract_strided_slice %114 {offsets = [0, 256], sizes = [8, 128], strides = [1, 1]} : vector<8x384xf32> to vector<8x128xf32>
    %135 = vector.extract_strided_slice %117 {offsets = [0, 256], sizes = [8, 128], strides = [1, 1]} : vector<8x384xf32> to vector<8x128xf32>
    %136 = arith.mulf %125, %135 : vector<8x128xf32>
    %137 = arith.addf %134, %136 : vector<8x128xf32>
    %138 = math.tanh %137 : vector<8x128xf32>
    %cst_51 = arith.constant 1.000000e+00 : f32
    %139 = vector.broadcast %cst_51 : f32 to vector<8x128xf32>
    %140 = arith.subf %139, %133 : vector<8x128xf32>
    %141 = arith.mulf %140, %138 : vector<8x128xf32>
    %142 = arith.mulf %133, %77 : vector<8x128xf32>
    %143 = arith.addf %141, %142 : vector<8x128xf32>
    %c1_i32 = arith.constant 1 : i32
    %144 = arith.addi %34, %c1_i32 : i32
    %145 = vector.broadcast %144 : i32 to vector<8x128xi32>
    %146 = arith.cmpi slt, %145, %5 : vector<8x128xi32>
    %147 = arith.select %146, %143, %77 : vector<8x128xi1>, vector<8x128xf32>
    %148 = vector.extract_strided_slice %33 {offsets = [6, 0, 0], sizes = [1, 8, 384], strides = [1, 1, 1]} : vector<8x8x384xf32> to vector<1x8x384xf32>
    %149 = vector.shape_cast %148 : vector<1x8x384xf32> to vector<8x384xf32>
    %cst_52 = arith.constant dense<0.000000e+00> : vector<8x384xf32>
    %150 = tpu.matmul %112, %39, %cst_52 {dimension_numbers = #tpu.dot_dimension_numbers<[1], [0], [0], [1], [0, 0, 1, 1], [], []>} : vector<8x128xf32>, vector<128x384xf32>, vector<8x384xf32> -> vector<8x384xf32>
    %151 = vector.broadcast %40 : vector<1x384xf32> to vector<8x384xf32>
    %152 = arith.addf %150, %151 : vector<8x384xf32>
    %153 = vector.extract_strided_slice %149 {offsets = [0, 0], sizes = [8, 128], strides = [1, 1]} : vector<8x384xf32> to vector<8x128xf32>
    %154 = vector.extract_strided_slice %152 {offsets = [0, 0], sizes = [8, 128], strides = [1, 1]} : vector<8x384xf32> to vector<8x128xf32>
    %155 = arith.addf %153, %154 : vector<8x128xf32>
    %156 = arith.negf %155 : vector<8x128xf32>
    %157 = math.exp %156 : vector<8x128xf32>
    %cst_53 = arith.constant 1.000000e+00 : f32
    %158 = vector.broadcast %cst_53 : f32 to vector<8x128xf32>
    %159 = arith.addf %158, %157 : vector<8x128xf32>
    %160 = arith.divf %158, %159 : vector<8x128xf32>
    %161 = vector.extract_strided_slice %149 {offsets = [0, 128], sizes = [8, 128], strides = [1, 1]} : vector<8x384xf32> to vector<8x128xf32>
    %162 = vector.extract_strided_slice %152 {offsets = [0, 128], sizes = [8, 128], strides = [1, 1]} : vector<8x384xf32> to vector<8x128xf32>
    %163 = arith.addf %161, %162 : vector<8x128xf32>
    %164 = arith.negf %163 : vector<8x128xf32>
    %165 = math.exp %164 : vector<8x128xf32>
    %cst_54 = arith.constant 1.000000e+00 : f32
    %166 = vector.broadcast %cst_54 : f32 to vector<8x128xf32>
    %167 = arith.addf %166, %165 : vector<8x128xf32>
    %168 = arith.divf %166, %167 : vector<8x128xf32>
    %169 = vector.extract_strided_slice %149 {offsets = [0, 256], sizes = [8, 128], strides = [1, 1]} : vector<8x384xf32> to vector<8x128xf32>
    %170 = vector.extract_strided_slice %152 {offsets = [0, 256], sizes = [8, 128], strides = [1, 1]} : vector<8x384xf32> to vector<8x128xf32>
    %171 = arith.mulf %160, %170 : vector<8x128xf32>
    %172 = arith.addf %169, %171 : vector<8x128xf32>
    %173 = math.tanh %172 : vector<8x128xf32>
    %cst_55 = arith.constant 1.000000e+00 : f32
    %174 = vector.broadcast %cst_55 : f32 to vector<8x128xf32>
    %175 = arith.subf %174, %168 : vector<8x128xf32>
    %176 = arith.mulf %175, %173 : vector<8x128xf32>
    %177 = arith.mulf %168, %112 : vector<8x128xf32>
    %178 = arith.addf %176, %177 : vector<8x128xf32>
    %c6_i32 = arith.constant 6 : i32
    %179 = arith.addi %36, %c6_i32 : i32
    %180 = vector.broadcast %179 : i32 to vector<8x128xi32>
    %181 = arith.cmpi slt, %180, %5 : vector<8x128xi32>
    %182 = arith.select %181, %178, %112 : vector<8x128xi1>, vector<8x128xf32>
    %183 = vector.extract_strided_slice %20 {offsets = [2, 0, 0], sizes = [1, 8, 384], strides = [1, 1, 1]} : vector<8x8x384xf32> to vector<1x8x384xf32>
    %184 = vector.shape_cast %183 : vector<1x8x384xf32> to vector<8x384xf32>
    %cst_56 = arith.constant dense<0.000000e+00> : vector<8x384xf32>
    %185 = tpu.matmul %147, %37, %cst_56 {dimension_numbers = #tpu.dot_dimension_numbers<[1], [0], [0], [1], [0, 0, 1, 1], [], []>} : vector<8x128xf32>, vector<128x384xf32>, vector<8x384xf32> -> vector<8x384xf32>
    %186 = vector.broadcast %38 : vector<1x384xf32> to vector<8x384xf32>
    %187 = arith.addf %185, %186 : vector<8x384xf32>
    %188 = vector.extract_strided_slice %184 {offsets = [0, 0], sizes = [8, 128], strides = [1, 1]} : vector<8x384xf32> to vector<8x128xf32>
    %189 = vector.extract_strided_slice %187 {offsets = [0, 0], sizes = [8, 128], strides = [1, 1]} : vector<8x384xf32> to vector<8x128xf32>
    %190 = arith.addf %188, %189 : vector<8x128xf32>
    %191 = arith.negf %190 : vector<8x128xf32>
    %192 = math.exp %191 : vector<8x128xf32>
    %cst_57 = arith.constant 1.000000e+00 : f32
    %193 = vector.broadcast %cst_57 : f32 to vector<8x128xf32>
    %194 = arith.addf %193, %192 : vector<8x128xf32>
    %195 = arith.divf %193, %194 : vector<8x128xf32>
    %196 = vector.extract_strided_slice %184 {offsets = [0, 128], sizes = [8, 128], strides = [1, 1]} : vector<8x384xf32> to vector<8x128xf32>
    %197 = vector.extract_strided_slice %187 {offsets = [0, 128], sizes = [8, 128], strides = [1, 1]} : vector<8x384xf32> to vector<8x128xf32>
    %198 = arith.addf %196, %197 : vector<8x128xf32>
    %199 = arith.negf %198 : vector<8x128xf32>
    %200 = math.exp %199 : vector<8x128xf32>
    %cst_58 = arith.constant 1.000000e+00 : f32
    %201 = vector.broadcast %cst_58 : f32 to vector<8x128xf32>
    %202 = arith.addf %201, %200 : vector<8x128xf32>
    %203 = arith.divf %201, %202 : vector<8x128xf32>
    %204 = vector.extract_strided_slice %184 {offsets = [0, 256], sizes = [8, 128], strides = [1, 1]} : vector<8x384xf32> to vector<8x128xf32>
    %205 = vector.extract_strided_slice %187 {offsets = [0, 256], sizes = [8, 128], strides = [1, 1]} : vector<8x384xf32> to vector<8x128xf32>
    %206 = arith.mulf %195, %205 : vector<8x128xf32>
    %207 = arith.addf %204, %206 : vector<8x128xf32>
    %208 = math.tanh %207 : vector<8x128xf32>
    %cst_59 = arith.constant 1.000000e+00 : f32
    %209 = vector.broadcast %cst_59 : f32 to vector<8x128xf32>
    %210 = arith.subf %209, %203 : vector<8x128xf32>
    %211 = arith.mulf %210, %208 : vector<8x128xf32>
    %212 = arith.mulf %203, %147 : vector<8x128xf32>
    %213 = arith.addf %211, %212 : vector<8x128xf32>
    %c2_i32 = arith.constant 2 : i32
    %214 = arith.addi %34, %c2_i32 : i32
    %215 = vector.broadcast %214 : i32 to vector<8x128xi32>
    %216 = arith.cmpi slt, %215, %5 : vector<8x128xi32>
    %217 = arith.select %216, %213, %147 : vector<8x128xi1>, vector<8x128xf32>
    %218 = vector.extract_strided_slice %33 {offsets = [5, 0, 0], sizes = [1, 8, 384], strides = [1, 1, 1]} : vector<8x8x384xf32> to vector<1x8x384xf32>
    %219 = vector.shape_cast %218 : vector<1x8x384xf32> to vector<8x384xf32>
    %cst_60 = arith.constant dense<0.000000e+00> : vector<8x384xf32>
    %220 = tpu.matmul %182, %39, %cst_60 {dimension_numbers = #tpu.dot_dimension_numbers<[1], [0], [0], [1], [0, 0, 1, 1], [], []>} : vector<8x128xf32>, vector<128x384xf32>, vector<8x384xf32> -> vector<8x384xf32>
    %221 = vector.broadcast %40 : vector<1x384xf32> to vector<8x384xf32>
    %222 = arith.addf %220, %221 : vector<8x384xf32>
    %223 = vector.extract_strided_slice %219 {offsets = [0, 0], sizes = [8, 128], strides = [1, 1]} : vector<8x384xf32> to vector<8x128xf32>
    %224 = vector.extract_strided_slice %222 {offsets = [0, 0], sizes = [8, 128], strides = [1, 1]} : vector<8x384xf32> to vector<8x128xf32>
    %225 = arith.addf %223, %224 : vector<8x128xf32>
    %226 = arith.negf %225 : vector<8x128xf32>
    %227 = math.exp %226 : vector<8x128xf32>
    %cst_61 = arith.constant 1.000000e+00 : f32
    %228 = vector.broadcast %cst_61 : f32 to vector<8x128xf32>
    %229 = arith.addf %228, %227 : vector<8x128xf32>
    %230 = arith.divf %228, %229 : vector<8x128xf32>
    %231 = vector.extract_strided_slice %219 {offsets = [0, 128], sizes = [8, 128], strides = [1, 1]} : vector<8x384xf32> to vector<8x128xf32>
    %232 = vector.extract_strided_slice %222 {offsets = [0, 128], sizes = [8, 128], strides = [1, 1]} : vector<8x384xf32> to vector<8x128xf32>
    %233 = arith.addf %231, %232 : vector<8x128xf32>
    %234 = arith.negf %233 : vector<8x128xf32>
    %235 = math.exp %234 : vector<8x128xf32>
    %cst_62 = arith.constant 1.000000e+00 : f32
    %236 = vector.broadcast %cst_62 : f32 to vector<8x128xf32>
    %237 = arith.addf %236, %235 : vector<8x128xf32>
    %238 = arith.divf %236, %237 : vector<8x128xf32>
    %239 = vector.extract_strided_slice %219 {offsets = [0, 256], sizes = [8, 128], strides = [1, 1]} : vector<8x384xf32> to vector<8x128xf32>
    %240 = vector.extract_strided_slice %222 {offsets = [0, 256], sizes = [8, 128], strides = [1, 1]} : vector<8x384xf32> to vector<8x128xf32>
    %241 = arith.mulf %230, %240 : vector<8x128xf32>
    %242 = arith.addf %239, %241 : vector<8x128xf32>
    %243 = math.tanh %242 : vector<8x128xf32>
    %cst_63 = arith.constant 1.000000e+00 : f32
    %244 = vector.broadcast %cst_63 : f32 to vector<8x128xf32>
    %245 = arith.subf %244, %238 : vector<8x128xf32>
    %246 = arith.mulf %245, %243 : vector<8x128xf32>
    %247 = arith.mulf %238, %182 : vector<8x128xf32>
    %248 = arith.addf %246, %247 : vector<8x128xf32>
    %c5_i32 = arith.constant 5 : i32
    %249 = arith.addi %36, %c5_i32 : i32
    %250 = vector.broadcast %249 : i32 to vector<8x128xi32>
    %251 = arith.cmpi slt, %250, %5 : vector<8x128xi32>
    %252 = arith.select %251, %248, %182 : vector<8x128xi1>, vector<8x128xf32>
    %253 = vector.extract_strided_slice %20 {offsets = [3, 0, 0], sizes = [1, 8, 384], strides = [1, 1, 1]} : vector<8x8x384xf32> to vector<1x8x384xf32>
    %254 = vector.shape_cast %253 : vector<1x8x384xf32> to vector<8x384xf32>
    %cst_64 = arith.constant dense<0.000000e+00> : vector<8x384xf32>
    %255 = tpu.matmul %217, %37, %cst_64 {dimension_numbers = #tpu.dot_dimension_numbers<[1], [0], [0], [1], [0, 0, 1, 1], [], []>} : vector<8x128xf32>, vector<128x384xf32>, vector<8x384xf32> -> vector<8x384xf32>
    %256 = vector.broadcast %38 : vector<1x384xf32> to vector<8x384xf32>
    %257 = arith.addf %255, %256 : vector<8x384xf32>
    %258 = vector.extract_strided_slice %254 {offsets = [0, 0], sizes = [8, 128], strides = [1, 1]} : vector<8x384xf32> to vector<8x128xf32>
    %259 = vector.extract_strided_slice %257 {offsets = [0, 0], sizes = [8, 128], strides = [1, 1]} : vector<8x384xf32> to vector<8x128xf32>
    %260 = arith.addf %258, %259 : vector<8x128xf32>
    %261 = arith.negf %260 : vector<8x128xf32>
    %262 = math.exp %261 : vector<8x128xf32>
    %cst_65 = arith.constant 1.000000e+00 : f32
    %263 = vector.broadcast %cst_65 : f32 to vector<8x128xf32>
    %264 = arith.addf %263, %262 : vector<8x128xf32>
    %265 = arith.divf %263, %264 : vector<8x128xf32>
    %266 = vector.extract_strided_slice %254 {offsets = [0, 128], sizes = [8, 128], strides = [1, 1]} : vector<8x384xf32> to vector<8x128xf32>
    %267 = vector.extract_strided_slice %257 {offsets = [0, 128], sizes = [8, 128], strides = [1, 1]} : vector<8x384xf32> to vector<8x128xf32>
    %268 = arith.addf %266, %267 : vector<8x128xf32>
    %269 = arith.negf %268 : vector<8x128xf32>
    %270 = math.exp %269 : vector<8x128xf32>
    %cst_66 = arith.constant 1.000000e+00 : f32
    %271 = vector.broadcast %cst_66 : f32 to vector<8x128xf32>
    %272 = arith.addf %271, %270 : vector<8x128xf32>
    %273 = arith.divf %271, %272 : vector<8x128xf32>
    %274 = vector.extract_strided_slice %254 {offsets = [0, 256], sizes = [8, 128], strides = [1, 1]} : vector<8x384xf32> to vector<8x128xf32>
    %275 = vector.extract_strided_slice %257 {offsets = [0, 256], sizes = [8, 128], strides = [1, 1]} : vector<8x384xf32> to vector<8x128xf32>
    %276 = arith.mulf %265, %275 : vector<8x128xf32>
    %277 = arith.addf %274, %276 : vector<8x128xf32>
    %278 = math.tanh %277 : vector<8x128xf32>
    %cst_67 = arith.constant 1.000000e+00 : f32
    %279 = vector.broadcast %cst_67 : f32 to vector<8x128xf32>
    %280 = arith.subf %279, %273 : vector<8x128xf32>
    %281 = arith.mulf %280, %278 : vector<8x128xf32>
    %282 = arith.mulf %273, %217 : vector<8x128xf32>
    %283 = arith.addf %281, %282 : vector<8x128xf32>
    %c3_i32 = arith.constant 3 : i32
    %284 = arith.addi %34, %c3_i32 : i32
    %285 = vector.broadcast %284 : i32 to vector<8x128xi32>
    %286 = arith.cmpi slt, %285, %5 : vector<8x128xi32>
    %287 = arith.select %286, %283, %217 : vector<8x128xi1>, vector<8x128xf32>
    %288 = vector.extract_strided_slice %33 {offsets = [4, 0, 0], sizes = [1, 8, 384], strides = [1, 1, 1]} : vector<8x8x384xf32> to vector<1x8x384xf32>
    %289 = vector.shape_cast %288 : vector<1x8x384xf32> to vector<8x384xf32>
    %cst_68 = arith.constant dense<0.000000e+00> : vector<8x384xf32>
    %290 = tpu.matmul %252, %39, %cst_68 {dimension_numbers = #tpu.dot_dimension_numbers<[1], [0], [0], [1], [0, 0, 1, 1], [], []>} : vector<8x128xf32>, vector<128x384xf32>, vector<8x384xf32> -> vector<8x384xf32>
    %291 = vector.broadcast %40 : vector<1x384xf32> to vector<8x384xf32>
    %292 = arith.addf %290, %291 : vector<8x384xf32>
    %293 = vector.extract_strided_slice %289 {offsets = [0, 0], sizes = [8, 128], strides = [1, 1]} : vector<8x384xf32> to vector<8x128xf32>
    %294 = vector.extract_strided_slice %292 {offsets = [0, 0], sizes = [8, 128], strides = [1, 1]} : vector<8x384xf32> to vector<8x128xf32>
    %295 = arith.addf %293, %294 : vector<8x128xf32>
    %296 = arith.negf %295 : vector<8x128xf32>
    %297 = math.exp %296 : vector<8x128xf32>
    %cst_69 = arith.constant 1.000000e+00 : f32
    %298 = vector.broadcast %cst_69 : f32 to vector<8x128xf32>
    %299 = arith.addf %298, %297 : vector<8x128xf32>
    %300 = arith.divf %298, %299 : vector<8x128xf32>
    %301 = vector.extract_strided_slice %289 {offsets = [0, 128], sizes = [8, 128], strides = [1, 1]} : vector<8x384xf32> to vector<8x128xf32>
    %302 = vector.extract_strided_slice %292 {offsets = [0, 128], sizes = [8, 128], strides = [1, 1]} : vector<8x384xf32> to vector<8x128xf32>
    %303 = arith.addf %301, %302 : vector<8x128xf32>
    %304 = arith.negf %303 : vector<8x128xf32>
    %305 = math.exp %304 : vector<8x128xf32>
    %cst_70 = arith.constant 1.000000e+00 : f32
    %306 = vector.broadcast %cst_70 : f32 to vector<8x128xf32>
    %307 = arith.addf %306, %305 : vector<8x128xf32>
    %308 = arith.divf %306, %307 : vector<8x128xf32>
    %309 = vector.extract_strided_slice %289 {offsets = [0, 256], sizes = [8, 128], strides = [1, 1]} : vector<8x384xf32> to vector<8x128xf32>
    %310 = vector.extract_strided_slice %292 {offsets = [0, 256], sizes = [8, 128], strides = [1, 1]} : vector<8x384xf32> to vector<8x128xf32>
    %311 = arith.mulf %300, %310 : vector<8x128xf32>
    %312 = arith.addf %309, %311 : vector<8x128xf32>
    %313 = math.tanh %312 : vector<8x128xf32>
    %cst_71 = arith.constant 1.000000e+00 : f32
    %314 = vector.broadcast %cst_71 : f32 to vector<8x128xf32>
    %315 = arith.subf %314, %308 : vector<8x128xf32>
    %316 = arith.mulf %315, %313 : vector<8x128xf32>
    %317 = arith.mulf %308, %252 : vector<8x128xf32>
    %318 = arith.addf %316, %317 : vector<8x128xf32>
    %c4_i32 = arith.constant 4 : i32
    %319 = arith.addi %36, %c4_i32 : i32
    %320 = vector.broadcast %319 : i32 to vector<8x128xi32>
    %321 = arith.cmpi slt, %320, %5 : vector<8x128xi32>
    %322 = arith.select %321, %318, %252 : vector<8x128xi1>, vector<8x128xf32>
    %323 = vector.extract_strided_slice %20 {offsets = [4, 0, 0], sizes = [1, 8, 384], strides = [1, 1, 1]} : vector<8x8x384xf32> to vector<1x8x384xf32>
    %324 = vector.shape_cast %323 : vector<1x8x384xf32> to vector<8x384xf32>
    %cst_72 = arith.constant dense<0.000000e+00> : vector<8x384xf32>
    %325 = tpu.matmul %287, %37, %cst_72 {dimension_numbers = #tpu.dot_dimension_numbers<[1], [0], [0], [1], [0, 0, 1, 1], [], []>} : vector<8x128xf32>, vector<128x384xf32>, vector<8x384xf32> -> vector<8x384xf32>
    %326 = vector.broadcast %38 : vector<1x384xf32> to vector<8x384xf32>
    %327 = arith.addf %325, %326 : vector<8x384xf32>
    %328 = vector.extract_strided_slice %324 {offsets = [0, 0], sizes = [8, 128], strides = [1, 1]} : vector<8x384xf32> to vector<8x128xf32>
    %329 = vector.extract_strided_slice %327 {offsets = [0, 0], sizes = [8, 128], strides = [1, 1]} : vector<8x384xf32> to vector<8x128xf32>
    %330 = arith.addf %328, %329 : vector<8x128xf32>
    %331 = arith.negf %330 : vector<8x128xf32>
    %332 = math.exp %331 : vector<8x128xf32>
    %cst_73 = arith.constant 1.000000e+00 : f32
    %333 = vector.broadcast %cst_73 : f32 to vector<8x128xf32>
    %334 = arith.addf %333, %332 : vector<8x128xf32>
    %335 = arith.divf %333, %334 : vector<8x128xf32>
    %336 = vector.extract_strided_slice %324 {offsets = [0, 128], sizes = [8, 128], strides = [1, 1]} : vector<8x384xf32> to vector<8x128xf32>
    %337 = vector.extract_strided_slice %327 {offsets = [0, 128], sizes = [8, 128], strides = [1, 1]} : vector<8x384xf32> to vector<8x128xf32>
    %338 = arith.addf %336, %337 : vector<8x128xf32>
    %339 = arith.negf %338 : vector<8x128xf32>
    %340 = math.exp %339 : vector<8x128xf32>
    %cst_74 = arith.constant 1.000000e+00 : f32
    %341 = vector.broadcast %cst_74 : f32 to vector<8x128xf32>
    %342 = arith.addf %341, %340 : vector<8x128xf32>
    %343 = arith.divf %341, %342 : vector<8x128xf32>
    %344 = vector.extract_strided_slice %324 {offsets = [0, 256], sizes = [8, 128], strides = [1, 1]} : vector<8x384xf32> to vector<8x128xf32>
    %345 = vector.extract_strided_slice %327 {offsets = [0, 256], sizes = [8, 128], strides = [1, 1]} : vector<8x384xf32> to vector<8x128xf32>
    %346 = arith.mulf %335, %345 : vector<8x128xf32>
    %347 = arith.addf %344, %346 : vector<8x128xf32>
    %348 = math.tanh %347 : vector<8x128xf32>
    %cst_75 = arith.constant 1.000000e+00 : f32
    %349 = vector.broadcast %cst_75 : f32 to vector<8x128xf32>
    %350 = arith.subf %349, %343 : vector<8x128xf32>
    %351 = arith.mulf %350, %348 : vector<8x128xf32>
    %352 = arith.mulf %343, %287 : vector<8x128xf32>
    %353 = arith.addf %351, %352 : vector<8x128xf32>
    %c4_i32_76 = arith.constant 4 : i32
    %354 = arith.addi %34, %c4_i32_76 : i32
    %355 = vector.broadcast %354 : i32 to vector<8x128xi32>
    %356 = arith.cmpi slt, %355, %5 : vector<8x128xi32>
    %357 = arith.select %356, %353, %287 : vector<8x128xi1>, vector<8x128xf32>
    %358 = vector.extract_strided_slice %33 {offsets = [3, 0, 0], sizes = [1, 8, 384], strides = [1, 1, 1]} : vector<8x8x384xf32> to vector<1x8x384xf32>
    %359 = vector.shape_cast %358 : vector<1x8x384xf32> to vector<8x384xf32>
    %cst_77 = arith.constant dense<0.000000e+00> : vector<8x384xf32>
    %360 = tpu.matmul %322, %39, %cst_77 {dimension_numbers = #tpu.dot_dimension_numbers<[1], [0], [0], [1], [0, 0, 1, 1], [], []>} : vector<8x128xf32>, vector<128x384xf32>, vector<8x384xf32> -> vector<8x384xf32>
    %361 = vector.broadcast %40 : vector<1x384xf32> to vector<8x384xf32>
    %362 = arith.addf %360, %361 : vector<8x384xf32>
    %363 = vector.extract_strided_slice %359 {offsets = [0, 0], sizes = [8, 128], strides = [1, 1]} : vector<8x384xf32> to vector<8x128xf32>
    %364 = vector.extract_strided_slice %362 {offsets = [0, 0], sizes = [8, 128], strides = [1, 1]} : vector<8x384xf32> to vector<8x128xf32>
    %365 = arith.addf %363, %364 : vector<8x128xf32>
    %366 = arith.negf %365 : vector<8x128xf32>
    %367 = math.exp %366 : vector<8x128xf32>
    %cst_78 = arith.constant 1.000000e+00 : f32
    %368 = vector.broadcast %cst_78 : f32 to vector<8x128xf32>
    %369 = arith.addf %368, %367 : vector<8x128xf32>
    %370 = arith.divf %368, %369 : vector<8x128xf32>
    %371 = vector.extract_strided_slice %359 {offsets = [0, 128], sizes = [8, 128], strides = [1, 1]} : vector<8x384xf32> to vector<8x128xf32>
    %372 = vector.extract_strided_slice %362 {offsets = [0, 128], sizes = [8, 128], strides = [1, 1]} : vector<8x384xf32> to vector<8x128xf32>
    %373 = arith.addf %371, %372 : vector<8x128xf32>
    %374 = arith.negf %373 : vector<8x128xf32>
    %375 = math.exp %374 : vector<8x128xf32>
    %cst_79 = arith.constant 1.000000e+00 : f32
    %376 = vector.broadcast %cst_79 : f32 to vector<8x128xf32>
    %377 = arith.addf %376, %375 : vector<8x128xf32>
    %378 = arith.divf %376, %377 : vector<8x128xf32>
    %379 = vector.extract_strided_slice %359 {offsets = [0, 256], sizes = [8, 128], strides = [1, 1]} : vector<8x384xf32> to vector<8x128xf32>
    %380 = vector.extract_strided_slice %362 {offsets = [0, 256], sizes = [8, 128], strides = [1, 1]} : vector<8x384xf32> to vector<8x128xf32>
    %381 = arith.mulf %370, %380 : vector<8x128xf32>
    %382 = arith.addf %379, %381 : vector<8x128xf32>
    %383 = math.tanh %382 : vector<8x128xf32>
    %cst_80 = arith.constant 1.000000e+00 : f32
    %384 = vector.broadcast %cst_80 : f32 to vector<8x128xf32>
    %385 = arith.subf %384, %378 : vector<8x128xf32>
    %386 = arith.mulf %385, %383 : vector<8x128xf32>
    %387 = arith.mulf %378, %322 : vector<8x128xf32>
    %388 = arith.addf %386, %387 : vector<8x128xf32>
    %c3_i32_81 = arith.constant 3 : i32
    %389 = arith.addi %36, %c3_i32_81 : i32
    %390 = vector.broadcast %389 : i32 to vector<8x128xi32>
    %391 = arith.cmpi slt, %390, %5 : vector<8x128xi32>
    %392 = arith.select %391, %388, %322 : vector<8x128xi1>, vector<8x128xf32>
    %393 = vector.extract_strided_slice %20 {offsets = [5, 0, 0], sizes = [1, 8, 384], strides = [1, 1, 1]} : vector<8x8x384xf32> to vector<1x8x384xf32>
    %394 = vector.shape_cast %393 : vector<1x8x384xf32> to vector<8x384xf32>
    %cst_82 = arith.constant dense<0.000000e+00> : vector<8x384xf32>
    %395 = tpu.matmul %357, %37, %cst_82 {dimension_numbers = #tpu.dot_dimension_numbers<[1], [0], [0], [1], [0, 0, 1, 1], [], []>} : vector<8x128xf32>, vector<128x384xf32>, vector<8x384xf32> -> vector<8x384xf32>
    %396 = vector.broadcast %38 : vector<1x384xf32> to vector<8x384xf32>
    %397 = arith.addf %395, %396 : vector<8x384xf32>
    %398 = vector.extract_strided_slice %394 {offsets = [0, 0], sizes = [8, 128], strides = [1, 1]} : vector<8x384xf32> to vector<8x128xf32>
    %399 = vector.extract_strided_slice %397 {offsets = [0, 0], sizes = [8, 128], strides = [1, 1]} : vector<8x384xf32> to vector<8x128xf32>
    %400 = arith.addf %398, %399 : vector<8x128xf32>
    %401 = arith.negf %400 : vector<8x128xf32>
    %402 = math.exp %401 : vector<8x128xf32>
    %cst_83 = arith.constant 1.000000e+00 : f32
    %403 = vector.broadcast %cst_83 : f32 to vector<8x128xf32>
    %404 = arith.addf %403, %402 : vector<8x128xf32>
    %405 = arith.divf %403, %404 : vector<8x128xf32>
    %406 = vector.extract_strided_slice %394 {offsets = [0, 128], sizes = [8, 128], strides = [1, 1]} : vector<8x384xf32> to vector<8x128xf32>
    %407 = vector.extract_strided_slice %397 {offsets = [0, 128], sizes = [8, 128], strides = [1, 1]} : vector<8x384xf32> to vector<8x128xf32>
    %408 = arith.addf %406, %407 : vector<8x128xf32>
    %409 = arith.negf %408 : vector<8x128xf32>
    %410 = math.exp %409 : vector<8x128xf32>
    %cst_84 = arith.constant 1.000000e+00 : f32
    %411 = vector.broadcast %cst_84 : f32 to vector<8x128xf32>
    %412 = arith.addf %411, %410 : vector<8x128xf32>
    %413 = arith.divf %411, %412 : vector<8x128xf32>
    %414 = vector.extract_strided_slice %394 {offsets = [0, 256], sizes = [8, 128], strides = [1, 1]} : vector<8x384xf32> to vector<8x128xf32>
    %415 = vector.extract_strided_slice %397 {offsets = [0, 256], sizes = [8, 128], strides = [1, 1]} : vector<8x384xf32> to vector<8x128xf32>
    %416 = arith.mulf %405, %415 : vector<8x128xf32>
    %417 = arith.addf %414, %416 : vector<8x128xf32>
    %418 = math.tanh %417 : vector<8x128xf32>
    %cst_85 = arith.constant 1.000000e+00 : f32
    %419 = vector.broadcast %cst_85 : f32 to vector<8x128xf32>
    %420 = arith.subf %419, %413 : vector<8x128xf32>
    %421 = arith.mulf %420, %418 : vector<8x128xf32>
    %422 = arith.mulf %413, %357 : vector<8x128xf32>
    %423 = arith.addf %421, %422 : vector<8x128xf32>
    %c5_i32_86 = arith.constant 5 : i32
    %424 = arith.addi %34, %c5_i32_86 : i32
    %425 = vector.broadcast %424 : i32 to vector<8x128xi32>
    %426 = arith.cmpi slt, %425, %5 : vector<8x128xi32>
    %427 = arith.select %426, %423, %357 : vector<8x128xi1>, vector<8x128xf32>
    %428 = vector.extract_strided_slice %33 {offsets = [2, 0, 0], sizes = [1, 8, 384], strides = [1, 1, 1]} : vector<8x8x384xf32> to vector<1x8x384xf32>
    %429 = vector.shape_cast %428 : vector<1x8x384xf32> to vector<8x384xf32>
    %cst_87 = arith.constant dense<0.000000e+00> : vector<8x384xf32>
    %430 = tpu.matmul %392, %39, %cst_87 {dimension_numbers = #tpu.dot_dimension_numbers<[1], [0], [0], [1], [0, 0, 1, 1], [], []>} : vector<8x128xf32>, vector<128x384xf32>, vector<8x384xf32> -> vector<8x384xf32>
    %431 = vector.broadcast %40 : vector<1x384xf32> to vector<8x384xf32>
    %432 = arith.addf %430, %431 : vector<8x384xf32>
    %433 = vector.extract_strided_slice %429 {offsets = [0, 0], sizes = [8, 128], strides = [1, 1]} : vector<8x384xf32> to vector<8x128xf32>
    %434 = vector.extract_strided_slice %432 {offsets = [0, 0], sizes = [8, 128], strides = [1, 1]} : vector<8x384xf32> to vector<8x128xf32>
    %435 = arith.addf %433, %434 : vector<8x128xf32>
    %436 = arith.negf %435 : vector<8x128xf32>
    %437 = math.exp %436 : vector<8x128xf32>
    %cst_88 = arith.constant 1.000000e+00 : f32
    %438 = vector.broadcast %cst_88 : f32 to vector<8x128xf32>
    %439 = arith.addf %438, %437 : vector<8x128xf32>
    %440 = arith.divf %438, %439 : vector<8x128xf32>
    %441 = vector.extract_strided_slice %429 {offsets = [0, 128], sizes = [8, 128], strides = [1, 1]} : vector<8x384xf32> to vector<8x128xf32>
    %442 = vector.extract_strided_slice %432 {offsets = [0, 128], sizes = [8, 128], strides = [1, 1]} : vector<8x384xf32> to vector<8x128xf32>
    %443 = arith.addf %441, %442 : vector<8x128xf32>
    %444 = arith.negf %443 : vector<8x128xf32>
    %445 = math.exp %444 : vector<8x128xf32>
    %cst_89 = arith.constant 1.000000e+00 : f32
    %446 = vector.broadcast %cst_89 : f32 to vector<8x128xf32>
    %447 = arith.addf %446, %445 : vector<8x128xf32>
    %448 = arith.divf %446, %447 : vector<8x128xf32>
    %449 = vector.extract_strided_slice %429 {offsets = [0, 256], sizes = [8, 128], strides = [1, 1]} : vector<8x384xf32> to vector<8x128xf32>
    %450 = vector.extract_strided_slice %432 {offsets = [0, 256], sizes = [8, 128], strides = [1, 1]} : vector<8x384xf32> to vector<8x128xf32>
    %451 = arith.mulf %440, %450 : vector<8x128xf32>
    %452 = arith.addf %449, %451 : vector<8x128xf32>
    %453 = math.tanh %452 : vector<8x128xf32>
    %cst_90 = arith.constant 1.000000e+00 : f32
    %454 = vector.broadcast %cst_90 : f32 to vector<8x128xf32>
    %455 = arith.subf %454, %448 : vector<8x128xf32>
    %456 = arith.mulf %455, %453 : vector<8x128xf32>
    %457 = arith.mulf %448, %392 : vector<8x128xf32>
    %458 = arith.addf %456, %457 : vector<8x128xf32>
    %c2_i32_91 = arith.constant 2 : i32
    %459 = arith.addi %36, %c2_i32_91 : i32
    %460 = vector.broadcast %459 : i32 to vector<8x128xi32>
    %461 = arith.cmpi slt, %460, %5 : vector<8x128xi32>
    %462 = arith.select %461, %458, %392 : vector<8x128xi1>, vector<8x128xf32>
    %463 = vector.extract_strided_slice %20 {offsets = [6, 0, 0], sizes = [1, 8, 384], strides = [1, 1, 1]} : vector<8x8x384xf32> to vector<1x8x384xf32>
    %464 = vector.shape_cast %463 : vector<1x8x384xf32> to vector<8x384xf32>
    %cst_92 = arith.constant dense<0.000000e+00> : vector<8x384xf32>
    %465 = tpu.matmul %427, %37, %cst_92 {dimension_numbers = #tpu.dot_dimension_numbers<[1], [0], [0], [1], [0, 0, 1, 1], [], []>} : vector<8x128xf32>, vector<128x384xf32>, vector<8x384xf32> -> vector<8x384xf32>
    %466 = vector.broadcast %38 : vector<1x384xf32> to vector<8x384xf32>
    %467 = arith.addf %465, %466 : vector<8x384xf32>
    %468 = vector.extract_strided_slice %464 {offsets = [0, 0], sizes = [8, 128], strides = [1, 1]} : vector<8x384xf32> to vector<8x128xf32>
    %469 = vector.extract_strided_slice %467 {offsets = [0, 0], sizes = [8, 128], strides = [1, 1]} : vector<8x384xf32> to vector<8x128xf32>
    %470 = arith.addf %468, %469 : vector<8x128xf32>
    %471 = arith.negf %470 : vector<8x128xf32>
    %472 = math.exp %471 : vector<8x128xf32>
    %cst_93 = arith.constant 1.000000e+00 : f32
    %473 = vector.broadcast %cst_93 : f32 to vector<8x128xf32>
    %474 = arith.addf %473, %472 : vector<8x128xf32>
    %475 = arith.divf %473, %474 : vector<8x128xf32>
    %476 = vector.extract_strided_slice %464 {offsets = [0, 128], sizes = [8, 128], strides = [1, 1]} : vector<8x384xf32> to vector<8x128xf32>
    %477 = vector.extract_strided_slice %467 {offsets = [0, 128], sizes = [8, 128], strides = [1, 1]} : vector<8x384xf32> to vector<8x128xf32>
    %478 = arith.addf %476, %477 : vector<8x128xf32>
    %479 = arith.negf %478 : vector<8x128xf32>
    %480 = math.exp %479 : vector<8x128xf32>
    %cst_94 = arith.constant 1.000000e+00 : f32
    %481 = vector.broadcast %cst_94 : f32 to vector<8x128xf32>
    %482 = arith.addf %481, %480 : vector<8x128xf32>
    %483 = arith.divf %481, %482 : vector<8x128xf32>
    %484 = vector.extract_strided_slice %464 {offsets = [0, 256], sizes = [8, 128], strides = [1, 1]} : vector<8x384xf32> to vector<8x128xf32>
    %485 = vector.extract_strided_slice %467 {offsets = [0, 256], sizes = [8, 128], strides = [1, 1]} : vector<8x384xf32> to vector<8x128xf32>
    %486 = arith.mulf %475, %485 : vector<8x128xf32>
    %487 = arith.addf %484, %486 : vector<8x128xf32>
    %488 = math.tanh %487 : vector<8x128xf32>
    %cst_95 = arith.constant 1.000000e+00 : f32
    %489 = vector.broadcast %cst_95 : f32 to vector<8x128xf32>
    %490 = arith.subf %489, %483 : vector<8x128xf32>
    %491 = arith.mulf %490, %488 : vector<8x128xf32>
    %492 = arith.mulf %483, %427 : vector<8x128xf32>
    %493 = arith.addf %491, %492 : vector<8x128xf32>
    %c6_i32_96 = arith.constant 6 : i32
    %494 = arith.addi %34, %c6_i32_96 : i32
    %495 = vector.broadcast %494 : i32 to vector<8x128xi32>
    %496 = arith.cmpi slt, %495, %5 : vector<8x128xi32>
    %497 = arith.select %496, %493, %427 : vector<8x128xi1>, vector<8x128xf32>
    %498 = vector.extract_strided_slice %33 {offsets = [1, 0, 0], sizes = [1, 8, 384], strides = [1, 1, 1]} : vector<8x8x384xf32> to vector<1x8x384xf32>
    %499 = vector.shape_cast %498 : vector<1x8x384xf32> to vector<8x384xf32>
    %cst_97 = arith.constant dense<0.000000e+00> : vector<8x384xf32>
    %500 = tpu.matmul %462, %39, %cst_97 {dimension_numbers = #tpu.dot_dimension_numbers<[1], [0], [0], [1], [0, 0, 1, 1], [], []>} : vector<8x128xf32>, vector<128x384xf32>, vector<8x384xf32> -> vector<8x384xf32>
    %501 = vector.broadcast %40 : vector<1x384xf32> to vector<8x384xf32>
    %502 = arith.addf %500, %501 : vector<8x384xf32>
    %503 = vector.extract_strided_slice %499 {offsets = [0, 0], sizes = [8, 128], strides = [1, 1]} : vector<8x384xf32> to vector<8x128xf32>
    %504 = vector.extract_strided_slice %502 {offsets = [0, 0], sizes = [8, 128], strides = [1, 1]} : vector<8x384xf32> to vector<8x128xf32>
    %505 = arith.addf %503, %504 : vector<8x128xf32>
    %506 = arith.negf %505 : vector<8x128xf32>
    %507 = math.exp %506 : vector<8x128xf32>
    %cst_98 = arith.constant 1.000000e+00 : f32
    %508 = vector.broadcast %cst_98 : f32 to vector<8x128xf32>
    %509 = arith.addf %508, %507 : vector<8x128xf32>
    %510 = arith.divf %508, %509 : vector<8x128xf32>
    %511 = vector.extract_strided_slice %499 {offsets = [0, 128], sizes = [8, 128], strides = [1, 1]} : vector<8x384xf32> to vector<8x128xf32>
    %512 = vector.extract_strided_slice %502 {offsets = [0, 128], sizes = [8, 128], strides = [1, 1]} : vector<8x384xf32> to vector<8x128xf32>
    %513 = arith.addf %511, %512 : vector<8x128xf32>
    %514 = arith.negf %513 : vector<8x128xf32>
    %515 = math.exp %514 : vector<8x128xf32>
    %cst_99 = arith.constant 1.000000e+00 : f32
    %516 = vector.broadcast %cst_99 : f32 to vector<8x128xf32>
    %517 = arith.addf %516, %515 : vector<8x128xf32>
    %518 = arith.divf %516, %517 : vector<8x128xf32>
    %519 = vector.extract_strided_slice %499 {offsets = [0, 256], sizes = [8, 128], strides = [1, 1]} : vector<8x384xf32> to vector<8x128xf32>
    %520 = vector.extract_strided_slice %502 {offsets = [0, 256], sizes = [8, 128], strides = [1, 1]} : vector<8x384xf32> to vector<8x128xf32>
    %521 = arith.mulf %510, %520 : vector<8x128xf32>
    %522 = arith.addf %519, %521 : vector<8x128xf32>
    %523 = math.tanh %522 : vector<8x128xf32>
    %cst_100 = arith.constant 1.000000e+00 : f32
    %524 = vector.broadcast %cst_100 : f32 to vector<8x128xf32>
    %525 = arith.subf %524, %518 : vector<8x128xf32>
    %526 = arith.mulf %525, %523 : vector<8x128xf32>
    %527 = arith.mulf %518, %462 : vector<8x128xf32>
    %528 = arith.addf %526, %527 : vector<8x128xf32>
    %c1_i32_101 = arith.constant 1 : i32
    %529 = arith.addi %36, %c1_i32_101 : i32
    %530 = vector.broadcast %529 : i32 to vector<8x128xi32>
    %531 = arith.cmpi slt, %530, %5 : vector<8x128xi32>
    %532 = arith.select %531, %528, %462 : vector<8x128xi1>, vector<8x128xf32>
    %533 = vector.extract_strided_slice %20 {offsets = [7, 0, 0], sizes = [1, 8, 384], strides = [1, 1, 1]} : vector<8x8x384xf32> to vector<1x8x384xf32>
    %534 = vector.shape_cast %533 : vector<1x8x384xf32> to vector<8x384xf32>
    %cst_102 = arith.constant dense<0.000000e+00> : vector<8x384xf32>
    %535 = tpu.matmul %497, %37, %cst_102 {dimension_numbers = #tpu.dot_dimension_numbers<[1], [0], [0], [1], [0, 0, 1, 1], [], []>} : vector<8x128xf32>, vector<128x384xf32>, vector<8x384xf32> -> vector<8x384xf32>
    %536 = vector.broadcast %38 : vector<1x384xf32> to vector<8x384xf32>
    %537 = arith.addf %535, %536 : vector<8x384xf32>
    %538 = vector.extract_strided_slice %534 {offsets = [0, 0], sizes = [8, 128], strides = [1, 1]} : vector<8x384xf32> to vector<8x128xf32>
    %539 = vector.extract_strided_slice %537 {offsets = [0, 0], sizes = [8, 128], strides = [1, 1]} : vector<8x384xf32> to vector<8x128xf32>
    %540 = arith.addf %538, %539 : vector<8x128xf32>
    %541 = arith.negf %540 : vector<8x128xf32>
    %542 = math.exp %541 : vector<8x128xf32>
    %cst_103 = arith.constant 1.000000e+00 : f32
    %543 = vector.broadcast %cst_103 : f32 to vector<8x128xf32>
    %544 = arith.addf %543, %542 : vector<8x128xf32>
    %545 = arith.divf %543, %544 : vector<8x128xf32>
    %546 = vector.extract_strided_slice %534 {offsets = [0, 128], sizes = [8, 128], strides = [1, 1]} : vector<8x384xf32> to vector<8x128xf32>
    %547 = vector.extract_strided_slice %537 {offsets = [0, 128], sizes = [8, 128], strides = [1, 1]} : vector<8x384xf32> to vector<8x128xf32>
    %548 = arith.addf %546, %547 : vector<8x128xf32>
    %549 = arith.negf %548 : vector<8x128xf32>
    %550 = math.exp %549 : vector<8x128xf32>
    %cst_104 = arith.constant 1.000000e+00 : f32
    %551 = vector.broadcast %cst_104 : f32 to vector<8x128xf32>
    %552 = arith.addf %551, %550 : vector<8x128xf32>
    %553 = arith.divf %551, %552 : vector<8x128xf32>
    %554 = vector.extract_strided_slice %534 {offsets = [0, 256], sizes = [8, 128], strides = [1, 1]} : vector<8x384xf32> to vector<8x128xf32>
    %555 = vector.extract_strided_slice %537 {offsets = [0, 256], sizes = [8, 128], strides = [1, 1]} : vector<8x384xf32> to vector<8x128xf32>
    %556 = arith.mulf %545, %555 : vector<8x128xf32>
    %557 = arith.addf %554, %556 : vector<8x128xf32>
    %558 = math.tanh %557 : vector<8x128xf32>
    %cst_105 = arith.constant 1.000000e+00 : f32
    %559 = vector.broadcast %cst_105 : f32 to vector<8x128xf32>
    %560 = arith.subf %559, %553 : vector<8x128xf32>
    %561 = arith.mulf %560, %558 : vector<8x128xf32>
    %562 = arith.mulf %553, %497 : vector<8x128xf32>
    %563 = arith.addf %561, %562 : vector<8x128xf32>
    %c7_i32_106 = arith.constant 7 : i32
    %564 = arith.addi %34, %c7_i32_106 : i32
    %565 = vector.broadcast %564 : i32 to vector<8x128xi32>
    %566 = arith.cmpi slt, %565, %5 : vector<8x128xi32>
    %567 = arith.select %566, %563, %497 : vector<8x128xi1>, vector<8x128xf32>
    %568 = vector.extract_strided_slice %33 {offsets = [0, 0, 0], sizes = [1, 8, 384], strides = [1, 1, 1]} : vector<8x8x384xf32> to vector<1x8x384xf32>
    %569 = vector.shape_cast %568 : vector<1x8x384xf32> to vector<8x384xf32>
    %cst_107 = arith.constant dense<0.000000e+00> : vector<8x384xf32>
    %570 = tpu.matmul %532, %39, %cst_107 {dimension_numbers = #tpu.dot_dimension_numbers<[1], [0], [0], [1], [0, 0, 1, 1], [], []>} : vector<8x128xf32>, vector<128x384xf32>, vector<8x384xf32> -> vector<8x384xf32>
    %571 = vector.broadcast %40 : vector<1x384xf32> to vector<8x384xf32>
    %572 = arith.addf %570, %571 : vector<8x384xf32>
    %573 = vector.extract_strided_slice %569 {offsets = [0, 0], sizes = [8, 128], strides = [1, 1]} : vector<8x384xf32> to vector<8x128xf32>
    %574 = vector.extract_strided_slice %572 {offsets = [0, 0], sizes = [8, 128], strides = [1, 1]} : vector<8x384xf32> to vector<8x128xf32>
    %575 = arith.addf %573, %574 : vector<8x128xf32>
    %576 = arith.negf %575 : vector<8x128xf32>
    %577 = math.exp %576 : vector<8x128xf32>
    %cst_108 = arith.constant 1.000000e+00 : f32
    %578 = vector.broadcast %cst_108 : f32 to vector<8x128xf32>
    %579 = arith.addf %578, %577 : vector<8x128xf32>
    %580 = arith.divf %578, %579 : vector<8x128xf32>
    %581 = vector.extract_strided_slice %569 {offsets = [0, 128], sizes = [8, 128], strides = [1, 1]} : vector<8x384xf32> to vector<8x128xf32>
    %582 = vector.extract_strided_slice %572 {offsets = [0, 128], sizes = [8, 128], strides = [1, 1]} : vector<8x384xf32> to vector<8x128xf32>
    %583 = arith.addf %581, %582 : vector<8x128xf32>
    %584 = arith.negf %583 : vector<8x128xf32>
    %585 = math.exp %584 : vector<8x128xf32>
    %cst_109 = arith.constant 1.000000e+00 : f32
    %586 = vector.broadcast %cst_109 : f32 to vector<8x128xf32>
    %587 = arith.addf %586, %585 : vector<8x128xf32>
    %588 = arith.divf %586, %587 : vector<8x128xf32>
    %589 = vector.extract_strided_slice %569 {offsets = [0, 256], sizes = [8, 128], strides = [1, 1]} : vector<8x384xf32> to vector<8x128xf32>
    %590 = vector.extract_strided_slice %572 {offsets = [0, 256], sizes = [8, 128], strides = [1, 1]} : vector<8x384xf32> to vector<8x128xf32>
    %591 = arith.mulf %580, %590 : vector<8x128xf32>
    %592 = arith.addf %589, %591 : vector<8x128xf32>
    %593 = math.tanh %592 : vector<8x128xf32>
    %cst_110 = arith.constant 1.000000e+00 : f32
    %594 = vector.broadcast %cst_110 : f32 to vector<8x128xf32>
    %595 = arith.subf %594, %588 : vector<8x128xf32>
    %596 = arith.mulf %595, %593 : vector<8x128xf32>
    %597 = arith.mulf %588, %532 : vector<8x128xf32>
    %598 = arith.addf %596, %597 : vector<8x128xf32>
    %c0_i32_111 = arith.constant 0 : i32
    %599 = arith.addi %36, %c0_i32_111 : i32
    %600 = vector.broadcast %599 : i32 to vector<8x128xi32>
    %601 = arith.cmpi slt, %600, %5 : vector<8x128xi32>
    %602 = arith.select %601, %598, %532 : vector<8x128xi1>, vector<8x128xf32>
    %c0_112 = arith.constant 0 : index
    %c0_113 = arith.constant 0 : index
    %603 = vector.load %arg16[%c0_112, %c0_113] : memref<8x128xf32, #tpu.memory_space<vmem>>, vector<8x128xf32>
    tpu.vector_store %arg16[%c0_112, %c0_113], %567 {strides = array<i32>} : memref<8x128xf32, #tpu.memory_space<vmem>>, vector<8x128xf32>,
    %c0_114 = arith.constant 0 : index
    %c0_115 = arith.constant 0 : index
    %604 = vector.load %arg17[%c0_114, %c0_115] : memref<8x128xf32, #tpu.memory_space<vmem>>, vector<8x128xf32>
    tpu.vector_store %arg17[%c0_114, %c0_115], %602 {strides = array<i32>} : memref<8x128xf32, #tpu.memory_space<vmem>>, vector<8x128xf32>,
    %c0_116 = arith.constant 0 : index
    %c0_117 = arith.constant 0 : index
    %605 = vector.load %arg14[%c0_116, %c0_117] : memref<8x128xf32, #tpu.memory_space<vmem>>, vector<8x128xf32>
    tpu.vector_store %arg14[%c0_116, %c0_117], %567 {strides = array<i32>} : memref<8x128xf32, #tpu.memory_space<vmem>>, vector<8x128xf32>,
    %c0_118 = arith.constant 0 : index
    %c0_119 = arith.constant 0 : index
    %606 = vector.load %arg15[%c0_118, %c0_119] : memref<8x128xf32, #tpu.memory_space<vmem>>, vector<8x128xf32>
    tpu.vector_store %arg15[%c0_118, %c0_119], %602 {strides = array<i32>} : memref<8x128xf32, #tpu.memory_space<vmem>>, vector<8x128xf32>,
    return
  }
  func.func @transform_0(%arg0: i32) -> (i32, i32) {
    %c0_i32 = arith.constant 0 : i32
    %c0_i32_0 = arith.constant 0 : i32
    %c0_i32_1 = arith.constant 0 : i32
    return %c0_i32, %c0_i32_0 : i32, i32
  }
  func.func @transform_1(%arg0: i32) -> (i32, i32, i32) {
    %c0_i32 = arith.constant 0 : i32
    %c0_i32_0 = arith.constant 0 : i32
    %c0_i32_1 = arith.constant 0 : i32
    return %arg0, %c0_i32, %c0_i32_0 : i32, i32, i32
  }
  func.func @transform_2(%arg0: i32) -> (i32, i32, i32) {
    %c0_i32 = arith.constant 0 : i32
    %c0_i32_0 = arith.constant 0 : i32
    %c0_i32_1 = arith.constant 0 : i32
    return %arg0, %c0_i32, %c0_i32_0 : i32, i32, i32
  }
  func.func @transform_3(%arg0: i32) -> (i32, i32, i32) {
    %c0_i32 = arith.constant 0 : i32
    %0 = arith.subi %c0_i32, %arg0 : i32
    %c0_i32_0 = arith.constant 0 : i32
    %c0_i32_1 = arith.constant 0 : i32
    %c0_i32_2 = arith.constant 0 : i32
    return %0, %c0_i32_0, %c0_i32_1 : i32, i32, i32
  }
  func.func @transform_4(%arg0: i32) -> (i32, i32, i32) {
    %c0_i32 = arith.constant 0 : i32
    %0 = arith.subi %c0_i32, %arg0 : i32
    %c0_i32_0 = arith.constant 0 : i32
    %c0_i32_1 = arith.constant 0 : i32
    %c0_i32_2 = arith.constant 0 : i32
    return %0, %c0_i32_0, %c0_i32_1 : i32, i32, i32
  }
  func.func @transform_5(%arg0: i32) -> (i32, i32) {
    %c0_i32 = arith.constant 0 : i32
    %c0_i32_0 = arith.constant 0 : i32
    %c0_i32_1 = arith.constant 0 : i32
    return %c0_i32, %c0_i32_0 : i32, i32
  }
  func.func @transform_6(%arg0: i32) -> (i32, i32) {
    %c0_i32 = arith.constant 0 : i32
    %c0_i32_0 = arith.constant 0 : i32
    %c0_i32_1 = arith.constant 0 : i32
    return %c0_i32, %c0_i32_0 : i32, i32
  }
  func.func @transform_7(%arg0: i32) -> (i32, i32) {
    %c0_i32 = arith.constant 0 : i32
    %c0_i32_0 = arith.constant 0 : i32
    %c0_i32_1 = arith.constant 0 : i32
    return %c0_i32, %c0_i32_0 : i32, i32
  }
  func.func @transform_8(%arg0: i32) -> (i32, i32) {
    %c0_i32 = arith.constant 0 : i32
    %c0_i32_0 = arith.constant 0 : i32
    %c0_i32_1 = arith.constant 0 : i32
    return %c0_i32, %c0_i32_0 : i32, i32
  }
  func.func @transform_9(%arg0: i32) -> (i32, i32) {
    %c0_i32 = arith.constant 0 : i32
    %c0_i32_0 = arith.constant 0 : i32
    %c0_i32_1 = arith.constant 0 : i32
    return %c0_i32, %c0_i32_0 : i32, i32
  }
  func.func @transform_10(%arg0: i32) -> (i32, i32) {
    %c0_i32 = arith.constant 0 : i32
    %c0_i32_0 = arith.constant 0 : i32
    %c0_i32_1 = arith.constant 0 : i32
    return %c0_i32, %c0_i32_0 : i32, i32
  }
  func.func @transform_11(%arg0: i32) -> (i32, i32) {
    %c0_i32 = arith.constant 0 : i32
    %c0_i32_0 = arith.constant 0 : i32
    %c0_i32_1 = arith.constant 0 : i32
    return %c0_i32, %c0_i32_0 : i32, i32
  }
  func.func @transform_12(%arg0: i32) -> (i32, i32) {
    %c0_i32 = arith.constant 0 : i32
    %c0_i32_0 = arith.constant 0 : i32
    %c0_i32_1 = arith.constant 0 : i32
    return %c0_i32, %c0_i32_0 : i32, i32
  }
  func.func @transform_13(%arg0: i32) -> (i32, i32) {
    %c0_i32 = arith.constant 0 : i32
    %c0_i32_0 = arith.constant 0 : i32
    %c0_i32_1 = arith.constant 0 : i32
    return %c0_i32, %c0_i32_0 : i32, i32
  }
  func.func @transform_14(%arg0: i32) -> (i32, i32) {
    %c0_i32 = arith.constant 0 : i32
    %c0_i32_0 = arith.constant 0 : i32
    %c0_i32_1 = arith.constant 0 : i32
    return %c0_i32, %c0_i32_0 : i32, i32
  }
}

module attributes {stable_mosaic.version = 11 : i64} {
  func.func @gru_layer0_kernel(%arg0: i32, %arg1: memref<8x1xi32, #tpu.memory_space<vmem>>, %arg2: memref<8x8x1xi32, #tpu.memory_space<vmem>>, %arg3: memref<8x8x1xi32, #tpu.memory_space<vmem>>, %arg4: memref<16x384xf32, #tpu.memory_space<vmem>>, %arg5: memref<16x384xf32, #tpu.memory_space<vmem>>, %arg6: memref<128x384xf32, #tpu.memory_space<vmem>>, %arg7: memref<128x384xf32, #tpu.memory_space<vmem>>, %arg8: memref<1x384xf32, #tpu.memory_space<vmem>>, %arg9: memref<1x384xf32, #tpu.memory_space<vmem>>, %arg10: memref<8x8x128xf32, #tpu.memory_space<vmem>>, %arg11: memref<8x8x128xf32, #tpu.memory_space<vmem>>, %arg12: memref<8x128xf32, #tpu.memory_space<vmem>>, %arg13: memref<8x128xf32, #tpu.memory_space<vmem>>) attributes {dimension_semantics = [#tpu.dimension_semantics<arbitrary>], iteration_bounds = array<i64: 1>, scalar_prefetch = 0 : i64, scratch_operands = 2 : i64, tpu.core_type = #tpu.core_type<tc>, window_params = [{pipeline_mode = #tpu.pipeline_mode<synchronous>, transform_indices = @transform_0, window_bounds = array<i64: 8, 1>}, {transform_indices = @transform_1, window_bounds = array<i64: 8, 8, 1>}, {transform_indices = @transform_2, window_bounds = array<i64: 8, 8, 1>}, {pipeline_mode = #tpu.pipeline_mode<synchronous>, transform_indices = @transform_3, window_bounds = array<i64: 16, 384>}, {pipeline_mode = #tpu.pipeline_mode<synchronous>, transform_indices = @transform_4, window_bounds = array<i64: 16, 384>}, {pipeline_mode = #tpu.pipeline_mode<synchronous>, transform_indices = @transform_5, window_bounds = array<i64: 128, 384>}, {pipeline_mode = #tpu.pipeline_mode<synchronous>, transform_indices = @transform_6, window_bounds = array<i64: 128, 384>}, {pipeline_mode = #tpu.pipeline_mode<synchronous>, transform_indices = @transform_7, window_bounds = array<i64: 1, 384>}, {pipeline_mode = #tpu.pipeline_mode<synchronous>, transform_indices = @transform_8, window_bounds = array<i64: 1, 384>}, {transform_indices = @transform_9, window_bounds = array<i64: 8, 8, 128>}, {transform_indices = @transform_10, window_bounds = array<i64: 8, 8, 128>}]} {
    %c0_i32 = arith.constant 0 : i32
    %0 = arith.cmpi eq, %arg0, %c0_i32 : i32
    %1 = arith.extui %0 : i1 to i32
    %c0_i32_0 = arith.constant 0 : i32
    %2 = arith.cmpi ne, %1, %c0_i32_0 : i32
    scf.if %2 {
      %cst_161 = arith.constant 0.000000e+00 : f32
      %676 = vector.broadcast %cst_161 : f32 to vector<8x128xf32>
      %c0_162 = arith.constant 0 : index
      %c0_163 = arith.constant 0 : index
      %677 = vector.load %arg12[%c0_162, %c0_163] : memref<8x128xf32, #tpu.memory_space<vmem>>, vector<8x128xf32>
      tpu.vector_store %arg12[%c0_162, %c0_163], %676 {strides = array<i32>} : memref<8x128xf32, #tpu.memory_space<vmem>>, vector<8x128xf32>,
      %cst_164 = arith.constant 0.000000e+00 : f32
      %678 = vector.broadcast %cst_164 : f32 to vector<8x128xf32>
      %c0_165 = arith.constant 0 : index
      %c0_166 = arith.constant 0 : index
      %679 = vector.load %arg13[%c0_165, %c0_166] : memref<8x128xf32, #tpu.memory_space<vmem>>, vector<8x128xf32>
      tpu.vector_store %arg13[%c0_165, %c0_166], %678 {strides = array<i32>} : memref<8x128xf32, #tpu.memory_space<vmem>>, vector<8x128xf32>,
    } else {
    }
    %c0 = arith.constant 0 : index
    %c0_1 = arith.constant 0 : index
    %3 = vector.load %arg1[%c0, %c0_1] : memref<8x1xi32, #tpu.memory_space<vmem>>, vector<8x1xi32>
    %4 = vector.shape_cast %3 : vector<8x1xi32> to vector<8x1xi32>
    %5 = vector.broadcast %4 : vector<8x1xi32> to vector<8x128xi32>
    %6 = tpu.iota {dimensions = array<i32: 2>} : vector<8x8x16xi32>
    %c0_2 = arith.constant 0 : index
    %c0_3 = arith.constant 0 : index
    %c0_4 = arith.constant 0 : index
    %7 = vector.load %arg2[%c0_2, %c0_3, %c0_4] : memref<8x8x1xi32, #tpu.memory_space<vmem>>, vector<8x8x1xi32>
    %8 = vector.broadcast %7 : vector<8x8x1xi32> to vector<8x8x16xi32>
    %9 = arith.cmpi eq, %8, %6 : vector<8x8x16xi32>
    %10 = arith.extui %9 : vector<8x8x16xi1> to vector<8x8x16xi32>
    %11 = arith.sitofp %10 : vector<8x8x16xi32> to vector<8x8x16xf32>
    %12 = vector.shape_cast %11 : vector<8x8x16xf32> to vector<64x16xf32>
    %c0_5 = arith.constant 0 : index
    %c0_6 = arith.constant 0 : index
    %c0_7 = arith.constant 0 : index
    %13 = vector.load %arg3[%c0_5, %c0_6, %c0_7] : memref<8x8x1xi32, #tpu.memory_space<vmem>>, vector<8x8x1xi32>
    %14 = vector.broadcast %13 : vector<8x8x1xi32> to vector<8x8x16xi32>
    %15 = arith.cmpi eq, %14, %6 : vector<8x8x16xi32>
    %16 = arith.extui %15 : vector<8x8x16xi1> to vector<8x8x16xi32>
    %17 = arith.sitofp %16 : vector<8x8x16xi32> to vector<8x8x16xf32>
    %18 = vector.shape_cast %17 : vector<8x8x16xf32> to vector<64x16xf32>
    %c0_8 = arith.constant 0 : index
    %c0_9 = arith.constant 0 : index
    %19 = vector.load %arg4[%c0_8, %c0_9] : memref<16x384xf32, #tpu.memory_space<vmem>>, vector<16x384xf32>
    %cst = arith.constant dense<0.000000e+00> : vector<64x384xf32>
    %20 = tpu.matmul %12, %19, %cst {dimension_numbers = #tpu.dot_dimension_numbers<[1], [0], [0], [1], [0, 0, 1, 1], [], []>} : vector<64x16xf32>, vector<16x384xf32>, vector<64x384xf32> -> vector<64x384xf32>
    %21 = vector.shape_cast %20 : vector<64x384xf32> to vector<8x8x384xf32>
    %c0_10 = arith.constant 0 : index
    %c0_11 = arith.constant 0 : index
    %22 = vector.load %arg5[%c0_10, %c0_11] : memref<16x384xf32, #tpu.memory_space<vmem>>, vector<16x384xf32>
    %cst_12 = arith.constant dense<0.000000e+00> : vector<64x384xf32>
    %23 = tpu.matmul %18, %22, %cst_12 {dimension_numbers = #tpu.dot_dimension_numbers<[1], [0], [0], [1], [0, 0, 1, 1], [], []>} : vector<64x16xf32>, vector<16x384xf32>, vector<64x384xf32> -> vector<64x384xf32>
    %24 = vector.shape_cast %23 : vector<64x384xf32> to vector<8x8x384xf32>
    %c8_i32 = arith.constant 8 : i32
    %25 = arith.muli %arg0, %c8_i32 : i32
    %c0_i32_13 = arith.constant 0 : i32
    %26 = arith.subi %c0_i32_13, %arg0 : i32
    %c8_i32_14 = arith.constant 8 : i32
    %27 = arith.muli %26, %c8_i32_14 : i32
    %c0_15 = arith.constant 0 : index
    %c0_16 = arith.constant 0 : index
    %28 = vector.load %arg6[%c0_15, %c0_16] : memref<128x384xf32, #tpu.memory_space<vmem>>, vector<128x384xf32>
    %c0_17 = arith.constant 0 : index
    %c0_18 = arith.constant 0 : index
    %29 = vector.load %arg8[%c0_17, %c0_18] : memref<1x384xf32, #tpu.memory_space<vmem>>, vector<1x384xf32>
    %c0_19 = arith.constant 0 : index
    %c0_20 = arith.constant 0 : index
    %30 = vector.load %arg7[%c0_19, %c0_20] : memref<128x384xf32, #tpu.memory_space<vmem>>, vector<128x384xf32>
    %c0_21 = arith.constant 0 : index
    %c0_22 = arith.constant 0 : index
    %31 = vector.load %arg9[%c0_21, %c0_22] : memref<1x384xf32, #tpu.memory_space<vmem>>, vector<1x384xf32>
    %c0_23 = arith.constant 0 : index
    %c0_24 = arith.constant 0 : index
    %32 = vector.load %arg12[%c0_23, %c0_24] : memref<8x128xf32, #tpu.memory_space<vmem>>, vector<8x128xf32>
    %c0_25 = arith.constant 0 : index
    %c0_26 = arith.constant 0 : index
    %33 = vector.load %arg13[%c0_25, %c0_26] : memref<8x128xf32, #tpu.memory_space<vmem>>, vector<8x128xf32>
    %34 = vector.extract_strided_slice %21 {offsets = [0, 0, 0], sizes = [1, 8, 384], strides = [1, 1, 1]} : vector<8x8x384xf32> to vector<1x8x384xf32>
    %35 = vector.shape_cast %34 : vector<1x8x384xf32> to vector<8x384xf32>
    %cst_27 = arith.constant dense<0.000000e+00> : vector<8x384xf32>
    %36 = tpu.matmul %32, %28, %cst_27 {dimension_numbers = #tpu.dot_dimension_numbers<[1], [0], [0], [1], [0, 0, 1, 1], [], []>} : vector<8x128xf32>, vector<128x384xf32>, vector<8x384xf32> -> vector<8x384xf32>
    %37 = vector.broadcast %29 : vector<1x384xf32> to vector<8x384xf32>
    %38 = arith.addf %36, %37 : vector<8x384xf32>
    %39 = vector.extract_strided_slice %35 {offsets = [0, 0], sizes = [8, 128], strides = [1, 1]} : vector<8x384xf32> to vector<8x128xf32>
    %40 = vector.extract_strided_slice %38 {offsets = [0, 0], sizes = [8, 128], strides = [1, 1]} : vector<8x384xf32> to vector<8x128xf32>
    %41 = arith.addf %39, %40 : vector<8x128xf32>
    %42 = arith.negf %41 : vector<8x128xf32>
    %43 = math.exp %42 : vector<8x128xf32>
    %cst_28 = arith.constant 1.000000e+00 : f32
    %44 = vector.broadcast %cst_28 : f32 to vector<8x128xf32>
    %45 = arith.addf %44, %43 : vector<8x128xf32>
    %46 = arith.divf %44, %45 : vector<8x128xf32>
    %47 = vector.extract_strided_slice %35 {offsets = [0, 128], sizes = [8, 128], strides = [1, 1]} : vector<8x384xf32> to vector<8x128xf32>
    %48 = vector.extract_strided_slice %38 {offsets = [0, 128], sizes = [8, 128], strides = [1, 1]} : vector<8x384xf32> to vector<8x128xf32>
    %49 = arith.addf %47, %48 : vector<8x128xf32>
    %50 = arith.negf %49 : vector<8x128xf32>
    %51 = math.exp %50 : vector<8x128xf32>
    %cst_29 = arith.constant 1.000000e+00 : f32
    %52 = vector.broadcast %cst_29 : f32 to vector<8x128xf32>
    %53 = arith.addf %52, %51 : vector<8x128xf32>
    %54 = arith.divf %52, %53 : vector<8x128xf32>
    %55 = vector.extract_strided_slice %35 {offsets = [0, 256], sizes = [8, 128], strides = [1, 1]} : vector<8x384xf32> to vector<8x128xf32>
    %56 = vector.extract_strided_slice %38 {offsets = [0, 256], sizes = [8, 128], strides = [1, 1]} : vector<8x384xf32> to vector<8x128xf32>
    %57 = arith.mulf %46, %56 : vector<8x128xf32>
    %58 = arith.addf %55, %57 : vector<8x128xf32>
    %59 = math.tanh %58 : vector<8x128xf32>
    %cst_30 = arith.constant 1.000000e+00 : f32
    %60 = vector.broadcast %cst_30 : f32 to vector<8x128xf32>
    %61 = arith.subf %60, %54 : vector<8x128xf32>
    %62 = arith.mulf %61, %59 : vector<8x128xf32>
    %63 = arith.mulf %54, %32 : vector<8x128xf32>
    %64 = arith.addf %62, %63 : vector<8x128xf32>
    %c0_i32_31 = arith.constant 0 : i32
    %65 = arith.addi %25, %c0_i32_31 : i32
    %66 = vector.broadcast %65 : i32 to vector<8x128xi32>
    %67 = arith.cmpi slt, %66, %5 : vector<8x128xi32>
    %68 = arith.select %67, %64, %32 : vector<8x128xi1>, vector<8x128xf32>
    %cst_32 = arith.constant 0.000000e+00 : f32
    %69 = vector.broadcast %cst_32 : f32 to vector<8x128xf32>
    %70 = arith.select %67, %64, %69 : vector<8x128xi1>, vector<8x128xf32>
    %c0_33 = arith.constant 0 : index
    %c0_34 = arith.constant 0 : index
    %c0_35 = arith.constant 0 : index
    %71 = vector.load %arg10[%c0_33, %c0_34, %c0_35] : memref<8x8x128xf32, #tpu.memory_space<vmem>>, vector<1x8x128xf32>
    %72 = vector.shape_cast %71 : vector<1x8x128xf32> to vector<8x128xf32>
    %73 = vector.shape_cast %70 : vector<8x128xf32> to vector<1x8x128xf32>
    tpu.vector_store %arg10[%c0_33, %c0_34, %c0_35], %73 {strides = array<i32>} : memref<8x8x128xf32, #tpu.memory_space<vmem>>, vector<1x8x128xf32>,
    %74 = vector.extract_strided_slice %24 {offsets = [7, 0, 0], sizes = [1, 8, 384], strides = [1, 1, 1]} : vector<8x8x384xf32> to vector<1x8x384xf32>
    %75 = vector.shape_cast %74 : vector<1x8x384xf32> to vector<8x384xf32>
    %cst_36 = arith.constant dense<0.000000e+00> : vector<8x384xf32>
    %76 = tpu.matmul %33, %30, %cst_36 {dimension_numbers = #tpu.dot_dimension_numbers<[1], [0], [0], [1], [0, 0, 1, 1], [], []>} : vector<8x128xf32>, vector<128x384xf32>, vector<8x384xf32> -> vector<8x384xf32>
    %77 = vector.broadcast %31 : vector<1x384xf32> to vector<8x384xf32>
    %78 = arith.addf %76, %77 : vector<8x384xf32>
    %79 = vector.extract_strided_slice %75 {offsets = [0, 0], sizes = [8, 128], strides = [1, 1]} : vector<8x384xf32> to vector<8x128xf32>
    %80 = vector.extract_strided_slice %78 {offsets = [0, 0], sizes = [8, 128], strides = [1, 1]} : vector<8x384xf32> to vector<8x128xf32>
    %81 = arith.addf %79, %80 : vector<8x128xf32>
    %82 = arith.negf %81 : vector<8x128xf32>
    %83 = math.exp %82 : vector<8x128xf32>
    %cst_37 = arith.constant 1.000000e+00 : f32
    %84 = vector.broadcast %cst_37 : f32 to vector<8x128xf32>
    %85 = arith.addf %84, %83 : vector<8x128xf32>
    %86 = arith.divf %84, %85 : vector<8x128xf32>
    %87 = vector.extract_strided_slice %75 {offsets = [0, 128], sizes = [8, 128], strides = [1, 1]} : vector<8x384xf32> to vector<8x128xf32>
    %88 = vector.extract_strided_slice %78 {offsets = [0, 128], sizes = [8, 128], strides = [1, 1]} : vector<8x384xf32> to vector<8x128xf32>
    %89 = arith.addf %87, %88 : vector<8x128xf32>
    %90 = arith.negf %89 : vector<8x128xf32>
    %91 = math.exp %90 : vector<8x128xf32>
    %cst_38 = arith.constant 1.000000e+00 : f32
    %92 = vector.broadcast %cst_38 : f32 to vector<8x128xf32>
    %93 = arith.addf %92, %91 : vector<8x128xf32>
    %94 = arith.divf %92, %93 : vector<8x128xf32>
    %95 = vector.extract_strided_slice %75 {offsets = [0, 256], sizes = [8, 128], strides = [1, 1]} : vector<8x384xf32> to vector<8x128xf32>
    %96 = vector.extract_strided_slice %78 {offsets = [0, 256], sizes = [8, 128], strides = [1, 1]} : vector<8x384xf32> to vector<8x128xf32>
    %97 = arith.mulf %86, %96 : vector<8x128xf32>
    %98 = arith.addf %95, %97 : vector<8x128xf32>
    %99 = math.tanh %98 : vector<8x128xf32>
    %cst_39 = arith.constant 1.000000e+00 : f32
    %100 = vector.broadcast %cst_39 : f32 to vector<8x128xf32>
    %101 = arith.subf %100, %94 : vector<8x128xf32>
    %102 = arith.mulf %101, %99 : vector<8x128xf32>
    %103 = arith.mulf %94, %33 : vector<8x128xf32>
    %104 = arith.addf %102, %103 : vector<8x128xf32>
    %c7_i32 = arith.constant 7 : i32
    %105 = arith.addi %27, %c7_i32 : i32
    %106 = vector.broadcast %105 : i32 to vector<8x128xi32>
    %107 = arith.cmpi slt, %106, %5 : vector<8x128xi32>
    %108 = arith.select %107, %104, %33 : vector<8x128xi1>, vector<8x128xf32>
    %cst_40 = arith.constant 0.000000e+00 : f32
    %109 = vector.broadcast %cst_40 : f32 to vector<8x128xf32>
    %110 = arith.select %107, %104, %109 : vector<8x128xi1>, vector<8x128xf32>
    %c7 = arith.constant 7 : index
    %c0_41 = arith.constant 0 : index
    %c0_42 = arith.constant 0 : index
    %111 = vector.load %arg11[%c7, %c0_41, %c0_42] : memref<8x8x128xf32, #tpu.memory_space<vmem>>, vector<1x8x128xf32>
    %112 = vector.shape_cast %111 : vector<1x8x128xf32> to vector<8x128xf32>
    %113 = vector.shape_cast %110 : vector<8x128xf32> to vector<1x8x128xf32>
    tpu.vector_store %arg11[%c7, %c0_41, %c0_42], %113 {strides = array<i32>} : memref<8x8x128xf32, #tpu.memory_space<vmem>>, vector<1x8x128xf32>,
    %114 = vector.extract_strided_slice %21 {offsets = [1, 0, 0], sizes = [1, 8, 384], strides = [1, 1, 1]} : vector<8x8x384xf32> to vector<1x8x384xf32>
    %115 = vector.shape_cast %114 : vector<1x8x384xf32> to vector<8x384xf32>
    %cst_43 = arith.constant dense<0.000000e+00> : vector<8x384xf32>
    %116 = tpu.matmul %68, %28, %cst_43 {dimension_numbers = #tpu.dot_dimension_numbers<[1], [0], [0], [1], [0, 0, 1, 1], [], []>} : vector<8x128xf32>, vector<128x384xf32>, vector<8x384xf32> -> vector<8x384xf32>
    %117 = vector.broadcast %29 : vector<1x384xf32> to vector<8x384xf32>
    %118 = arith.addf %116, %117 : vector<8x384xf32>
    %119 = vector.extract_strided_slice %115 {offsets = [0, 0], sizes = [8, 128], strides = [1, 1]} : vector<8x384xf32> to vector<8x128xf32>
    %120 = vector.extract_strided_slice %118 {offsets = [0, 0], sizes = [8, 128], strides = [1, 1]} : vector<8x384xf32> to vector<8x128xf32>
    %121 = arith.addf %119, %120 : vector<8x128xf32>
    %122 = arith.negf %121 : vector<8x128xf32>
    %123 = math.exp %122 : vector<8x128xf32>
    %cst_44 = arith.constant 1.000000e+00 : f32
    %124 = vector.broadcast %cst_44 : f32 to vector<8x128xf32>
    %125 = arith.addf %124, %123 : vector<8x128xf32>
    %126 = arith.divf %124, %125 : vector<8x128xf32>
    %127 = vector.extract_strided_slice %115 {offsets = [0, 128], sizes = [8, 128], strides = [1, 1]} : vector<8x384xf32> to vector<8x128xf32>
    %128 = vector.extract_strided_slice %118 {offsets = [0, 128], sizes = [8, 128], strides = [1, 1]} : vector<8x384xf32> to vector<8x128xf32>
    %129 = arith.addf %127, %128 : vector<8x128xf32>
    %130 = arith.negf %129 : vector<8x128xf32>
    %131 = math.exp %130 : vector<8x128xf32>
    %cst_45 = arith.constant 1.000000e+00 : f32
    %132 = vector.broadcast %cst_45 : f32 to vector<8x128xf32>
    %133 = arith.addf %132, %131 : vector<8x128xf32>
    %134 = arith.divf %132, %133 : vector<8x128xf32>
    %135 = vector.extract_strided_slice %115 {offsets = [0, 256], sizes = [8, 128], strides = [1, 1]} : vector<8x384xf32> to vector<8x128xf32>
    %136 = vector.extract_strided_slice %118 {offsets = [0, 256], sizes = [8, 128], strides = [1, 1]} : vector<8x384xf32> to vector<8x128xf32>
    %137 = arith.mulf %126, %136 : vector<8x128xf32>
    %138 = arith.addf %135, %137 : vector<8x128xf32>
    %139 = math.tanh %138 : vector<8x128xf32>
    %cst_46 = arith.constant 1.000000e+00 : f32
    %140 = vector.broadcast %cst_46 : f32 to vector<8x128xf32>
    %141 = arith.subf %140, %134 : vector<8x128xf32>
    %142 = arith.mulf %141, %139 : vector<8x128xf32>
    %143 = arith.mulf %134, %68 : vector<8x128xf32>
    %144 = arith.addf %142, %143 : vector<8x128xf32>
    %c1_i32 = arith.constant 1 : i32
    %145 = arith.addi %25, %c1_i32 : i32
    %146 = vector.broadcast %145 : i32 to vector<8x128xi32>
    %147 = arith.cmpi slt, %146, %5 : vector<8x128xi32>
    %148 = arith.select %147, %144, %68 : vector<8x128xi1>, vector<8x128xf32>
    %cst_47 = arith.constant 0.000000e+00 : f32
    %149 = vector.broadcast %cst_47 : f32 to vector<8x128xf32>
    %150 = arith.select %147, %144, %149 : vector<8x128xi1>, vector<8x128xf32>
    %c1 = arith.constant 1 : index
    %c0_48 = arith.constant 0 : index
    %c0_49 = arith.constant 0 : index
    %151 = vector.load %arg10[%c1, %c0_48, %c0_49] : memref<8x8x128xf32, #tpu.memory_space<vmem>>, vector<1x8x128xf32>
    %152 = vector.shape_cast %151 : vector<1x8x128xf32> to vector<8x128xf32>
    %153 = vector.shape_cast %150 : vector<8x128xf32> to vector<1x8x128xf32>
    tpu.vector_store %arg10[%c1, %c0_48, %c0_49], %153 {strides = array<i32>} : memref<8x8x128xf32, #tpu.memory_space<vmem>>, vector<1x8x128xf32>,
    %154 = vector.extract_strided_slice %24 {offsets = [6, 0, 0], sizes = [1, 8, 384], strides = [1, 1, 1]} : vector<8x8x384xf32> to vector<1x8x384xf32>
    %155 = vector.shape_cast %154 : vector<1x8x384xf32> to vector<8x384xf32>
    %cst_50 = arith.constant dense<0.000000e+00> : vector<8x384xf32>
    %156 = tpu.matmul %108, %30, %cst_50 {dimension_numbers = #tpu.dot_dimension_numbers<[1], [0], [0], [1], [0, 0, 1, 1], [], []>} : vector<8x128xf32>, vector<128x384xf32>, vector<8x384xf32> -> vector<8x384xf32>
    %157 = vector.broadcast %31 : vector<1x384xf32> to vector<8x384xf32>
    %158 = arith.addf %156, %157 : vector<8x384xf32>
    %159 = vector.extract_strided_slice %155 {offsets = [0, 0], sizes = [8, 128], strides = [1, 1]} : vector<8x384xf32> to vector<8x128xf32>
    %160 = vector.extract_strided_slice %158 {offsets = [0, 0], sizes = [8, 128], strides = [1, 1]} : vector<8x384xf32> to vector<8x128xf32>
    %161 = arith.addf %159, %160 : vector<8x128xf32>
    %162 = arith.negf %161 : vector<8x128xf32>
    %163 = math.exp %162 : vector<8x128xf32>
    %cst_51 = arith.constant 1.000000e+00 : f32
    %164 = vector.broadcast %cst_51 : f32 to vector<8x128xf32>
    %165 = arith.addf %164, %163 : vector<8x128xf32>
    %166 = arith.divf %164, %165 : vector<8x128xf32>
    %167 = vector.extract_strided_slice %155 {offsets = [0, 128], sizes = [8, 128], strides = [1, 1]} : vector<8x384xf32> to vector<8x128xf32>
    %168 = vector.extract_strided_slice %158 {offsets = [0, 128], sizes = [8, 128], strides = [1, 1]} : vector<8x384xf32> to vector<8x128xf32>
    %169 = arith.addf %167, %168 : vector<8x128xf32>
    %170 = arith.negf %169 : vector<8x128xf32>
    %171 = math.exp %170 : vector<8x128xf32>
    %cst_52 = arith.constant 1.000000e+00 : f32
    %172 = vector.broadcast %cst_52 : f32 to vector<8x128xf32>
    %173 = arith.addf %172, %171 : vector<8x128xf32>
    %174 = arith.divf %172, %173 : vector<8x128xf32>
    %175 = vector.extract_strided_slice %155 {offsets = [0, 256], sizes = [8, 128], strides = [1, 1]} : vector<8x384xf32> to vector<8x128xf32>
    %176 = vector.extract_strided_slice %158 {offsets = [0, 256], sizes = [8, 128], strides = [1, 1]} : vector<8x384xf32> to vector<8x128xf32>
    %177 = arith.mulf %166, %176 : vector<8x128xf32>
    %178 = arith.addf %175, %177 : vector<8x128xf32>
    %179 = math.tanh %178 : vector<8x128xf32>
    %cst_53 = arith.constant 1.000000e+00 : f32
    %180 = vector.broadcast %cst_53 : f32 to vector<8x128xf32>
    %181 = arith.subf %180, %174 : vector<8x128xf32>
    %182 = arith.mulf %181, %179 : vector<8x128xf32>
    %183 = arith.mulf %174, %108 : vector<8x128xf32>
    %184 = arith.addf %182, %183 : vector<8x128xf32>
    %c6_i32 = arith.constant 6 : i32
    %185 = arith.addi %27, %c6_i32 : i32
    %186 = vector.broadcast %185 : i32 to vector<8x128xi32>
    %187 = arith.cmpi slt, %186, %5 : vector<8x128xi32>
    %188 = arith.select %187, %184, %108 : vector<8x128xi1>, vector<8x128xf32>
    %cst_54 = arith.constant 0.000000e+00 : f32
    %189 = vector.broadcast %cst_54 : f32 to vector<8x128xf32>
    %190 = arith.select %187, %184, %189 : vector<8x128xi1>, vector<8x128xf32>
    %c6 = arith.constant 6 : index
    %c0_55 = arith.constant 0 : index
    %c0_56 = arith.constant 0 : index
    %191 = vector.load %arg11[%c6, %c0_55, %c0_56] : memref<8x8x128xf32, #tpu.memory_space<vmem>>, vector<1x8x128xf32>
    %192 = vector.shape_cast %191 : vector<1x8x128xf32> to vector<8x128xf32>
    %193 = vector.shape_cast %190 : vector<8x128xf32> to vector<1x8x128xf32>
    tpu.vector_store %arg11[%c6, %c0_55, %c0_56], %193 {strides = array<i32>} : memref<8x8x128xf32, #tpu.memory_space<vmem>>, vector<1x8x128xf32>,
    %194 = vector.extract_strided_slice %21 {offsets = [2, 0, 0], sizes = [1, 8, 384], strides = [1, 1, 1]} : vector<8x8x384xf32> to vector<1x8x384xf32>
    %195 = vector.shape_cast %194 : vector<1x8x384xf32> to vector<8x384xf32>
    %cst_57 = arith.constant dense<0.000000e+00> : vector<8x384xf32>
    %196 = tpu.matmul %148, %28, %cst_57 {dimension_numbers = #tpu.dot_dimension_numbers<[1], [0], [0], [1], [0, 0, 1, 1], [], []>} : vector<8x128xf32>, vector<128x384xf32>, vector<8x384xf32> -> vector<8x384xf32>
    %197 = vector.broadcast %29 : vector<1x384xf32> to vector<8x384xf32>
    %198 = arith.addf %196, %197 : vector<8x384xf32>
    %199 = vector.extract_strided_slice %195 {offsets = [0, 0], sizes = [8, 128], strides = [1, 1]} : vector<8x384xf32> to vector<8x128xf32>
    %200 = vector.extract_strided_slice %198 {offsets = [0, 0], sizes = [8, 128], strides = [1, 1]} : vector<8x384xf32> to vector<8x128xf32>
    %201 = arith.addf %199, %200 : vector<8x128xf32>
    %202 = arith.negf %201 : vector<8x128xf32>
    %203 = math.exp %202 : vector<8x128xf32>
    %cst_58 = arith.constant 1.000000e+00 : f32
    %204 = vector.broadcast %cst_58 : f32 to vector<8x128xf32>
    %205 = arith.addf %204, %203 : vector<8x128xf32>
    %206 = arith.divf %204, %205 : vector<8x128xf32>
    %207 = vector.extract_strided_slice %195 {offsets = [0, 128], sizes = [8, 128], strides = [1, 1]} : vector<8x384xf32> to vector<8x128xf32>
    %208 = vector.extract_strided_slice %198 {offsets = [0, 128], sizes = [8, 128], strides = [1, 1]} : vector<8x384xf32> to vector<8x128xf32>
    %209 = arith.addf %207, %208 : vector<8x128xf32>
    %210 = arith.negf %209 : vector<8x128xf32>
    %211 = math.exp %210 : vector<8x128xf32>
    %cst_59 = arith.constant 1.000000e+00 : f32
    %212 = vector.broadcast %cst_59 : f32 to vector<8x128xf32>
    %213 = arith.addf %212, %211 : vector<8x128xf32>
    %214 = arith.divf %212, %213 : vector<8x128xf32>
    %215 = vector.extract_strided_slice %195 {offsets = [0, 256], sizes = [8, 128], strides = [1, 1]} : vector<8x384xf32> to vector<8x128xf32>
    %216 = vector.extract_strided_slice %198 {offsets = [0, 256], sizes = [8, 128], strides = [1, 1]} : vector<8x384xf32> to vector<8x128xf32>
    %217 = arith.mulf %206, %216 : vector<8x128xf32>
    %218 = arith.addf %215, %217 : vector<8x128xf32>
    %219 = math.tanh %218 : vector<8x128xf32>
    %cst_60 = arith.constant 1.000000e+00 : f32
    %220 = vector.broadcast %cst_60 : f32 to vector<8x128xf32>
    %221 = arith.subf %220, %214 : vector<8x128xf32>
    %222 = arith.mulf %221, %219 : vector<8x128xf32>
    %223 = arith.mulf %214, %148 : vector<8x128xf32>
    %224 = arith.addf %222, %223 : vector<8x128xf32>
    %c2_i32 = arith.constant 2 : i32
    %225 = arith.addi %25, %c2_i32 : i32
    %226 = vector.broadcast %225 : i32 to vector<8x128xi32>
    %227 = arith.cmpi slt, %226, %5 : vector<8x128xi32>
    %228 = arith.select %227, %224, %148 : vector<8x128xi1>, vector<8x128xf32>
    %cst_61 = arith.constant 0.000000e+00 : f32
    %229 = vector.broadcast %cst_61 : f32 to vector<8x128xf32>
    %230 = arith.select %227, %224, %229 : vector<8x128xi1>, vector<8x128xf32>
    %c2 = arith.constant 2 : index
    %c0_62 = arith.constant 0 : index
    %c0_63 = arith.constant 0 : index
    %231 = vector.load %arg10[%c2, %c0_62, %c0_63] : memref<8x8x128xf32, #tpu.memory_space<vmem>>, vector<1x8x128xf32>
    %232 = vector.shape_cast %231 : vector<1x8x128xf32> to vector<8x128xf32>
    %233 = vector.shape_cast %230 : vector<8x128xf32> to vector<1x8x128xf32>
    tpu.vector_store %arg10[%c2, %c0_62, %c0_63], %233 {strides = array<i32>} : memref<8x8x128xf32, #tpu.memory_space<vmem>>, vector<1x8x128xf32>,
    %234 = vector.extract_strided_slice %24 {offsets = [5, 0, 0], sizes = [1, 8, 384], strides = [1, 1, 1]} : vector<8x8x384xf32> to vector<1x8x384xf32>
    %235 = vector.shape_cast %234 : vector<1x8x384xf32> to vector<8x384xf32>
    %cst_64 = arith.constant dense<0.000000e+00> : vector<8x384xf32>
    %236 = tpu.matmul %188, %30, %cst_64 {dimension_numbers = #tpu.dot_dimension_numbers<[1], [0], [0], [1], [0, 0, 1, 1], [], []>} : vector<8x128xf32>, vector<128x384xf32>, vector<8x384xf32> -> vector<8x384xf32>
    %237 = vector.broadcast %31 : vector<1x384xf32> to vector<8x384xf32>
    %238 = arith.addf %236, %237 : vector<8x384xf32>
    %239 = vector.extract_strided_slice %235 {offsets = [0, 0], sizes = [8, 128], strides = [1, 1]} : vector<8x384xf32> to vector<8x128xf32>
    %240 = vector.extract_strided_slice %238 {offsets = [0, 0], sizes = [8, 128], strides = [1, 1]} : vector<8x384xf32> to vector<8x128xf32>
    %241 = arith.addf %239, %240 : vector<8x128xf32>
    %242 = arith.negf %241 : vector<8x128xf32>
    %243 = math.exp %242 : vector<8x128xf32>
    %cst_65 = arith.constant 1.000000e+00 : f32
    %244 = vector.broadcast %cst_65 : f32 to vector<8x128xf32>
    %245 = arith.addf %244, %243 : vector<8x128xf32>
    %246 = arith.divf %244, %245 : vector<8x128xf32>
    %247 = vector.extract_strided_slice %235 {offsets = [0, 128], sizes = [8, 128], strides = [1, 1]} : vector<8x384xf32> to vector<8x128xf32>
    %248 = vector.extract_strided_slice %238 {offsets = [0, 128], sizes = [8, 128], strides = [1, 1]} : vector<8x384xf32> to vector<8x128xf32>
    %249 = arith.addf %247, %248 : vector<8x128xf32>
    %250 = arith.negf %249 : vector<8x128xf32>
    %251 = math.exp %250 : vector<8x128xf32>
    %cst_66 = arith.constant 1.000000e+00 : f32
    %252 = vector.broadcast %cst_66 : f32 to vector<8x128xf32>
    %253 = arith.addf %252, %251 : vector<8x128xf32>
    %254 = arith.divf %252, %253 : vector<8x128xf32>
    %255 = vector.extract_strided_slice %235 {offsets = [0, 256], sizes = [8, 128], strides = [1, 1]} : vector<8x384xf32> to vector<8x128xf32>
    %256 = vector.extract_strided_slice %238 {offsets = [0, 256], sizes = [8, 128], strides = [1, 1]} : vector<8x384xf32> to vector<8x128xf32>
    %257 = arith.mulf %246, %256 : vector<8x128xf32>
    %258 = arith.addf %255, %257 : vector<8x128xf32>
    %259 = math.tanh %258 : vector<8x128xf32>
    %cst_67 = arith.constant 1.000000e+00 : f32
    %260 = vector.broadcast %cst_67 : f32 to vector<8x128xf32>
    %261 = arith.subf %260, %254 : vector<8x128xf32>
    %262 = arith.mulf %261, %259 : vector<8x128xf32>
    %263 = arith.mulf %254, %188 : vector<8x128xf32>
    %264 = arith.addf %262, %263 : vector<8x128xf32>
    %c5_i32 = arith.constant 5 : i32
    %265 = arith.addi %27, %c5_i32 : i32
    %266 = vector.broadcast %265 : i32 to vector<8x128xi32>
    %267 = arith.cmpi slt, %266, %5 : vector<8x128xi32>
    %268 = arith.select %267, %264, %188 : vector<8x128xi1>, vector<8x128xf32>
    %cst_68 = arith.constant 0.000000e+00 : f32
    %269 = vector.broadcast %cst_68 : f32 to vector<8x128xf32>
    %270 = arith.select %267, %264, %269 : vector<8x128xi1>, vector<8x128xf32>
    %c5 = arith.constant 5 : index
    %c0_69 = arith.constant 0 : index
    %c0_70 = arith.constant 0 : index
    %271 = vector.load %arg11[%c5, %c0_69, %c0_70] : memref<8x8x128xf32, #tpu.memory_space<vmem>>, vector<1x8x128xf32>
    %272 = vector.shape_cast %271 : vector<1x8x128xf32> to vector<8x128xf32>
    %273 = vector.shape_cast %270 : vector<8x128xf32> to vector<1x8x128xf32>
    tpu.vector_store %arg11[%c5, %c0_69, %c0_70], %273 {strides = array<i32>} : memref<8x8x128xf32, #tpu.memory_space<vmem>>, vector<1x8x128xf32>,
    %274 = vector.extract_strided_slice %21 {offsets = [3, 0, 0], sizes = [1, 8, 384], strides = [1, 1, 1]} : vector<8x8x384xf32> to vector<1x8x384xf32>
    %275 = vector.shape_cast %274 : vector<1x8x384xf32> to vector<8x384xf32>
    %cst_71 = arith.constant dense<0.000000e+00> : vector<8x384xf32>
    %276 = tpu.matmul %228, %28, %cst_71 {dimension_numbers = #tpu.dot_dimension_numbers<[1], [0], [0], [1], [0, 0, 1, 1], [], []>} : vector<8x128xf32>, vector<128x384xf32>, vector<8x384xf32> -> vector<8x384xf32>
    %277 = vector.broadcast %29 : vector<1x384xf32> to vector<8x384xf32>
    %278 = arith.addf %276, %277 : vector<8x384xf32>
    %279 = vector.extract_strided_slice %275 {offsets = [0, 0], sizes = [8, 128], strides = [1, 1]} : vector<8x384xf32> to vector<8x128xf32>
    %280 = vector.extract_strided_slice %278 {offsets = [0, 0], sizes = [8, 128], strides = [1, 1]} : vector<8x384xf32> to vector<8x128xf32>
    %281 = arith.addf %279, %280 : vector<8x128xf32>
    %282 = arith.negf %281 : vector<8x128xf32>
    %283 = math.exp %282 : vector<8x128xf32>
    %cst_72 = arith.constant 1.000000e+00 : f32
    %284 = vector.broadcast %cst_72 : f32 to vector<8x128xf32>
    %285 = arith.addf %284, %283 : vector<8x128xf32>
    %286 = arith.divf %284, %285 : vector<8x128xf32>
    %287 = vector.extract_strided_slice %275 {offsets = [0, 128], sizes = [8, 128], strides = [1, 1]} : vector<8x384xf32> to vector<8x128xf32>
    %288 = vector.extract_strided_slice %278 {offsets = [0, 128], sizes = [8, 128], strides = [1, 1]} : vector<8x384xf32> to vector<8x128xf32>
    %289 = arith.addf %287, %288 : vector<8x128xf32>
    %290 = arith.negf %289 : vector<8x128xf32>
    %291 = math.exp %290 : vector<8x128xf32>
    %cst_73 = arith.constant 1.000000e+00 : f32
    %292 = vector.broadcast %cst_73 : f32 to vector<8x128xf32>
    %293 = arith.addf %292, %291 : vector<8x128xf32>
    %294 = arith.divf %292, %293 : vector<8x128xf32>
    %295 = vector.extract_strided_slice %275 {offsets = [0, 256], sizes = [8, 128], strides = [1, 1]} : vector<8x384xf32> to vector<8x128xf32>
    %296 = vector.extract_strided_slice %278 {offsets = [0, 256], sizes = [8, 128], strides = [1, 1]} : vector<8x384xf32> to vector<8x128xf32>
    %297 = arith.mulf %286, %296 : vector<8x128xf32>
    %298 = arith.addf %295, %297 : vector<8x128xf32>
    %299 = math.tanh %298 : vector<8x128xf32>
    %cst_74 = arith.constant 1.000000e+00 : f32
    %300 = vector.broadcast %cst_74 : f32 to vector<8x128xf32>
    %301 = arith.subf %300, %294 : vector<8x128xf32>
    %302 = arith.mulf %301, %299 : vector<8x128xf32>
    %303 = arith.mulf %294, %228 : vector<8x128xf32>
    %304 = arith.addf %302, %303 : vector<8x128xf32>
    %c3_i32 = arith.constant 3 : i32
    %305 = arith.addi %25, %c3_i32 : i32
    %306 = vector.broadcast %305 : i32 to vector<8x128xi32>
    %307 = arith.cmpi slt, %306, %5 : vector<8x128xi32>
    %308 = arith.select %307, %304, %228 : vector<8x128xi1>, vector<8x128xf32>
    %cst_75 = arith.constant 0.000000e+00 : f32
    %309 = vector.broadcast %cst_75 : f32 to vector<8x128xf32>
    %310 = arith.select %307, %304, %309 : vector<8x128xi1>, vector<8x128xf32>
    %c3 = arith.constant 3 : index
    %c0_76 = arith.constant 0 : index
    %c0_77 = arith.constant 0 : index
    %311 = vector.load %arg10[%c3, %c0_76, %c0_77] : memref<8x8x128xf32, #tpu.memory_space<vmem>>, vector<1x8x128xf32>
    %312 = vector.shape_cast %311 : vector<1x8x128xf32> to vector<8x128xf32>
    %313 = vector.shape_cast %310 : vector<8x128xf32> to vector<1x8x128xf32>
    tpu.vector_store %arg10[%c3, %c0_76, %c0_77], %313 {strides = array<i32>} : memref<8x8x128xf32, #tpu.memory_space<vmem>>, vector<1x8x128xf32>,
    %314 = vector.extract_strided_slice %24 {offsets = [4, 0, 0], sizes = [1, 8, 384], strides = [1, 1, 1]} : vector<8x8x384xf32> to vector<1x8x384xf32>
    %315 = vector.shape_cast %314 : vector<1x8x384xf32> to vector<8x384xf32>
    %cst_78 = arith.constant dense<0.000000e+00> : vector<8x384xf32>
    %316 = tpu.matmul %268, %30, %cst_78 {dimension_numbers = #tpu.dot_dimension_numbers<[1], [0], [0], [1], [0, 0, 1, 1], [], []>} : vector<8x128xf32>, vector<128x384xf32>, vector<8x384xf32> -> vector<8x384xf32>
    %317 = vector.broadcast %31 : vector<1x384xf32> to vector<8x384xf32>
    %318 = arith.addf %316, %317 : vector<8x384xf32>
    %319 = vector.extract_strided_slice %315 {offsets = [0, 0], sizes = [8, 128], strides = [1, 1]} : vector<8x384xf32> to vector<8x128xf32>
    %320 = vector.extract_strided_slice %318 {offsets = [0, 0], sizes = [8, 128], strides = [1, 1]} : vector<8x384xf32> to vector<8x128xf32>
    %321 = arith.addf %319, %320 : vector<8x128xf32>
    %322 = arith.negf %321 : vector<8x128xf32>
    %323 = math.exp %322 : vector<8x128xf32>
    %cst_79 = arith.constant 1.000000e+00 : f32
    %324 = vector.broadcast %cst_79 : f32 to vector<8x128xf32>
    %325 = arith.addf %324, %323 : vector<8x128xf32>
    %326 = arith.divf %324, %325 : vector<8x128xf32>
    %327 = vector.extract_strided_slice %315 {offsets = [0, 128], sizes = [8, 128], strides = [1, 1]} : vector<8x384xf32> to vector<8x128xf32>
    %328 = vector.extract_strided_slice %318 {offsets = [0, 128], sizes = [8, 128], strides = [1, 1]} : vector<8x384xf32> to vector<8x128xf32>
    %329 = arith.addf %327, %328 : vector<8x128xf32>
    %330 = arith.negf %329 : vector<8x128xf32>
    %331 = math.exp %330 : vector<8x128xf32>
    %cst_80 = arith.constant 1.000000e+00 : f32
    %332 = vector.broadcast %cst_80 : f32 to vector<8x128xf32>
    %333 = arith.addf %332, %331 : vector<8x128xf32>
    %334 = arith.divf %332, %333 : vector<8x128xf32>
    %335 = vector.extract_strided_slice %315 {offsets = [0, 256], sizes = [8, 128], strides = [1, 1]} : vector<8x384xf32> to vector<8x128xf32>
    %336 = vector.extract_strided_slice %318 {offsets = [0, 256], sizes = [8, 128], strides = [1, 1]} : vector<8x384xf32> to vector<8x128xf32>
    %337 = arith.mulf %326, %336 : vector<8x128xf32>
    %338 = arith.addf %335, %337 : vector<8x128xf32>
    %339 = math.tanh %338 : vector<8x128xf32>
    %cst_81 = arith.constant 1.000000e+00 : f32
    %340 = vector.broadcast %cst_81 : f32 to vector<8x128xf32>
    %341 = arith.subf %340, %334 : vector<8x128xf32>
    %342 = arith.mulf %341, %339 : vector<8x128xf32>
    %343 = arith.mulf %334, %268 : vector<8x128xf32>
    %344 = arith.addf %342, %343 : vector<8x128xf32>
    %c4_i32 = arith.constant 4 : i32
    %345 = arith.addi %27, %c4_i32 : i32
    %346 = vector.broadcast %345 : i32 to vector<8x128xi32>
    %347 = arith.cmpi slt, %346, %5 : vector<8x128xi32>
    %348 = arith.select %347, %344, %268 : vector<8x128xi1>, vector<8x128xf32>
    %cst_82 = arith.constant 0.000000e+00 : f32
    %349 = vector.broadcast %cst_82 : f32 to vector<8x128xf32>
    %350 = arith.select %347, %344, %349 : vector<8x128xi1>, vector<8x128xf32>
    %c4 = arith.constant 4 : index
    %c0_83 = arith.constant 0 : index
    %c0_84 = arith.constant 0 : index
    %351 = vector.load %arg11[%c4, %c0_83, %c0_84] : memref<8x8x128xf32, #tpu.memory_space<vmem>>, vector<1x8x128xf32>
    %352 = vector.shape_cast %351 : vector<1x8x128xf32> to vector<8x128xf32>
    %353 = vector.shape_cast %350 : vector<8x128xf32> to vector<1x8x128xf32>
    tpu.vector_store %arg11[%c4, %c0_83, %c0_84], %353 {strides = array<i32>} : memref<8x8x128xf32, #tpu.memory_space<vmem>>, vector<1x8x128xf32>,
    %354 = vector.extract_strided_slice %21 {offsets = [4, 0, 0], sizes = [1, 8, 384], strides = [1, 1, 1]} : vector<8x8x384xf32> to vector<1x8x384xf32>
    %355 = vector.shape_cast %354 : vector<1x8x384xf32> to vector<8x384xf32>
    %cst_85 = arith.constant dense<0.000000e+00> : vector<8x384xf32>
    %356 = tpu.matmul %308, %28, %cst_85 {dimension_numbers = #tpu.dot_dimension_numbers<[1], [0], [0], [1], [0, 0, 1, 1], [], []>} : vector<8x128xf32>, vector<128x384xf32>, vector<8x384xf32> -> vector<8x384xf32>
    %357 = vector.broadcast %29 : vector<1x384xf32> to vector<8x384xf32>
    %358 = arith.addf %356, %357 : vector<8x384xf32>
    %359 = vector.extract_strided_slice %355 {offsets = [0, 0], sizes = [8, 128], strides = [1, 1]} : vector<8x384xf32> to vector<8x128xf32>
    %360 = vector.extract_strided_slice %358 {offsets = [0, 0], sizes = [8, 128], strides = [1, 1]} : vector<8x384xf32> to vector<8x128xf32>
    %361 = arith.addf %359, %360 : vector<8x128xf32>
    %362 = arith.negf %361 : vector<8x128xf32>
    %363 = math.exp %362 : vector<8x128xf32>
    %cst_86 = arith.constant 1.000000e+00 : f32
    %364 = vector.broadcast %cst_86 : f32 to vector<8x128xf32>
    %365 = arith.addf %364, %363 : vector<8x128xf32>
    %366 = arith.divf %364, %365 : vector<8x128xf32>
    %367 = vector.extract_strided_slice %355 {offsets = [0, 128], sizes = [8, 128], strides = [1, 1]} : vector<8x384xf32> to vector<8x128xf32>
    %368 = vector.extract_strided_slice %358 {offsets = [0, 128], sizes = [8, 128], strides = [1, 1]} : vector<8x384xf32> to vector<8x128xf32>
    %369 = arith.addf %367, %368 : vector<8x128xf32>
    %370 = arith.negf %369 : vector<8x128xf32>
    %371 = math.exp %370 : vector<8x128xf32>
    %cst_87 = arith.constant 1.000000e+00 : f32
    %372 = vector.broadcast %cst_87 : f32 to vector<8x128xf32>
    %373 = arith.addf %372, %371 : vector<8x128xf32>
    %374 = arith.divf %372, %373 : vector<8x128xf32>
    %375 = vector.extract_strided_slice %355 {offsets = [0, 256], sizes = [8, 128], strides = [1, 1]} : vector<8x384xf32> to vector<8x128xf32>
    %376 = vector.extract_strided_slice %358 {offsets = [0, 256], sizes = [8, 128], strides = [1, 1]} : vector<8x384xf32> to vector<8x128xf32>
    %377 = arith.mulf %366, %376 : vector<8x128xf32>
    %378 = arith.addf %375, %377 : vector<8x128xf32>
    %379 = math.tanh %378 : vector<8x128xf32>
    %cst_88 = arith.constant 1.000000e+00 : f32
    %380 = vector.broadcast %cst_88 : f32 to vector<8x128xf32>
    %381 = arith.subf %380, %374 : vector<8x128xf32>
    %382 = arith.mulf %381, %379 : vector<8x128xf32>
    %383 = arith.mulf %374, %308 : vector<8x128xf32>
    %384 = arith.addf %382, %383 : vector<8x128xf32>
    %c4_i32_89 = arith.constant 4 : i32
    %385 = arith.addi %25, %c4_i32_89 : i32
    %386 = vector.broadcast %385 : i32 to vector<8x128xi32>
    %387 = arith.cmpi slt, %386, %5 : vector<8x128xi32>
    %388 = arith.select %387, %384, %308 : vector<8x128xi1>, vector<8x128xf32>
    %cst_90 = arith.constant 0.000000e+00 : f32
    %389 = vector.broadcast %cst_90 : f32 to vector<8x128xf32>
    %390 = arith.select %387, %384, %389 : vector<8x128xi1>, vector<8x128xf32>
    %c4_91 = arith.constant 4 : index
    %c0_92 = arith.constant 0 : index
    %c0_93 = arith.constant 0 : index
    %391 = vector.load %arg10[%c4_91, %c0_92, %c0_93] : memref<8x8x128xf32, #tpu.memory_space<vmem>>, vector<1x8x128xf32>
    %392 = vector.shape_cast %391 : vector<1x8x128xf32> to vector<8x128xf32>
    %393 = vector.shape_cast %390 : vector<8x128xf32> to vector<1x8x128xf32>
    tpu.vector_store %arg10[%c4_91, %c0_92, %c0_93], %393 {strides = array<i32>} : memref<8x8x128xf32, #tpu.memory_space<vmem>>, vector<1x8x128xf32>,
    %394 = vector.extract_strided_slice %24 {offsets = [3, 0, 0], sizes = [1, 8, 384], strides = [1, 1, 1]} : vector<8x8x384xf32> to vector<1x8x384xf32>
    %395 = vector.shape_cast %394 : vector<1x8x384xf32> to vector<8x384xf32>
    %cst_94 = arith.constant dense<0.000000e+00> : vector<8x384xf32>
    %396 = tpu.matmul %348, %30, %cst_94 {dimension_numbers = #tpu.dot_dimension_numbers<[1], [0], [0], [1], [0, 0, 1, 1], [], []>} : vector<8x128xf32>, vector<128x384xf32>, vector<8x384xf32> -> vector<8x384xf32>
    %397 = vector.broadcast %31 : vector<1x384xf32> to vector<8x384xf32>
    %398 = arith.addf %396, %397 : vector<8x384xf32>
    %399 = vector.extract_strided_slice %395 {offsets = [0, 0], sizes = [8, 128], strides = [1, 1]} : vector<8x384xf32> to vector<8x128xf32>
    %400 = vector.extract_strided_slice %398 {offsets = [0, 0], sizes = [8, 128], strides = [1, 1]} : vector<8x384xf32> to vector<8x128xf32>
    %401 = arith.addf %399, %400 : vector<8x128xf32>
    %402 = arith.negf %401 : vector<8x128xf32>
    %403 = math.exp %402 : vector<8x128xf32>
    %cst_95 = arith.constant 1.000000e+00 : f32
    %404 = vector.broadcast %cst_95 : f32 to vector<8x128xf32>
    %405 = arith.addf %404, %403 : vector<8x128xf32>
    %406 = arith.divf %404, %405 : vector<8x128xf32>
    %407 = vector.extract_strided_slice %395 {offsets = [0, 128], sizes = [8, 128], strides = [1, 1]} : vector<8x384xf32> to vector<8x128xf32>
    %408 = vector.extract_strided_slice %398 {offsets = [0, 128], sizes = [8, 128], strides = [1, 1]} : vector<8x384xf32> to vector<8x128xf32>
    %409 = arith.addf %407, %408 : vector<8x128xf32>
    %410 = arith.negf %409 : vector<8x128xf32>
    %411 = math.exp %410 : vector<8x128xf32>
    %cst_96 = arith.constant 1.000000e+00 : f32
    %412 = vector.broadcast %cst_96 : f32 to vector<8x128xf32>
    %413 = arith.addf %412, %411 : vector<8x128xf32>
    %414 = arith.divf %412, %413 : vector<8x128xf32>
    %415 = vector.extract_strided_slice %395 {offsets = [0, 256], sizes = [8, 128], strides = [1, 1]} : vector<8x384xf32> to vector<8x128xf32>
    %416 = vector.extract_strided_slice %398 {offsets = [0, 256], sizes = [8, 128], strides = [1, 1]} : vector<8x384xf32> to vector<8x128xf32>
    %417 = arith.mulf %406, %416 : vector<8x128xf32>
    %418 = arith.addf %415, %417 : vector<8x128xf32>
    %419 = math.tanh %418 : vector<8x128xf32>
    %cst_97 = arith.constant 1.000000e+00 : f32
    %420 = vector.broadcast %cst_97 : f32 to vector<8x128xf32>
    %421 = arith.subf %420, %414 : vector<8x128xf32>
    %422 = arith.mulf %421, %419 : vector<8x128xf32>
    %423 = arith.mulf %414, %348 : vector<8x128xf32>
    %424 = arith.addf %422, %423 : vector<8x128xf32>
    %c3_i32_98 = arith.constant 3 : i32
    %425 = arith.addi %27, %c3_i32_98 : i32
    %426 = vector.broadcast %425 : i32 to vector<8x128xi32>
    %427 = arith.cmpi slt, %426, %5 : vector<8x128xi32>
    %428 = arith.select %427, %424, %348 : vector<8x128xi1>, vector<8x128xf32>
    %cst_99 = arith.constant 0.000000e+00 : f32
    %429 = vector.broadcast %cst_99 : f32 to vector<8x128xf32>
    %430 = arith.select %427, %424, %429 : vector<8x128xi1>, vector<8x128xf32>
    %c3_100 = arith.constant 3 : index
    %c0_101 = arith.constant 0 : index
    %c0_102 = arith.constant 0 : index
    %431 = vector.load %arg11[%c3_100, %c0_101, %c0_102] : memref<8x8x128xf32, #tpu.memory_space<vmem>>, vector<1x8x128xf32>
    %432 = vector.shape_cast %431 : vector<1x8x128xf32> to vector<8x128xf32>
    %433 = vector.shape_cast %430 : vector<8x128xf32> to vector<1x8x128xf32>
    tpu.vector_store %arg11[%c3_100, %c0_101, %c0_102], %433 {strides = array<i32>} : memref<8x8x128xf32, #tpu.memory_space<vmem>>, vector<1x8x128xf32>,
    %434 = vector.extract_strided_slice %21 {offsets = [5, 0, 0], sizes = [1, 8, 384], strides = [1, 1, 1]} : vector<8x8x384xf32> to vector<1x8x384xf32>
    %435 = vector.shape_cast %434 : vector<1x8x384xf32> to vector<8x384xf32>
    %cst_103 = arith.constant dense<0.000000e+00> : vector<8x384xf32>
    %436 = tpu.matmul %388, %28, %cst_103 {dimension_numbers = #tpu.dot_dimension_numbers<[1], [0], [0], [1], [0, 0, 1, 1], [], []>} : vector<8x128xf32>, vector<128x384xf32>, vector<8x384xf32> -> vector<8x384xf32>
    %437 = vector.broadcast %29 : vector<1x384xf32> to vector<8x384xf32>
    %438 = arith.addf %436, %437 : vector<8x384xf32>
    %439 = vector.extract_strided_slice %435 {offsets = [0, 0], sizes = [8, 128], strides = [1, 1]} : vector<8x384xf32> to vector<8x128xf32>
    %440 = vector.extract_strided_slice %438 {offsets = [0, 0], sizes = [8, 128], strides = [1, 1]} : vector<8x384xf32> to vector<8x128xf32>
    %441 = arith.addf %439, %440 : vector<8x128xf32>
    %442 = arith.negf %441 : vector<8x128xf32>
    %443 = math.exp %442 : vector<8x128xf32>
    %cst_104 = arith.constant 1.000000e+00 : f32
    %444 = vector.broadcast %cst_104 : f32 to vector<8x128xf32>
    %445 = arith.addf %444, %443 : vector<8x128xf32>
    %446 = arith.divf %444, %445 : vector<8x128xf32>
    %447 = vector.extract_strided_slice %435 {offsets = [0, 128], sizes = [8, 128], strides = [1, 1]} : vector<8x384xf32> to vector<8x128xf32>
    %448 = vector.extract_strided_slice %438 {offsets = [0, 128], sizes = [8, 128], strides = [1, 1]} : vector<8x384xf32> to vector<8x128xf32>
    %449 = arith.addf %447, %448 : vector<8x128xf32>
    %450 = arith.negf %449 : vector<8x128xf32>
    %451 = math.exp %450 : vector<8x128xf32>
    %cst_105 = arith.constant 1.000000e+00 : f32
    %452 = vector.broadcast %cst_105 : f32 to vector<8x128xf32>
    %453 = arith.addf %452, %451 : vector<8x128xf32>
    %454 = arith.divf %452, %453 : vector<8x128xf32>
    %455 = vector.extract_strided_slice %435 {offsets = [0, 256], sizes = [8, 128], strides = [1, 1]} : vector<8x384xf32> to vector<8x128xf32>
    %456 = vector.extract_strided_slice %438 {offsets = [0, 256], sizes = [8, 128], strides = [1, 1]} : vector<8x384xf32> to vector<8x128xf32>
    %457 = arith.mulf %446, %456 : vector<8x128xf32>
    %458 = arith.addf %455, %457 : vector<8x128xf32>
    %459 = math.tanh %458 : vector<8x128xf32>
    %cst_106 = arith.constant 1.000000e+00 : f32
    %460 = vector.broadcast %cst_106 : f32 to vector<8x128xf32>
    %461 = arith.subf %460, %454 : vector<8x128xf32>
    %462 = arith.mulf %461, %459 : vector<8x128xf32>
    %463 = arith.mulf %454, %388 : vector<8x128xf32>
    %464 = arith.addf %462, %463 : vector<8x128xf32>
    %c5_i32_107 = arith.constant 5 : i32
    %465 = arith.addi %25, %c5_i32_107 : i32
    %466 = vector.broadcast %465 : i32 to vector<8x128xi32>
    %467 = arith.cmpi slt, %466, %5 : vector<8x128xi32>
    %468 = arith.select %467, %464, %388 : vector<8x128xi1>, vector<8x128xf32>
    %cst_108 = arith.constant 0.000000e+00 : f32
    %469 = vector.broadcast %cst_108 : f32 to vector<8x128xf32>
    %470 = arith.select %467, %464, %469 : vector<8x128xi1>, vector<8x128xf32>
    %c5_109 = arith.constant 5 : index
    %c0_110 = arith.constant 0 : index
    %c0_111 = arith.constant 0 : index
    %471 = vector.load %arg10[%c5_109, %c0_110, %c0_111] : memref<8x8x128xf32, #tpu.memory_space<vmem>>, vector<1x8x128xf32>
    %472 = vector.shape_cast %471 : vector<1x8x128xf32> to vector<8x128xf32>
    %473 = vector.shape_cast %470 : vector<8x128xf32> to vector<1x8x128xf32>
    tpu.vector_store %arg10[%c5_109, %c0_110, %c0_111], %473 {strides = array<i32>} : memref<8x8x128xf32, #tpu.memory_space<vmem>>, vector<1x8x128xf32>,
    %474 = vector.extract_strided_slice %24 {offsets = [2, 0, 0], sizes = [1, 8, 384], strides = [1, 1, 1]} : vector<8x8x384xf32> to vector<1x8x384xf32>
    %475 = vector.shape_cast %474 : vector<1x8x384xf32> to vector<8x384xf32>
    %cst_112 = arith.constant dense<0.000000e+00> : vector<8x384xf32>
    %476 = tpu.matmul %428, %30, %cst_112 {dimension_numbers = #tpu.dot_dimension_numbers<[1], [0], [0], [1], [0, 0, 1, 1], [], []>} : vector<8x128xf32>, vector<128x384xf32>, vector<8x384xf32> -> vector<8x384xf32>
    %477 = vector.broadcast %31 : vector<1x384xf32> to vector<8x384xf32>
    %478 = arith.addf %476, %477 : vector<8x384xf32>
    %479 = vector.extract_strided_slice %475 {offsets = [0, 0], sizes = [8, 128], strides = [1, 1]} : vector<8x384xf32> to vector<8x128xf32>
    %480 = vector.extract_strided_slice %478 {offsets = [0, 0], sizes = [8, 128], strides = [1, 1]} : vector<8x384xf32> to vector<8x128xf32>
    %481 = arith.addf %479, %480 : vector<8x128xf32>
    %482 = arith.negf %481 : vector<8x128xf32>
    %483 = math.exp %482 : vector<8x128xf32>
    %cst_113 = arith.constant 1.000000e+00 : f32
    %484 = vector.broadcast %cst_113 : f32 to vector<8x128xf32>
    %485 = arith.addf %484, %483 : vector<8x128xf32>
    %486 = arith.divf %484, %485 : vector<8x128xf32>
    %487 = vector.extract_strided_slice %475 {offsets = [0, 128], sizes = [8, 128], strides = [1, 1]} : vector<8x384xf32> to vector<8x128xf32>
    %488 = vector.extract_strided_slice %478 {offsets = [0, 128], sizes = [8, 128], strides = [1, 1]} : vector<8x384xf32> to vector<8x128xf32>
    %489 = arith.addf %487, %488 : vector<8x128xf32>
    %490 = arith.negf %489 : vector<8x128xf32>
    %491 = math.exp %490 : vector<8x128xf32>
    %cst_114 = arith.constant 1.000000e+00 : f32
    %492 = vector.broadcast %cst_114 : f32 to vector<8x128xf32>
    %493 = arith.addf %492, %491 : vector<8x128xf32>
    %494 = arith.divf %492, %493 : vector<8x128xf32>
    %495 = vector.extract_strided_slice %475 {offsets = [0, 256], sizes = [8, 128], strides = [1, 1]} : vector<8x384xf32> to vector<8x128xf32>
    %496 = vector.extract_strided_slice %478 {offsets = [0, 256], sizes = [8, 128], strides = [1, 1]} : vector<8x384xf32> to vector<8x128xf32>
    %497 = arith.mulf %486, %496 : vector<8x128xf32>
    %498 = arith.addf %495, %497 : vector<8x128xf32>
    %499 = math.tanh %498 : vector<8x128xf32>
    %cst_115 = arith.constant 1.000000e+00 : f32
    %500 = vector.broadcast %cst_115 : f32 to vector<8x128xf32>
    %501 = arith.subf %500, %494 : vector<8x128xf32>
    %502 = arith.mulf %501, %499 : vector<8x128xf32>
    %503 = arith.mulf %494, %428 : vector<8x128xf32>
    %504 = arith.addf %502, %503 : vector<8x128xf32>
    %c2_i32_116 = arith.constant 2 : i32
    %505 = arith.addi %27, %c2_i32_116 : i32
    %506 = vector.broadcast %505 : i32 to vector<8x128xi32>
    %507 = arith.cmpi slt, %506, %5 : vector<8x128xi32>
    %508 = arith.select %507, %504, %428 : vector<8x128xi1>, vector<8x128xf32>
    %cst_117 = arith.constant 0.000000e+00 : f32
    %509 = vector.broadcast %cst_117 : f32 to vector<8x128xf32>
    %510 = arith.select %507, %504, %509 : vector<8x128xi1>, vector<8x128xf32>
    %c2_118 = arith.constant 2 : index
    %c0_119 = arith.constant 0 : index
    %c0_120 = arith.constant 0 : index
    %511 = vector.load %arg11[%c2_118, %c0_119, %c0_120] : memref<8x8x128xf32, #tpu.memory_space<vmem>>, vector<1x8x128xf32>
    %512 = vector.shape_cast %511 : vector<1x8x128xf32> to vector<8x128xf32>
    %513 = vector.shape_cast %510 : vector<8x128xf32> to vector<1x8x128xf32>
    tpu.vector_store %arg11[%c2_118, %c0_119, %c0_120], %513 {strides = array<i32>} : memref<8x8x128xf32, #tpu.memory_space<vmem>>, vector<1x8x128xf32>,
    %514 = vector.extract_strided_slice %21 {offsets = [6, 0, 0], sizes = [1, 8, 384], strides = [1, 1, 1]} : vector<8x8x384xf32> to vector<1x8x384xf32>
    %515 = vector.shape_cast %514 : vector<1x8x384xf32> to vector<8x384xf32>
    %cst_121 = arith.constant dense<0.000000e+00> : vector<8x384xf32>
    %516 = tpu.matmul %468, %28, %cst_121 {dimension_numbers = #tpu.dot_dimension_numbers<[1], [0], [0], [1], [0, 0, 1, 1], [], []>} : vector<8x128xf32>, vector<128x384xf32>, vector<8x384xf32> -> vector<8x384xf32>
    %517 = vector.broadcast %29 : vector<1x384xf32> to vector<8x384xf32>
    %518 = arith.addf %516, %517 : vector<8x384xf32>
    %519 = vector.extract_strided_slice %515 {offsets = [0, 0], sizes = [8, 128], strides = [1, 1]} : vector<8x384xf32> to vector<8x128xf32>
    %520 = vector.extract_strided_slice %518 {offsets = [0, 0], sizes = [8, 128], strides = [1, 1]} : vector<8x384xf32> to vector<8x128xf32>
    %521 = arith.addf %519, %520 : vector<8x128xf32>
    %522 = arith.negf %521 : vector<8x128xf32>
    %523 = math.exp %522 : vector<8x128xf32>
    %cst_122 = arith.constant 1.000000e+00 : f32
    %524 = vector.broadcast %cst_122 : f32 to vector<8x128xf32>
    %525 = arith.addf %524, %523 : vector<8x128xf32>
    %526 = arith.divf %524, %525 : vector<8x128xf32>
    %527 = vector.extract_strided_slice %515 {offsets = [0, 128], sizes = [8, 128], strides = [1, 1]} : vector<8x384xf32> to vector<8x128xf32>
    %528 = vector.extract_strided_slice %518 {offsets = [0, 128], sizes = [8, 128], strides = [1, 1]} : vector<8x384xf32> to vector<8x128xf32>
    %529 = arith.addf %527, %528 : vector<8x128xf32>
    %530 = arith.negf %529 : vector<8x128xf32>
    %531 = math.exp %530 : vector<8x128xf32>
    %cst_123 = arith.constant 1.000000e+00 : f32
    %532 = vector.broadcast %cst_123 : f32 to vector<8x128xf32>
    %533 = arith.addf %532, %531 : vector<8x128xf32>
    %534 = arith.divf %532, %533 : vector<8x128xf32>
    %535 = vector.extract_strided_slice %515 {offsets = [0, 256], sizes = [8, 128], strides = [1, 1]} : vector<8x384xf32> to vector<8x128xf32>
    %536 = vector.extract_strided_slice %518 {offsets = [0, 256], sizes = [8, 128], strides = [1, 1]} : vector<8x384xf32> to vector<8x128xf32>
    %537 = arith.mulf %526, %536 : vector<8x128xf32>
    %538 = arith.addf %535, %537 : vector<8x128xf32>
    %539 = math.tanh %538 : vector<8x128xf32>
    %cst_124 = arith.constant 1.000000e+00 : f32
    %540 = vector.broadcast %cst_124 : f32 to vector<8x128xf32>
    %541 = arith.subf %540, %534 : vector<8x128xf32>
    %542 = arith.mulf %541, %539 : vector<8x128xf32>
    %543 = arith.mulf %534, %468 : vector<8x128xf32>
    %544 = arith.addf %542, %543 : vector<8x128xf32>
    %c6_i32_125 = arith.constant 6 : i32
    %545 = arith.addi %25, %c6_i32_125 : i32
    %546 = vector.broadcast %545 : i32 to vector<8x128xi32>
    %547 = arith.cmpi slt, %546, %5 : vector<8x128xi32>
    %548 = arith.select %547, %544, %468 : vector<8x128xi1>, vector<8x128xf32>
    %cst_126 = arith.constant 0.000000e+00 : f32
    %549 = vector.broadcast %cst_126 : f32 to vector<8x128xf32>
    %550 = arith.select %547, %544, %549 : vector<8x128xi1>, vector<8x128xf32>
    %c6_127 = arith.constant 6 : index
    %c0_128 = arith.constant 0 : index
    %c0_129 = arith.constant 0 : index
    %551 = vector.load %arg10[%c6_127, %c0_128, %c0_129] : memref<8x8x128xf32, #tpu.memory_space<vmem>>, vector<1x8x128xf32>
    %552 = vector.shape_cast %551 : vector<1x8x128xf32> to vector<8x128xf32>
    %553 = vector.shape_cast %550 : vector<8x128xf32> to vector<1x8x128xf32>
    tpu.vector_store %arg10[%c6_127, %c0_128, %c0_129], %553 {strides = array<i32>} : memref<8x8x128xf32, #tpu.memory_space<vmem>>, vector<1x8x128xf32>,
    %554 = vector.extract_strided_slice %24 {offsets = [1, 0, 0], sizes = [1, 8, 384], strides = [1, 1, 1]} : vector<8x8x384xf32> to vector<1x8x384xf32>
    %555 = vector.shape_cast %554 : vector<1x8x384xf32> to vector<8x384xf32>
    %cst_130 = arith.constant dense<0.000000e+00> : vector<8x384xf32>
    %556 = tpu.matmul %508, %30, %cst_130 {dimension_numbers = #tpu.dot_dimension_numbers<[1], [0], [0], [1], [0, 0, 1, 1], [], []>} : vector<8x128xf32>, vector<128x384xf32>, vector<8x384xf32> -> vector<8x384xf32>
    %557 = vector.broadcast %31 : vector<1x384xf32> to vector<8x384xf32>
    %558 = arith.addf %556, %557 : vector<8x384xf32>
    %559 = vector.extract_strided_slice %555 {offsets = [0, 0], sizes = [8, 128], strides = [1, 1]} : vector<8x384xf32> to vector<8x128xf32>
    %560 = vector.extract_strided_slice %558 {offsets = [0, 0], sizes = [8, 128], strides = [1, 1]} : vector<8x384xf32> to vector<8x128xf32>
    %561 = arith.addf %559, %560 : vector<8x128xf32>
    %562 = arith.negf %561 : vector<8x128xf32>
    %563 = math.exp %562 : vector<8x128xf32>
    %cst_131 = arith.constant 1.000000e+00 : f32
    %564 = vector.broadcast %cst_131 : f32 to vector<8x128xf32>
    %565 = arith.addf %564, %563 : vector<8x128xf32>
    %566 = arith.divf %564, %565 : vector<8x128xf32>
    %567 = vector.extract_strided_slice %555 {offsets = [0, 128], sizes = [8, 128], strides = [1, 1]} : vector<8x384xf32> to vector<8x128xf32>
    %568 = vector.extract_strided_slice %558 {offsets = [0, 128], sizes = [8, 128], strides = [1, 1]} : vector<8x384xf32> to vector<8x128xf32>
    %569 = arith.addf %567, %568 : vector<8x128xf32>
    %570 = arith.negf %569 : vector<8x128xf32>
    %571 = math.exp %570 : vector<8x128xf32>
    %cst_132 = arith.constant 1.000000e+00 : f32
    %572 = vector.broadcast %cst_132 : f32 to vector<8x128xf32>
    %573 = arith.addf %572, %571 : vector<8x128xf32>
    %574 = arith.divf %572, %573 : vector<8x128xf32>
    %575 = vector.extract_strided_slice %555 {offsets = [0, 256], sizes = [8, 128], strides = [1, 1]} : vector<8x384xf32> to vector<8x128xf32>
    %576 = vector.extract_strided_slice %558 {offsets = [0, 256], sizes = [8, 128], strides = [1, 1]} : vector<8x384xf32> to vector<8x128xf32>
    %577 = arith.mulf %566, %576 : vector<8x128xf32>
    %578 = arith.addf %575, %577 : vector<8x128xf32>
    %579 = math.tanh %578 : vector<8x128xf32>
    %cst_133 = arith.constant 1.000000e+00 : f32
    %580 = vector.broadcast %cst_133 : f32 to vector<8x128xf32>
    %581 = arith.subf %580, %574 : vector<8x128xf32>
    %582 = arith.mulf %581, %579 : vector<8x128xf32>
    %583 = arith.mulf %574, %508 : vector<8x128xf32>
    %584 = arith.addf %582, %583 : vector<8x128xf32>
    %c1_i32_134 = arith.constant 1 : i32
    %585 = arith.addi %27, %c1_i32_134 : i32
    %586 = vector.broadcast %585 : i32 to vector<8x128xi32>
    %587 = arith.cmpi slt, %586, %5 : vector<8x128xi32>
    %588 = arith.select %587, %584, %508 : vector<8x128xi1>, vector<8x128xf32>
    %cst_135 = arith.constant 0.000000e+00 : f32
    %589 = vector.broadcast %cst_135 : f32 to vector<8x128xf32>
    %590 = arith.select %587, %584, %589 : vector<8x128xi1>, vector<8x128xf32>
    %c1_136 = arith.constant 1 : index
    %c0_137 = arith.constant 0 : index
    %c0_138 = arith.constant 0 : index
    %591 = vector.load %arg11[%c1_136, %c0_137, %c0_138] : memref<8x8x128xf32, #tpu.memory_space<vmem>>, vector<1x8x128xf32>
    %592 = vector.shape_cast %591 : vector<1x8x128xf32> to vector<8x128xf32>
    %593 = vector.shape_cast %590 : vector<8x128xf32> to vector<1x8x128xf32>
    tpu.vector_store %arg11[%c1_136, %c0_137, %c0_138], %593 {strides = array<i32>} : memref<8x8x128xf32, #tpu.memory_space<vmem>>, vector<1x8x128xf32>,
    %594 = vector.extract_strided_slice %21 {offsets = [7, 0, 0], sizes = [1, 8, 384], strides = [1, 1, 1]} : vector<8x8x384xf32> to vector<1x8x384xf32>
    %595 = vector.shape_cast %594 : vector<1x8x384xf32> to vector<8x384xf32>
    %cst_139 = arith.constant dense<0.000000e+00> : vector<8x384xf32>
    %596 = tpu.matmul %548, %28, %cst_139 {dimension_numbers = #tpu.dot_dimension_numbers<[1], [0], [0], [1], [0, 0, 1, 1], [], []>} : vector<8x128xf32>, vector<128x384xf32>, vector<8x384xf32> -> vector<8x384xf32>
    %597 = vector.broadcast %29 : vector<1x384xf32> to vector<8x384xf32>
    %598 = arith.addf %596, %597 : vector<8x384xf32>
    %599 = vector.extract_strided_slice %595 {offsets = [0, 0], sizes = [8, 128], strides = [1, 1]} : vector<8x384xf32> to vector<8x128xf32>
    %600 = vector.extract_strided_slice %598 {offsets = [0, 0], sizes = [8, 128], strides = [1, 1]} : vector<8x384xf32> to vector<8x128xf32>
    %601 = arith.addf %599, %600 : vector<8x128xf32>
    %602 = arith.negf %601 : vector<8x128xf32>
    %603 = math.exp %602 : vector<8x128xf32>
    %cst_140 = arith.constant 1.000000e+00 : f32
    %604 = vector.broadcast %cst_140 : f32 to vector<8x128xf32>
    %605 = arith.addf %604, %603 : vector<8x128xf32>
    %606 = arith.divf %604, %605 : vector<8x128xf32>
    %607 = vector.extract_strided_slice %595 {offsets = [0, 128], sizes = [8, 128], strides = [1, 1]} : vector<8x384xf32> to vector<8x128xf32>
    %608 = vector.extract_strided_slice %598 {offsets = [0, 128], sizes = [8, 128], strides = [1, 1]} : vector<8x384xf32> to vector<8x128xf32>
    %609 = arith.addf %607, %608 : vector<8x128xf32>
    %610 = arith.negf %609 : vector<8x128xf32>
    %611 = math.exp %610 : vector<8x128xf32>
    %cst_141 = arith.constant 1.000000e+00 : f32
    %612 = vector.broadcast %cst_141 : f32 to vector<8x128xf32>
    %613 = arith.addf %612, %611 : vector<8x128xf32>
    %614 = arith.divf %612, %613 : vector<8x128xf32>
    %615 = vector.extract_strided_slice %595 {offsets = [0, 256], sizes = [8, 128], strides = [1, 1]} : vector<8x384xf32> to vector<8x128xf32>
    %616 = vector.extract_strided_slice %598 {offsets = [0, 256], sizes = [8, 128], strides = [1, 1]} : vector<8x384xf32> to vector<8x128xf32>
    %617 = arith.mulf %606, %616 : vector<8x128xf32>
    %618 = arith.addf %615, %617 : vector<8x128xf32>
    %619 = math.tanh %618 : vector<8x128xf32>
    %cst_142 = arith.constant 1.000000e+00 : f32
    %620 = vector.broadcast %cst_142 : f32 to vector<8x128xf32>
    %621 = arith.subf %620, %614 : vector<8x128xf32>
    %622 = arith.mulf %621, %619 : vector<8x128xf32>
    %623 = arith.mulf %614, %548 : vector<8x128xf32>
    %624 = arith.addf %622, %623 : vector<8x128xf32>
    %c7_i32_143 = arith.constant 7 : i32
    %625 = arith.addi %25, %c7_i32_143 : i32
    %626 = vector.broadcast %625 : i32 to vector<8x128xi32>
    %627 = arith.cmpi slt, %626, %5 : vector<8x128xi32>
    %628 = arith.select %627, %624, %548 : vector<8x128xi1>, vector<8x128xf32>
    %cst_144 = arith.constant 0.000000e+00 : f32
    %629 = vector.broadcast %cst_144 : f32 to vector<8x128xf32>
    %630 = arith.select %627, %624, %629 : vector<8x128xi1>, vector<8x128xf32>
    %c7_145 = arith.constant 7 : index
    %c0_146 = arith.constant 0 : index
    %c0_147 = arith.constant 0 : index
    %631 = vector.load %arg10[%c7_145, %c0_146, %c0_147] : memref<8x8x128xf32, #tpu.memory_space<vmem>>, vector<1x8x128xf32>
    %632 = vector.shape_cast %631 : vector<1x8x128xf32> to vector<8x128xf32>
    %633 = vector.shape_cast %630 : vector<8x128xf32> to vector<1x8x128xf32>
    tpu.vector_store %arg10[%c7_145, %c0_146, %c0_147], %633 {strides = array<i32>} : memref<8x8x128xf32, #tpu.memory_space<vmem>>, vector<1x8x128xf32>,
    %634 = vector.extract_strided_slice %24 {offsets = [0, 0, 0], sizes = [1, 8, 384], strides = [1, 1, 1]} : vector<8x8x384xf32> to vector<1x8x384xf32>
    %635 = vector.shape_cast %634 : vector<1x8x384xf32> to vector<8x384xf32>
    %cst_148 = arith.constant dense<0.000000e+00> : vector<8x384xf32>
    %636 = tpu.matmul %588, %30, %cst_148 {dimension_numbers = #tpu.dot_dimension_numbers<[1], [0], [0], [1], [0, 0, 1, 1], [], []>} : vector<8x128xf32>, vector<128x384xf32>, vector<8x384xf32> -> vector<8x384xf32>
    %637 = vector.broadcast %31 : vector<1x384xf32> to vector<8x384xf32>
    %638 = arith.addf %636, %637 : vector<8x384xf32>
    %639 = vector.extract_strided_slice %635 {offsets = [0, 0], sizes = [8, 128], strides = [1, 1]} : vector<8x384xf32> to vector<8x128xf32>
    %640 = vector.extract_strided_slice %638 {offsets = [0, 0], sizes = [8, 128], strides = [1, 1]} : vector<8x384xf32> to vector<8x128xf32>
    %641 = arith.addf %639, %640 : vector<8x128xf32>
    %642 = arith.negf %641 : vector<8x128xf32>
    %643 = math.exp %642 : vector<8x128xf32>
    %cst_149 = arith.constant 1.000000e+00 : f32
    %644 = vector.broadcast %cst_149 : f32 to vector<8x128xf32>
    %645 = arith.addf %644, %643 : vector<8x128xf32>
    %646 = arith.divf %644, %645 : vector<8x128xf32>
    %647 = vector.extract_strided_slice %635 {offsets = [0, 128], sizes = [8, 128], strides = [1, 1]} : vector<8x384xf32> to vector<8x128xf32>
    %648 = vector.extract_strided_slice %638 {offsets = [0, 128], sizes = [8, 128], strides = [1, 1]} : vector<8x384xf32> to vector<8x128xf32>
    %649 = arith.addf %647, %648 : vector<8x128xf32>
    %650 = arith.negf %649 : vector<8x128xf32>
    %651 = math.exp %650 : vector<8x128xf32>
    %cst_150 = arith.constant 1.000000e+00 : f32
    %652 = vector.broadcast %cst_150 : f32 to vector<8x128xf32>
    %653 = arith.addf %652, %651 : vector<8x128xf32>
    %654 = arith.divf %652, %653 : vector<8x128xf32>
    %655 = vector.extract_strided_slice %635 {offsets = [0, 256], sizes = [8, 128], strides = [1, 1]} : vector<8x384xf32> to vector<8x128xf32>
    %656 = vector.extract_strided_slice %638 {offsets = [0, 256], sizes = [8, 128], strides = [1, 1]} : vector<8x384xf32> to vector<8x128xf32>
    %657 = arith.mulf %646, %656 : vector<8x128xf32>
    %658 = arith.addf %655, %657 : vector<8x128xf32>
    %659 = math.tanh %658 : vector<8x128xf32>
    %cst_151 = arith.constant 1.000000e+00 : f32
    %660 = vector.broadcast %cst_151 : f32 to vector<8x128xf32>
    %661 = arith.subf %660, %654 : vector<8x128xf32>
    %662 = arith.mulf %661, %659 : vector<8x128xf32>
    %663 = arith.mulf %654, %588 : vector<8x128xf32>
    %664 = arith.addf %662, %663 : vector<8x128xf32>
    %c0_i32_152 = arith.constant 0 : i32
    %665 = arith.addi %27, %c0_i32_152 : i32
    %666 = vector.broadcast %665 : i32 to vector<8x128xi32>
    %667 = arith.cmpi slt, %666, %5 : vector<8x128xi32>
    %668 = arith.select %667, %664, %588 : vector<8x128xi1>, vector<8x128xf32>
    %cst_153 = arith.constant 0.000000e+00 : f32
    %669 = vector.broadcast %cst_153 : f32 to vector<8x128xf32>
    %670 = arith.select %667, %664, %669 : vector<8x128xi1>, vector<8x128xf32>
    %c0_154 = arith.constant 0 : index
    %c0_155 = arith.constant 0 : index
    %c0_156 = arith.constant 0 : index
    %671 = vector.load %arg11[%c0_154, %c0_155, %c0_156] : memref<8x8x128xf32, #tpu.memory_space<vmem>>, vector<1x8x128xf32>
    %672 = vector.shape_cast %671 : vector<1x8x128xf32> to vector<8x128xf32>
    %673 = vector.shape_cast %670 : vector<8x128xf32> to vector<1x8x128xf32>
    tpu.vector_store %arg11[%c0_154, %c0_155, %c0_156], %673 {strides = array<i32>} : memref<8x8x128xf32, #tpu.memory_space<vmem>>, vector<1x8x128xf32>,
    %c0_157 = arith.constant 0 : index
    %c0_158 = arith.constant 0 : index
    %674 = vector.load %arg12[%c0_157, %c0_158] : memref<8x128xf32, #tpu.memory_space<vmem>>, vector<8x128xf32>
    tpu.vector_store %arg12[%c0_157, %c0_158], %628 {strides = array<i32>} : memref<8x128xf32, #tpu.memory_space<vmem>>, vector<8x128xf32>,
    %c0_159 = arith.constant 0 : index
    %c0_160 = arith.constant 0 : index
    %675 = vector.load %arg13[%c0_159, %c0_160] : memref<8x128xf32, #tpu.memory_space<vmem>>, vector<8x128xf32>
    tpu.vector_store %arg13[%c0_159, %c0_160], %668 {strides = array<i32>} : memref<8x128xf32, #tpu.memory_space<vmem>>, vector<8x128xf32>,
    return
  }
  func.func @transform_0(%arg0: i32) -> (i32, i32) {
    %c0_i32 = arith.constant 0 : i32
    %c0_i32_0 = arith.constant 0 : i32
    %c0_i32_1 = arith.constant 0 : i32
    return %c0_i32, %c0_i32_0 : i32, i32
  }
  func.func @transform_1(%arg0: i32) -> (i32, i32, i32) {
    %c0_i32 = arith.constant 0 : i32
    %c0_i32_0 = arith.constant 0 : i32
    %c0_i32_1 = arith.constant 0 : i32
    return %arg0, %c0_i32, %c0_i32_0 : i32, i32, i32
  }
  func.func @transform_2(%arg0: i32) -> (i32, i32, i32) {
    %c0_i32 = arith.constant 0 : i32
    %0 = arith.subi %c0_i32, %arg0 : i32
    %c0_i32_0 = arith.constant 0 : i32
    %c0_i32_1 = arith.constant 0 : i32
    %c0_i32_2 = arith.constant 0 : i32
    return %0, %c0_i32_0, %c0_i32_1 : i32, i32, i32
  }
  func.func @transform_3(%arg0: i32) -> (i32, i32) {
    %c0_i32 = arith.constant 0 : i32
    %c0_i32_0 = arith.constant 0 : i32
    %c0_i32_1 = arith.constant 0 : i32
    return %c0_i32, %c0_i32_0 : i32, i32
  }
  func.func @transform_4(%arg0: i32) -> (i32, i32) {
    %c0_i32 = arith.constant 0 : i32
    %c0_i32_0 = arith.constant 0 : i32
    %c0_i32_1 = arith.constant 0 : i32
    return %c0_i32, %c0_i32_0 : i32, i32
  }
  func.func @transform_5(%arg0: i32) -> (i32, i32) {
    %c0_i32 = arith.constant 0 : i32
    %c0_i32_0 = arith.constant 0 : i32
    %c0_i32_1 = arith.constant 0 : i32
    return %c0_i32, %c0_i32_0 : i32, i32
  }
  func.func @transform_6(%arg0: i32) -> (i32, i32) {
    %c0_i32 = arith.constant 0 : i32
    %c0_i32_0 = arith.constant 0 : i32
    %c0_i32_1 = arith.constant 0 : i32
    return %c0_i32, %c0_i32_0 : i32, i32
  }
  func.func @transform_7(%arg0: i32) -> (i32, i32) {
    %c0_i32 = arith.constant 0 : i32
    %c0_i32_0 = arith.constant 0 : i32
    %c0_i32_1 = arith.constant 0 : i32
    return %c0_i32, %c0_i32_0 : i32, i32
  }
  func.func @transform_8(%arg0: i32) -> (i32, i32) {
    %c0_i32 = arith.constant 0 : i32
    %c0_i32_0 = arith.constant 0 : i32
    %c0_i32_1 = arith.constant 0 : i32
    return %c0_i32, %c0_i32_0 : i32, i32
  }
  func.func @transform_9(%arg0: i32) -> (i32, i32, i32) {
    %c0_i32 = arith.constant 0 : i32
    %c0_i32_0 = arith.constant 0 : i32
    %c0_i32_1 = arith.constant 0 : i32
    return %arg0, %c0_i32, %c0_i32_0 : i32, i32, i32
  }
  func.func @transform_10(%arg0: i32) -> (i32, i32, i32) {
    %c0_i32 = arith.constant 0 : i32
    %0 = arith.subi %c0_i32, %arg0 : i32
    %c0_i32_0 = arith.constant 0 : i32
    %c0_i32_1 = arith.constant 0 : i32
    %c0_i32_2 = arith.constant 0 : i32
    return %0, %c0_i32_0, %c0_i32_1 : i32, i32, i32
  }
}

</mosaic_0001>

<bundles_post_ra>
// kernel: language_model_forward.5
= control target key start
LH: loop header
LB: loop body
LE: loop exit
PB: predicated region body
PF: predicated region fallthrough
CT: control target
= control target key end

     0   :  { %v594_v0 = vmov 0.0|0.0   ;;  %vm595_vm0 = vmmov 0   ;;  %v596_v8 = vmov 0.0   ;;  %vm226_vm1 = vcmask 261120   ;;  %s816_s3 = inlined_call_operand.vmem [shape: f32[128,32], index: 3, kind: input, shape index: {}]   ;;  %s817_s2 = inlined_call_operand.vmem [shape: f32[128,32], index: 2, kind: input, shape index: {}]   ;;  %s818_s1 = inlined_call_operand.vmem [shape: f32[8,128], index: 1, kind: input, shape index: {}]   ;;  %s819_s0 = inlined_call_operand.vmem [shape: f32[8,128], index: 0, kind: input, shape index: {}]   ;;  %s820_s5 = inlined_call_operand.vmem [shape: f32[32,32], index: 5, kind: input, shape index: {}]   ;;  %s821_s7 = inlined_call_operand.vmem [shape: f32[32,32], index: 7, kind: input, shape index: {}]   ;;  %s822_s4 = inlined_call_operand.vmem [shape: f32[1,32], index: 4, kind: input, shape index: {}]   ;;  %s823_s6 = inlined_call_operand.vmem [shape: f32[1,32], index: 6, kind: input, shape index: {}]   ;;  %s824_s8 = inlined_call_operand.vmem [shape: f32[1,32], index: 8, kind: input, shape index: {}]   ;;  %s825_s9 = inlined_call_operand.vmem [shape: f32[8,32], index: 9, kind: output, shape index: {}]  }
   0x1   :  { %531 = vmatprep.subr.bf16.mxu0 %v594_v0  ;;  %555 = vmatprep.subr.bf16.mxu1 %v594_v0  ;;  %v50_v1 = vld [vmem:[%s816_s3] sm:$0xff]  ;;  %v51_v2 = vld [vmem:[%s816_s3 + $0x8] sm:$0xff]  ;;  %v52_v6 = vld [vmem:[%s816_s3 + $0x10] sm:$0xff] }
   0x2   :  { %v33_v3 = vld [vmem:[%s817_s2] sm:$0xff]  ;;  %v532_v4 = vpack.c.bf16 %v51_v2, %v50_v1  ;;  %v34_v5 = vld [vmem:[%s817_s2 + $0x8] sm:$0xff]  ;;  %v53_v7 = vld [vmem:[%s816_s3 + $0x18] sm:$0xff]  ;;  %471 = vmatprep.mubr.msk.f32.mxu0 %vm595_vm0, %v596_v8  ;;  %506 = vmatprep.mubr.msk.f32.mxu1 %vm595_vm0, %v596_v8 }
   0x3   :  { %v556_v9 = vpack.c.bf16 %v34_v5, %v33_v3  ;;  %v35_v10 = vld [vmem:[%s817_s2 + $0x10] sm:$0xff]  ;;  %v36_v11 = vld [vmem:[%s817_s2 + $0x18] sm:$0xff]  ;;  %v535_v12 = vpack.c.bf16 %v53_v7, %v52_v6  ;;  %v54_v14 = vld [vmem:[%s816_s3 + $0x20] sm:$0xff] }
   0x4   :  { %533 = vmatpush3.bf16.msra.mxu0 %v532_v4  ;;  %v559_v13 = vpack.c.bf16 %v36_v11, %v35_v10  ;;  %v55_v15 = vld [vmem:[%s816_s3 + $0x28] sm:$0xff]  ;;  %v37_v16 = vld [vmem:[%s817_s2 + $0x20] sm:$0xff]  ;;  %v56_v20 = vld [vmem:[%s816_s3 + $0x30] sm:$0xff] }
   0x5   :  { %557 = vmatpush3.bf16.msra.mxu1 %v556_v9  ;;  %534 = vmatprep.subr.bf16.mxu0 %v594_v0  ;;  %v38_v17 = vld [vmem:[%s817_s2 + $0x28] sm:$0xff]  ;;  %v538_v18 = vpack.c.bf16 %v55_v15, %v54_v14  ;;  %v57_v21 = vld [vmem:[%s816_s3 + $0x38] sm:$0xff]  ;;  %v39_v22 = vld [vmem:[%s817_s2 + $0x30] sm:$0xff] }
   0x6   :  { %558 = vmatprep.subr.bf16.mxu1 %v594_v0  ;;  %v562_v19 = vpack.c.bf16 %v38_v17, %v37_v16  ;;  %v40_v23 = vld [vmem:[%s817_s2 + $0x38] sm:$0xff]  ;;  %v541_v24 = vpack.c.bf16 %v57_v21, %v56_v20  ;;  %v58_v26 = vld [vmem:[%s816_s3 + $0x40] sm:$0xff]  ;;  %v59_v27 = vld [vmem:[%s816_s3 + $0x48] sm:$0xff] }
   0x7   :  { %v565_v25 = vpack.c.bf16 %v40_v23, %v39_v22  ;;  %v41_v28 = vld [vmem:[%s817_s2 + $0x40] sm:$0xff]  ;;  %v42_v29 = vld [vmem:[%s817_s2 + $0x48] sm:$0xff]  ;;  %v544_v30 = vpack.c.bf16 %v59_v27, %v58_v26  ;;  %v60_v32 = vld [vmem:[%s816_s3 + $0x50] sm:$0xff] }
   0x8   :  { %536 = vmatpush3.bf16.msra.mxu0 %v535_v12  ;;  %v568_v31 = vpack.c.bf16 %v42_v29, %v41_v28  ;;  %v61_v33 = vld [vmem:[%s816_s3 + $0x58] sm:$0xff]  ;;  %v43_v34 = vld [vmem:[%s817_s2 + $0x50] sm:$0xff]  ;;  %v62_v38 = vld [vmem:[%s816_s3 + $0x60] sm:$0xff] }
   0x9   :  { %560 = vmatpush3.bf16.msra.mxu1 %v559_v13  ;;  %537 = vmatprep.subr.bf16.mxu0 %v594_v0  ;;  %v44_v35 = vld [vmem:[%s817_s2 + $0x58] sm:$0xff]  ;;  %v547_v36 = vpack.c.bf16 %v61_v33, %v60_v32  ;;  %v63_v39 = vld [vmem:[%s816_s3 + $0x68] sm:$0xff]  ;;  %v45_v40 = vld [vmem:[%s817_s2 + $0x60] sm:$0xff] }
   0xa   :  { %561 = vmatprep.subr.bf16.mxu1 %v594_v0  ;;  %v571_v37 = vpack.c.bf16 %v44_v35, %v43_v34  ;;  %v46_v41 = vld [vmem:[%s817_s2 + $0x68] sm:$0xff]  ;;  %v550_v42 = vpack.c.bf16 %v63_v39, %v62_v38  ;;  %v64_v44 = vld [vmem:[%s816_s3 + $0x70] sm:$0xff]  ;;  %v65_v45 = vld [vmem:[%s816_s3 + $0x78] sm:$0xff] }
   0xb   :  { %v574_v43 = vpack.c.bf16 %v46_v41, %v45_v40  ;;  %v47_v46 = vld [vmem:[%s817_s2 + $0x70] sm:$0xff]  ;;  %v48_v47 = vld [vmem:[%s817_s2 + $0x78] sm:$0xff]  ;;  %v553_v48 = vpack.c.bf16 %v65_v45, %v64_v44  ;;  %v49_v50 = vld [vmem:[%s818_s1] sm:$0xff] }
   0xc   :  { %539 = vmatpush3.bf16.msra.mxu0 %v538_v18  ;;  %v577_v49 = vpack.c.bf16 %v48_v47, %v47_v46  ;;  %v32_v51 = vld [vmem:[%s819_s0] sm:$0xff]  ;;  %v216_v53 = vld [vmem:[%s820_s5 + $0x8] sm:$0xff]  ;;  %v217_v55 = vld [vmem:[%s820_s5 + $0x10] sm:$0xff] }
   0xd   :  { %563 = vmatpush3.bf16.msra.mxu1 %v562_v19  ;;  %540 = vmatprep.subr.bf16.mxu0 %v594_v0  ;;  %v215_v52 = vld [vmem:[%s820_s5] sm:$0xff]  ;;  %v218_v56 = vld [vmem:[%s820_s5 + $0x18] sm:$0xff]  ;;  %v302_v59 = vld [vmem:[%s821_s7 + $0x8] sm:$0xff] }
   0xe   :  { %564 = vmatprep.subr.bf16.mxu1 %v594_v0  ;;  %v580_v54 = vpack.c.bf16 %v216_v53, %v215_v52  ;;  %v583_v57 = vpack.c.bf16 %v218_v56, %v217_v55  ;;  %v301_v58 = vld [vmem:[%s821_s7] sm:$0xff]  ;;  %v303_v6 = vld [vmem:[%s821_s7 + $0x10] sm:$0xff] }
   0xf   :  { %v586_v60 = vpack.c.bf16 %v302_v59, %v301_v58  ;;  %v390_v63 = vld [vmem:[%s822_s4] ss:$0 sm:$0xff] }
  0x10   :  { %542 = vmatpush3.bf16.msra.mxu0 %v541_v24  ;;  %v393_v13 = vld [vmem:[%s824_s8] ss:$0 sm:$0xff] }
  0x11   :  { %566 = vmatpush3.bf16.msra.mxu1 %v565_v25  ;;  %543 = vmatprep.subr.bf16.mxu0 %v594_v0 }
  0x12   :  { %567 = vmatprep.subr.bf16.mxu1 %v594_v0 }
  0x14   :  { %545 = vmatpush3.bf16.msra.mxu0 %v544_v30 }
  0x15   :  { %569 = vmatpush3.bf16.msra.mxu1 %v568_v31  ;;  %546 = vmatprep.subr.bf16.mxu0 %v594_v0 }
  0x16   :  { %570 = vmatprep.subr.bf16.mxu1 %v594_v0 }
  0x18   :  { %548 = vmatpush3.bf16.msra.mxu0 %v547_v36 }
  0x19   :  { %572 = vmatpush3.bf16.msra.mxu1 %v571_v37  ;;  %549 = vmatprep.subr.bf16.mxu0 %v594_v0 }
  0x1a   :  { %573 = vmatprep.subr.bf16.mxu1 %v594_v0 }
  0x1c   :  { %551 = vmatpush3.bf16.msra.mxu0 %v550_v42 }
  0x1d   :  { %575 = vmatpush3.bf16.msra.mxu1 %v574_v43  ;;  %552 = vmatprep.subr.bf16.mxu0 %v594_v0 }
  0x1e   :  { %576 = vmatprep.subr.bf16.mxu1 %v594_v0 }
  0x20   :  { %554 = vmatpush3.bf16.msra.mxu0 %v553_v48 }
  0x21   :  { %578 = vmatpush3.bf16.msra.mxu1 %v577_v49  ;;  %579 = vmatprep.subr.bf16.mxu0 %v594_v0 }
  0x22   :  { %585 = vmatprep.subr.bf16.mxu1 %v594_v0 }
  0x23   :  { %472 = vmatmul.mubr.f32.vlgmr.msra.gmra.mrb[0].mxu0 %v49_v50 }
  0x24   :  { %507 = vmatmul.mubr.f32.vlgmr.msra.gmra.mrb[0].mxu1 %v32_v51  ;;  %517 = vmatprep.mubr.msk.f32.mxu0 %vm595_vm0, %v596_v8 }
  0x25   :  { %528 = vmatprep.mubr.msk.f32.mxu1 %vm595_vm0, %v596_v8  ;;  %581 = vmatpush3.bf16.msra.mxu0 %v580_v54  ;;  %v391_v8 = vld [vmem:[%s823_s6] ss:$0 sm:$0xff] }
  0x26   :  { %582 = vmatprep.subr.bf16.mxu0 %v594_v0  ;;  %587 = vmatpush3.bf16.msra.mxu1 %v586_v60 }
  0x27   :  { %588 = vmatprep.subr.bf16.mxu1 %v594_v0  ;;  %v304_v0 = vld [vmem:[%s821_s7 + $0x18] sm:$0xff] }
  0x28   :  { %v589_v7 = vpack.c.bf16 %v304_v0, %v303_v6 }
  0x29   :  { %584 = vmatpush3.bf16.msra.mxu0 %v583_v57 }
  0x2a   :  { %590 = vmatpush3.bf16.msra.mxu1 %v589_v7 }
  0xf6   :  { %v132_v61 = vpop.f32.mrb[0].mxu0 }
  0xf7   :  { %v202_v62 = vpop.f32.mrb[0].mxu1  ;;  %v473_v1 = vpop.f32.mrb[1].mxu0 }
  0xf8   :  { %v203_v2 = vadd.f32 %v202_v62, %v132_v61  ;;  %v508_v3 = vpop.f32.mrb[1].mxu1 }
  0xfa   :  { %v213_v4 = vadd.f32 %v390_v63, %v203_v2 }
  0xfc   :  { %v214_v5 = vmax.f32 %v213_v4, 0.0 }
  0xfe   :  { %518 = vmatmul.mubr.msk.f32.vlgmr.msra.gmra.mrb[2].mxu0 %vm226_vm1, %v214_v5 }
 0x1d1   :  { %v296_v9 = vpop.f32.mrb[2].mxu0 }
 0x1d2   :  { %v297_v10 = vadd.f32 %v391_v8, %v296_v9  ;;  %v519_v11 = vpop.f32.mrb[3].mxu0 }
 0x1d4   :  { %v300_v12 = vmax.f32 %v297_v10, 0.0 }
 0x1d6   :  { %529 = vmatmul.mubr.msk.f32.vlgmr.msra.gmra.mrb[2].mxu1 %vm226_vm1, %v300_v12 }
 0x2a9   :  { %v381_v14 = vpop.f32.mrb[2].mxu1 }
 0x2aa   :  { %v382_v15 = vadd.f32 %v393_v13, %v381_v14  ;;  %v530_v16 = vpop.f32.mrb[3].mxu1 }
 0x2ac   :  { %385 = vst.msk [vmem:[%s825_s9] sm:$0xff] %vm226_vm1, %v382_v15 }

// kernel: language_model_forward.3
= control target key start
LH: loop header
LB: loop body
LE: loop exit
PB: predicated region body
PF: predicated region fallthrough
CT: control target
= control target key end

     0   :  { %16 = vsyncpa [#allocation5], 0  ;;  %s7218_s0 = inlined_call_operand.vmem [shape: s32[8,1], index: 0, kind: input, shape index: {}]   ;;  %s7219_s1 = inlined_call_operand.vmem [shape: s32[8,8,1], index: 1, kind: input, shape index: {}, may-alias: {1,2}]   ;;  %s7220_s2 = inlined_call_operand.vmem [shape: s32[8,8,1], index: 2, kind: input, shape index: {}, may-alias: {1,2}]   ;;  %s7221_s3 = inlined_call_operand.hbm [shape: f32[16,384], index: 3, kind: input, shape index: {}]   ;;  %s7222_s4 = inlined_call_operand.hbm [shape: f32[16,384], index: 4, kind: input, shape index: {}]   ;;  %s7223_s5 = inlined_call_operand.hbm [shape: f32[128,384], index: 5, kind: input, shape index: {}]   ;;  %s7224_s6 = inlined_call_operand.hbm [shape: f32[128,384], index: 6, kind: input, shape index: {}]   ;;  %s7225_s7 = inlined_call_operand.hbm [shape: f32[1,384], index: 7, kind: input, shape index: {}]   ;;  %s7226_s8 = inlined_call_operand.hbm [shape: f32[1,384], index: 8, kind: input, shape index: {}]   ;;  %s7227_s9 = inlined_call_operand.vmem [shape: f32[8,8,128], index: 9, kind: output, shape index: {0}]   ;;  %s7228_s10 = inlined_call_operand.vmem [shape: f32[8,8,128], index: 10, kind: output, shape index: {1}]  }
   0x1   :  { %17 = vsyncpa [#allocation7], 0 }
   0x2   :  { %18 = vsyncpa [#allocation10], 0 }
   0x3   :  { %19 = vsyncpa [#allocation13], 0  ;;  %s5936_s13 = smov [#allocation6]   ;;  %s5937_s15 = smov [#allocation9]  }
   0x4   :  { %s51_s14 = sshll.u32 %s5936_s13, 4  ;;  %s75_s16 = sshll.u32 %s5937_s15, 4  ;;  %s52_s14 = int_to_ptr.vmem [resolvable:$true] %s51_s14  ;;  %s6003_s16 = int_to_ptr.vmem [resolvable:$true] %s75_s16 }
   0x5   :  { %s5796_s19 = scalar_lea.hbm %s7222_s4, 768 }
   0x6   :  { %p5797_p0 = scmp.ne.s32.totalorder %s7222_s4, %s5796_s19  ;;  %p5800_p1 = scmp.lt.u32.totalorder %s5796_s19, %s7222_s4 }
   0x8   :  { %p5802_p2 = pnand %p5800_p1, %p5797_p0 }
   0xa   :  { %5805 = shalt.err (!%p5802_p2)
}
   0xb   :  { %s5806_s24 = scalar_lea.vmem %s52_s14, 768  ;;  %p5811_p4 = scmp.lt.s32.totalorder %s52_s14, %s52_s14 }
   0xc   :  { %p5807_p3 = scmp.ne.s32.totalorder %s52_s14, %s5806_s24  ;;  %p5812_p5 = scmp.lt.s32.totalorder %s5806_s24, %s5806_s24 }
   0xe   :  { %p5813_p6 = por %p5812_p5, %p5811_p4 }
  0x10   :  { %p5814_p7 = pnand %p5813_p6, %p5807_p3 }
  0x12   :  { %5817 = shalt.err (!%p5814_p7)
}
  0x13   :  { %s5938_s25 = smov 384   ;;  %s5939_s26 = smov 24  }
  0x14   :  { %57 = dma.hbm_to_vmem [thread:$0]  %s7222_s4, 768, %s52_s14, [#allocation7], %s5938_s25, %s5938_s25, %s5939_s26  }
  0x15   :  { %s5818_s11 = scalar_lea.hbm %s7224_s6, 6144 }
  0x16   :  { %p5819_p8 = scmp.ne.s32.totalorder %s7224_s6, %s5818_s11  ;;  %p5822_p9 = scmp.lt.u32.totalorder %s5818_s11, %s7224_s6 }
  0x18   :  { %p5824_p10 = pnand %p5822_p9, %p5819_p8 }
  0x1a   :  { %5827 = shalt.err (!%p5824_p10)
}
  0x1b   :  { %s5828_s18 = scalar_lea.vmem %s6003_s16, 6144  ;;  %p5833_p12 = scmp.lt.s32.totalorder %s6003_s16, %s6003_s16 }
  0x1c   :  { %p5829_p11 = scmp.ne.s32.totalorder %s6003_s16, %s5828_s18  ;;  %p5834_p13 = scmp.lt.s32.totalorder %s5828_s18, %s5828_s18 }
  0x1e   :  { %p5835_p0 = por %p5834_p13, %p5833_p12 }
  0x20   :  { %p5836_p1 = pnand %p5835_p0, %p5829_p11 }
  0x22   :  { %5839 = shalt.err (!%p5836_p1)
}
  0x23   :  { %81 = dma.hbm_to_vmem [thread:$0]  %s7224_s6, 6144, %s6003_s16, [#allocation10], %s5938_s25, %s5938_s25, %s5939_s26  }
  0x24   :  { %s5940_s19 = smov [#allocation4]   ;;  %s5941_s21 = smov [#allocation8]  }
  0x25   :  { %s39_s20 = sshll.u32 %s5940_s19, 4  ;;  %s63_s22 = sshll.u32 %s5941_s21, 4  ;;  %s40_s20 = int_to_ptr.vmem [resolvable:$true] %s39_s20  ;;  %s6040_s22 = int_to_ptr.vmem [resolvable:$true] %s63_s22 }
  0x26   :  { %s5840_s27 = scalar_lea.hbm %s7221_s3, 768 }
  0x27   :  { %p5841_p2 = scmp.ne.s32.totalorder %s7221_s3, %s5840_s27  ;;  %p5844_p3 = scmp.lt.u32.totalorder %s5840_s27, %s7221_s3 }
  0x29   :  { %p5846_p4 = pnand %p5844_p3, %p5841_p2 }
  0x2b   :  { %5849 = shalt.err (!%p5846_p4)
}
  0x2c   :  { %s5850_s6 = scalar_lea.vmem %s40_s20, 768  ;;  %p5855_p6 = scmp.lt.s32.totalorder %s40_s20, %s40_s20 }
  0x2d   :  { %p5851_p5 = scmp.ne.s32.totalorder %s40_s20, %s5850_s6  ;;  %p5856_p7 = scmp.lt.s32.totalorder %s5850_s6, %s5850_s6 }
  0x2f   :  { %p5857_p8 = por %p5856_p7, %p5855_p6 }
  0x31   :  { %p5858_p9 = pnand %p5857_p8, %p5851_p5 }
  0x33   :  { %5861 = shalt.err (!%p5858_p9)
}
  0x34   :  { %45 = dma.hbm_to_vmem [thread:$0]  %s7221_s3, 768, %s40_s20, [#allocation5], %s5938_s25, %s5938_s25, %s5939_s26  }
  0x35   :  { %s5862_s17 = scalar_lea.hbm %s7223_s5, 6144 }
  0x36   :  { %p5863_p10 = scmp.ne.s32.totalorder %s7223_s5, %s5862_s17  ;;  %p5866_p11 = scmp.lt.u32.totalorder %s5862_s17, %s7223_s5 }
  0x38   :  { %p5868_p12 = pnand %p5866_p11, %p5863_p10 }
  0x3a   :  { %5871 = shalt.err (!%p5868_p12)
}
  0x3b   :  { %s5872_s21 = scalar_lea.vmem %s6040_s22, 6144  ;;  %p5877_p0 = scmp.lt.s32.totalorder %s6040_s22, %s6040_s22 }
  0x3c   :  { %p5873_p13 = scmp.ne.s32.totalorder %s6040_s22, %s5872_s21  ;;  %p5878_p1 = scmp.lt.s32.totalorder %s5872_s21, %s5872_s21 }
  0x3e   :  { %p5879_p2 = por %p5878_p1, %p5877_p0 }
  0x40   :  { %p5880_p3 = pnand %p5879_p2, %p5873_p13 }
  0x42   :  { %5883 = shalt.err (!%p5880_p3)
}
  0x43   :  { %69 = dma.hbm_to_vmem [thread:$0]  %s7223_s5, 6144, %s6040_s22, [#allocation7], %s5938_s25, %s5938_s25, %s5939_s26  }
  0x44   :  { %s5942_s23 = smov [#allocation11]   ;;  %s5943_s27 = smov [#allocation12]  }
  0x45   :  { %s88_s24 = sshll.u32 %s5942_s23, 4  ;;  %s98_s28 = sshll.u32 %s5943_s27, 4  ;;  %s89_s24 = int_to_ptr.vmem [resolvable:$true] %s88_s24  ;;  %s99_s28 = int_to_ptr.vmem [resolvable:$true] %s98_s28 }
  0x46   :  { %s5884_s11 = scalar_lea.hbm %s7225_s7, 48 }
  0x47   :  { %p5885_p4 = scmp.ne.s32.totalorder %s7225_s7, %s5884_s11  ;;  %p5888_p5 = scmp.lt.u32.totalorder %s5884_s11, %s7225_s7 }
  0x49   :  { %p5890_p6 = pnand %p5888_p5, %p5885_p4 }
  0x4b   :  { %5893 = shalt.err (!%p5890_p6)
}
  0x4c   :  { %s5894_s5 = scalar_lea.vmem %s89_s24, 48  ;;  %s5898_s25 = scalar_lea.vmem %s89_s24, 64 }
  0x4d   :  { %p5895_p7 = scmp.ne.s32.totalorder %s89_s24, %s5894_s5  ;;  %p5899_p8 = scmp.lt.s32.totalorder %s89_s24, %s89_s24 }
  0x4e   :  { %p5900_p9 = scmp.lt.s32.totalorder %s5898_s25, %s5894_s5 }
  0x50   :  { %p5901_p10 = por %p5900_p9, %p5899_p8 }
  0x52   :  { %p5902_p11 = pnand %p5901_p10, %p5895_p7 }
  0x54   :  { %5905 = shalt.err (!%p5902_p11)
}
  0x55   :  { %91 = dma.hbm_to_vmem [thread:$0]  %s7225_s7, 48, %s89_s24, [#allocation10]  }
  0x56   :  { %s5906_s18 = scalar_lea.hbm %s7226_s8, 48 }
  0x57   :  { %p5907_p12 = scmp.ne.s32.totalorder %s7226_s8, %s5906_s18  ;;  %p5910_p13 = scmp.lt.u32.totalorder %s5906_s18, %s7226_s8 }
  0x59   :  { %p5912_p0 = pnand %p5910_p13, %p5907_p12 }
  0x5b   :  { %5915 = shalt.err (!%p5912_p0)
}
  0x5c   :  { %s5916_s3 = scalar_lea.vmem %s99_s28, 48  ;;  %s5920_s20 = scalar_lea.vmem %s99_s28, 64 }
  0x5d   :  { %p5917_p1 = scmp.ne.s32.totalorder %s99_s28, %s5916_s3  ;;  %p5921_p2 = scmp.lt.s32.totalorder %s99_s28, %s99_s28 }
  0x5e   :  { %p5922_p3 = scmp.lt.s32.totalorder %s5920_s20, %s5916_s3 }
  0x60   :  { %p5923_p4 = por %p5922_p3, %p5921_p2 }
  0x62   :  { %p5924_p5 = pnand %p5923_p4, %p5917_p1 }
  0x64   :  { %5927 = shalt.err (!%p5924_p5)
}
  0x65   :  { %101 = dma.hbm_to_vmem [thread:$0]  %s7226_s8, 48, %s99_s28, [#allocation13]  }
  0x66   :  { %5928 = dma.done.wait [#allocation5], 768  }
  0x67   :  { %5929 = vsyncadd [#allocation5], 4294966528 }
  0x68   :  { %5930 = dma.done.wait [#allocation7], 6912  }
  0x69   :  { %5931 = vsyncadd [#allocation7], 4294960384 }
  0x6a   :  { %5932 = dma.done.wait [#allocation10], 6192  }
  0x6b   :  { %5933 = vsyncadd [#allocation10], 4294961104 }
  0x6c   :  { %5934 = dma.done.wait [#allocation13], 48  }
  0x6d   :  { %5935 = vsyncadd [#allocation13], 4294967248  ;;  %v5944_v0 = vmov 0   ;;  %v7229_v1 = vmov 0.0   ;;  %v167_v2 = vld [vmem:[%s7219_s1 + $0x38] sm:$0xff]  ;;  %v166_v3 = vld [vmem:[%s7219_s1 + $0x30] sm:$0xff]  ;;  %v7233_v31 = vlaneseq }
  0x6e   :  { %5635 = vset.pattern.permute.xlu1 %v5944_v0  ;;  %5634 = vset.pattern.permute.xlu0 %v5944_v0  ;;  %v161_v4 = vld [vmem:[%s7219_s1 + $0x8] sm:$0xff]  ;;  %v160_v5 = vld [vmem:[%s7219_s1] sm:$0xff]  ;;  %v163_v6 = vld [vmem:[%s7219_s1 + $0x18] sm:$0xff]  ;;  %vm278_vm0 = vcmask 130048   ;;  %v7231_v57 = vmov 0.0|0.0  }
  0x6f   :  { %403 = vmatprep.mubr.f32.mxu1 %v7229_v1  ;;  %367 = vmatprep.mubr.f32.mxu0 %v7229_v1  ;;  %v162_v7 = vld [vmem:[%s7219_s1 + $0x10] sm:$0xff]  ;;  %v273_v8 = vld [vmem:[#allocation4 + $0x8] sm:$0xff]  ;;  %v276_v9 = vld [vmem:[#allocation4 + $0x20] sm:$0xff]  ;;  %v6155_v32 = vand.u32 127, %v7233_v31 }
  0x70   :  { %190 = vperm.xlu1 %5635, %v167_v2   ;;  %187 = vperm.xlu0 %5634, %v166_v3   ;;  %v272_v10 = vld [vmem:[#allocation4] sm:$0xff]  ;;  %v275_v11 = vld [vmem:[#allocation4 + $0x18] sm:$0xff]  ;;  %v4644_v12 = vpack.c.bf16 %v276_v9, %v273_v8  ;;  %v274_v14 = vld [vmem:[#allocation4 + $0x10] sm:$0xff] }
  0x71   :  { %v4646_v13 = vpack.c.bf16 %v275_v11, %v272_v10  ;;  %v277_v15 = vld [vmem:[#allocation4 + $0x28] sm:$0xff]  ;;  %v523_v16 = vld [vmem:[#allocation6 + $0x10] sm:$0xff]  ;;  %v526_v18 = vld [vmem:[#allocation6 + $0x28] sm:$0xff] }
  0x72   :  { %v4648_v17 = vpack.c.bf16 %v277_v15, %v274_v14  ;;  %v4656_v19 = vpack.c.bf16 %v526_v18, %v523_v16  ;;  %v165_v20 = vld [vmem:[%s7219_s1 + $0x28] sm:$0xff]  ;;  %v164_v21 = vld [vmem:[%s7219_s1 + $0x20] sm:$0xff]  ;;  %5556 = vmatprep.subr.bf16.mxu1 %v4644_v12  ;;  %4645 = vmatprep.subr.bf16.mxu0 %v4644_v12  ;;  %v219_v24 = vld [vmem:[%s7220_s2 + $0x18] sm:$0xff] }
  0x73   :  { %5557 = vmatpush1.bf16.msra.mxu1 %v4646_v13  ;;  %4647 = vmatpush1.bf16.msra.mxu0 %v4646_v13  ;;  %v217_v22 = vld [vmem:[%s7220_s2 + $0x8] sm:$0xff]  ;;  %v216_v23 = vld [vmem:[%s7220_s2] sm:$0xff]  ;;  %v218_v25 = vld [vmem:[%s7220_s2 + $0x10] sm:$0xff] }
  0x74   :  { %172 = vperm.xlu1 %5635, %v161_v4   ;;  %169 = vperm.xlu0 %5634, %v160_v5   ;;  %v221_v26 = vld [vmem:[%s7220_s2 + $0x28] sm:$0xff]  ;;  %v220_v27 = vld [vmem:[%s7220_s2 + $0x20] sm:$0xff]  ;;  %v223_v28 = vld [vmem:[%s7220_s2 + $0x38] sm:$0xff] }
  0x75   :  { %4649 = vmatprep.subr.bf16.mxu1 %v4648_v17  ;;  %4657 = vmatprep.subr.bf16.mxu0 %v4656_v19  ;;  %v222_v29 = vld [vmem:[%s7220_s2 + $0x30] sm:$0xff]  ;;  %v154_v30 = vld [vmem:[%s7218_s0] sm:$0xff]  ;;  %v522_v33 = vld [vmem:[#allocation6 + $0x8] sm:$0xff] }
  0x76   :  { %v525_v34 = vld [vmem:[#allocation6 + $0x20] sm:$0xff]  ;;  %v773_v39 = vld [vmem:[#allocation8 + $0x8] sm:$0xff]  ;;  %v776_v40 = vld [vmem:[#allocation8 + $0x20] sm:$0xff] }
  0x77   :  { %v4652_v37 = vpack.c.bf16 %v525_v34, %v522_v33  ;;  %v6164_v44 = vpack.c.bf16 %v776_v40, %v773_v39  ;;  %v521_v46 = vld [vmem:[#allocation6] sm:$0xff]  ;;  %v524_v47 = vld [vmem:[#allocation6 + $0x18] sm:$0xff]  ;;  %v772_v3 = vld [vmem:[#allocation8] sm:$0xff] }
  0x78   :  { %178 = vperm.xlu1 %5635, %v163_v6   ;;  %175 = vperm.xlu0 %5634, %v162_v7   ;;  %v4654_v50 = vpack.c.bf16 %v524_v47, %v521_v46  ;;  %v774_v61 = vld [vmem:[#allocation8 + $0x10] sm:$0xff]  ;;  %v777_v62 = vld [vmem:[#allocation8 + $0x28] sm:$0xff]  ;;  %v775_v4 = vld [vmem:[#allocation8 + $0x18] sm:$0xff] }
  0x79   :  { %v6200_v2 = vpack.c.bf16 %v777_v62, %v774_v61  ;;  %v780_v5 = vld [vmem:[#allocation8 + $0x40] sm:$0xff]  ;;  %v783_v6 = vld [vmem:[#allocation8 + $0x58] sm:$0xff]  ;;  %v782_v9 = vld [vmem:[#allocation8 + $0x50] sm:$0xff]  ;;  %v6208_v11 = vpack.c.bf16 %v775_v4, %v772_v3 }
  0x7a   :  { %v779_v8 = vld [vmem:[#allocation8 + $0x38] sm:$0xff]  ;;  %v6210_v12 = vpack.c.bf16 %v783_v6, %v780_v5  ;;  %v778_v13 = vld [vmem:[#allocation8 + $0x30] sm:$0xff]  ;;  %v781_v14 = vld [vmem:[#allocation8 + $0x48] sm:$0xff] }
  0x7b   :  { %v786_v15 = vld [vmem:[#allocation8 + $0x70] sm:$0xff]  ;;  %v789_v16 = vld [vmem:[#allocation8 + $0x88] sm:$0xff]  ;;  %v791_v34 = vld [vmem:[#allocation8 + $0x98] sm:$0xff] }
  0x7c   :  { %184 = vperm.xlu1 %5635, %v165_v20   ;;  %181 = vperm.xlu0 %5634, %v164_v21   ;;  %v785_v20 = vld [vmem:[#allocation8 + $0x68] sm:$0xff]  ;;  %v788_v21 = vld [vmem:[#allocation8 + $0x80] sm:$0xff]  ;;  %v790_v40 = vld [vmem:[#allocation8 + $0x90] sm:$0xff] }
  0x7d   :  { %v6238_v33 = vpack.c.bf16 %v788_v21, %v785_v20  ;;  %v797_v47 = vld [vmem:[#allocation8 + $0xc8] sm:$0xff]  ;;  %v802_v62 = vld [vmem:[#allocation8 + $0xf0] sm:$0xff]  ;;  %v812_v6 = vld [vmem:[#allocation8 + $0x140] sm:$0xff] }
  0x7e   :  { %v810_v3 = vld [vmem:[#allocation8 + $0x130] sm:$0xff]  ;;  %v813_v4 = vld [vmem:[#allocation8 + $0x148] sm:$0xff]  ;;  %v825_v20 = vld [vmem:[#allocation9 + $0x20] sm:$0xff] }
  0x7f   :  { %v809_v5 = vld [vmem:[#allocation8 + $0x128] sm:$0xff] }
  0x80   :  { %228 = vperm.xlu1 %5635, %v217_v22   ;;  %225 = vperm.xlu0 %5634, %v216_v23   ;;  %v6226_v23 = vpack.c.bf16 %v781_v14, %v778_v13  ;;  %v811_v13 = vld [vmem:[#allocation8 + $0x138] sm:$0xff]  ;;  %v816_v14 = vld [vmem:[#allocation8 + $0x160] sm:$0xff] }
  0x84   :  { %234 = vperm.xlu1 %5635, %v219_v24   ;;  %231 = vperm.xlu0 %5634, %v218_v25   ;;  %v6228_v24 = vpack.c.bf16 %v789_v16, %v786_v15  ;;  %v784_v25 = vld [vmem:[#allocation8 + $0x60] sm:$0xff]  ;;  %v819_v15 = vld [vmem:[#allocation8 + $0x178] sm:$0xff] }
  0x85   :  { %v815_v16 = vld [vmem:[#allocation8 + $0x158] sm:$0xff] }
  0x88   :  { %240 = vperm.xlu1 %5635, %v221_v26   ;;  %237 = vperm.xlu0 %5634, %v220_v27   ;;  %v787_v26 = vld [vmem:[#allocation8 + $0x78] sm:$0xff]  ;;  %v792_v27 = vld [vmem:[#allocation8 + $0xa0] sm:$0xff] }
  0x8c   :  { %246 = vperm.xlu1 %5635, %v223_v28   ;;  %243 = vperm.xlu0 %5634, %v222_v29   ;;  %v795_v28 = vld [vmem:[#allocation8 + $0xb8] sm:$0xff] }
  0x8d   :  { %v6250_v39 = vpack.c.bf16 %v795_v28, %v792_v27  ;;  %v817_v27 = vld [vmem:[#allocation8 + $0x168] sm:$0xff]  ;;  %v821_v28 = vld [vmem:[#allocation9] sm:$0xff] }
  0x90   :  { %156 = vperm.xlu0 %5634, %v154_v30  }
  0xef   :  { %v191_v35 = vpop.permute.xlu1 %190  ;;  %v188_v36 = vpop.permute.xlu0 %187 }
  0xf0   :  { %vm199_vm1 = vcmp.eq.s32.totalorder %v191_v35, %v6155_v32  ;;  %vm198_vm2 = vcmp.eq.s32.totalorder %v188_v36, %v6155_v32  ;;  %v794_v35 = vld [vmem:[#allocation8 + $0xb0] sm:$0xff] }
  0xf1   :  { %v3652_v38 = vsel %vm198_vm2, 1.0, %v7229_v1  ;;  %v3653_v41 = vsel %vm199_vm1, 1.0, %v7229_v1  ;;  %v6260_v46 = vpack.c.bf16 %v794_v35, %v791_v34  ;;  %v828_v34 = vld [vmem:[#allocation9 + $0x38] sm:$0xff]  ;;  %v831_v35 = vld [vmem:[#allocation9 + $0x50] sm:$0xff]  ;;  %vm5947_vm2 = vmmov 0  }
  0xf2   :  { %3668 = vmatmul.mubr.msk.f32.vlgmr.msra.gmra.mrb[0].mxu1 %vm278_vm0, %v3652_v38 }
  0xf3   :  { %v173_v42 = vpop.permute.xlu1 %172  ;;  %v170_v43 = vpop.permute.xlu0 %169  ;;  %409 = vmatprep.mubr.f32.mxu1 %v7229_v1  ;;  %4651 = vmatpush3.bf16.msra.mxu1 %v4648_v17 }
  0xf4   :  { %vm192_vm3 = vcmp.eq.s32.totalorder %v170_v43, %v6155_v32  ;;  %4653 = vmatprep.subr.bf16.mxu1 %v4652_v37  ;;  %vm193_vm4 = vcmp.eq.s32.totalorder %v173_v42, %v6155_v32  ;;  %v798_v42 = vld [vmem:[#allocation8 + $0xd0] sm:$0xff]  ;;  %v801_v43 = vld [vmem:[#allocation8 + $0xe8] sm:$0xff] }
  0xf5   :  { %v3646_v45 = vsel %vm192_vm3, 1.0, %v7229_v1  ;;  %v3647_v51 = vsel %vm193_vm4, 1.0, %v7229_v1 }
  0xf6   :  { %3662 = vmatmul.mubr.msk.f32.vlgmr.msra.gmra.mrb[0].mxu0 %vm278_vm0, %v3646_v45  ;;  %3669 = vmatmul.mubr.msk.f32.gmra.mrb[2].mxu1 %vm278_vm0, %v3653_v41 }
  0xf7   :  { %4659 = vmatpush3.bf16.msra.mxu0 %v4656_v19  ;;  %v179_v48 = vpop.permute.xlu1 %178  ;;  %4056 = vmatprep.mubr.msk.f32.mxu1 %vm278_vm0, %v3646_v45  ;;  %v176_v49 = vpop.permute.xlu0 %175  ;;  %v6218_v19 = vpack.c.bf16 %v782_v9, %v779_v8  ;;  %v6298_v8 = vpack.c.bf16 %v813_v4, %v810_v3  ;;  %v808_v9 = vld [vmem:[#allocation8 + $0x120] sm:$0xff]  ;;  %v839_v3 = vld [vmem:[#allocation9 + $0x90] sm:$0xff] }
  0xf8   :  { %vm194_vm5 = vcmp.eq.s32.totalorder %v176_v49, %v6155_v32  ;;  %373 = vmatprep.mubr.f32.mxu0 %v7229_v1  ;;  %4661 = vmatprep.subr.bf16.mxu0 %v6164_v44  ;;  %vm195_vm6 = vcmp.eq.s32.totalorder %v179_v48, %v6155_v32  ;;  %v800_v48 = vld [vmem:[#allocation8 + $0xe0] sm:$0xff]  ;;  %v6308_v21 = vpack.c.bf16 %v811_v13, %v808_v9  ;;  %v835_v9 = vld [vmem:[#allocation9 + $0x70] sm:$0xff]  ;;  %v838_v13 = vld [vmem:[#allocation9 + $0x88] sm:$0xff] }
  0xf9   :  { %v3648_v52 = vsel %vm194_vm5, 1.0, %v7229_v1  ;;  %v3649_v55 = vsel %vm195_vm6, 1.0, %v7229_v1  ;;  %7268 = vst [vmem:[#allocation22_spill] sm:$0xff] %v6298_v8 }
  0xfa   :  { %3663 = vmatmul.mubr.msk.f32.gmra.mrb[2].mxu0 %vm278_vm0, %v3647_v51  ;;  %4057 = vmatmul.mubr.msk.f32.vlgmr.msra.gmra.mrb[4].mxu1 %vm278_vm0, %v3647_v51  ;;  %v6270_v51 = vpack.c.bf16 %v801_v43, %v798_v42  ;;  %7270 = vst [vmem:[#allocation24_spill] sm:$0xff] %v6308_v21  ;;  %v830_v42 = vld [vmem:[#allocation9 + $0x48] sm:$0xff]  ;;  %v823_v43 = vld [vmem:[#allocation9 + $0x10] sm:$0xff] }
  0xfb   :  { %v185_v53 = vpop.permute.xlu1 %184  ;;  %4059 = vmatprep.mubr.msk.f32.mxu1 %vm278_vm0, %v3648_v52  ;;  %v182_v54 = vpop.permute.xlu0 %181  ;;  %379 = vmatprep.mubr.f32.mxu0 %v7229_v1 }
  0xfc   :  { %vm196_vm7 = vcmp.eq.s32.totalorder %v182_v54, %v6155_v32  ;;  %4655 = vmatpush1.bf16.msra.mxu1 %v4654_v50  ;;  %vm197_vm8 = vcmp.eq.s32.totalorder %v185_v53, %v6155_v32  ;;  %7264 = vst [vmem:[#allocation18_spill] sm:$0xff] %v6270_v51  ;;  %v799_v53 = vld [vmem:[#allocation8 + $0xd8] sm:$0xff]  ;;  %v804_v54 = vld [vmem:[#allocation8 + $0x100] sm:$0xff] }
  0xfd   :  { %v3650_v56 = vsel %vm196_vm7, 1.0, %v7229_v1  ;;  %4692 = vmatprep.subr.bf16.mxu1 %v7231_v57  ;;  %v3651_v59 = vsel %vm197_vm8, 1.0, %v7229_v1 }
  0xfe   :  { %3664 = vmatmul.mubr.msk.f32.gmra.mrb[4].mxu0 %vm278_vm0, %v3648_v52  ;;  %4060 = vmatmul.mubr.msk.f32.gmra.mrb[6].mxu1 %vm278_vm0, %v3649_v55  ;;  %v796_v52 = vld [vmem:[#allocation8 + $0xc0] sm:$0xff] }
  0xff   :  { %4062 = vmatprep.mubr.msk.f32.mxu1 %vm278_vm0, %v3650_v56  ;;  %v226_v58 = vpop.permute.xlu0 %225  ;;  %385 = vmatprep.mubr.f32.mxu0 %v7229_v1  ;;  %v229_v60 = vpop.permute.xlu1 %228 }
 0x100   :  { %vm248_vm9 = vcmp.eq.s32.totalorder %v226_v58, %v6155_v32  ;;  %vm249_vm10 = vcmp.eq.s32.totalorder %v229_v60, %v6155_v32  ;;  %v803_v58 = vld [vmem:[#allocation8 + $0xf8] sm:$0xff]  ;;  %v6283_v60 = vpack.c.bf16 %v799_v53, %v796_v52  ;;  %v833_v52 = vld [vmem:[#allocation9 + $0x60] sm:$0xff] }
 0x101   :  { %v3654_v7 = vsel %vm248_vm9, 1.0, %v7229_v1  ;;  %v3655_v17 = vsel %vm249_vm10, 1.0, %v7229_v1 }
 0x102   :  { %3665 = vmatmul.mubr.msk.f32.gmra.mrb[6].mxu0 %vm278_vm0, %v3649_v55  ;;  %4063 = vmatmul.mubr.msk.f32.gmra.mrb[8].mxu1 %vm278_vm0, %v3651_v59  ;;  %v807_v55 = vld [vmem:[#allocation8 + $0x118] sm:$0xff] }
 0x103   :  { %4065 = vmatprep.mubr.msk.f32.mxu1 %vm278_vm0, %v3652_v38  ;;  %391 = vmatprep.mubr.f32.mxu0 %v7229_v1  ;;  %v232_v63 = vpop.permute.xlu0 %231  ;;  %v235_v0 = vpop.permute.xlu1 %234  ;;  %v6248_v38 = vpack.c.bf16 %v787_v26, %v784_v25  ;;  %v6285_v61 = vpack.c.bf16 %v807_v55, %v804_v54  ;;  %v814_v25 = vld [vmem:[#allocation8 + $0x150] sm:$0xff]  ;;  %v836_v55 = vld [vmem:[#allocation9 + $0x78] sm:$0xff] }
 0x104   :  { %vm250_vm11 = vcmp.eq.s32.totalorder %v232_v63, %v6155_v32  ;;  %vm251_vm12 = vcmp.eq.s32.totalorder %v235_v0, %v6155_v32  ;;  %v805_v0 = vld [vmem:[#allocation8 + $0x108] sm:$0xff] }
 0x105   :  { %v3656_v22 = vsel %vm250_vm11, 1.0, %v7229_v1  ;;  %v3657_v29 = vsel %vm251_vm12, 1.0, %v7229_v1  ;;  %7265 = vst [vmem:[#allocation19_spill] sm:$0xff] %v6285_v61 }
 0x106   :  { %3666 = vmatmul.mubr.msk.f32.gmra.mrb[8].mxu0 %vm278_vm0, %v3650_v56  ;;  %4066 = vmatmul.mubr.msk.f32.gmra.mrb[10].mxu1 %vm278_vm0, %v3653_v41  ;;  %v793_v41 = vld [vmem:[#allocation8 + $0xa8] sm:$0xff] }
 0x107   :  { %397 = vmatprep.mubr.f32.mxu0 %v7229_v1  ;;  %615 = vmatprep.mubr.f32.mxu1 %v7229_v1  ;;  %v238_v10 = vpop.permute.xlu0 %237  ;;  %v241_v18 = vpop.permute.xlu1 %240  ;;  %v6268_v50 = vpack.c.bf16 %v793_v41, %v790_v40  ;;  %v827_v40 = vld [vmem:[#allocation9 + $0x30] sm:$0xff]  ;;  %v6329_v41 = vpack.c.bf16 %v831_v35, %v828_v34 }
 0x108   :  { %vm252_vm13 = vcmp.eq.s32.totalorder %v238_v10, %v6155_v32  ;;  %vm253_vm14 = vcmp.eq.s32.totalorder %v241_v18, %v6155_v32  ;;  %v6302_v10 = vpack.c.bf16 %v812_v6, %v809_v5  ;;  %v822_v18 = vld [vmem:[#allocation9 + $0x8] sm:$0xff]  ;;  %v855_v34 = vld [vmem:[#allocation9 + $0x110] sm:$0xff] }
 0x109   :  { %v3658_v36 = vsel %vm252_vm13, 1.0, %v7229_v1  ;;  %v3659_v45 = vsel %vm253_vm14, 1.0, %v7229_v1  ;;  %v842_v6 = vld [vmem:[#allocation9 + $0xa8] sm:$0xff] }
 0x10a   :  { %3667 = vmatmul.mubr.msk.f32.gmra.mrb[10].mxu0 %vm278_vm0, %v3651_v59  ;;  %3678 = vmatmul.mubr.msk.f32.vlgmr.msra.gmra.mrb[12].mxu1 %vm278_vm0, %v3654_v7  ;;  %v806_v59 = vld [vmem:[#allocation8 + $0x110] sm:$0xff]  ;;  %7269 = vst [vmem:[#allocation23_spill] sm:$0xff] %v6302_v10 }
 0x10b   :  { %4694 = vmatpush3.bf16.msra.mxu1 %v6200_v2  ;;  %4072 = vmatprep.mubr.msk.f32.mxu0 %vm278_vm0, %v3654_v7  ;;  %v244_v30 = vpop.permute.xlu0 %243  ;;  %v247_v37 = vpop.permute.xlu1 %246  ;;  %v6289_v63 = vpack.c.bf16 %v806_v59, %v803_v58  ;;  %v6296_v7 = vpack.c.bf16 %v805_v0, %v802_v62  ;;  %v832_v58 = vld [vmem:[#allocation9 + $0x58] sm:$0xff]  ;;  %v843_v62 = vld [vmem:[#allocation9 + $0xb0] sm:$0xff]  ;;  %v6346_v0 = vpack.c.bf16 %v836_v55, %v833_v52  ;;  %v858_v52 = vld [vmem:[#allocation9 + $0x128] sm:$0xff] }
 0x10c   :  { %621 = vmatprep.mubr.f32.mxu1 %v7229_v1  ;;  %4695 = vmatprep.subr.bf16.mxu1 %v7231_v57  ;;  %vm254_vm15 = vcmp.eq.s32.totalorder %v244_v30, %v6155_v32  ;;  %vm255_vm1 = vcmp.eq.s32.totalorder %v247_v37, %v6155_v32  ;;  %v6274_v32 = vpack.c.bf16 %v800_v48, %v797_v47  ;;  %v834_v47 = vld [vmem:[#allocation9 + $0x68] sm:$0xff]  ;;  %v837_v48 = vld [vmem:[#allocation9 + $0x80] sm:$0xff]  ;;  %v840_v59 = vld [vmem:[#allocation9 + $0x98] sm:$0xff] }
 0x10d   :  { %v3660_v49 = vsel %vm254_vm15, 1.0, %v7229_v1  ;;  %v3661_v56 = vsel %vm255_vm1, 1.0, %v7229_v1  ;;  %7266 = vst [vmem:[#allocation20_spill] sm:$0xff] %v6289_v63  ;;  %7267 = vst [vmem:[#allocation21_spill] sm:$0xff] %v6296_v7  ;;  %v6317_v30 = vpack.c.bf16 %v825_v20, %v822_v18  ;;  %v6340_v54 = vpack.c.bf16 %v837_v48, %v834_v47  ;;  %v847_v47 = vld [vmem:[#allocation9 + $0xd0] sm:$0xff]  ;;  %v850_v48 = vld [vmem:[#allocation9 + $0xe8] sm:$0xff] }
 0x10e   :  { %3679 = vmatmul.mubr.msk.f32.gmra.mrb[14].mxu1 %vm278_vm0, %v3655_v17  ;;  %4073 = vmatmul.mubr.msk.f32.vlgmr.msra.gmra.mrb[12].mxu0 %vm278_vm0, %v3655_v17  ;;  %v818_v17 = vld [vmem:[#allocation8 + $0x170] sm:$0xff]  ;;  %v6352_v5 = vpack.c.bf16 %v843_v62, %v840_v59  ;;  %v6361_v18 = vpack.c.bf16 %v838_v13, %v835_v9  ;;  %v861_v55 = vld [vmem:[#allocation9 + $0x140] sm:$0xff]  ;;  %v6381_v59 = vpack.c.bf16 %v850_v48, %v847_v47  ;;  %v856_v9 = vld [vmem:[#allocation9 + $0x118] sm:$0xff] }
 0x10f   :  { %4663 = vmatpush1.bf16.msra.mxu0 %v6208_v11  ;;  %4697 = vmatpush3.bf16.msra.mxu1 %v6210_v12  ;;  %v6314_v26 = vpack.c.bf16 %v818_v17, %v815_v16  ;;  %7273 = vst [vmem:[#allocation27_spill] sm:$0xff] %v6317_v30  ;;  %v6358_v16 = vpack.c.bf16 %v842_v6, %v839_v3  ;;  %v845_v17 = vld [vmem:[#allocation9 + $0xc0] sm:$0xff]  ;;  %v860_v3 = vld [vmem:[#allocation9 + $0x138] sm:$0xff] }
 0x110   :  { %4075 = vmatprep.mubr.msk.f32.mxu0 %vm278_vm0, %v3656_v22  ;;  %627 = vmatprep.mubr.f32.mxu1 %v7229_v1  ;;  %v6384_v62 = vpack.c.bf16 %v861_v55, %v858_v52  ;;  %v853_v6 = vld [vmem:[#allocation9 + $0x100] sm:$0xff]  ;;  %v864_v13 = vld [vmem:[#allocation9 + $0x158] sm:$0xff] }
 0x111   :  { %4665 = vmatprep.subr.bf16.mxu0 %v6218_v19  ;;  %4698 = vmatprep.subr.bf16.mxu1 %v7231_v57  ;;  %7272 = vst [vmem:[#allocation26_spill] sm:$0xff] %v6314_v26  ;;  %v865_v47 = vld [vmem:[#allocation9 + $0x160] sm:$0xff]  ;;  %v868_v48 = vld [vmem:[#allocation9 + $0x178] sm:$0xff] }
 0x112   :  { %3680 = vmatmul.mubr.msk.f32.gmra.mrb[16].mxu1 %vm278_vm0, %v3656_v22  ;;  %4076 = vmatmul.mubr.msk.f32.gmra.mrb[14].mxu0 %vm278_vm0, %v3657_v29  ;;  %v6310_v22 = vpack.c.bf16 %v819_v15, %v816_v14  ;;  %v846_v14 = vld [vmem:[#allocation9 + $0xc8] sm:$0xff]  ;;  %v849_v15 = vld [vmem:[#allocation9 + $0xe0] sm:$0xff]  ;;  %v6407_v52 = vpack.c.bf16 %v868_v48, %v865_v47 }
 0x113   :  { %4667 = vmatpush1.bf16.msra.mxu0 %v6226_v23  ;;  %4700 = vmatpush3.bf16.msra.mxu1 %v6228_v24  ;;  %v6364_v20 = vpack.c.bf16 %v849_v15, %v846_v14  ;;  %v867_v14 = vld [vmem:[#allocation9 + $0x170] sm:$0xff] }
 0x114   :  { %4078 = vmatprep.mubr.msk.f32.mxu0 %vm278_vm0, %v3658_v36  ;;  %633 = vmatprep.mubr.f32.mxu1 %v7229_v1  ;;  %7271 = vst [vmem:[#allocation25_spill] sm:$0xff] %v6310_v22 }
 0x115   :  { %4669 = vmatprep.subr.bf16.mxu0 %v6238_v33  ;;  %4701 = vmatprep.subr.bf16.mxu1 %v7231_v57 }
 0x116   :  { %3681 = vmatmul.mubr.msk.f32.gmra.mrb[18].mxu1 %vm278_vm0, %v3657_v29  ;;  %4079 = vmatmul.mubr.msk.f32.gmra.mrb[16].mxu0 %vm278_vm0, %v3659_v45  ;;  %v824_v29 = vld [vmem:[#allocation9 + $0x18] sm:$0xff] }
 0x117   :  { %4671 = vmatpush1.bf16.msra.mxu0 %v6248_v38  ;;  %4703 = vmatpush3.bf16.msra.mxu1 %v6250_v39  ;;  %v6324_v37 = vpack.c.bf16 %v824_v29, %v821_v28  ;;  %v844_v28 = vld [vmem:[#allocation9 + $0xb8] sm:$0xff] }
 0x118   :  { %4081 = vmatprep.mubr.msk.f32.mxu0 %vm278_vm0, %v3660_v49  ;;  %639 = vmatprep.mubr.f32.mxu1 %v7229_v1  ;;  %v852_v29 = vld [vmem:[#allocation9 + $0xf8] sm:$0xff] }
 0x119   :  { %4673 = vmatprep.subr.bf16.mxu0 %v6260_v46  ;;  %4704 = vmatprep.subr.bf16.mxu1 %v7231_v57 }
 0x11a   :  { %3682 = vmatmul.mubr.msk.f32.gmra.mrb[20].mxu1 %vm278_vm0, %v3658_v36  ;;  %4082 = vmatmul.mubr.msk.f32.gmra.mrb[18].mxu0 %vm278_vm0, %v3661_v56  ;;  %v6322_v36 = vpack.c.bf16 %v817_v27, %v814_v25  ;;  %v848_v25 = vld [vmem:[#allocation9 + $0xd8] sm:$0xff]  ;;  %v841_v27 = vld [vmem:[#allocation9 + $0xa0] sm:$0xff] }
 0x11b   :  { %4675 = vmatpush1.bf16.msra.mxu0 %v6268_v50  ;;  %4706 = vmatpush3.bf16.msra.mxu1 %v6270_v51  ;;  %v6368_v35 = vpack.c.bf16 %v848_v25, %v845_v17  ;;  %v863_v17 = vld [vmem:[#allocation9 + $0x150] sm:$0xff]  ;;  %v6391_v25 = vpack.c.bf16 %v856_v9, %v853_v6 }
 0x11c   :  { %645 = vmatprep.mubr.f32.mxu1 %v7229_v1  ;;  %4677 = vmatprep.subr.bf16.mxu0 %v6274_v32  ;;  %7274 = vst [vmem:[#allocation28_spill] sm:$0xff] %v6322_v36 }
 0x11d   :  { %4707 = vmatprep.subr.bf16.mxu1 %v7231_v57  ;;  %952 = vmatprep.mubr.f32.mxu0 %v7229_v1 }
 0x11e   :  { %3683 = vmatmul.mubr.msk.f32.gmra.mrb[22].mxu1 %vm278_vm0, %v3659_v45  ;;  %v826_v45 = vld [vmem:[#allocation9 + $0x28] sm:$0xff] }
 0x11f   :  { %4679 = vmatpush1.bf16.msra.mxu0 %v6283_v60  ;;  %4709 = vmatpush3.bf16.msra.mxu1 %v6285_v61  ;;  %v6337_v53 = vpack.c.bf16 %v826_v45, %v823_v43  ;;  %v6374_v43 = vpack.c.bf16 %v855_v34, %v852_v29  ;;  %v854_v45 = vld [vmem:[#allocation9 + $0x108] sm:$0xff]  ;;  %v859_v29 = vld [vmem:[#allocation9 + $0x130] sm:$0xff] }
 0x120   :  { %651 = vmatprep.mubr.f32.mxu1 %v7229_v1  ;;  %4681 = vmatprep.subr.bf16.mxu0 %v6289_v63  ;;  %v862_v34 = vld [vmem:[#allocation9 + $0x148] sm:$0xff] }
 0x121   :  { %4710 = vmatprep.subr.bf16.mxu1 %v7231_v57 }
 0x122   :  { %3684 = vmatmul.mubr.msk.f32.gmra.mrb[24].mxu1 %vm278_vm0, %v3660_v49  ;;  %v6335_v49 = vpack.c.bf16 %v830_v42, %v827_v40  ;;  %v851_v40 = vld [vmem:[#allocation9 + $0xf0] sm:$0xff]  ;;  %v6371_v42 = vpack.c.bf16 %v844_v28, %v841_v27  ;;  %v6394_v27 = vpack.c.bf16 %v867_v14, %v864_v13  ;;  %v866_v28 = vld [vmem:[#allocation9 + $0x168] sm:$0xff] }
 0x123   :  { %4683 = vmatpush1.bf16.msra.mxu0 %v6296_v7  ;;  %4712 = vmatpush3.bf16.msra.mxu1 %v6298_v8 }
 0x124   :  { %657 = vmatprep.mubr.f32.mxu1 %v7229_v1  ;;  %4685 = vmatprep.subr.bf16.mxu0 %v6302_v10 }
 0x125   :  { %4713 = vmatprep.subr.bf16.mxu1 %v7231_v57 }
 0x126   :  { %3685 = vmatmul.mubr.msk.f32.gmra.mrb[26].mxu1 %vm278_vm0, %v3661_v56  ;;  %v829_v56 = vld [vmem:[#allocation9 + $0x40] sm:$0xff] }
 0x127   :  { %4687 = vmatpush1.bf16.msra.mxu0 %v6308_v21  ;;  %4715 = vmatpush3.bf16.msra.mxu1 %v6310_v22  ;;  %v6349_v4 = vpack.c.bf16 %v832_v58, %v829_v56  ;;  %v6378_v56 = vpack.c.bf16 %v854_v45, %v851_v40  ;;  %v857_v58 = vld [vmem:[#allocation9 + $0x120] sm:$0xff]  ;;  %v6398_v40 = vpack.c.bf16 %v866_v28, %v863_v17 }
 0x128   :  { %4689 = vmatprep.subr.bf16.mxu0 %v6314_v26  ;;  %4116 = vmatprep.mubr.msk.f32.mxu1 %vm5947_vm2, %v7229_v1  ;;  %v6388_v15 = vpack.c.bf16 %v860_v3, %v857_v58  ;;  %v6401_v45 = vpack.c.bf16 %v862_v34, %v859_v29 }
 0x129   :  { %4717 = vmatprep.subr.bf16.mxu1 %v6317_v30 }
 0x12a   :  { %4117 = vmatmul.mubr.f32.vlgmr.msra.gmra.mrb[28].mxu1 %v7229_v1 }
 0x12b   :  { %4691 = vmatpush1.bf16.msra.mxu0 %v6322_v36  ;;  %4719 = vmatpush1.bf16.msra.mxu1 %v6324_v37 }
 0x12c   :  { %4721 = vmatprep.subr.bf16.mxu1 %v6329_v41  ;;  %4748 = vmatprep.subr.bf16.mxu0 %v7231_v57 }
 0x12d   :  { %1135 = vmatprep.mubr.f32.mxu1 %v7229_v1 }
 0x12e   :  { %953 = vmatmul.mubr.f32.vlgmr.msra.gmra.mrb[0].mxu0 %v7229_v1 }
 0x12f   :  { %4723 = vmatpush1.bf16.msra.mxu1 %v6335_v49  ;;  %4750 = vmatpush3.bf16.msra.mxu0 %v6337_v53 }
 0x130   :  { %4725 = vmatprep.subr.bf16.mxu1 %v6340_v54  ;;  %4751 = vmatprep.subr.bf16.mxu0 %v7231_v57 }
 0x131   :  { %4151 = vmatprep.mubr.msk.f32.mxu0 %vm5947_vm2, %v7229_v1 }
 0x133   :  { %4727 = vmatpush1.bf16.msra.mxu1 %v6346_v0  ;;  %4753 = vmatpush3.bf16.msra.mxu0 %v6349_v4 }
 0x134   :  { %4729 = vmatprep.subr.bf16.mxu1 %v6352_v5  ;;  %4754 = vmatprep.subr.bf16.mxu0 %v7231_v57 }
 0x137   :  { %4731 = vmatpush1.bf16.msra.mxu1 %v6358_v16  ;;  %4756 = vmatpush3.bf16.msra.mxu0 %v6361_v18 }
 0x138   :  { %4733 = vmatprep.subr.bf16.mxu1 %v6364_v20  ;;  %4757 = vmatprep.subr.bf16.mxu0 %v7231_v57 }
 0x13b   :  { %4735 = vmatpush1.bf16.msra.mxu1 %v6368_v35  ;;  %4759 = vmatpush3.bf16.msra.mxu0 %v6371_v42 }
 0x13c   :  { %4737 = vmatprep.subr.bf16.mxu1 %v6374_v43  ;;  %4760 = vmatprep.subr.bf16.mxu0 %v7231_v57 }
 0x13f   :  { %4739 = vmatpush1.bf16.msra.mxu1 %v6378_v56  ;;  %4762 = vmatpush3.bf16.msra.mxu0 %v6381_v59 }
 0x140   :  { %4741 = vmatprep.subr.bf16.mxu1 %v6384_v62  ;;  %4763 = vmatprep.subr.bf16.mxu0 %v7231_v57 }
 0x143   :  { %4743 = vmatpush1.bf16.msra.mxu1 %v6388_v15  ;;  %4765 = vmatpush3.bf16.msra.mxu0 %v6391_v25 }
 0x144   :  { %4745 = vmatprep.subr.bf16.mxu1 %v6394_v27  ;;  %4766 = vmatprep.subr.bf16.mxu0 %v7231_v57 }
 0x147   :  { %4747 = vmatpush1.bf16.msra.mxu1 %v6398_v40  ;;  %4768 = vmatpush3.bf16.msra.mxu0 %v6401_v45 }
 0x148   :  { %4769 = vmatprep.subr.bf16.mxu0 %v7231_v57  ;;  %4804 = vmatprep.subr.bf16.mxu1 %v7231_v57 }
 0x14a   :  { %1136 = vmatmul.mubr.f32.vlgmr.msra.gmra.mrb[26].mxu1 %v7229_v1 }
 0x14b   :  { %4771 = vmatpush3.bf16.msra.mxu0 %v6407_v52  ;;  %4806 = vmatpush3.bf16.msra.mxu1 %v6200_v2 }
 0x14c   :  { %4773 = vmatprep.subr.bf16.mxu0 %v6164_v44  ;;  %4807 = vmatprep.subr.bf16.mxu1 %v7231_v57 }
 0x14d   :  { %4186 = vmatprep.mubr.msk.f32.mxu1 %vm5947_vm2, %v7229_v1 }
 0x14e   :  { %4152 = vmatmul.mubr.f32.vlgmr.msra.gmra.mrb[20].mxu0 %v7229_v1 }
 0x14f   :  { %4775 = vmatpush1.bf16.msra.mxu0 %v6208_v11  ;;  %4809 = vmatpush3.bf16.msra.mxu1 %v6210_v12 }
 0x150   :  { %4777 = vmatprep.subr.bf16.mxu0 %v6218_v19  ;;  %4810 = vmatprep.subr.bf16.mxu1 %v7231_v57 }
 0x151   :  { %1304 = vmatprep.mubr.f32.mxu0 %v7229_v1 }
 0x153   :  { %4779 = vmatpush1.bf16.msra.mxu0 %v6226_v23  ;;  %4812 = vmatpush3.bf16.msra.mxu1 %v6228_v24 }
 0x154   :  { %4781 = vmatprep.subr.bf16.mxu0 %v6238_v33  ;;  %4813 = vmatprep.subr.bf16.mxu1 %v7231_v57 }
 0x157   :  { %4783 = vmatpush1.bf16.msra.mxu0 %v6248_v38  ;;  %4815 = vmatpush3.bf16.msra.mxu1 %v6250_v39 }
 0x158   :  { %4785 = vmatprep.subr.bf16.mxu0 %v6260_v46  ;;  %4816 = vmatprep.subr.bf16.mxu1 %v7231_v57 }
 0x15b   :  { %4787 = vmatpush1.bf16.msra.mxu0 %v6268_v50  ;;  %4818 = vmatpush3.bf16.msra.mxu1 %v6270_v51 }
 0x15c   :  { %4789 = vmatprep.subr.bf16.mxu0 %v6274_v32  ;;  %4819 = vmatprep.subr.bf16.mxu1 %v7231_v57 }
 0x15f   :  { %4791 = vmatpush1.bf16.msra.mxu0 %v6283_v60  ;;  %4821 = vmatpush3.bf16.msra.mxu1 %v6285_v61 }
 0x160   :  { %4793 = vmatprep.subr.bf16.mxu0 %v6289_v63  ;;  %4822 = vmatprep.subr.bf16.mxu1 %v7231_v57 }
 0x163   :  { %4795 = vmatpush1.bf16.msra.mxu0 %v6296_v7  ;;  %4824 = vmatpush3.bf16.msra.mxu1 %v6298_v8 }
 0x164   :  { %4797 = vmatprep.subr.bf16.mxu0 %v6302_v10  ;;  %4825 = vmatprep.subr.bf16.mxu1 %v7231_v57 }
 0x167   :  { %4799 = vmatpush1.bf16.msra.mxu0 %v6308_v21  ;;  %4827 = vmatpush3.bf16.msra.mxu1 %v6310_v22 }
 0x168   :  { %4801 = vmatprep.subr.bf16.mxu0 %v6314_v26  ;;  %4829 = vmatprep.subr.bf16.mxu1 %v6317_v30  ;;  %v869_v26 = vld [vmem:[#allocation12] sm:$0x7] }
 0x16b   :  { %4803 = vmatpush1.bf16.msra.mxu0 %v6322_v36 }
 0x16c   :  { %4860 = vmatprep.subr.bf16.mxu0 %v7231_v57 }
 0x1c5   :  { %v6450_v55 = vpop.f32.mrb[0].mxu1 }
 0x1c6   :  { %7275 = vst [vmem:[#allocation29_spill] sm:$0xff] %v6450_v55  ;;  %v6452_v58 = vpop.f32.mrb[1].mxu1 }
 0x1c7   :  { %7276 = vst [vmem:[#allocation30_spill] sm:$0xff] %v6452_v58 }
 0x1c9   :  { %v6454_v3 = vpop.f32.mrb[2].mxu1 }
 0x1ca   :  { %7277 = vst [vmem:[#allocation31_spill] sm:$0xff] %v6454_v3  ;;  %v6456_v6 = vpop.f32.mrb[3].mxu1 }
 0x1cb   :  { %7278 = vst [vmem:[#allocation32_spill] sm:$0xff] %v6456_v6 }
 0x1cd   :  { %v6458_v9 = vpop.f32.mrb[4].mxu1 }
 0x1ce   :  { %7279 = vst [vmem:[#allocation33_spill] sm:$0xff] %v6458_v9  ;;  %v482_v13 = vpop.f32.mrb[5].mxu1 }
 0x1d1   :  { %v6460_v14 = vpop.f32.mrb[6].mxu1 }
 0x1d2   :  { %7280 = vst [vmem:[#allocation34_spill] sm:$0xff] %v6460_v14  ;;  %v6462_v17 = vpop.f32.mrb[7].mxu1 }
 0x1d3   :  { %7281 = vst [vmem:[#allocation35_spill] sm:$0xff] %v6462_v17 }
 0x1d5   :  { %v6464_v28 = vpop.f32.mrb[8].mxu1 }
 0x1d6   :  { %7282 = vst [vmem:[#allocation36_spill] sm:$0xff] %v6464_v28  ;;  %v6466_v29 = vpop.f32.mrb[9].mxu1  ;;  %v7293_v28 = vlaneseq }
 0x1d7   :  { %7283 = vst [vmem:[#allocation37_spill] sm:$0xff] %v6466_v29 }
 0x1d9   :  { %v6468_v34 = vpop.f32.mrb[10].mxu1 }
 0x1da   :  { %7284 = vst [vmem:[#allocation38_spill] sm:$0xff] %v6468_v34  ;;  %v6470_v47 = vpop.f32.mrb[11].mxu1  ;;  %v874_v34 = vshrl.u32 %v7293_v28, 7 }
 0x1db   :  { %7285 = vst [vmem:[#allocation39_spill] sm:$0xff] %v6470_v47  ;;  %v820_v47 = vld [vmem:[#allocation11] sm:$0x7] }
 0x1dc   :  { %v875_v29 = vsub.s32 0, %v874_v34  ;;  %v879_v17 = vsub.s32 1, %v874_v34  ;;  %v883_v36 = vsub.s32 2, %v874_v34 }
 0x1de   :  { %v6495_v8 = vrot.slane %v820_v47, %v883_v36  ;;  %v6497_v10 = vrot.slane %v869_v26, %v875_v29 }
 0x1e0   :  { %7296 = vst [vmem:[#allocation49_spill] sm:$0xff] %v6495_v8  ;;  %7297 = vst [vmem:[#allocation50_spill] sm:$0xff] %v6497_v10 }
 0x1e1   :  { %v6472_v48 = vpop.f32.mrb[12].mxu0 }
 0x1e2   :  { %7286 = vst [vmem:[#allocation40_spill] sm:$0xff] %v6472_v48  ;;  %v6474_v1 = vpop.f32.mrb[13].mxu0 }
 0x1e3   :  { %7287 = vst [vmem:[#allocation41_spill] sm:$0xff] %v6474_v1  ;;  %v6489_v1 = vrot.slane %v820_v47, %v875_v29 }
 0x1e5   :  { %v6476_v57 = vpop.f32.mrb[14].mxu0  ;;  %7294 = vst [vmem:[#allocation47_spill] sm:$0xff] %v6489_v1 }
 0x1e6   :  { %7288 = vst [vmem:[#allocation42_spill] sm:$0xff] %v6476_v57  ;;  %v6478_v31 = vpop.f32.mrb[15].mxu0 }
 0x1e7   :  { %7289 = vst [vmem:[#allocation43_spill] sm:$0xff] %v6478_v31 }
 0x1e9   :  { %v6480_v6 = vpop.f32.mrb[16].mxu0 }
 0x1ea   :  { %7290 = vst [vmem:[#allocation44_spill] sm:$0xff] %v6480_v6  ;;  %v6482_v3 = vpop.f32.mrb[17].mxu0  ;;  %v6492_v6 = vrot.slane %v820_v47, %v879_v17 }
 0x1eb   :  { %7291 = vst [vmem:[#allocation45_spill] sm:$0xff] %v6482_v3 }
 0x1ec   :  { %7295 = vst [vmem:[#allocation48_spill] sm:$0xff] %v6492_v6 }
 0x1ed   :  { %v6484_v58 = vpop.f32.mrb[18].mxu0 }
 0x1ee   :  { %v6486_v55 = vpop.f32.mrb[19].mxu0 }
 0x1ef   :  { %7292 = vst [vmem:[#allocation46_spill] sm:$0xff] %v6486_v55 }
 0x1fd   :  { %v1025_v14 = vpop.f32.mrb[28].mxu1 }
 0x1fe   :  { %v4118_v48 = vpop.f32.mrb[29].mxu1 }
 0x201   :  { %v954_v57 = vpop.f32.mrb[0].mxu0 }
 0x202   :  { %v955_v31 = vadd.f32 %v954_v57, %v6489_v1  ;;  %v956_v9 = vpop.f32.mrb[1].mxu0  ;;  %v1026_v57 = vadd.f32 %v1025_v14, %v6495_v8 }
 0x203   :  { %v957_v30 = vadd.f32 %v956_v9, %v6492_v6 }
 0x204   :  { %v3694_v3 = vmul.f32 -1.442695, %v955_v31 }
 0x205   :  { %v3695_v55 = vmul.f32 -1.442695, %v957_v30 }
 0x206   :  { %5636 = vpow2.f32 %v3694_v3 }
 0x207   :  { %5638 = vpow2.f32 %v3695_v55  ;;  %v6501_v55 = vrot.slane %v869_v26, %v879_v17 }
 0x210   :  { %v5637_v28 = vpop.eup %5636 }
 0x211   :  { %v1033_v22 = vadd.f32 1.0, %v5637_v28  ;;  %v5639_v48 = vpop.eup %5638 }
 0x212   :  { %v1040_v21 = vadd.f32 1.0, %v5639_v48 }
 0x213   :  { %5640 = vrcp.f32 %v1033_v22 }
 0x214   :  { %5642 = vrcp.f32 %v1040_v21  ;;  %v6504_v21 = vpop.permute.xlu0 %156 }
 0x215   :  { %vm3696_vm0 = vcmp.gt.s32.totalorder %v6504_v21, 0  ;;  %vm3699_vm3 = vcmp.gt.s32.totalorder %v6504_v21, 7  ;;  %vm3703_vm4 = vcmp.gt.s32.totalorder %v6504_v21, 1  ;;  %vm3707_vm5 = vcmp.gt.s32.totalorder %v6504_v21, 6 }
 0x216   :  { %vm3711_vm6 = vcmp.gt.s32.totalorder %v6504_v21, 2  ;;  %vm3715_vm7 = vcmp.gt.s32.totalorder %v6504_v21, 5  ;;  %vm3719_vm8 = vcmp.gt.s32.totalorder %v6504_v21, 3  ;;  %vm3723_vm9 = vcmp.gt.s32.totalorder %v6504_v21, 4 }
 0x21d   :  { %v5641_v1 = vpop.eup %5640  ;;  %v1137_v31 = vpop.f32.mrb[26].mxu1 }
 0x21e   :  { %v1043_v61 = vmul.f32 %v5641_v1, %v1026_v57  ;;  %v1138_v30 = vadd.f32 %v1137_v31, %v6497_v10  ;;  %v1139_v3 = vpop.f32.mrb[27].mxu1  ;;  %v5643_v48 = vpop.eup %5642 }
 0x21f   :  { %v1140_v47 = vadd.f32 %v1139_v3, %v6501_v55  ;;  %v1046_v14 = vsub.f32 1.0, %v5643_v48  ;;  %v1048_v17 = vmul.f32 0.0, %v5643_v48  ;;  %v7299_v3 = vmov 0.0  }
 0x220   :  { %v1044_v22 = vadd.f32 %v1043_v61, %v482_v13  ;;  %v3697_v9 = vmul.f32 -1.442695, %v1138_v30  ;;  %v6523_v13 = vrot.slane %v869_v26, %v883_v36 }
 0x221   :  { %v1208_v34 = vpop.f32.mrb[20].mxu0  ;;  %v3698_v29 = vmul.f32 -1.442695, %v1140_v47 }
 0x222   :  { %5644 = vtanh.f32 %v1044_v22  ;;  %v4153_v28 = vpop.f32.mrb[21].mxu0  ;;  %v1209_v22 = vadd.f32 %v1208_v34, %v6523_v13 }
 0x223   :  { %5646 = vpow2.f32 %v3697_v9 }
 0x224   :  { %5648 = vpow2.f32 %v3698_v29 }
 0x22c   :  { %v5645_v8 = vpop.eup %5644 }
 0x22d   :  { %v5647_v1 = vpop.eup %5646  ;;  %v1047_v57 = vmul.f32 %v5645_v8, %v1046_v14  ;;  %v7298_v8 = vmov 0.0|0.0  }
 0x22e   :  { %v1216_v31 = vadd.f32 1.0, %v5647_v1  ;;  %v5649_v30 = vpop.eup %5648  ;;  %v7300_v1 = vld [vmem:[#allocation19_spill] sm:$0xff] }
 0x22f   :  { %v1049_v10 = vadd.f32 %v1048_v17, %v1047_v57  ;;  %v7301_v57 = vld [vmem:[#allocation23_spill] sm:$0xff]  ;;  %v7302_v17 = vld [vmem:[#allocation24_spill] sm:$0xff] }
 0x230   :  { %5650 = vrcp.f32 %v1216_v31  ;;  %v7303_v31 = vld [vmem:[#allocation22_spill] sm:$0xff] }
 0x231   :  { %3756 = vmatmul.mubr.msk.f32.vlgmr.msra.gmra.mrb[2].mxu0 %vm3696_vm0, %v1049_v10  ;;  %4187 = vmatmul.mubr.msk.f32.vlgmr.msra.gmra.mrb[30].mxu1 %vm3696_vm0, %v1049_v10  ;;  %v6513_v61 = vsel %vm3696_vm0, %v1049_v10, 0.0  ;;  %v1223_v10 = vadd.f32 1.0, %v5649_v30  ;;  %v7304_v30 = vld [vmem:[#allocation26_spill] sm:$0xff] }
 0x232   :  { %4831 = vmatpush1.bf16.msra.mxu1 %v6324_v37  ;;  %4862 = vmatpush3.bf16.msra.mxu0 %v6337_v53  ;;  %1054 = vst [vmem:[%s7227_s9] sm:$0xff] %v6513_v61 }
 0x233   :  { %4833 = vmatprep.subr.bf16.mxu1 %v6329_v41  ;;  %4863 = vmatprep.subr.bf16.mxu0 %v7298_v8  ;;  %5652 = vrcp.f32 %v1223_v10  ;;  %v7305_v10 = vld [vmem:[#allocation28_spill] sm:$0xff] }
 0x234   :  { %1473 = vmatprep.mubr.f32.mxu1 %v7299_v3  ;;  %4221 = vmatprep.mubr.msk.f32.mxu0 %vm5947_vm2, %v7299_v3 }
 0x236   :  { %4835 = vmatpush1.bf16.msra.mxu1 %v6335_v49  ;;  %4865 = vmatpush3.bf16.msra.mxu0 %v6349_v4 }
 0x237   :  { %4837 = vmatprep.subr.bf16.mxu1 %v6340_v54  ;;  %4866 = vmatprep.subr.bf16.mxu0 %v7298_v8 }
 0x23a   :  { %v5651_v9 = vpop.eup %5650  ;;  %4839 = vmatpush1.bf16.msra.mxu1 %v6346_v0  ;;  %4868 = vmatpush3.bf16.msra.mxu0 %v6361_v18 }
 0x23b   :  { %v1226_v26 = vmul.f32 %v5651_v9, %v1209_v22  ;;  %4841 = vmatprep.subr.bf16.mxu1 %v6352_v5  ;;  %4869 = vmatprep.subr.bf16.mxu0 %v7298_v8  ;;  %v7306_v22 = vld [vmem:[#allocation25_spill] sm:$0xff]  ;;  %v7307_v9 = vld [vmem:[#allocation27_spill] sm:$0xff] }
 0x23d   :  { %v1227_v36 = vadd.f32 %v6484_v58, %v1226_v26  ;;  %v5653_v34 = vpop.eup %5652 }
 0x23e   :  { %4843 = vmatpush1.bf16.msra.mxu1 %v6358_v16  ;;  %4871 = vmatpush3.bf16.msra.mxu0 %v6371_v42  ;;  %v1229_v58 = vsub.f32 1.0, %v5653_v34  ;;  %v1231_v29 = vmul.f32 0.0, %v5653_v34  ;;  %v7308_v34 = vld [vmem:[#allocation47_spill] sm:$0xff] }
 0x23f   :  { %5654 = vtanh.f32 %v1227_v36  ;;  %4845 = vmatprep.subr.bf16.mxu1 %v6364_v20  ;;  %4872 = vmatprep.subr.bf16.mxu0 %v7298_v8 }
 0x242   :  { %4847 = vmatpush1.bf16.msra.mxu1 %v6368_v35  ;;  %4874 = vmatpush3.bf16.msra.mxu0 %v6381_v59 }
 0x243   :  { %4849 = vmatprep.subr.bf16.mxu1 %v6374_v43  ;;  %4875 = vmatprep.subr.bf16.mxu0 %v7298_v8 }
 0x246   :  { %4851 = vmatpush1.bf16.msra.mxu1 %v6378_v56  ;;  %4877 = vmatpush3.bf16.msra.mxu0 %v6391_v25 }
 0x247   :  { %4853 = vmatprep.subr.bf16.mxu1 %v6384_v62  ;;  %4878 = vmatprep.subr.bf16.mxu0 %v7298_v8 }
 0x249   :  { %v5655_v47 = vpop.eup %5654 }
 0x24a   :  { %4855 = vmatpush1.bf16.msra.mxu1 %v6388_v15  ;;  %4880 = vmatpush3.bf16.msra.mxu0 %v6401_v45  ;;  %v1230_v28 = vmul.f32 %v5655_v47, %v1229_v58 }
 0x24b   :  { %4857 = vmatprep.subr.bf16.mxu1 %v6394_v27  ;;  %4881 = vmatprep.subr.bf16.mxu0 %v7298_v8 }
 0x24c   :  { %v1232_v48 = vadd.f32 %v1231_v29, %v1230_v28 }
 0x24e   :  { %4859 = vmatpush1.bf16.msra.mxu1 %v6398_v40  ;;  %4883 = vmatpush3.bf16.msra.mxu0 %v6407_v52  ;;  %v6559_v14 = vsel %vm3699_vm3, %v1232_v48, 0.0 }
 0x24f   :  { %4885 = vmatprep.subr.bf16.mxu0 %v6164_v44  ;;  %4916 = vmatprep.subr.bf16.mxu1 %v7298_v8  ;;  %3700 = vst [vmem:[%s7228_s10 + $0x38] sm:$0xff] %v6559_v14 }
 0x251   :  { %3758 = vmatmul.mubr.msk.f32.vlgmr.msra.gmra.mrb[24].mxu1 %vm3699_vm3, %v1232_v48  ;;  %4222 = vmatmul.mubr.msk.f32.vlgmr.msra.gmra.mrb[22].mxu0 %vm3699_vm3, %v1232_v48 }
 0x252   :  { %4887 = vmatpush1.bf16.msra.mxu0 %v6208_v11  ;;  %4918 = vmatpush3.bf16.msra.mxu1 %v6200_v2 }
 0x253   :  { %4889 = vmatprep.subr.bf16.mxu0 %v6218_v19  ;;  %4919 = vmatprep.subr.bf16.mxu1 %v7298_v8 }
 0x254   :  { %1642 = vmatprep.mubr.f32.mxu0 %v7299_v3  ;;  %4256 = vmatprep.mubr.msk.f32.mxu1 %vm5947_vm2, %v7299_v3 }
 0x256   :  { %4891 = vmatpush1.bf16.msra.mxu0 %v6226_v23  ;;  %4921 = vmatpush3.bf16.msra.mxu1 %v6210_v12 }
 0x257   :  { %4893 = vmatprep.subr.bf16.mxu0 %v6238_v33  ;;  %4922 = vmatprep.subr.bf16.mxu1 %v7298_v8 }
 0x25a   :  { %4895 = vmatpush1.bf16.msra.mxu0 %v6248_v38  ;;  %4924 = vmatpush3.bf16.msra.mxu1 %v6228_v24 }
 0x25b   :  { %4897 = vmatprep.subr.bf16.mxu0 %v6260_v46  ;;  %4925 = vmatprep.subr.bf16.mxu1 %v7298_v8 }
 0x25e   :  { %4899 = vmatpush1.bf16.msra.mxu0 %v6268_v50  ;;  %4927 = vmatpush3.bf16.msra.mxu1 %v6250_v39 }
 0x25f   :  { %4901 = vmatprep.subr.bf16.mxu0 %v6274_v32  ;;  %4928 = vmatprep.subr.bf16.mxu1 %v7298_v8 }
 0x262   :  { %4903 = vmatpush1.bf16.msra.mxu0 %v6283_v60  ;;  %4930 = vmatpush3.bf16.msra.mxu1 %v6270_v51 }
 0x263   :  { %4905 = vmatprep.subr.bf16.mxu0 %v6289_v63  ;;  %4931 = vmatprep.subr.bf16.mxu1 %v7298_v8  ;;  %v7310_v63 = vld [vmem:[#allocation33_spill] sm:$0xff] }
 0x266   :  { %4907 = vmatpush1.bf16.msra.mxu0 %v6296_v7  ;;  %4933 = vmatpush3.bf16.msra.mxu1 %v7300_v1 }
 0x267   :  { %4909 = vmatprep.subr.bf16.mxu0 %v7301_v57  ;;  %4934 = vmatprep.subr.bf16.mxu1 %v7298_v8 }
 0x26a   :  { %4911 = vmatpush1.bf16.msra.mxu0 %v7302_v17  ;;  %4936 = vmatpush3.bf16.msra.mxu1 %v7303_v31 }
 0x26b   :  { %4913 = vmatprep.subr.bf16.mxu0 %v7304_v30  ;;  %4937 = vmatprep.subr.bf16.mxu1 %v7298_v8 }
 0x26e   :  { %4915 = vmatpush1.bf16.msra.mxu0 %v7305_v10  ;;  %4939 = vmatpush3.bf16.msra.mxu1 %v7306_v22 }
 0x26f   :  { %4941 = vmatprep.subr.bf16.mxu1 %v7307_v9  ;;  %4972 = vmatprep.subr.bf16.mxu0 %v7298_v8  ;;  %v7309_v9 = vld [vmem:[#allocation49_spill] sm:$0xff] }
 0x304   :  { %v1306_v26 = vpop.f32.mrb[2].mxu0  ;;  %v1377_v36 = vpop.f32.mrb[30].mxu1 }
 0x305   :  { %v1307_v58 = vadd.f32 %v1306_v26, %v7308_v34  ;;  %v1308_v47 = vpop.f32.mrb[3].mxu0  ;;  %v4188_v28 = vpop.f32.mrb[31].mxu1  ;;  %v1378_v57 = vadd.f32 %v1377_v36, %v7309_v9 }
 0x306   :  { %v1309_v48 = vadd.f32 %v1308_v47, %v6492_v6 }
 0x307   :  { %v3701_v29 = vmul.f32 -1.442695, %v1307_v58  ;;  %v7311_v58 = vld [vmem:[#allocation50_spill] sm:$0xff] }
 0x308   :  { %v3702_v30 = vmul.f32 -1.442695, %v1309_v48 }
 0x309   :  { %5656 = vpow2.f32 %v3701_v29 }
 0x30a   :  { %5658 = vpow2.f32 %v3702_v30 }
 0x313   :  { %v5657_v31 = vpop.eup %5656 }
 0x314   :  { %v1385_v10 = vadd.f32 1.0, %v5657_v31  ;;  %v5659_v22 = vpop.eup %5658 }
 0x315   :  { %v1392_v17 = vadd.f32 1.0, %v5659_v22 }
 0x316   :  { %5660 = vrcp.f32 %v1385_v10 }
 0x317   :  { %5662 = vrcp.f32 %v1392_v17 }
 0x320   :  { %v5661_v1 = vpop.eup %5660 }
 0x321   :  { %v1395_v7 = vmul.f32 %v5661_v1, %v1378_v57  ;;  %v5663_v10 = vpop.eup %5662 }
 0x322   :  { %v1398_v6 = vsub.f32 1.0, %v5663_v10  ;;  %v1400_v57 = vmul.f32 %v5663_v10, %v6513_v61 }
 0x323   :  { %v1396_v26 = vadd.f32 %v7310_v63, %v1395_v7 }
 0x324   :  { %v1475_v34 = vpop.f32.mrb[24].mxu1  ;;  %v1546_v28 = vpop.f32.mrb[22].mxu0 }
 0x325   :  { %5664 = vtanh.f32 %v1396_v26  ;;  %v1476_v47 = vadd.f32 %v1475_v34, %v7311_v58  ;;  %v1477_v29 = vpop.f32.mrb[25].mxu1  ;;  %v4223_v48 = vpop.f32.mrb[23].mxu0 }
 0x326   :  { %v1478_v31 = vadd.f32 %v1477_v29, %v6501_v55 }
 0x327   :  { %v3705_v30 = vmul.f32 -1.442695, %v1476_v47  ;;  %v1547_v47 = vadd.f32 %v1546_v28, %v6523_v13 }
 0x328   :  { %v3706_v22 = vmul.f32 -1.442695, %v1478_v31 }
 0x329   :  { %5666 = vpow2.f32 %v3705_v30  ;;  %v7312_v30 = vld [vmem:[#allocation46_spill] sm:$0xff] }
 0x32a   :  { %5668 = vpow2.f32 %v3706_v22 }
 0x32f   :  { %v5665_v36 = vpop.eup %5664 }
 0x330   :  { %v1399_v1 = vmul.f32 %v5665_v36, %v1398_v6 }
 0x332   :  { %v1401_v63 = vadd.f32 %v1400_v57, %v1399_v1 }
 0x333   :  { %v5667_v7 = vpop.eup %5666 }
 0x334   :  { %v1554_v17 = vadd.f32 1.0, %v5667_v7  ;;  %v6617_v34 = vsel %vm3703_vm4, %v1401_v63, %v6513_v61  ;;  %v1406_v26 = vsel %vm3703_vm4, %v1401_v63, 0.0  ;;  %v5669_v6 = vpop.eup %5668 }
 0x335   :  { %3704 = vst [vmem:[%s7227_s9 + $0x8] sm:$0xff] %v1406_v26  ;;  %1643 = vmatmul.mubr.f32.vlgmr.msra.gmra.mrb[4].mxu0 %v6617_v34  ;;  %4257 = vmatmul.mubr.f32.vlgmr.msra.gmra.mrb[32].mxu1 %v6617_v34  ;;  %v1561_v61 = vadd.f32 1.0, %v5669_v6  ;;  %v7315_v26 = vld [vmem:[#allocation19_spill] sm:$0xff] }
 0x336   :  { %5670 = vrcp.f32 %v1554_v17  ;;  %4943 = vmatpush1.bf16.msra.mxu1 %v6324_v37  ;;  %4974 = vmatpush3.bf16.msra.mxu0 %v6337_v53  ;;  %v7314_v17 = vld [vmem:[#allocation21_spill] sm:$0xff]  ;;  %v7316_v6 = vld [vmem:[#allocation23_spill] sm:$0xff] }
 0x337   :  { %4945 = vmatprep.subr.bf16.mxu1 %v6329_v41  ;;  %4975 = vmatprep.subr.bf16.mxu0 %v7298_v8  ;;  %5672 = vrcp.f32 %v1561_v61  ;;  %v7317_v61 = vld [vmem:[#allocation24_spill] sm:$0xff] }
 0x338   :  { %1811 = vmatprep.mubr.f32.mxu1 %v7299_v3  ;;  %4291 = vmatprep.mubr.msk.f32.mxu0 %vm5947_vm2, %v7299_v3 }
 0x33a   :  { %4947 = vmatpush1.bf16.msra.mxu1 %v6335_v49  ;;  %4977 = vmatpush3.bf16.msra.mxu0 %v6349_v4 }
 0x33b   :  { %4949 = vmatprep.subr.bf16.mxu1 %v6340_v54  ;;  %4978 = vmatprep.subr.bf16.mxu0 %v7298_v8 }
 0x33e   :  { %4951 = vmatpush1.bf16.msra.mxu1 %v6346_v0  ;;  %4980 = vmatpush3.bf16.msra.mxu0 %v6361_v18 }
 0x33f   :  { %4953 = vmatprep.subr.bf16.mxu1 %v6352_v5  ;;  %4981 = vmatprep.subr.bf16.mxu0 %v7298_v8 }
 0x340   :  { %v5671_v29 = vpop.eup %5670 }
 0x341   :  { %v1564_v48 = vmul.f32 %v5671_v29, %v1547_v47  ;;  %v5673_v28 = vpop.eup %5672  ;;  %v7318_v47 = vld [vmem:[#allocation22_spill] sm:$0xff] }
 0x342   :  { %4955 = vmatpush1.bf16.msra.mxu1 %v6358_v16  ;;  %4983 = vmatpush3.bf16.msra.mxu0 %v6371_v42  ;;  %v1567_v10 = vsub.f32 1.0, %v5673_v28  ;;  %v1569_v1 = vmul.f32 %v5673_v28, %v6559_v14  ;;  %v7319_v29 = vld [vmem:[#allocation26_spill] sm:$0xff] }
 0x343   :  { %v1565_v31 = vadd.f32 %v1564_v48, %v7312_v30  ;;  %4957 = vmatprep.subr.bf16.mxu1 %v6364_v20  ;;  %4984 = vmatprep.subr.bf16.mxu0 %v7298_v8  ;;  %v7320_v48 = vld [vmem:[#allocation28_spill] sm:$0xff]  ;;  %v7321_v30 = vld [vmem:[#allocation25_spill] sm:$0xff] }
 0x345   :  { %5674 = vtanh.f32 %v1565_v31  ;;  %v7322_v31 = vld [vmem:[#allocation27_spill] sm:$0xff] }
 0x346   :  { %4959 = vmatpush1.bf16.msra.mxu1 %v6368_v35  ;;  %4986 = vmatpush3.bf16.msra.mxu0 %v6381_v59 }
 0x347   :  { %4961 = vmatprep.subr.bf16.mxu1 %v6374_v43  ;;  %4987 = vmatprep.subr.bf16.mxu0 %v7298_v8 }
 0x34a   :  { %4963 = vmatpush1.bf16.msra.mxu1 %v6378_v56  ;;  %4989 = vmatpush3.bf16.msra.mxu0 %v6391_v25 }
 0x34b   :  { %4965 = vmatprep.subr.bf16.mxu1 %v6384_v62  ;;  %4990 = vmatprep.subr.bf16.mxu0 %v7298_v8 }
 0x34e   :  { %4967 = vmatpush1.bf16.msra.mxu1 %v6388_v15  ;;  %4992 = vmatpush3.bf16.msra.mxu0 %v6401_v45 }
 0x34f   :  { %v5675_v22 = vpop.eup %5674  ;;  %4969 = vmatprep.subr.bf16.mxu1 %v6394_v27  ;;  %4993 = vmatprep.subr.bf16.mxu0 %v7298_v8 }
 0x350   :  { %v1568_v36 = vmul.f32 %v5675_v22, %v1567_v10  ;;  %v7323_v22 = vld [vmem:[#allocation47_spill] sm:$0xff] }
 0x352   :  { %4971 = vmatpush1.bf16.msra.mxu1 %v6398_v40  ;;  %4995 = vmatpush3.bf16.msra.mxu0 %v6407_v52  ;;  %v1570_v57 = vadd.f32 %v1569_v1, %v1568_v36 }
 0x353   :  { %4997 = vmatprep.subr.bf16.mxu0 %v6164_v44  ;;  %5028 = vmatprep.subr.bf16.mxu1 %v7298_v8 }
 0x354   :  { %v6668_v63 = vsel %vm3707_vm5, %v1570_v57, %v6559_v14  ;;  %v1575_v7 = vsel %vm3707_vm5, %v1570_v57, 0.0  ;;  %v7313_v14 = vld [vmem:[#allocation20_spill] sm:$0xff] }
 0x355   :  { %3708 = vst [vmem:[%s7228_s10 + $0x30] sm:$0xff] %v1575_v7  ;;  %1812 = vmatmul.mubr.f32.vlgmr.msra.gmra.mrb[22].mxu1 %v6668_v63  ;;  %4292 = vmatmul.mubr.f32.vlgmr.msra.gmra.mrb[24].mxu0 %v6668_v63 }
 0x356   :  { %4999 = vmatpush1.bf16.msra.mxu0 %v6208_v11  ;;  %5030 = vmatpush3.bf16.msra.mxu1 %v6200_v2 }
 0x357   :  { %5001 = vmatprep.subr.bf16.mxu0 %v6218_v19  ;;  %5031 = vmatprep.subr.bf16.mxu1 %v7298_v8 }
 0x358   :  { %1980 = vmatprep.mubr.f32.mxu0 %v7299_v3  ;;  %4326 = vmatprep.mubr.msk.f32.mxu1 %vm5947_vm2, %v7299_v3 }
 0x35a   :  { %5003 = vmatpush1.bf16.msra.mxu0 %v6226_v23  ;;  %5033 = vmatpush3.bf16.msra.mxu1 %v6210_v12 }
 0x35b   :  { %5005 = vmatprep.subr.bf16.mxu0 %v6238_v33  ;;  %5034 = vmatprep.subr.bf16.mxu1 %v7298_v8 }
 0x35e   :  { %5007 = vmatpush1.bf16.msra.mxu0 %v6248_v38  ;;  %5036 = vmatpush3.bf16.msra.mxu1 %v6228_v24 }
 0x35f   :  { %5009 = vmatprep.subr.bf16.mxu0 %v6260_v46  ;;  %5037 = vmatprep.subr.bf16.mxu1 %v7298_v8 }
 0x362   :  { %5011 = vmatpush1.bf16.msra.mxu0 %v6268_v50  ;;  %5039 = vmatpush3.bf16.msra.mxu1 %v6250_v39 }
 0x363   :  { %5013 = vmatprep.subr.bf16.mxu0 %v6274_v32  ;;  %5040 = vmatprep.subr.bf16.mxu1 %v7298_v8 }
 0x366   :  { %5015 = vmatpush1.bf16.msra.mxu0 %v6283_v60  ;;  %5042 = vmatpush3.bf16.msra.mxu1 %v6270_v51  ;;  %v7325_v51 = vld [vmem:[#allocation35_spill] sm:$0xff] }
 0x367   :  { %5017 = vmatprep.subr.bf16.mxu0 %v7313_v14  ;;  %5043 = vmatprep.subr.bf16.mxu1 %v7298_v8 }
 0x36a   :  { %5019 = vmatpush1.bf16.msra.mxu0 %v7314_v17  ;;  %5045 = vmatpush3.bf16.msra.mxu1 %v7315_v26 }
 0x36b   :  { %5021 = vmatprep.subr.bf16.mxu0 %v7316_v6  ;;  %5046 = vmatprep.subr.bf16.mxu1 %v7298_v8 }
 0x36e   :  { %5023 = vmatpush1.bf16.msra.mxu0 %v7317_v61  ;;  %5048 = vmatpush3.bf16.msra.mxu1 %v7318_v47  ;;  %v7324_v47 = vld [vmem:[#allocation48_spill] sm:$0xff] }
 0x36f   :  { %5025 = vmatprep.subr.bf16.mxu0 %v7319_v29  ;;  %5049 = vmatprep.subr.bf16.mxu1 %v7298_v8 }
 0x372   :  { %5027 = vmatpush1.bf16.msra.mxu0 %v7320_v48  ;;  %5051 = vmatpush3.bf16.msra.mxu1 %v7321_v30 }
 0x373   :  { %5053 = vmatprep.subr.bf16.mxu1 %v7322_v31  ;;  %5084 = vmatprep.subr.bf16.mxu0 %v7298_v8 }
 0x408   :  { %v1644_v28 = vpop.f32.mrb[4].mxu0  ;;  %v1715_v10 = vpop.f32.mrb[32].mxu1 }
 0x409   :  { %v1645_v36 = vadd.f32 %v1644_v28, %v7323_v22  ;;  %v1646_v1 = vpop.f32.mrb[5].mxu0  ;;  %v4258_v57 = vpop.f32.mrb[33].mxu1  ;;  %v1716_v31 = vadd.f32 %v1715_v10, %v7309_v9 }
 0x40a   :  { %v1647_v61 = vadd.f32 %v1646_v1, %v7324_v47 }
 0x40b   :  { %v3709_v7 = vmul.f32 -1.442695, %v1645_v36 }
 0x40c   :  { %v3710_v29 = vmul.f32 -1.442695, %v1647_v61 }
 0x40d   :  { %5676 = vpow2.f32 %v3709_v7 }
 0x40e   :  { %5678 = vpow2.f32 %v3710_v29 }
 0x417   :  { %v5677_v6 = vpop.eup %5676 }
 0x418   :  { %v1723_v48 = vadd.f32 1.0, %v5677_v6  ;;  %v5679_v30 = vpop.eup %5678 }
 0x419   :  { %v1730_v26 = vadd.f32 1.0, %v5679_v30 }
 0x41a   :  { %5680 = vrcp.f32 %v1723_v48 }
 0x41b   :  { %5682 = vrcp.f32 %v1730_v26 }
 0x424   :  { %v5681_v17 = vpop.eup %5680 }
 0x425   :  { %v1733_v14 = vmul.f32 %v5681_v17, %v1716_v31  ;;  %v5683_v48 = vpop.eup %5682 }
 0x426   :  { %v1736_v7 = vsub.f32 1.0, %v5683_v48  ;;  %v1738_v26 = vmul.f32 %v5683_v48, %v6617_v34 }
 0x427   :  { %v1734_v28 = vadd.f32 %v1733_v14, %v7325_v51 }
 0x428   :  { %v1813_v22 = vpop.f32.mrb[22].mxu1  ;;  %v1884_v57 = vpop.f32.mrb[24].mxu0 }
 0x429   :  { %5684 = vtanh.f32 %v1734_v28  ;;  %v1814_v36 = vadd.f32 %v1813_v22, %v7311_v58  ;;  %v1815_v1 = vpop.f32.mrb[23].mxu1  ;;  %v4293_v61 = vpop.f32.mrb[25].mxu0 }
 0x42a   :  { %v1816_v6 = vadd.f32 %v1815_v1, %v6501_v55  ;;  %v1885_v1 = vadd.f32 %v1884_v57, %v6523_v13 }
 0x42b   :  { %v3713_v29 = vmul.f32 -1.442695, %v1814_v36 }
 0x42c   :  { %v3714_v30 = vmul.f32 -1.442695, %v1816_v6  ;;  %v7326_v6 = vld [vmem:[#allocation44_spill] sm:$0xff] }
 0x42d   :  { %5686 = vpow2.f32 %v3713_v29 }
 0x42e   :  { %5688 = vpow2.f32 %v3714_v30 }
 0x433   :  { %v5685_v10 = vpop.eup %5684 }
 0x434   :  { %v1737_v17 = vmul.f32 %v5685_v10, %v1736_v7 }
 0x436   :  { %v1739_v51 = vadd.f32 %v1738_v26, %v1737_v17 }
 0x437   :  { %v5687_v14 = vpop.eup %5686 }
 0x438   :  { %v1892_v31 = vadd.f32 1.0, %v5687_v14  ;;  %v6723_v22 = vsel %vm3711_vm6, %v1739_v51, %v6617_v34  ;;  %v1744_v28 = vsel %vm3711_vm6, %v1739_v51, 0.0  ;;  %v5689_v34 = vpop.eup %5688 }
 0x439   :  { %3712 = vst [vmem:[%s7227_s9 + $0x10] sm:$0xff] %v1744_v28  ;;  %1981 = vmatmul.mubr.f32.vlgmr.msra.gmra.mrb[6].mxu0 %v6723_v22  ;;  %4327 = vmatmul.mubr.f32.vlgmr.msra.gmra.mrb[34].mxu1 %v6723_v22  ;;  %v1899_v36 = vadd.f32 1.0, %v5689_v34  ;;  %v7329_v28 = vld [vmem:[#allocation21_spill] sm:$0xff]  ;;  %v7330_v34 = vld [vmem:[#allocation19_spill] sm:$0xff] }
 0x43a   :  { %5690 = vrcp.f32 %v1892_v31  ;;  %5055 = vmatpush1.bf16.msra.mxu1 %v6324_v37  ;;  %5086 = vmatpush3.bf16.msra.mxu0 %v6337_v53  ;;  %v7328_v31 = vld [vmem:[#allocation20_spill] sm:$0xff] }
 0x43b   :  { %5057 = vmatprep.subr.bf16.mxu1 %v6329_v41  ;;  %5087 = vmatprep.subr.bf16.mxu0 %v7298_v8  ;;  %5692 = vrcp.f32 %v1899_v36  ;;  %v7331_v36 = vld [vmem:[#allocation23_spill] sm:$0xff] }
 0x43c   :  { %2149 = vmatprep.mubr.f32.mxu1 %v7299_v3  ;;  %4361 = vmatprep.mubr.msk.f32.mxu0 %vm5947_vm2, %v7299_v3 }
 0x43e   :  { %5059 = vmatpush1.bf16.msra.mxu1 %v6335_v49  ;;  %5089 = vmatpush3.bf16.msra.mxu0 %v6349_v4 }
 0x43f   :  { %5061 = vmatprep.subr.bf16.mxu1 %v6340_v54  ;;  %5090 = vmatprep.subr.bf16.mxu0 %v7298_v8 }
 0x442   :  { %5063 = vmatpush1.bf16.msra.mxu1 %v6346_v0  ;;  %5092 = vmatpush3.bf16.msra.mxu0 %v6361_v18 }
 0x443   :  { %5065 = vmatprep.subr.bf16.mxu1 %v6352_v5  ;;  %5093 = vmatprep.subr.bf16.mxu0 %v7298_v8 }
 0x444   :  { %v5691_v61 = vpop.eup %5690 }
 0x445   :  { %v1902_v29 = vmul.f32 %v5691_v61, %v1885_v1  ;;  %v5693_v57 = vpop.eup %5692  ;;  %v7332_v1 = vld [vmem:[#allocation24_spill] sm:$0xff]  ;;  %v7333_v61 = vld [vmem:[#allocation22_spill] sm:$0xff] }
 0x446   :  { %5067 = vmatpush1.bf16.msra.mxu1 %v6358_v16  ;;  %5095 = vmatpush3.bf16.msra.mxu0 %v6371_v42  ;;  %v1905_v30 = vsub.f32 1.0, %v5693_v57  ;;  %v1907_v17 = vmul.f32 %v5693_v57, %v6668_v63  ;;  %v7337_v57 = vld [vmem:[#allocation27_spill] sm:$0xff] }
 0x447   :  { %v1903_v48 = vadd.f32 %v7326_v6, %v1902_v29  ;;  %5069 = vmatprep.subr.bf16.mxu1 %v6364_v20  ;;  %5096 = vmatprep.subr.bf16.mxu0 %v7298_v8  ;;  %v7334_v29 = vld [vmem:[#allocation26_spill] sm:$0xff]  ;;  %v7335_v6 = vld [vmem:[#allocation28_spill] sm:$0xff] }
 0x449   :  { %5694 = vtanh.f32 %v1903_v48  ;;  %v7336_v48 = vld [vmem:[#allocation25_spill] sm:$0xff] }
 0x44a   :  { %5071 = vmatpush1.bf16.msra.mxu1 %v6368_v35  ;;  %5098 = vmatpush3.bf16.msra.mxu0 %v6381_v59 }
 0x44b   :  { %5073 = vmatprep.subr.bf16.mxu1 %v6374_v43  ;;  %5099 = vmatprep.subr.bf16.mxu0 %v7298_v8 }
 0x44e   :  { %5075 = vmatpush1.bf16.msra.mxu1 %v6378_v56  ;;  %5101 = vmatpush3.bf16.msra.mxu0 %v6391_v25 }
 0x44f   :  { %5077 = vmatprep.subr.bf16.mxu1 %v6384_v62  ;;  %5102 = vmatprep.subr.bf16.mxu0 %v7298_v8 }
 0x452   :  { %5079 = vmatpush1.bf16.msra.mxu1 %v6388_v15  ;;  %5104 = vmatpush3.bf16.msra.mxu0 %v6401_v45 }
 0x453   :  { %v5695_v7 = vpop.eup %5694  ;;  %5081 = vmatprep.subr.bf16.mxu1 %v6394_v27  ;;  %5105 = vmatprep.subr.bf16.mxu0 %v7298_v8 }
 0x454   :  { %v1906_v10 = vmul.f32 %v5695_v7, %v1905_v30 }
 0x456   :  { %5083 = vmatpush1.bf16.msra.mxu1 %v6398_v40  ;;  %5107 = vmatpush3.bf16.msra.mxu0 %v6407_v52  ;;  %v1908_v26 = vadd.f32 %v1907_v17, %v1906_v10  ;;  %v7338_v10 = vld [vmem:[#allocation47_spill] sm:$0xff] }
 0x457   :  { %5109 = vmatprep.subr.bf16.mxu0 %v6164_v44  ;;  %5140 = vmatprep.subr.bf16.mxu1 %v7298_v8 }
 0x458   :  { %v6774_v51 = vsel %vm3715_vm7, %v1908_v26, %v6668_v63  ;;  %v1913_v14 = vsel %vm3715_vm7, %v1908_v26, 0.0  ;;  %v7327_v63 = vld [vmem:[#allocation18_spill] sm:$0xff] }
 0x459   :  { %3716 = vst [vmem:[%s7228_s10 + $0x28] sm:$0xff] %v1913_v14  ;;  %2150 = vmatmul.mubr.f32.vlgmr.msra.gmra.mrb[20].mxu1 %v6774_v51  ;;  %4362 = vmatmul.mubr.f32.vlgmr.msra.gmra.mrb[26].mxu0 %v6774_v51 }
 0x45a   :  { %5111 = vmatpush1.bf16.msra.mxu0 %v6208_v11  ;;  %5142 = vmatpush3.bf16.msra.mxu1 %v6200_v2 }
 0x45b   :  { %5113 = vmatprep.subr.bf16.mxu0 %v6218_v19  ;;  %5143 = vmatprep.subr.bf16.mxu1 %v7298_v8 }
 0x45c   :  { %2318 = vmatprep.mubr.f32.mxu0 %v7299_v3  ;;  %4396 = vmatprep.mubr.msk.f32.mxu1 %vm5947_vm2, %v7299_v3 }
 0x45e   :  { %5115 = vmatpush1.bf16.msra.mxu0 %v6226_v23  ;;  %5145 = vmatpush3.bf16.msra.mxu1 %v6210_v12 }
 0x45f   :  { %5117 = vmatprep.subr.bf16.mxu0 %v6238_v33  ;;  %5146 = vmatprep.subr.bf16.mxu1 %v7298_v8 }
 0x462   :  { %5119 = vmatpush1.bf16.msra.mxu0 %v6248_v38  ;;  %5148 = vmatpush3.bf16.msra.mxu1 %v6228_v24 }
 0x463   :  { %5121 = vmatprep.subr.bf16.mxu0 %v6260_v46  ;;  %5149 = vmatprep.subr.bf16.mxu1 %v7298_v8 }
 0x466   :  { %5123 = vmatpush1.bf16.msra.mxu0 %v6268_v50  ;;  %5151 = vmatpush3.bf16.msra.mxu1 %v6250_v39 }
 0x467   :  { %5125 = vmatprep.subr.bf16.mxu0 %v6274_v32  ;;  %5152 = vmatprep.subr.bf16.mxu1 %v7298_v8 }
 0x46a   :  { %5127 = vmatpush1.bf16.msra.mxu0 %v6283_v60  ;;  %5154 = vmatpush3.bf16.msra.mxu1 %v7327_v63  ;;  %v7339_v63 = vld [vmem:[#allocation34_spill] sm:$0xff] }
 0x46b   :  { %5129 = vmatprep.subr.bf16.mxu0 %v7328_v31  ;;  %5155 = vmatprep.subr.bf16.mxu1 %v7298_v8 }
 0x46e   :  { %5131 = vmatpush1.bf16.msra.mxu0 %v7329_v28  ;;  %5157 = vmatpush3.bf16.msra.mxu1 %v7330_v34 }
 0x46f   :  { %5133 = vmatprep.subr.bf16.mxu0 %v7331_v36  ;;  %5158 = vmatprep.subr.bf16.mxu1 %v7298_v8 }
 0x472   :  { %5135 = vmatpush1.bf16.msra.mxu0 %v7332_v1  ;;  %5160 = vmatpush3.bf16.msra.mxu1 %v7333_v61 }
 0x473   :  { %5137 = vmatprep.subr.bf16.mxu0 %v7334_v29  ;;  %5161 = vmatprep.subr.bf16.mxu1 %v7298_v8 }
 0x476   :  { %5139 = vmatpush1.bf16.msra.mxu0 %v7335_v6  ;;  %5163 = vmatpush3.bf16.msra.mxu1 %v7336_v48 }
 0x477   :  { %5165 = vmatprep.subr.bf16.mxu1 %v7337_v57  ;;  %5196 = vmatprep.subr.bf16.mxu0 %v7298_v8 }
 0x50c   :  { %v1982_v30 = vpop.f32.mrb[6].mxu0  ;;  %v2053_v7 = vpop.f32.mrb[34].mxu1 }
 0x50d   :  { %v1983_v17 = vadd.f32 %v1982_v30, %v7338_v10  ;;  %v1984_v26 = vpop.f32.mrb[7].mxu0  ;;  %v4328_v14 = vpop.f32.mrb[35].mxu1  ;;  %v2054_v57 = vadd.f32 %v2053_v7, %v7309_v9 }
 0x50e   :  { %v1985_v61 = vadd.f32 %v1984_v26, %v7324_v47 }
 0x50f   :  { %v3717_v1 = vmul.f32 -1.442695, %v1983_v17 }
 0x510   :  { %v3718_v29 = vmul.f32 -1.442695, %v1985_v61 }
 0x511   :  { %5696 = vpow2.f32 %v3717_v1 }
 0x512   :  { %5698 = vpow2.f32 %v3718_v29 }
 0x51b   :  { %v5697_v36 = vpop.eup %5696 }
 0x51c   :  { %v2061_v6 = vadd.f32 1.0, %v5697_v36  ;;  %v5699_v48 = vpop.eup %5698 }
 0x51d   :  { %v2068_v34 = vadd.f32 1.0, %v5699_v48 }
 0x51e   :  { %5700 = vrcp.f32 %v2061_v6 }
 0x51f   :  { %5702 = vrcp.f32 %v2068_v34 }
 0x528   :  { %v5701_v28 = vpop.eup %5700 }
 0x529   :  { %v2071_v31 = vmul.f32 %v5701_v28, %v2054_v57  ;;  %v5703_v6 = vpop.eup %5702 }
 0x52a   :  { %v2074_v26 = vsub.f32 1.0, %v5703_v6  ;;  %v2076_v34 = vmul.f32 %v5703_v6, %v6723_v22 }
 0x52b   :  { %v2072_v30 = vadd.f32 %v7339_v63, %v2071_v31 }
 0x52c   :  { %v2151_v10 = vpop.f32.mrb[20].mxu1  ;;  %v2222_v14 = vpop.f32.mrb[26].mxu0 }
 0x52d   :  { %5704 = vtanh.f32 %v2072_v30  ;;  %v2152_v17 = vadd.f32 %v2151_v10, %v7311_v58  ;;  %v2153_v1 = vpop.f32.mrb[21].mxu1  ;;  %v4363_v61 = vpop.f32.mrb[27].mxu0 }
 0x52e   :  { %v2154_v36 = vadd.f32 %v2153_v1, %v6501_v55  ;;  %v2223_v1 = vadd.f32 %v2222_v14, %v6523_v13 }
 0x52f   :  { %v3721_v29 = vmul.f32 -1.442695, %v2152_v17 }
 0x530   :  { %v3722_v48 = vmul.f32 -1.442695, %v2154_v36  ;;  %v7340_v36 = vld [vmem:[#allocation45_spill] sm:$0xff] }
 0x531   :  { %5706 = vpow2.f32 %v3721_v29 }
 0x532   :  { %5708 = vpow2.f32 %v3722_v48 }
 0x537   :  { %v5705_v7 = vpop.eup %5704 }
 0x538   :  { %v2075_v28 = vmul.f32 %v5705_v7, %v2074_v26 }
 0x53a   :  { %v2077_v63 = vadd.f32 %v2076_v34, %v2075_v28 }
 0x53b   :  { %v5707_v31 = vpop.eup %5706 }
 0x53c   :  { %v2230_v57 = vadd.f32 1.0, %v5707_v31  ;;  %v6829_v10 = vsel %vm3719_vm8, %v2077_v63, %v6723_v22  ;;  %v2082_v30 = vsel %vm3719_vm8, %v2077_v63, 0.0  ;;  %v5709_v22 = vpop.eup %5708 }
 0x53d   :  { %3720 = vst [vmem:[%s7227_s9 + $0x18] sm:$0xff] %v2082_v30  ;;  %2319 = vmatmul.mubr.f32.vlgmr.msra.gmra.mrb[8].mxu0 %v6829_v10  ;;  %4397 = vmatmul.mubr.f32.vlgmr.msra.gmra.mrb[36].mxu1 %v6829_v10  ;;  %v2237_v17 = vadd.f32 1.0, %v5709_v22  ;;  %v7343_v30 = vld [vmem:[#allocation21_spill] sm:$0xff]  ;;  %v7344_v22 = vld [vmem:[#allocation19_spill] sm:$0xff] }
 0x53e   :  { %5710 = vrcp.f32 %v2230_v57  ;;  %5167 = vmatpush1.bf16.msra.mxu1 %v6324_v37  ;;  %5198 = vmatpush3.bf16.msra.mxu0 %v6337_v53  ;;  %v7342_v57 = vld [vmem:[#allocation20_spill] sm:$0xff] }
 0x53f   :  { %5169 = vmatprep.subr.bf16.mxu1 %v6329_v41  ;;  %5199 = vmatprep.subr.bf16.mxu0 %v7298_v8  ;;  %5712 = vrcp.f32 %v2237_v17  ;;  %v7345_v17 = vld [vmem:[#allocation23_spill] sm:$0xff] }
 0x540   :  { %2487 = vmatprep.mubr.f32.mxu1 %v7299_v3  ;;  %4431 = vmatprep.mubr.msk.f32.mxu0 %vm5947_vm2, %v7299_v3 }
 0x542   :  { %5171 = vmatpush1.bf16.msra.mxu1 %v6335_v49  ;;  %5201 = vmatpush3.bf16.msra.mxu0 %v6349_v4 }
 0x543   :  { %5173 = vmatprep.subr.bf16.mxu1 %v6340_v54  ;;  %5202 = vmatprep.subr.bf16.mxu0 %v7298_v8 }
 0x546   :  { %5175 = vmatpush1.bf16.msra.mxu1 %v6346_v0  ;;  %5204 = vmatpush3.bf16.msra.mxu0 %v6361_v18 }
 0x547   :  { %5177 = vmatprep.subr.bf16.mxu1 %v6352_v5  ;;  %5205 = vmatprep.subr.bf16.mxu0 %v7298_v8 }
 0x548   :  { %v5711_v61 = vpop.eup %5710 }
 0x549   :  { %v2240_v29 = vmul.f32 %v5711_v61, %v2223_v1  ;;  %v5713_v14 = vpop.eup %5712  ;;  %v7346_v1 = vld [vmem:[#allocation24_spill] sm:$0xff]  ;;  %v7347_v61 = vld [vmem:[#allocation22_spill] sm:$0xff] }
 0x54a   :  { %5179 = vmatpush1.bf16.msra.mxu1 %v6358_v16  ;;  %5207 = vmatpush3.bf16.msra.mxu0 %v6371_v42  ;;  %v2243_v48 = vsub.f32 1.0, %v5713_v14  ;;  %v2245_v28 = vmul.f32 %v5713_v14, %v6774_v51  ;;  %v7351_v14 = vld [vmem:[#allocation27_spill] sm:$0xff] }
 0x54b   :  { %v2241_v6 = vadd.f32 %v2240_v29, %v7340_v36  ;;  %5181 = vmatprep.subr.bf16.mxu1 %v6364_v20  ;;  %5208 = vmatprep.subr.bf16.mxu0 %v7298_v8  ;;  %v7348_v29 = vld [vmem:[#allocation26_spill] sm:$0xff]  ;;  %v7349_v36 = vld [vmem:[#allocation28_spill] sm:$0xff] }
 0x54d   :  { %5714 = vtanh.f32 %v2241_v6  ;;  %v7350_v6 = vld [vmem:[#allocation25_spill] sm:$0xff] }
 0x54e   :  { %5183 = vmatpush1.bf16.msra.mxu1 %v6368_v35  ;;  %5210 = vmatpush3.bf16.msra.mxu0 %v6381_v59 }
 0x54f   :  { %5185 = vmatprep.subr.bf16.mxu1 %v6374_v43  ;;  %5211 = vmatprep.subr.bf16.mxu0 %v7298_v8 }
 0x552   :  { %5187 = vmatpush1.bf16.msra.mxu1 %v6378_v56  ;;  %5213 = vmatpush3.bf16.msra.mxu0 %v6391_v25 }
 0x553   :  { %5189 = vmatprep.subr.bf16.mxu1 %v6384_v62  ;;  %5214 = vmatprep.subr.bf16.mxu0 %v7298_v8 }
 0x556   :  { %5191 = vmatpush1.bf16.msra.mxu1 %v6388_v15  ;;  %5216 = vmatpush3.bf16.msra.mxu0 %v6401_v45 }
 0x557   :  { %v5715_v26 = vpop.eup %5714  ;;  %5193 = vmatprep.subr.bf16.mxu1 %v6394_v27  ;;  %5217 = vmatprep.subr.bf16.mxu0 %v7298_v8 }
 0x558   :  { %v2244_v7 = vmul.f32 %v5715_v26, %v2243_v48 }
 0x55a   :  { %5195 = vmatpush1.bf16.msra.mxu1 %v6398_v40  ;;  %5219 = vmatpush3.bf16.msra.mxu0 %v6407_v52  ;;  %v2246_v34 = vadd.f32 %v2245_v28, %v2244_v7  ;;  %v7352_v7 = vld [vmem:[#allocation47_spill] sm:$0xff] }
 0x55b   :  { %5221 = vmatprep.subr.bf16.mxu0 %v6164_v44  ;;  %5252 = vmatprep.subr.bf16.mxu1 %v7298_v8 }
 0x55c   :  { %v6880_v63 = vsel %vm3723_vm9, %v2246_v34, %v6774_v51  ;;  %v2251_v31 = vsel %vm3723_vm9, %v2246_v34, 0.0  ;;  %v7341_v51 = vld [vmem:[#allocation18_spill] sm:$0xff] }
 0x55d   :  { %3724 = vst [vmem:[%s7228_s10 + $0x20] sm:$0xff] %v2251_v31  ;;  %2488 = vmatmul.mubr.f32.vlgmr.msra.gmra.mrb[18].mxu1 %v6880_v63  ;;  %4432 = vmatmul.mubr.f32.vlgmr.msra.gmra.mrb[28].mxu0 %v6880_v63 }
 0x55e   :  { %5223 = vmatpush1.bf16.msra.mxu0 %v6208_v11  ;;  %5254 = vmatpush3.bf16.msra.mxu1 %v6200_v2 }
 0x55f   :  { %5225 = vmatprep.subr.bf16.mxu0 %v6218_v19  ;;  %5255 = vmatprep.subr.bf16.mxu1 %v7298_v8 }
 0x560   :  { %2656 = vmatprep.mubr.f32.mxu0 %v7299_v3  ;;  %4466 = vmatprep.mubr.msk.f32.mxu1 %vm5947_vm2, %v7299_v3 }
 0x562   :  { %5227 = vmatpush1.bf16.msra.mxu0 %v6226_v23  ;;  %5257 = vmatpush3.bf16.msra.mxu1 %v6210_v12 }
 0x563   :  { %5229 = vmatprep.subr.bf16.mxu0 %v6238_v33  ;;  %5258 = vmatprep.subr.bf16.mxu1 %v7298_v8 }
 0x566   :  { %5231 = vmatpush1.bf16.msra.mxu0 %v6248_v38  ;;  %5260 = vmatpush3.bf16.msra.mxu1 %v6228_v24 }
 0x567   :  { %5233 = vmatprep.subr.bf16.mxu0 %v6260_v46  ;;  %5261 = vmatprep.subr.bf16.mxu1 %v7298_v8 }
 0x56a   :  { %5235 = vmatpush1.bf16.msra.mxu0 %v6268_v50  ;;  %5263 = vmatpush3.bf16.msra.mxu1 %v6250_v39 }
 0x56b   :  { %5237 = vmatprep.subr.bf16.mxu0 %v6274_v32  ;;  %5264 = vmatprep.subr.bf16.mxu1 %v7298_v8 }
 0x56e   :  { %5239 = vmatpush1.bf16.msra.mxu0 %v6283_v60  ;;  %5266 = vmatpush3.bf16.msra.mxu1 %v7341_v51  ;;  %v7353_v51 = vld [vmem:[#allocation37_spill] sm:$0xff] }
 0x56f   :  { %5241 = vmatprep.subr.bf16.mxu0 %v7342_v57  ;;  %5267 = vmatprep.subr.bf16.mxu1 %v7298_v8 }
 0x572   :  { %5243 = vmatpush1.bf16.msra.mxu0 %v7343_v30  ;;  %5269 = vmatpush3.bf16.msra.mxu1 %v7344_v22 }
 0x573   :  { %5245 = vmatprep.subr.bf16.mxu0 %v7345_v17  ;;  %5270 = vmatprep.subr.bf16.mxu1 %v7298_v8 }
 0x576   :  { %5247 = vmatpush1.bf16.msra.mxu0 %v7346_v1  ;;  %5272 = vmatpush3.bf16.msra.mxu1 %v7347_v61 }
 0x577   :  { %5249 = vmatprep.subr.bf16.mxu0 %v7348_v29  ;;  %5273 = vmatprep.subr.bf16.mxu1 %v7298_v8 }
 0x57a   :  { %5251 = vmatpush1.bf16.msra.mxu0 %v7349_v36  ;;  %5275 = vmatpush3.bf16.msra.mxu1 %v7350_v6 }
 0x57b   :  { %5277 = vmatprep.subr.bf16.mxu1 %v7351_v14  ;;  %5308 = vmatprep.subr.bf16.mxu0 %v7298_v8 }
 0x610   :  { %v2320_v48 = vpop.f32.mrb[8].mxu0  ;;  %v2391_v26 = vpop.f32.mrb[36].mxu1 }
 0x611   :  { %v2321_v28 = vadd.f32 %v2320_v48, %v7352_v7  ;;  %v2322_v34 = vpop.f32.mrb[9].mxu0  ;;  %v4398_v31 = vpop.f32.mrb[37].mxu1  ;;  %v2392_v14 = vadd.f32 %v2391_v26, %v7309_v9 }
 0x612   :  { %v2323_v61 = vadd.f32 %v2322_v34, %v7324_v47 }
 0x613   :  { %v3725_v1 = vmul.f32 -1.442695, %v2321_v28 }
 0x614   :  { %v3726_v29 = vmul.f32 -1.442695, %v2323_v61 }
 0x615   :  { %5716 = vpow2.f32 %v3725_v1 }
 0x616   :  { %5718 = vpow2.f32 %v3726_v29 }
 0x61f   :  { %v5717_v17 = vpop.eup %5716 }
 0x620   :  { %v2399_v36 = vadd.f32 1.0, %v5717_v17  ;;  %v5719_v6 = vpop.eup %5718 }
 0x621   :  { %v2406_v22 = vadd.f32 1.0, %v5719_v6 }
 0x622   :  { %5720 = vrcp.f32 %v2399_v36 }
 0x623   :  { %5722 = vrcp.f32 %v2406_v22 }
 0x62c   :  { %v5721_v30 = vpop.eup %5720 }
 0x62d   :  { %v2409_v57 = vmul.f32 %v5721_v30, %v2392_v14  ;;  %v5723_v36 = vpop.eup %5722 }
 0x62e   :  { %v2412_v34 = vsub.f32 1.0, %v5723_v36  ;;  %v2414_v22 = vmul.f32 %v5723_v36, %v6829_v10 }
 0x62f   :  { %v2410_v48 = vadd.f32 %v2409_v57, %v7353_v51 }
 0x630   :  { %v2489_v7 = vpop.f32.mrb[18].mxu1  ;;  %v2560_v31 = vpop.f32.mrb[28].mxu0 }
 0x631   :  { %5724 = vtanh.f32 %v2410_v48  ;;  %v2490_v28 = vadd.f32 %v2489_v7, %v7311_v58  ;;  %v2491_v1 = vpop.f32.mrb[19].mxu1  ;;  %v4433_v61 = vpop.f32.mrb[29].mxu0 }
 0x632   :  { %v2492_v17 = vadd.f32 %v2491_v1, %v6501_v55  ;;  %v2561_v1 = vadd.f32 %v2560_v31, %v6523_v13 }
 0x633   :  { %v3729_v29 = vmul.f32 -1.442695, %v2490_v28 }
 0x634   :  { %v3730_v6 = vmul.f32 -1.442695, %v2492_v17  ;;  %v7354_v17 = vld [vmem:[#allocation42_spill] sm:$0xff] }
 0x635   :  { %5726 = vpow2.f32 %v3729_v29 }
 0x636   :  { %5728 = vpow2.f32 %v3730_v6 }
 0x63b   :  { %v5725_v26 = vpop.eup %5724 }
 0x63c   :  { %v2413_v30 = vmul.f32 %v5725_v26, %v2412_v34 }
 0x63e   :  { %v2415_v51 = vadd.f32 %v2414_v22, %v2413_v30 }
 0x63f   :  { %v5727_v57 = vpop.eup %5726 }
 0x640   :  { %v2568_v14 = vadd.f32 1.0, %v5727_v57  ;;  %v6934_v7 = vsel %vm3723_vm9, %v2415_v51, %v6829_v10  ;;  %v2420_v48 = vsel %vm3723_vm9, %v2415_v51, 0.0  ;;  %v5729_v10 = vpop.eup %5728 }
 0x641   :  { %3728 = vst [vmem:[%s7227_s9 + $0x20] sm:$0xff] %v2420_v48  ;;  %2657 = vmatmul.mubr.f32.vlgmr.msra.gmra.mrb[10].mxu0 %v6934_v7  ;;  %4467 = vmatmul.mubr.f32.vlgmr.msra.gmra.mrb[38].mxu1 %v6934_v7  ;;  %v2575_v28 = vadd.f32 1.0, %v5729_v10  ;;  %v7357_v48 = vld [vmem:[#allocation21_spill] sm:$0xff]  ;;  %v7358_v10 = vld [vmem:[#allocation19_spill] sm:$0xff] }
 0x642   :  { %5730 = vrcp.f32 %v2568_v14  ;;  %5279 = vmatpush1.bf16.msra.mxu1 %v6324_v37  ;;  %5310 = vmatpush3.bf16.msra.mxu0 %v6337_v53  ;;  %v7356_v14 = vld [vmem:[#allocation20_spill] sm:$0xff] }
 0x643   :  { %5281 = vmatprep.subr.bf16.mxu1 %v6329_v41  ;;  %5311 = vmatprep.subr.bf16.mxu0 %v7298_v8  ;;  %5732 = vrcp.f32 %v2575_v28  ;;  %v7359_v28 = vld [vmem:[#allocation23_spill] sm:$0xff] }
 0x644   :  { %2825 = vmatprep.mubr.f32.mxu1 %v7299_v3  ;;  %4501 = vmatprep.mubr.msk.f32.mxu0 %vm5947_vm2, %v7299_v3 }
 0x646   :  { %5283 = vmatpush1.bf16.msra.mxu1 %v6335_v49  ;;  %5313 = vmatpush3.bf16.msra.mxu0 %v6349_v4 }
 0x647   :  { %5285 = vmatprep.subr.bf16.mxu1 %v6340_v54  ;;  %5314 = vmatprep.subr.bf16.mxu0 %v7298_v8 }
 0x64a   :  { %5287 = vmatpush1.bf16.msra.mxu1 %v6346_v0  ;;  %5316 = vmatpush3.bf16.msra.mxu0 %v6361_v18 }
 0x64b   :  { %5289 = vmatprep.subr.bf16.mxu1 %v6352_v5  ;;  %5317 = vmatprep.subr.bf16.mxu0 %v7298_v8 }
 0x64c   :  { %v5731_v61 = vpop.eup %5730 }
 0x64d   :  { %v2578_v29 = vmul.f32 %v5731_v61, %v2561_v1  ;;  %v5733_v31 = vpop.eup %5732  ;;  %v7360_v1 = vld [vmem:[#allocation24_spill] sm:$0xff]  ;;  %v7361_v61 = vld [vmem:[#allocation22_spill] sm:$0xff] }
 0x64e   :  { %5291 = vmatpush1.bf16.msra.mxu1 %v6358_v16  ;;  %5319 = vmatpush3.bf16.msra.mxu0 %v6371_v42  ;;  %v2581_v6 = vsub.f32 1.0, %v5733_v31  ;;  %v2583_v30 = vmul.f32 %v5733_v31, %v6880_v63  ;;  %v7365_v31 = vld [vmem:[#allocation27_spill] sm:$0xff] }
 0x64f   :  { %v2579_v36 = vadd.f32 %v7354_v17, %v2578_v29  ;;  %5293 = vmatprep.subr.bf16.mxu1 %v6364_v20  ;;  %5320 = vmatprep.subr.bf16.mxu0 %v7298_v8  ;;  %v7362_v29 = vld [vmem:[#allocation26_spill] sm:$0xff]  ;;  %v7363_v17 = vld [vmem:[#allocation28_spill] sm:$0xff] }
 0x651   :  { %5734 = vtanh.f32 %v2579_v36  ;;  %v7364_v36 = vld [vmem:[#allocation25_spill] sm:$0xff] }
 0x652   :  { %5295 = vmatpush1.bf16.msra.mxu1 %v6368_v35  ;;  %5322 = vmatpush3.bf16.msra.mxu0 %v6381_v59 }
 0x653   :  { %5297 = vmatprep.subr.bf16.mxu1 %v6374_v43  ;;  %5323 = vmatprep.subr.bf16.mxu0 %v7298_v8 }
 0x656   :  { %5299 = vmatpush1.bf16.msra.mxu1 %v6378_v56  ;;  %5325 = vmatpush3.bf16.msra.mxu0 %v6391_v25 }
 0x657   :  { %5301 = vmatprep.subr.bf16.mxu1 %v6384_v62  ;;  %5326 = vmatprep.subr.bf16.mxu0 %v7298_v8 }
 0x65a   :  { %5303 = vmatpush1.bf16.msra.mxu1 %v6388_v15  ;;  %5328 = vmatpush3.bf16.msra.mxu0 %v6401_v45 }
 0x65b   :  { %v5735_v34 = vpop.eup %5734  ;;  %5305 = vmatprep.subr.bf16.mxu1 %v6394_v27  ;;  %5329 = vmatprep.subr.bf16.mxu0 %v7298_v8 }
 0x65c   :  { %v2582_v26 = vmul.f32 %v5735_v34, %v2581_v6 }
 0x65e   :  { %5307 = vmatpush1.bf16.msra.mxu1 %v6398_v40  ;;  %5331 = vmatpush3.bf16.msra.mxu0 %v6407_v52  ;;  %v2584_v22 = vadd.f32 %v2583_v30, %v2582_v26  ;;  %v7366_v26 = vld [vmem:[#allocation47_spill] sm:$0xff] }
 0x65f   :  { %5333 = vmatprep.subr.bf16.mxu0 %v6164_v44  ;;  %5364 = vmatprep.subr.bf16.mxu1 %v7298_v8 }
 0x660   :  { %v6984_v51 = vsel %vm3719_vm8, %v2584_v22, %v6880_v63  ;;  %v2589_v57 = vsel %vm3719_vm8, %v2584_v22, 0.0  ;;  %v7355_v63 = vld [vmem:[#allocation18_spill] sm:$0xff] }
 0x661   :  { %3732 = vst [vmem:[%s7228_s10 + $0x18] sm:$0xff] %v2589_v57  ;;  %2826 = vmatmul.mubr.f32.vlgmr.msra.gmra.mrb[16].mxu1 %v6984_v51  ;;  %4502 = vmatmul.mubr.f32.vlgmr.msra.gmra.mrb[30].mxu0 %v6984_v51 }
 0x662   :  { %5335 = vmatpush1.bf16.msra.mxu0 %v6208_v11  ;;  %5366 = vmatpush3.bf16.msra.mxu1 %v6200_v2 }
 0x663   :  { %5337 = vmatprep.subr.bf16.mxu0 %v6218_v19  ;;  %5367 = vmatprep.subr.bf16.mxu1 %v7298_v8 }
 0x664   :  { %2994 = vmatprep.mubr.f32.mxu0 %v7299_v3  ;;  %4536 = vmatprep.mubr.msk.f32.mxu1 %vm5947_vm2, %v7299_v3 }
 0x666   :  { %5339 = vmatpush1.bf16.msra.mxu0 %v6226_v23  ;;  %5369 = vmatpush3.bf16.msra.mxu1 %v6210_v12 }
 0x667   :  { %5341 = vmatprep.subr.bf16.mxu0 %v6238_v33  ;;  %5370 = vmatprep.subr.bf16.mxu1 %v7298_v8 }
 0x66a   :  { %5343 = vmatpush1.bf16.msra.mxu0 %v6248_v38  ;;  %5372 = vmatpush3.bf16.msra.mxu1 %v6228_v24 }
 0x66b   :  { %5345 = vmatprep.subr.bf16.mxu0 %v6260_v46  ;;  %5373 = vmatprep.subr.bf16.mxu1 %v7298_v8 }
 0x66e   :  { %5347 = vmatpush1.bf16.msra.mxu0 %v6268_v50  ;;  %5375 = vmatpush3.bf16.msra.mxu1 %v6250_v39 }
 0x66f   :  { %5349 = vmatprep.subr.bf16.mxu0 %v6274_v32  ;;  %5376 = vmatprep.subr.bf16.mxu1 %v7298_v8 }
 0x672   :  { %5351 = vmatpush1.bf16.msra.mxu0 %v6283_v60  ;;  %5378 = vmatpush3.bf16.msra.mxu1 %v7355_v63  ;;  %v7367_v63 = vld [vmem:[#allocation36_spill] sm:$0xff] }
 0x673   :  { %5353 = vmatprep.subr.bf16.mxu0 %v7356_v14  ;;  %5379 = vmatprep.subr.bf16.mxu1 %v7298_v8 }
 0x676   :  { %5355 = vmatpush1.bf16.msra.mxu0 %v7357_v48  ;;  %5381 = vmatpush3.bf16.msra.mxu1 %v7358_v10 }
 0x677   :  { %5357 = vmatprep.subr.bf16.mxu0 %v7359_v28  ;;  %5382 = vmatprep.subr.bf16.mxu1 %v7298_v8 }
 0x67a   :  { %5359 = vmatpush1.bf16.msra.mxu0 %v7360_v1  ;;  %5384 = vmatpush3.bf16.msra.mxu1 %v7361_v61 }
 0x67b   :  { %5361 = vmatprep.subr.bf16.mxu0 %v7362_v29  ;;  %5385 = vmatprep.subr.bf16.mxu1 %v7298_v8 }
 0x67e   :  { %5363 = vmatpush1.bf16.msra.mxu0 %v7363_v17  ;;  %5387 = vmatpush3.bf16.msra.mxu1 %v7364_v36 }
 0x67f   :  { %5389 = vmatprep.subr.bf16.mxu1 %v7365_v31  ;;  %5420 = vmatprep.subr.bf16.mxu0 %v7298_v8 }
 0x714   :  { %v2658_v6 = vpop.f32.mrb[10].mxu0  ;;  %v2729_v34 = vpop.f32.mrb[38].mxu1 }
 0x715   :  { %v2659_v30 = vadd.f32 %v2658_v6, %v7366_v26  ;;  %v2660_v22 = vpop.f32.mrb[11].mxu0  ;;  %v4468_v57 = vpop.f32.mrb[39].mxu1  ;;  %v2730_v31 = vadd.f32 %v2729_v34, %v7309_v9 }
 0x716   :  { %v2661_v61 = vadd.f32 %v2660_v22, %v7324_v47 }
 0x717   :  { %v3733_v1 = vmul.f32 -1.442695, %v2659_v30 }
 0x718   :  { %v3734_v29 = vmul.f32 -1.442695, %v2661_v61 }
 0x719   :  { %5736 = vpow2.f32 %v3733_v1 }
 0x71a   :  { %5738 = vpow2.f32 %v3734_v29 }
 0x723   :  { %v5737_v28 = vpop.eup %5736 }
 0x724   :  { %v2737_v17 = vadd.f32 1.0, %v5737_v28  ;;  %v5739_v36 = vpop.eup %5738 }
 0x725   :  { %v2744_v10 = vadd.f32 1.0, %v5739_v36 }
 0x726   :  { %5740 = vrcp.f32 %v2737_v17 }
 0x727   :  { %5742 = vrcp.f32 %v2744_v10 }
 0x730   :  { %v5741_v48 = vpop.eup %5740 }
 0x731   :  { %v2747_v14 = vmul.f32 %v5741_v48, %v2730_v31  ;;  %v5743_v17 = vpop.eup %5742 }
 0x732   :  { %v2750_v22 = vsub.f32 1.0, %v5743_v17  ;;  %v2752_v10 = vmul.f32 %v5743_v17, %v6934_v7 }
 0x733   :  { %v2748_v6 = vadd.f32 %v7367_v63, %v2747_v14 }
 0x734   :  { %v2827_v26 = vpop.f32.mrb[16].mxu1  ;;  %v2898_v57 = vpop.f32.mrb[30].mxu0 }
 0x735   :  { %5744 = vtanh.f32 %v2748_v6  ;;  %v2828_v30 = vadd.f32 %v2827_v26, %v7311_v58  ;;  %v2829_v1 = vpop.f32.mrb[17].mxu1  ;;  %v4503_v61 = vpop.f32.mrb[31].mxu0 }
 0x736   :  { %v2830_v28 = vadd.f32 %v2829_v1, %v6501_v55  ;;  %v2899_v1 = vadd.f32 %v2898_v57, %v6523_v13 }
 0x737   :  { %v3737_v29 = vmul.f32 -1.442695, %v2828_v30 }
 0x738   :  { %v3738_v36 = vmul.f32 -1.442695, %v2830_v28  ;;  %v7368_v28 = vld [vmem:[#allocation43_spill] sm:$0xff] }
 0x739   :  { %5746 = vpow2.f32 %v3737_v29 }
 0x73a   :  { %5748 = vpow2.f32 %v3738_v36 }
 0x73f   :  { %v5745_v34 = vpop.eup %5744 }
 0x740   :  { %v2751_v48 = vmul.f32 %v5745_v34, %v2750_v22 }
 0x742   :  { %v2753_v63 = vadd.f32 %v2752_v10, %v2751_v48 }
 0x743   :  { %v5747_v14 = vpop.eup %5746 }
 0x744   :  { %v2906_v31 = vadd.f32 1.0, %v5747_v14  ;;  %v7038_v26 = vsel %vm3715_vm7, %v2753_v63, %v6934_v7  ;;  %v2758_v6 = vsel %vm3715_vm7, %v2753_v63, 0.0  ;;  %v5749_v7 = vpop.eup %5748 }
 0x745   :  { %3736 = vst [vmem:[%s7227_s9 + $0x28] sm:$0xff] %v2758_v6  ;;  %2995 = vmatmul.mubr.f32.vlgmr.msra.gmra.mrb[32].mxu0 %v7038_v26  ;;  %4537 = vmatmul.mubr.f32.vlgmr.msra.gmra.mrb[40].mxu1 %v7038_v26  ;;  %v2913_v30 = vadd.f32 1.0, %v5749_v7 }
 0x746   :  { %5750 = vrcp.f32 %v2906_v31  ;;  %5391 = vmatpush1.bf16.msra.mxu1 %v6324_v37  ;;  %5422 = vmatpush3.bf16.msra.mxu0 %v6337_v53 }
 0x747   :  { %5393 = vmatprep.subr.bf16.mxu1 %v6329_v41  ;;  %5423 = vmatprep.subr.bf16.mxu0 %v7298_v8  ;;  %5752 = vrcp.f32 %v2913_v30 }
 0x748   :  { %3163 = vmatprep.mubr.f32.mxu1 %v7299_v3  ;;  %4571 = vmatprep.mubr.msk.f32.mxu0 %vm5947_vm2, %v7299_v3 }
 0x74a   :  { %5395 = vmatpush1.bf16.msra.mxu1 %v6335_v49  ;;  %5425 = vmatpush3.bf16.msra.mxu0 %v6349_v4 }
 0x74b   :  { %5397 = vmatprep.subr.bf16.mxu1 %v6340_v54  ;;  %5426 = vmatprep.subr.bf16.mxu0 %v7298_v8 }
 0x74e   :  { %5399 = vmatpush1.bf16.msra.mxu1 %v6346_v0  ;;  %5428 = vmatpush3.bf16.msra.mxu0 %v6361_v18 }
 0x74f   :  { %5401 = vmatprep.subr.bf16.mxu1 %v6352_v5  ;;  %5429 = vmatprep.subr.bf16.mxu0 %v7298_v8 }
 0x750   :  { %v5751_v61 = vpop.eup %5750 }
 0x751   :  { %v2916_v29 = vmul.f32 %v5751_v61, %v2899_v1  ;;  %v5753_v57 = vpop.eup %5752 }
 0x752   :  { %5403 = vmatpush1.bf16.msra.mxu1 %v6358_v16  ;;  %5431 = vmatpush3.bf16.msra.mxu0 %v6371_v42  ;;  %v2919_v36 = vsub.f32 1.0, %v5753_v57  ;;  %v2921_v48 = vmul.f32 %v5753_v57, %v6984_v51 }
 0x753   :  { %v2917_v17 = vadd.f32 %v2916_v29, %v7368_v28  ;;  %5405 = vmatprep.subr.bf16.mxu1 %v6364_v20  ;;  %5432 = vmatprep.subr.bf16.mxu0 %v7298_v8 }
 0x755   :  { %5754 = vtanh.f32 %v2917_v17 }
 0x756   :  { %5407 = vmatpush1.bf16.msra.mxu1 %v6368_v35  ;;  %5434 = vmatpush3.bf16.msra.mxu0 %v6381_v59 }
 0x757   :  { %5409 = vmatprep.subr.bf16.mxu1 %v6374_v43  ;;  %5435 = vmatprep.subr.bf16.mxu0 %v7298_v8 }
 0x75a   :  { %5411 = vmatpush1.bf16.msra.mxu1 %v6378_v56  ;;  %5437 = vmatpush3.bf16.msra.mxu0 %v6391_v25 }
 0x75b   :  { %5413 = vmatprep.subr.bf16.mxu1 %v6384_v62  ;;  %5438 = vmatprep.subr.bf16.mxu0 %v7298_v8 }
 0x75e   :  { %5415 = vmatpush1.bf16.msra.mxu1 %v6388_v15  ;;  %5440 = vmatpush3.bf16.msra.mxu0 %v6401_v45 }
 0x75f   :  { %v5755_v22 = vpop.eup %5754  ;;  %5417 = vmatprep.subr.bf16.mxu1 %v6394_v27  ;;  %5441 = vmatprep.subr.bf16.mxu0 %v7298_v8 }
 0x760   :  { %v2920_v34 = vmul.f32 %v5755_v22, %v2919_v36 }
 0x762   :  { %5419 = vmatpush1.bf16.msra.mxu1 %v6398_v40  ;;  %5443 = vmatpush3.bf16.msra.mxu0 %v6407_v52  ;;  %v2922_v10 = vadd.f32 %v2921_v48, %v2920_v34 }
 0x763   :  { %5445 = vmatprep.subr.bf16.mxu0 %v6164_v44  ;;  %5476 = vmatprep.subr.bf16.mxu1 %v7298_v8  ;;  %v7369_v44 = vld [vmem:[#allocation18_spill] sm:$0xff] }
 0x764   :  { %v7088_v63 = vsel %vm3711_vm6, %v2922_v10, %v6984_v51  ;;  %v2927_v14 = vsel %vm3711_vm6, %v2922_v10, 0.0  ;;  %v7382_v51 = vld [vmem:[#allocation30_spill] sm:$0xff] }
 0x765   :  { %3740 = vst [vmem:[%s7228_s10 + $0x10] sm:$0xff] %v2927_v14  ;;  %3164 = vmatmul.mubr.f32.vlgmr.msra.gmra.mrb[14].mxu1 %v7088_v63  ;;  %4572 = vmatmul.mubr.f32.vlgmr.msra.gmra.mrb[34].mxu0 %v7088_v63  ;;  %v5572_v31 = vadd.f32 %v7324_v47, %v7382_v51 }
 0x766   :  { %5447 = vmatpush1.bf16.msra.mxu0 %v6208_v11  ;;  %5478 = vmatpush3.bf16.msra.mxu1 %v6200_v2  ;;  %v7370_v2 = vld [vmem:[#allocation20_spill] sm:$0xff]  ;;  %v7371_v11 = vld [vmem:[#allocation21_spill] sm:$0xff] }
 0x767   :  { %5449 = vmatprep.subr.bf16.mxu0 %v6218_v19  ;;  %5479 = vmatprep.subr.bf16.mxu1 %v7298_v8  ;;  %v7373_v19 = vld [vmem:[#allocation23_spill] sm:$0xff] }
 0x768   :  { %3332 = vmatprep.mubr.f32.mxu0 %v7299_v3  ;;  %4606 = vmatprep.mubr.msk.f32.mxu1 %vm5947_vm2, %v7299_v3 }
 0x76a   :  { %5451 = vmatpush1.bf16.msra.mxu0 %v6226_v23  ;;  %5481 = vmatpush3.bf16.msra.mxu1 %v6210_v12  ;;  %v7372_v12 = vld [vmem:[#allocation19_spill] sm:$0xff]  ;;  %v7374_v23 = vld [vmem:[#allocation24_spill] sm:$0xff] }
 0x76b   :  { %5453 = vmatprep.subr.bf16.mxu0 %v6238_v33  ;;  %5482 = vmatprep.subr.bf16.mxu1 %v7298_v8  ;;  %v7376_v33 = vld [vmem:[#allocation26_spill] sm:$0xff] }
 0x76e   :  { %5455 = vmatpush1.bf16.msra.mxu0 %v6248_v38  ;;  %5484 = vmatpush3.bf16.msra.mxu1 %v6228_v24  ;;  %v7375_v24 = vld [vmem:[#allocation22_spill] sm:$0xff]  ;;  %v7377_v38 = vld [vmem:[#allocation28_spill] sm:$0xff] }
 0x76f   :  { %5457 = vmatprep.subr.bf16.mxu0 %v6260_v46  ;;  %5485 = vmatprep.subr.bf16.mxu1 %v7298_v8  ;;  %v7379_v46 = vld [vmem:[#allocation27_spill] sm:$0xff] }
 0x772   :  { %5459 = vmatpush1.bf16.msra.mxu0 %v6268_v50  ;;  %5487 = vmatpush3.bf16.msra.mxu1 %v6250_v39  ;;  %v7378_v39 = vld [vmem:[#allocation25_spill] sm:$0xff] }
 0x773   :  { %5461 = vmatprep.subr.bf16.mxu0 %v6274_v32  ;;  %5488 = vmatprep.subr.bf16.mxu1 %v7298_v8  ;;  %v7380_v50 = vld [vmem:[#allocation29_spill] sm:$0xff]  ;;  %v7381_v32 = vld [vmem:[#allocation47_spill] sm:$0xff] }
 0x776   :  { %5463 = vmatpush1.bf16.msra.mxu0 %v6283_v60  ;;  %5490 = vmatpush3.bf16.msra.mxu1 %v7369_v44  ;;  %v5570_v60 = vadd.f32 %v7381_v32, %v7380_v50  ;;  %v7383_v44 = vld [vmem:[#allocation39_spill] sm:$0xff] }
 0x777   :  { %5465 = vmatprep.subr.bf16.mxu0 %v7370_v2  ;;  %5491 = vmatprep.subr.bf16.mxu1 %v7298_v8 }
 0x77a   :  { %5467 = vmatpush1.bf16.msra.mxu0 %v7371_v11  ;;  %5493 = vmatpush3.bf16.msra.mxu1 %v7372_v12 }
 0x77b   :  { %5469 = vmatprep.subr.bf16.mxu0 %v7373_v19  ;;  %5494 = vmatprep.subr.bf16.mxu1 %v7298_v8 }
 0x77e   :  { %5471 = vmatpush1.bf16.msra.mxu0 %v7374_v23  ;;  %5496 = vmatpush3.bf16.msra.mxu1 %v7375_v24 }
 0x77f   :  { %5473 = vmatprep.subr.bf16.mxu0 %v7376_v33  ;;  %5497 = vmatprep.subr.bf16.mxu1 %v7298_v8 }
 0x782   :  { %5475 = vmatpush1.bf16.msra.mxu0 %v7377_v38  ;;  %5499 = vmatpush3.bf16.msra.mxu1 %v7378_v39 }
 0x783   :  { %5501 = vmatprep.subr.bf16.mxu1 %v7379_v46  ;;  %5532 = vmatprep.subr.bf16.mxu0 %v7298_v8 }
 0x818   :  { %v2996_v6 = vpop.f32.mrb[32].mxu0  ;;  %v3067_v7 = vpop.f32.mrb[40].mxu1 }
 0x819   :  { %v5571_v30 = vadd.f32 %v5570_v60, %v2996_v6  ;;  %v2998_v1 = vpop.f32.mrb[33].mxu0  ;;  %v4538_v61 = vpop.f32.mrb[41].mxu1  ;;  %v3068_v48 = vadd.f32 %v3067_v7, %v7309_v9 }
 0x81a   :  { %v5573_v29 = vadd.f32 %v5572_v31, %v2998_v1 }
 0x81b   :  { %v3741_v28 = vmul.f32 -1.442695, %v5571_v30 }
 0x81c   :  { %v3742_v17 = vmul.f32 -1.442695, %v5573_v29 }
 0x81d   :  { %5756 = vpow2.f32 %v3741_v28 }
 0x81e   :  { %5758 = vpow2.f32 %v3742_v17 }
 0x827   :  { %v5757_v57 = vpop.eup %5756 }
 0x828   :  { %v3075_v36 = vadd.f32 1.0, %v5757_v57  ;;  %v5759_v22 = vpop.eup %5758 }
 0x829   :  { %v3082_v34 = vadd.f32 1.0, %v5759_v22 }
 0x82a   :  { %5760 = vrcp.f32 %v3075_v36 }
 0x82b   :  { %5762 = vrcp.f32 %v3082_v34 }
 0x834   :  { %v5761_v10 = vpop.eup %5760 }
 0x835   :  { %v3085_v14 = vmul.f32 %v5761_v10, %v3068_v48  ;;  %v5763_v39 = vpop.eup %5762 }
 0x836   :  { %v3088_v50 = vsub.f32 1.0, %v5763_v39  ;;  %v3090_v31 = vmul.f32 %v5763_v39, %v7038_v26 }
 0x837   :  { %v3086_v2 = vadd.f32 %v3085_v14, %v7383_v44 }
 0x838   :  { %v3165_v11 = vpop.f32.mrb[14].mxu1  ;;  %v3236_v12 = vpop.f32.mrb[34].mxu0 }
 0x839   :  { %5764 = vtanh.f32 %v3086_v2  ;;  %v3166_v19 = vadd.f32 %v3165_v11, %v7311_v58  ;;  %v3167_v23 = vpop.f32.mrb[15].mxu1  ;;  %v4573_v24 = vpop.f32.mrb[35].mxu0 }
 0x83a   :  { %v3168_v38 = vadd.f32 %v3167_v23, %v6501_v55 }
 0x83b   :  { %v3745_v33 = vmul.f32 -1.442695, %v3166_v19 }
 0x83c   :  { %v3746_v46 = vmul.f32 -1.442695, %v3168_v38 }
 0x83d   :  { %5766 = vpow2.f32 %v3745_v33 }
 0x83e   :  { %5768 = vpow2.f32 %v3746_v46 }
 0x843   :  { %v5765_v60 = vpop.eup %5764 }
 0x844   :  { %v3089_v51 = vmul.f32 %v5765_v60, %v3088_v50 }
 0x846   :  { %v3091_v6 = vadd.f32 %v3090_v31, %v3089_v51 }
 0x847   :  { %v5767_v7 = vpop.eup %5766 }
 0x848   :  { %v3244_v30 = vadd.f32 1.0, %v5767_v7  ;;  %v7144_v1 = vsel %vm3707_vm5, %v3091_v6, %v7038_v26  ;;  %v3096_v61 = vsel %vm3707_vm5, %v3091_v6, 0.0  ;;  %v5769_v26 = vpop.eup %5768  ;;  %v7388_v7 = vld [vmem:[#allocation41_spill] sm:$0xff] }
 0x849   :  { %3744 = vst [vmem:[%s7227_s9 + $0x30] sm:$0xff] %v3096_v61  ;;  %3333 = vmatmul.mubr.f32.vlgmr.msra.gmra.mrb[36].mxu0 %v7144_v1  ;;  %4607 = vmatmul.mubr.f32.vlgmr.msra.gmra.mrb[42].mxu1 %v7144_v1 }
 0x84a   :  { %5770 = vrcp.f32 %v3244_v30  ;;  %5503 = vmatpush1.bf16.msra.mxu1 %v6324_v37  ;;  %5534 = vmatpush3.bf16.msra.mxu0 %v6337_v53  ;;  %v3251_v37 = vadd.f32 1.0, %v5769_v26 }
 0x84b   :  { %5505 = vmatprep.subr.bf16.mxu1 %v6329_v41  ;;  %5535 = vmatprep.subr.bf16.mxu0 %v7298_v8  ;;  %v3237_v41 = vadd.f32 %v3236_v12, %v6523_v13 }
 0x84c   :  { %3501 = vmatprep.mubr.f32.mxu1 %v7299_v3  ;;  %4641 = vmatprep.mubr.msk.f32.mxu0 %vm5947_vm2, %v7299_v3  ;;  %5772 = vrcp.f32 %v3251_v37 }
 0x84e   :  { %5507 = vmatpush1.bf16.msra.mxu1 %v6335_v49  ;;  %5537 = vmatpush3.bf16.msra.mxu0 %v6349_v4  ;;  %v7384_v49 = vld [vmem:[#allocation40_spill] sm:$0xff] }
 0x84f   :  { %5509 = vmatprep.subr.bf16.mxu1 %v6340_v54  ;;  %5538 = vmatprep.subr.bf16.mxu0 %v7298_v8 }
 0x852   :  { %5511 = vmatpush1.bf16.msra.mxu1 %v6346_v0  ;;  %5540 = vmatpush3.bf16.msra.mxu0 %v6361_v18 }
 0x853   :  { %5513 = vmatprep.subr.bf16.mxu1 %v6352_v5  ;;  %5541 = vmatprep.subr.bf16.mxu0 %v7298_v8 }
 0x854   :  { %v5771_v53 = vpop.eup %5770 }
 0x855   :  { %v3254_v3 = vmul.f32 %v5771_v53, %v3237_v41 }
 0x856   :  { %5515 = vmatpush1.bf16.msra.mxu1 %v6358_v16  ;;  %5543 = vmatpush3.bf16.msra.mxu0 %v6371_v42  ;;  %v5773_v0 = vpop.eup %5772 }
 0x857   :  { %v3255_v54 = vadd.f32 %v7384_v49, %v3254_v3  ;;  %5517 = vmatprep.subr.bf16.mxu1 %v6364_v20  ;;  %5544 = vmatprep.subr.bf16.mxu0 %v7298_v8  ;;  %v3257_v4 = vsub.f32 1.0, %v5773_v0  ;;  %v3259_v18 = vmul.f32 %v5773_v0, %v7088_v63 }
 0x859   :  { %5774 = vtanh.f32 %v3255_v54 }
 0x85a   :  { %5519 = vmatpush1.bf16.msra.mxu1 %v6368_v35  ;;  %5546 = vmatpush3.bf16.msra.mxu0 %v6381_v59  ;;  %v7386_v59 = vld [vmem:[#allocation32_spill] sm:$0xff] }
 0x85b   :  { %5521 = vmatprep.subr.bf16.mxu1 %v6374_v43  ;;  %5547 = vmatprep.subr.bf16.mxu0 %v7298_v8  ;;  %v7385_v43 = vld [vmem:[#allocation31_spill] sm:$0xff] }
 0x85e   :  { %5523 = vmatpush1.bf16.msra.mxu1 %v6378_v56  ;;  %5549 = vmatpush3.bf16.msra.mxu0 %v6391_v25  ;;  %v5574_v56 = vadd.f32 %v7381_v32, %v7385_v43 }
 0x85f   :  { %5525 = vmatprep.subr.bf16.mxu1 %v6384_v62  ;;  %5550 = vmatprep.subr.bf16.mxu0 %v7298_v8  ;;  %v5576_v62 = vadd.f32 %v7324_v47, %v7386_v59  ;;  %v7387_v47 = vld [vmem:[#allocation38_spill] sm:$0xff] }
 0x862   :  { %5527 = vmatpush1.bf16.msra.mxu1 %v6388_v15  ;;  %5552 = vmatpush3.bf16.msra.mxu0 %v6401_v45 }
 0x863   :  { %v5775_v5 = vpop.eup %5774  ;;  %5529 = vmatprep.subr.bf16.mxu1 %v6394_v27  ;;  %5553 = vmatprep.subr.bf16.mxu0 %v7298_v8 }
 0x864   :  { %v3258_v16 = vmul.f32 %v5775_v5, %v3257_v4 }
 0x866   :  { %5531 = vmatpush1.bf16.msra.mxu1 %v6398_v40  ;;  %5555 = vmatpush3.bf16.msra.mxu0 %v6407_v52  ;;  %v3260_v20 = vadd.f32 %v3259_v18, %v3258_v16 }
 0x868   :  { %v3264_v35 = vsel %vm3703_vm4, %v3260_v20, %v7088_v63  ;;  %v3265_v42 = vsel %vm3703_vm4, %v3260_v20, 0.0 }
 0x869   :  { %3748 = vst [vmem:[%s7228_s10 + $0x8] sm:$0xff] %v3265_v42  ;;  %3502 = vmatmul.mubr.f32.vlgmr.msra.gmra.mrb[12].mxu1 %v3264_v35  ;;  %4642 = vmatmul.mubr.f32.vlgmr.msra.gmra.mrb[38].mxu0 %v3264_v35 }
 0x91c   :  { %v3334_v15 = vpop.f32.mrb[36].mxu0  ;;  %v3405_v25 = vpop.f32.mrb[42].mxu1 }
 0x91d   :  { %v5575_v27 = vadd.f32 %v5574_v56, %v3334_v15  ;;  %v3336_v40 = vpop.f32.mrb[37].mxu0  ;;  %v4608_v45 = vpop.f32.mrb[43].mxu1  ;;  %v3406_v32 = vadd.f32 %v3405_v25, %v7309_v9 }
 0x91e   :  { %v5577_v52 = vadd.f32 %v5576_v62, %v3336_v40 }
 0x91f   :  { %v3749_v8 = vmul.f32 -1.442695, %v5575_v27 }
 0x920   :  { %v3750_v63 = vmul.f32 -1.442695, %v5577_v52 }
 0x921   :  { %5776 = vpow2.f32 %v3749_v8 }
 0x922   :  { %5778 = vpow2.f32 %v3750_v63 }
 0x92b   :  { %v5777_v29 = vpop.eup %5776 }
 0x92c   :  { %v3413_v28 = vadd.f32 1.0, %v5777_v29  ;;  %v5779_v17 = vpop.eup %5778 }
 0x92d   :  { %v3420_v57 = vadd.f32 1.0, %v5779_v17 }
 0x92e   :  { %5780 = vrcp.f32 %v3413_v28 }
 0x92f   :  { %5782 = vrcp.f32 %v3420_v57 }
 0x938   :  { %v5781_v36 = vpop.eup %5780 }
 0x939   :  { %v3423_v22 = vmul.f32 %v5781_v36, %v3406_v32  ;;  %v5783_v19 = vpop.eup %5782 }
 0x93a   :  { %v3426_v24 = vsub.f32 1.0, %v5783_v19  ;;  %v3428_v38 = vmul.f32 %v5783_v19, %v7144_v1 }
 0x93b   :  { %v3424_v34 = vadd.f32 %v7387_v47, %v3423_v22 }
 0x93c   :  { %v3503_v48 = vpop.f32.mrb[12].mxu1  ;;  %v3574_v10 = vpop.f32.mrb[38].mxu0 }
 0x93d   :  { %5784 = vtanh.f32 %v3424_v34  ;;  %v3504_v14 = vadd.f32 %v3503_v48, %v7311_v58  ;;  %v3505_v44 = vpop.f32.mrb[13].mxu1  ;;  %v4643_v2 = vpop.f32.mrb[39].mxu0  ;;  %v3575_v51 = vadd.f32 %v3574_v10, %v6523_v13 }
 0x93e   :  { %v3506_v12 = vadd.f32 %v3505_v44, %v6501_v55 }
 0x93f   :  { %v3753_v11 = vmul.f32 -1.442695, %v3504_v14 }
 0x940   :  { %v3754_v23 = vmul.f32 -1.442695, %v3506_v12 }
 0x941   :  { %5786 = vpow2.f32 %v3753_v11 }
 0x942   :  { %5788 = vpow2.f32 %v3754_v23 }
 0x947   :  { %v5785_v9 = vpop.eup %5784 }
 0x948   :  { %v3427_v33 = vmul.f32 %v5785_v9, %v3426_v24 }
 0x94a   :  { %v3429_v39 = vadd.f32 %v3428_v38, %v3427_v33 }
 0x94b   :  { %v5787_v46 = vpop.eup %5786 }
 0x94c   :  { %v3434_v50 = vsel %vm3699_vm3, %v3429_v39, 0.0  ;;  %v3582_v58 = vadd.f32 1.0, %v5787_v46  ;;  %v5789_v55 = vpop.eup %5788 }
 0x94d   :  { %3752 = vst [vmem:[%s7227_s9 + $0x38] sm:$0xff] %v3434_v50  ;;  %v3589_v60 = vadd.f32 1.0, %v5789_v55 }
 0x94e   :  { %5790 = vrcp.f32 %v3582_v58 }
 0x94f   :  { %5792 = vrcp.f32 %v3589_v60 }
 0x958   :  { %v5791_v31 = vpop.eup %5790 }
 0x959   :  { %v3592_v6 = vmul.f32 %v5791_v31, %v3575_v51  ;;  %v5793_v1 = vpop.eup %5792 }
 0x95a   :  { %v3595_v61 = vsub.f32 1.0, %v5793_v1  ;;  %v3597_v41 = vmul.f32 %v5793_v1, %v3264_v35 }
 0x95b   :  { %v3593_v30 = vadd.f32 %v3592_v6, %v7388_v7 }
 0x95d   :  { %5794 = vtanh.f32 %v3593_v30 }
 0x967   :  { %v5795_v26 = vpop.eup %5794 }
 0x968   :  { %v3596_v37 = vmul.f32 %v5795_v26, %v3595_v61 }
 0x96a   :  { %v3598_v53 = vadd.f32 %v3597_v41, %v3596_v37 }
 0x96c   :  { %v3602_v3 = vsel %vm3696_vm0, %v3598_v53, 0.0 }
 0x96d   :  { %3603 = vst [vmem:[%s7228_s10] sm:$0xff] %v3602_v3 }
 0x96e   :  { %3628 = vsyncpa [#allocation5], 1 }
 0x96f   :  { %3629 = vsyncpa [#allocation7], 1 }
 0x970   :  { %3630 = vsyncpa [#allocation10], 1 }
 0x971   :  { %3631 = vsyncpa [#allocation13], 1 }

// kernel: language_model_forward.4
= control target key start
LH: loop header
LB: loop body
LE: loop exit
PB: predicated region body
PF: predicated region fallthrough
CT: control target
= control target key end

     0   :  { %20 = vsyncpa [#allocation5], 0  ;;  %s8419_s0 = inlined_call_operand.vmem [shape: s32[8,1], index: 0, kind: input, shape index: {}]   ;;  %s8420_s1 = inlined_call_operand.vmem [shape: f32[8,8,128], index: 1, kind: input, shape index: {}, may-alias: {1,3}]   ;;  %s8421_s2 = inlined_call_operand.vmem [shape: f32[8,8,128], index: 2, kind: input, shape index: {}, may-alias: {2,4}]   ;;  %s8422_s3 = inlined_call_operand.vmem [shape: f32[8,8,128], index: 3, kind: input, shape index: {}, may-alias: {1,3}]   ;;  %s8423_s4 = inlined_call_operand.vmem [shape: f32[8,8,128], index: 4, kind: input, shape index: {}, may-alias: {2,4}]   ;;  %s8424_s5 = inlined_call_operand.vmem [shape: f32[256,384], index: 5, kind: input, shape index: {}]   ;;  %s8425_s6 = inlined_call_operand.hbm [shape: f32[256,384], index: 6, kind: input, shape index: {}]   ;;  %s8426_s7 = inlined_call_operand.vmem [shape: f32[1,384], index: 7, kind: input, shape index: {}]   ;;  %s8427_s8 = inlined_call_operand.vmem [shape: f32[1,384], index: 8, kind: input, shape index: {}]   ;;  %s8428_s9 = inlined_call_operand.vmem [shape: f32[128,384], index: 9, kind: input, shape index: {}]   ;;  %s8429_s10 = inlined_call_operand.hbm [shape: f32[128,384], index: 10, kind: input, shape index: {}]   ;;  %s8430_s11 = inlined_call_operand.vmem [shape: f32[1,384], index: 11, kind: input, shape index: {}]   ;;  %s8431_s12 = inlined_call_operand.vmem [shape: f32[1,384], index: 12, kind: input, shape index: {}]   ;;  %s8432_s13 = inlined_call_operand.vmem [shape: f32[8,128], index: 13, kind: output, shape index: {0}]   ;;  %s8433_s14 = inlined_call_operand.vmem [shape: f32[8,128], index: 14, kind: output, shape index: {1}]  }
   0x1   :  { %21 = vsyncpa [#allocation7], 0  ;;  %s6790_s29 = smov [#allocation4]   ;;  %s6742_s17 = scalar_lea.hbm %s8425_s6, 12288 }
   0x2   :  { %s55_s30 = sshll.u32 %s6790_s29, 4  ;;  %p6743_p0 = scmp.ne.s32.totalorder %s8425_s6, %s6742_s17  ;;  %s56_s30 = int_to_ptr.vmem [resolvable:$true] %s55_s30 }
   0x3   :  { %p6746_p1 = scmp.lt.u32.totalorder %s6742_s17, %s8425_s6 }
   0x5   :  { %p6748_p2 = pnand %p6746_p1, %p6743_p0 }
   0x7   :  { %6751 = shalt.err (!%p6748_p2)
}
   0x8   :  { %s6752_s22 = scalar_lea.vmem %s56_s30, 12288  ;;  %p6757_p4 = scmp.lt.s32.totalorder %s56_s30, %s56_s30 }
   0x9   :  { %p6753_p3 = scmp.ne.s32.totalorder %s56_s30, %s6752_s22  ;;  %p6758_p5 = scmp.lt.s32.totalorder %s6752_s22, %s6752_s22 }
   0xb   :  { %p6759_p6 = por %p6758_p5, %p6757_p4 }
   0xd   :  { %p6760_p7 = pnand %p6759_p6, %p6753_p3 }
   0xf   :  { %6763 = shalt.err (!%p6760_p7)
}
  0x10   :  { %s6791_s23 = smov 384   ;;  %s6792_s24 = smov 24  }
  0x11   :  { %61 = dma.hbm_to_vmem [thread:$0]  %s8425_s6, 12288, %s56_s30, [#allocation5], %s6791_s23, %s6791_s23, %s6792_s24  }
  0x12   :  { %s6793_s27 = smov [#allocation6]   ;;  %s6764_s16 = scalar_lea.hbm %s8429_s10, 6144 }
  0x13   :  { %s73_s28 = sshll.u32 %s6793_s27, 4  ;;  %p6765_p8 = scmp.ne.s32.totalorder %s8429_s10, %s6764_s16  ;;  %s74_s28 = int_to_ptr.vmem [resolvable:$true] %s73_s28 }
  0x14   :  { %p6768_p9 = scmp.lt.u32.totalorder %s6764_s16, %s8429_s10 }
  0x16   :  { %p6770_p10 = pnand %p6768_p9, %p6765_p8 }
  0x18   :  { %6773 = shalt.err (!%p6770_p10)
}
  0x19   :  { %s6774_s21 = scalar_lea.vmem %s74_s28, 6144  ;;  %p6779_p12 = scmp.lt.s32.totalorder %s74_s28, %s74_s28 }
  0x1a   :  { %p6775_p11 = scmp.ne.s32.totalorder %s74_s28, %s6774_s21  ;;  %p6780_p13 = scmp.lt.s32.totalorder %s6774_s21, %s6774_s21 }
  0x1c   :  { %p6781_p0 = por %p6780_p13, %p6779_p12 }
  0x1e   :  { %p6782_p1 = pnand %p6781_p0, %p6775_p11 }
  0x20   :  { %6785 = shalt.err (!%p6782_p1)
}
  0x21   :  { %79 = dma.hbm_to_vmem [thread:$0]  %s8429_s10, 6144, %s74_s28, [#allocation7], %s6791_s23, %s6791_s23, %s6792_s24  }
  0x22   :  { %6786 = dma.done.wait [#allocation5], 12288  }
  0x23   :  { %6787 = vsyncadd [#allocation5], 4294955008 }
  0x24   :  { %6788 = dma.done.wait [#allocation7], 6144  }
  0x25   :  { %6789 = vsyncadd [#allocation7], 4294961152  ;;  %v8434_v0 = vmov 0.0   ;;  %v177_v1 = vld [vmem:[%s8424_s5 + $0x188] sm:$0xff]  ;;  %v180_v2 = vld [vmem:[%s8424_s5 + $0x1a0] sm:$0xff]  ;;  %vm6796_vm0 = vmmov 0  }
  0x26   :  { %400 = vmatprep.mubr.f32.mxu0 %v8434_v0  ;;  %v178_v3 = vld [vmem:[%s8424_s5 + $0x190] sm:$0xff]  ;;  %v5277_v4 = vpack.c.bf16 %v180_v2, %v177_v1  ;;  %v181_v5 = vld [vmem:[%s8424_s5 + $0x1a8] sm:$0xff]  ;;  %v176_v6 = vld [vmem:[%s8424_s5 + $0x180] sm:$0xff] }
  0x27   :  { %v179_v7 = vld [vmem:[%s8424_s5 + $0x198] sm:$0xff]  ;;  %v5309_v8 = vpack.c.bf16 %v181_v5, %v178_v3  ;;  %v186_v11 = vld [vmem:[%s8424_s5 + $0x1d0] sm:$0xff]  ;;  %v184_v12 = vld [vmem:[%s8424_s5 + $0x1c0] sm:$0xff] }
  0x28   :  { %v5279_v9 = vpack.c.bf16 %v179_v7, %v176_v6  ;;  %v183_v10 = vld [vmem:[%s8424_s5 + $0x1b8] sm:$0xff]  ;;  %5278 = vmatprep.subr.bf16.mxu0 %v5277_v4  ;;  %v182_v15 = vld [vmem:[%s8424_s5 + $0x1b0] sm:$0xff]  ;;  %v185_v16 = vld [vmem:[%s8424_s5 + $0x1c8] sm:$0xff] }
  0x29   :  { %v5281_v13 = vpack.c.bf16 %v186_v11, %v183_v10  ;;  %v187_v14 = vld [vmem:[%s8424_s5 + $0x1d8] sm:$0xff]  ;;  %5310 = vmatprep.subr.bf16.mxu1 %v5309_v8  ;;  %v5283_v18 = vpack.c.bf16 %v185_v16, %v182_v15  ;;  %v189_v19 = vld [vmem:[%s8424_s5 + $0x1e8] sm:$0xff]  ;;  %v192_v20 = vld [vmem:[%s8424_s5 + $0x200] sm:$0xff] }
  0x2a   :  { %5280 = vmatpush1.bf16.msra.mxu0 %v5279_v9  ;;  %v5313_v17 = vpack.c.bf16 %v187_v14, %v184_v12  ;;  %v190_v21 = vld [vmem:[%s8424_s5 + $0x1f0] sm:$0xff]  ;;  %5312 = vmatpush3.bf16.msra.mxu1 %v5309_v8  ;;  %v5285_v22 = vpack.c.bf16 %v192_v20, %v189_v19  ;;  %v193_v23 = vld [vmem:[%s8424_s5 + $0x208] sm:$0xff]  ;;  %v188_v24 = vld [vmem:[%s8424_s5 + $0x1e0] sm:$0xff] }
  0x2b   :  { %5282 = vmatprep.subr.bf16.mxu0 %v5281_v13  ;;  %v191_v25 = vld [vmem:[%s8424_s5 + $0x1f8] sm:$0xff]  ;;  %v5317_v26 = vpack.c.bf16 %v193_v23, %v190_v21  ;;  %v198_v28 = vld [vmem:[%s8424_s5 + $0x230] sm:$0xff]  ;;  %v196_v29 = vld [vmem:[%s8424_s5 + $0x220] sm:$0xff] }
  0x2c   :  { %5314 = vmatprep.subr.bf16.mxu1 %v5313_v17  ;;  %v195_v27 = vld [vmem:[%s8424_s5 + $0x218] sm:$0xff]  ;;  %v5287_v31 = vpack.c.bf16 %v191_v25, %v188_v24  ;;  %v194_v33 = vld [vmem:[%s8424_s5 + $0x210] sm:$0xff]  ;;  %v197_v34 = vld [vmem:[%s8424_s5 + $0x228] sm:$0xff] }
  0x2d   :  { %v199_v30 = vld [vmem:[%s8424_s5 + $0x238] sm:$0xff]  ;;  %v5289_v32 = vpack.c.bf16 %v198_v28, %v195_v27  ;;  %v201_v36 = vld [vmem:[%s8424_s5 + $0x248] sm:$0xff]  ;;  %v204_v37 = vld [vmem:[%s8424_s5 + $0x260] sm:$0xff]  ;;  %v5291_v40 = vpack.c.bf16 %v197_v34, %v194_v33 }
  0x2e   :  { %5284 = vmatpush1.bf16.msra.mxu0 %v5283_v18  ;;  %5316 = vmatpush3.bf16.msra.mxu1 %v5313_v17  ;;  %v5321_v35 = vpack.c.bf16 %v199_v30, %v196_v29  ;;  %v202_v38 = vld [vmem:[%s8424_s5 + $0x250] sm:$0xff]  ;;  %v205_v39 = vld [vmem:[%s8424_s5 + $0x268] sm:$0xff]  ;;  %v5293_v41 = vpack.c.bf16 %v204_v37, %v201_v36  ;;  %v200_v42 = vld [vmem:[%s8424_s5 + $0x240] sm:$0xff] }
  0x2f   :  { %5286 = vmatprep.subr.bf16.mxu0 %v5285_v22  ;;  %5318 = vmatprep.subr.bf16.mxu1 %v5317_v26  ;;  %v203_v43 = vld [vmem:[%s8424_s5 + $0x258] sm:$0xff]  ;;  %v5325_v44 = vpack.c.bf16 %v205_v39, %v202_v38  ;;  %v210_v46 = vld [vmem:[%s8424_s5 + $0x290] sm:$0xff]  ;;  %v208_v47 = vld [vmem:[%s8424_s5 + $0x280] sm:$0xff] }
  0x30   :  { %v207_v45 = vld [vmem:[%s8424_s5 + $0x278] sm:$0xff]  ;;  %v5295_v49 = vpack.c.bf16 %v203_v43, %v200_v42  ;;  %v7003_v50 = vld [vmem:[%s8421_s2] sm:$0xff]  ;;  %v206_v52 = vld [vmem:[%s8424_s5 + $0x270] sm:$0xff] }
  0x31   :  { %v211_v48 = vld [vmem:[%s8424_s5 + $0x298] sm:$0xff]  ;;  %v5297_v51 = vpack.c.bf16 %v210_v46, %v207_v45  ;;  %v209_v53 = vld [vmem:[%s8424_s5 + $0x288] sm:$0xff]  ;;  %v216_v56 = vld [vmem:[%s8424_s5 + $0x2c0] sm:$0xff]  ;;  %4573 = vmatprep.mubr.f32.mxu1 %v7003_v50 }
  0x32   :  { %5288 = vmatpush1.bf16.msra.mxu0 %v5287_v31  ;;  %5320 = vmatpush3.bf16.msra.mxu1 %v5317_v26  ;;  %v5329_v54 = vpack.c.bf16 %v211_v48, %v208_v47  ;;  %v213_v55 = vld [vmem:[%s8424_s5 + $0x2a8] sm:$0xff]  ;;  %v214_v57 = vld [vmem:[%s8424_s5 + $0x2b0] sm:$0xff]  ;;  %v5299_v59 = vpack.c.bf16 %v209_v53, %v206_v52  ;;  %v212_v61 = vld [vmem:[%s8424_s5 + $0x2a0] sm:$0xff] }
  0x33   :  { %5290 = vmatprep.subr.bf16.mxu0 %v5289_v32  ;;  %5322 = vmatprep.subr.bf16.mxu1 %v5321_v35  ;;  %v217_v58 = vld [vmem:[%s8424_s5 + $0x2c8] sm:$0xff]  ;;  %v5301_v60 = vpack.c.bf16 %v216_v56, %v213_v55  ;;  %v215_v62 = vld [vmem:[%s8424_s5 + $0x2b8] sm:$0xff]  ;;  %v222_v2 = vld [vmem:[%s8424_s5 + $0x2f0] sm:$0xff] }
  0x34   :  { %v5333_v63 = vpack.c.bf16 %v217_v58, %v214_v57  ;;  %v219_v1 = vld [vmem:[%s8424_s5 + $0x2d8] sm:$0xff]  ;;  %v220_v3 = vld [vmem:[%s8424_s5 + $0x2e0] sm:$0xff]  ;;  %v5303_v5 = vpack.c.bf16 %v215_v62, %v212_v61  ;;  %v218_v7 = vld [vmem:[%s8424_s5 + $0x2d0] sm:$0xff] }
  0x35   :  { %v223_v4 = vld [vmem:[%s8424_s5 + $0x2f8] sm:$0xff]  ;;  %v5305_v6 = vpack.c.bf16 %v222_v2, %v219_v1  ;;  %v221_v8 = vld [vmem:[%s8424_s5 + $0x2e8] sm:$0xff]  ;;  %v132_v11 = vld [vmem:[%s8424_s5 + $0x20] sm:$0xff] }
  0x36   :  { %5292 = vmatpush1.bf16.msra.mxu0 %v5291_v40  ;;  %5324 = vmatpush3.bf16.msra.mxu1 %v5321_v35  ;;  %v5337_v9 = vpack.c.bf16 %v223_v4, %v220_v3  ;;  %v129_v10 = vld [vmem:[%s8424_s5 + $0x8] sm:$0xff]  ;;  %v130_v12 = vld [vmem:[%s8424_s5 + $0x10] sm:$0xff]  ;;  %v5307_v14 = vpack.c.bf16 %v221_v8, %v218_v7  ;;  %v128_v16 = vld [vmem:[%s8424_s5] sm:$0xff] }
  0x37   :  { %5294 = vmatprep.subr.bf16.mxu0 %v5293_v41  ;;  %5326 = vmatprep.subr.bf16.mxu1 %v5325_v44  ;;  %v133_v13 = vld [vmem:[%s8424_s5 + $0x28] sm:$0xff]  ;;  %v5341_v15 = vpack.c.bf16 %v132_v11, %v129_v10  ;;  %v131_v17 = vld [vmem:[%s8424_s5 + $0x18] sm:$0xff]  ;;  %v138_v20 = vld [vmem:[%s8424_s5 + $0x50] sm:$0xff] }
  0x38   :  { %v5373_v18 = vpack.c.bf16 %v133_v13, %v130_v12  ;;  %v135_v19 = vld [vmem:[%s8424_s5 + $0x38] sm:$0xff]  ;;  %v136_v21 = vld [vmem:[%s8424_s5 + $0x40] sm:$0xff]  ;;  %v5343_v23 = vpack.c.bf16 %v131_v17, %v128_v16  ;;  %v329_v24 = vld [vmem:[%s8421_s2 + $0x8] sm:$0xff] }
  0x39   :  { %v139_v22 = vld [vmem:[%s8424_s5 + $0x58] sm:$0xff]  ;;  %v134_v25 = vld [vmem:[%s8424_s5 + $0x30] sm:$0xff]  ;;  %v137_v26 = vld [vmem:[%s8424_s5 + $0x48] sm:$0xff]  ;;  %v5345_v27 = vpack.c.bf16 %v138_v20, %v135_v19 }
  0x3a   :  { %5296 = vmatpush1.bf16.msra.mxu0 %v5295_v49  ;;  %5328 = vmatpush3.bf16.msra.mxu1 %v5325_v44  ;;  %v5377_v28 = vpack.c.bf16 %v139_v22, %v136_v21  ;;  %v141_v29 = vld [vmem:[%s8424_s5 + $0x68] sm:$0xff]  ;;  %v144_v30 = vld [vmem:[%s8424_s5 + $0x80] sm:$0xff]  ;;  %v142_v31 = vld [vmem:[%s8424_s5 + $0x70] sm:$0xff]  ;;  %v5347_v33 = vpack.c.bf16 %v137_v26, %v134_v25 }
  0x3b   :  { %5298 = vmatprep.subr.bf16.mxu0 %v5297_v51  ;;  %5330 = vmatprep.subr.bf16.mxu1 %v5329_v54  ;;  %v145_v32 = vld [vmem:[%s8424_s5 + $0x88] sm:$0xff]  ;;  %v5349_v34 = vpack.c.bf16 %v144_v30, %v141_v29  ;;  %v140_v35 = vld [vmem:[%s8424_s5 + $0x60] sm:$0xff]  ;;  %v143_v36 = vld [vmem:[%s8424_s5 + $0x78] sm:$0xff] }
  0x3c   :  { %v330_v37 = vld [vmem:[%s8421_s2 + $0x10] sm:$0xff]  ;;  %v5381_v38 = vpack.c.bf16 %v145_v32, %v142_v31  ;;  %v147_v39 = vld [vmem:[%s8424_s5 + $0x98] sm:$0xff]  ;;  %v148_v41 = vld [vmem:[%s8424_s5 + $0xa0] sm:$0xff]  ;;  %v5351_v43 = vpack.c.bf16 %v143_v36, %v140_v35 }
  0x3d   :  { %v150_v40 = vld [vmem:[%s8424_s5 + $0xb0] sm:$0xff]  ;;  %v151_v42 = vld [vmem:[%s8424_s5 + $0xb8] sm:$0xff]  ;;  %v149_v47 = vld [vmem:[%s8424_s5 + $0xa8] sm:$0xff] }
  0x3e   :  { %5300 = vmatpush1.bf16.msra.mxu0 %v5299_v59  ;;  %5332 = vmatpush3.bf16.msra.mxu1 %v5329_v54  ;;  %v331_v44 = vld [vmem:[%s8421_s2 + $0x18] sm:$0xff]  ;;  %v5353_v45 = vpack.c.bf16 %v150_v40, %v147_v39  ;;  %v146_v46 = vld [vmem:[%s8424_s5 + $0x90] sm:$0xff]  ;;  %v5385_v48 = vpack.c.bf16 %v151_v42, %v148_v41  ;;  %v332_v49 = vld [vmem:[%s8421_s2 + $0x20] sm:$0xff] }
  0x3f   :  { %5302 = vmatprep.subr.bf16.mxu0 %v5301_v60  ;;  %5334 = vmatprep.subr.bf16.mxu1 %v5333_v63  ;;  %v156_v51 = vld [vmem:[%s8424_s5 + $0xe0] sm:$0xff]  ;;  %v154_v52 = vld [vmem:[%s8424_s5 + $0xd0] sm:$0xff]  ;;  %v157_v53 = vld [vmem:[%s8424_s5 + $0xe8] sm:$0xff]  ;;  %v5355_v54 = vpack.c.bf16 %v149_v47, %v146_v46 }
  0x40   :  { %v152_v56 = vld [vmem:[%s8424_s5 + $0xc0] sm:$0xff]  ;;  %v155_v57 = vld [vmem:[%s8424_s5 + $0xd8] sm:$0xff]  ;;  %v333_v58 = vld [vmem:[%s8421_s2 + $0x28] sm:$0xff]  ;;  %v5389_v59 = vpack.c.bf16 %v157_v53, %v154_v52 }
  0x41   :  { %v159_v60 = vld [vmem:[%s8424_s5 + $0xf8] sm:$0xff]  ;;  %v162_v61 = vld [vmem:[%s8424_s5 + $0x110] sm:$0xff]  ;;  %v5359_v3 = vpack.c.bf16 %v155_v57, %v152_v56  ;;  %v7179_v4 = vld [vmem:[%s8420_s1] sm:$0xff] }
  0x42   :  { %5304 = vmatpush1.bf16.msra.mxu0 %v5303_v5  ;;  %5336 = vmatpush3.bf16.msra.mxu1 %v5333_v63  ;;  %v334_v62 = vld [vmem:[%s8421_s2 + $0x30] sm:$0xff]  ;;  %v160_v63 = vld [vmem:[%s8424_s5 + $0x100] sm:$0xff]  ;;  %v163_v1 = vld [vmem:[%s8424_s5 + $0x118] sm:$0xff]  ;;  %v5361_v5 = vpack.c.bf16 %v162_v61, %v159_v60 }
  0x43   :  { %5306 = vmatprep.subr.bf16.mxu0 %v5305_v6  ;;  %5338 = vmatprep.subr.bf16.mxu1 %v5337_v9  ;;  %v335_v2 = vld [vmem:[%s8421_s2 + $0x38] sm:$0xff]  ;;  %v158_v6 = vld [vmem:[%s8424_s5 + $0xf0] sm:$0xff]  ;;  %v161_v7 = vld [vmem:[%s8424_s5 + $0x108] sm:$0xff]  ;;  %v5393_v8 = vpack.c.bf16 %v163_v1, %v160_v63 }
  0x44   :  { %v168_v10 = vld [vmem:[%s8424_s5 + $0x140] sm:$0xff]  ;;  %v166_v11 = vld [vmem:[%s8424_s5 + $0x130] sm:$0xff]  ;;  %v169_v12 = vld [vmem:[%s8424_s5 + $0x148] sm:$0xff]  ;;  %v5363_v13 = vpack.c.bf16 %v161_v7, %v158_v6 }
  0x45   :  { %v167_v16 = vld [vmem:[%s8424_s5 + $0x138] sm:$0xff]  ;;  %v5397_v17 = vpack.c.bf16 %v169_v12, %v166_v11  ;;  %v174_v19 = vld [vmem:[%s8424_s5 + $0x170] sm:$0xff]  ;;  %v172_v20 = vld [vmem:[%s8424_s5 + $0x160] sm:$0xff] }
  0x46   :  { %5308 = vmatpush1.bf16.msra.mxu0 %v5307_v14  ;;  %5340 = vmatpush3.bf16.msra.mxu1 %v5337_v9  ;;  %v165_v9 = vld [vmem:[%s8424_s5 + $0x128] sm:$0xff]  ;;  %v175_v21 = vld [vmem:[%s8424_s5 + $0x178] sm:$0xff]  ;;  %v274_v29 = vld [vmem:[#allocation4 + $0x190] sm:$0xff] }
  0x47   :  { %5342 = vmatprep.subr.bf16.mxu0 %v5341_v15  ;;  %5374 = vmatprep.subr.bf16.mxu1 %v5373_v18  ;;  %v5365_v14 = vpack.c.bf16 %v168_v10, %v165_v9  ;;  %v164_v15 = vld [vmem:[%s8424_s5 + $0x120] sm:$0xff]  ;;  %v173_v25 = vld [vmem:[%s8424_s5 + $0x168] sm:$0xff]  ;;  %v5401_v26 = vpack.c.bf16 %v175_v21, %v172_v20  ;;  %v279_v36 = vld [vmem:[#allocation4 + $0x1b8] sm:$0xff] }
  0x48   :  { %v5367_v22 = vpack.c.bf16 %v167_v16, %v164_v15  ;;  %v277_v30 = vld [vmem:[#allocation4 + $0x1a8] sm:$0xff]  ;;  %v283_v39 = vld [vmem:[#allocation4 + $0x1d8] sm:$0xff]  ;;  %v278_v42 = vld [vmem:[#allocation4 + $0x1b0] sm:$0xff] }
  0x49   :  { %401 = vmatmul.mubr.f32.vlgmr.msra.gmra.mrb[0].mxu0 %v7003_v50  ;;  %4574 = vmatmul.mubr.f32.vlgmr.msra.gmra.mrb[0].mxu1 %v329_v24  ;;  %v153_v50 = vld [vmem:[%s8424_s5 + $0xc8] sm:$0xff]  ;;  %v5437_v35 = vpack.c.bf16 %v277_v30, %v274_v29  ;;  %v288_v47 = vld [vmem:[#allocation4 + $0x200] sm:$0xff]  ;;  %v287_v53 = vld [vmem:[#allocation4 + $0x1f8] sm:$0xff] }
  0x4a   :  { %5344 = vmatpush1.bf16.msra.mxu0 %v5343_v23  ;;  %5376 = vmatpush3.bf16.msra.mxu1 %v5373_v18  ;;  %v5357_v55 = vpack.c.bf16 %v156_v51, %v153_v50  ;;  %v171_v18 = vld [vmem:[%s8424_s5 + $0x158] sm:$0xff]  ;;  %v321_v41 = vld [vmem:[%s8420_s1 + $0x8] sm:$0xff]  ;;  %v284_v52 = vld [vmem:[#allocation4 + $0x1e0] sm:$0xff] }
  0x4b   :  { %406 = vmatprep.mubr.f32.mxu0 %v8434_v0  ;;  %5346 = vmatprep.subr.bf16.mxu0 %v5345_v27  ;;  %v5369_v23 = vpack.c.bf16 %v174_v19, %v171_v18  ;;  %v273_v27 = vld [vmem:[#allocation4 + $0x188] sm:$0xff]  ;;  %v291_v56 = vld [vmem:[#allocation4 + $0x218] sm:$0xff]  ;;  %v294_v57 = vld [vmem:[#allocation4 + $0x230] sm:$0xff]  ;;  %v5415_v60 = vpack.c.bf16 %v287_v53, %v284_v52 }
  0x4c   :  { %5378 = vmatprep.subr.bf16.mxu1 %v5377_v28  ;;  %4576 = vmatprep.mubr.f32.mxu1 %v330_v37  ;;  %v285_v46 = vld [vmem:[#allocation4 + $0x1e8] sm:$0xff]  ;;  %v324_v61 = vld [vmem:[%s8420_s1 + $0x20] sm:$0xff]  ;;  %v5417_v63 = vpack.c.bf16 %v294_v57, %v291_v56  ;;  %v290_v1 = vld [vmem:[#allocation4 + $0x210] sm:$0xff] }
  0x4d   :  { %407 = vmatmul.mubr.f32.gmra.mrb[2].mxu0 %v329_v24  ;;  %4577 = vmatmul.mubr.f32.gmra.mrb[2].mxu1 %v331_v44  ;;  %v170_v24 = vld [vmem:[%s8424_s5 + $0x150] sm:$0xff]  ;;  %v5413_v51 = vpack.c.bf16 %v288_v47, %v285_v46  ;;  %v301_v7 = vld [vmem:[#allocation4 + $0x268] sm:$0xff]  ;;  %v296_v12 = vld [vmem:[#allocation4 + $0x240] sm:$0xff] }
  0x4e   :  { %5348 = vmatpush1.bf16.msra.mxu0 %v5347_v33  ;;  %412 = vmatprep.mubr.f32.mxu0 %v8434_v0  ;;  %v5371_v31 = vpack.c.bf16 %v173_v25, %v170_v24  ;;  %v272_v33 = vld [vmem:[#allocation4 + $0x180] sm:$0xff]  ;;  %v298_v6 = vld [vmem:[#allocation4 + $0x250] sm:$0xff]  ;;  %v303_v15 = vld [vmem:[#allocation4 + $0x278] sm:$0xff] }
  0x4f   :  { %5380 = vmatpush3.bf16.msra.mxu1 %v5377_v28  ;;  %5350 = vmatprep.subr.bf16.mxu0 %v5349_v34  ;;  %v276_v28 = vld [vmem:[#allocation4 + $0x1a0] sm:$0xff]  ;;  %v275_v34 = vld [vmem:[#allocation4 + $0x198] sm:$0xff]  ;;  %v326_v10 = vld [vmem:[%s8420_s1 + $0x30] sm:$0xff] }
  0x50   :  { %5382 = vmatprep.subr.bf16.mxu1 %v5381_v38  ;;  %4579 = vmatprep.mubr.f32.mxu1 %v332_v49  ;;  %v5405_v32 = vpack.c.bf16 %v276_v28, %v273_v27  ;;  %v5407_v40 = vpack.c.bf16 %v275_v34, %v272_v33  ;;  %v306_v16 = vld [vmem:[#allocation4 + $0x290] sm:$0xff]  ;;  %v307_v18 = vld [vmem:[#allocation4 + $0x298] sm:$0xff]  ;;  %v7257_v21 = vld [vmem:[%s8423_s4] sm:$0xff] }
  0x51   :  { %413 = vmatmul.mubr.f32.gmra.mrb[4].mxu0 %v330_v37  ;;  %4580 = vmatmul.mubr.f32.gmra.mrb[4].mxu1 %v333_v58  ;;  %v282_v37 = vld [vmem:[#allocation4 + $0x1d0] sm:$0xff]  ;;  %v327_v19 = vld [vmem:[%s8420_s1 + $0x38] sm:$0xff]  ;;  %v305_v24 = vld [vmem:[#allocation4 + $0x288] sm:$0xff] }
  0x52   :  { %5352 = vmatpush1.bf16.msra.mxu0 %v5351_v43  ;;  %418 = vmatprep.mubr.f32.mxu0 %v8434_v0  ;;  %v281_v43 = vld [vmem:[#allocation4 + $0x1c8] sm:$0xff]  ;;  %v312_v27 = vld [vmem:[#allocation4 + $0x2c0] sm:$0xff]  ;;  %v310_v28 = vld [vmem:[#allocation4 + $0x2b0] sm:$0xff] }
  0x53   :  { %5384 = vmatpush3.bf16.msra.mxu1 %v5381_v38  ;;  %5354 = vmatprep.subr.bf16.mxu0 %v5353_v45  ;;  %v280_v38 = vld [vmem:[#allocation4 + $0x1c0] sm:$0xff]  ;;  %v5411_v50 = vpack.c.bf16 %v281_v43, %v278_v42  ;;  %v313_v29 = vld [vmem:[#allocation4 + $0x2c8] sm:$0xff]  ;;  %v311_v33 = vld [vmem:[#allocation4 + $0x2b8] sm:$0xff] }
  0x54   :  { %5386 = vmatprep.subr.bf16.mxu1 %v5385_v48  ;;  %4582 = vmatprep.mubr.f32.mxu1 %v334_v62  ;;  %v5441_v45 = vpack.c.bf16 %v283_v39, %v280_v38  ;;  %v5461_v34 = vpack.c.bf16 %v313_v29, %v310_v28  ;;  %v319_v38 = vld [vmem:[#allocation4 + $0x2f8] sm:$0xff]  ;;  %v317_v42 = vld [vmem:[#allocation4 + $0x2e8] sm:$0xff]  ;;  %v226_v46 = vld [vmem:[#allocation4 + $0x10] sm:$0xff] }
  0x55   :  { %419 = vmatmul.mubr.f32.gmra.mrb[6].mxu0 %v331_v44  ;;  %4583 = vmatmul.mubr.f32.gmra.mrb[6].mxu1 %v335_v2  ;;  %v5409_v44 = vpack.c.bf16 %v282_v37, %v279_v36  ;;  %v318_v36 = vld [vmem:[#allocation4 + $0x2f0] sm:$0xff]  ;;  %v316_v37 = vld [vmem:[#allocation4 + $0x2e0] sm:$0xff]  ;;  %v229_v47 = vld [vmem:[#allocation4 + $0x28] sm:$0xff] }
  0x56   :  { %5356 = vmatpush1.bf16.msra.mxu0 %v5355_v54  ;;  %424 = vmatprep.mubr.f32.mxu0 %v8434_v0  ;;  %v322_v54 = vld [vmem:[%s8420_s1 + $0x10] sm:$0xff]  ;;  %v5465_v43 = vpack.c.bf16 %v319_v38, %v316_v37  ;;  %v5501_v52 = vpack.c.bf16 %v229_v47, %v226_v46  ;;  %v231_v53 = vld [vmem:[#allocation4 + $0x38] sm:$0xff]  ;;  %v826_v29 = vld [vmem:[%s8423_s4 + $0x28] sm:$0xff] }
  0x57   :  { %5388 = vmatpush3.bf16.msra.mxu1 %v5385_v48  ;;  %5358 = vmatprep.subr.bf16.mxu0 %v5357_v55  ;;  %v286_v48 = vld [vmem:[#allocation4 + $0x1f0] sm:$0xff]  ;;  %v235_v56 = vld [vmem:[#allocation4 + $0x58] sm:$0xff]  ;;  %v7293_v38 = vld [vmem:[%s8422_s3] sm:$0xff] }
  0x58   :  { %5390 = vmatprep.subr.bf16.mxu1 %v5389_v59  ;;  %4617 = vmatprep.mubr.f32.mxu1 %v7179_v4  ;;  %v251_v28 = vld [vmem:[#allocation4 + $0xd8] sm:$0xff]  ;;  %v265_v46 = vld [vmem:[#allocation4 + $0x148] sm:$0xff] }
  0x59   :  { %425 = vmatmul.mubr.f32.gmra.mrb[8].mxu0 %v332_v49  ;;  %v289_v49 = vld [vmem:[#allocation4 + $0x208] sm:$0xff] }
  0x5a   :  { %5360 = vmatpush1.bf16.msra.mxu0 %v5359_v3  ;;  %430 = vmatprep.mubr.f32.mxu0 %v8434_v0  ;;  %v5445_v55 = vpack.c.bf16 %v289_v49, %v286_v48 }
  0x5b   :  { %5392 = vmatpush3.bf16.msra.mxu1 %v5389_v59  ;;  %5362 = vmatprep.subr.bf16.mxu0 %v5361_v5  ;;  %v295_v59 = vld [vmem:[#allocation4 + $0x238] sm:$0xff]  ;;  %v300_v5 = vld [vmem:[#allocation4 + $0x260] sm:$0xff] }
  0x5c   :  { %5394 = vmatprep.subr.bf16.mxu1 %v5393_v8 }
  0x5d   :  { %431 = vmatmul.mubr.f32.gmra.mrb[10].mxu0 %v333_v58  ;;  %v292_v58 = vld [vmem:[#allocation4 + $0x220] sm:$0xff] }
  0x5e   :  { %5364 = vmatpush1.bf16.msra.mxu0 %v5363_v13  ;;  %436 = vmatprep.mubr.f32.mxu0 %v8434_v0  ;;  %v5449_v3 = vpack.c.bf16 %v295_v59, %v292_v58  ;;  %v299_v13 = vld [vmem:[#allocation4 + $0x258] sm:$0xff]  ;;  %v822_v58 = vld [vmem:[%s8423_s4 + $0x8] sm:$0xff]  ;;  %v230_v59 = vld [vmem:[#allocation4 + $0x30] sm:$0xff] }
  0x5f   :  { %5396 = vmatpush3.bf16.msra.mxu1 %v5393_v8  ;;  %5366 = vmatprep.subr.bf16.mxu0 %v5365_v14  ;;  %v325_v8 = vld [vmem:[%s8420_s1 + $0x28] sm:$0xff]  ;;  %v5453_v14 = vpack.c.bf16 %v301_v7, %v298_v6  ;;  %v5423_v20 = vpack.c.bf16 %v299_v13, %v296_v12  ;;  %v236_v6 = vld [vmem:[#allocation4 + $0x60] sm:$0xff]  ;;  %v239_v7 = vld [vmem:[#allocation4 + $0x78] sm:$0xff] }
  0x60   :  { %5398 = vmatprep.subr.bf16.mxu1 %v5397_v17  ;;  %v244_v12 = vld [vmem:[#allocation4 + $0xa0] sm:$0xff]  ;;  %v247_v13 = vld [vmem:[#allocation4 + $0xb8] sm:$0xff] }
  0x61   :  { %437 = vmatmul.mubr.f32.gmra.mrb[12].mxu0 %v334_v62  ;;  %v323_v62 = vld [vmem:[%s8420_s1 + $0x18] sm:$0xff] }
  0x62   :  { %5368 = vmatpush1.bf16.msra.mxu0 %v5367_v22  ;;  %442 = vmatprep.mubr.f32.mxu0 %v8434_v0  ;;  %v5425_v22 = vpack.c.bf16 %v306_v16, %v303_v15  ;;  %v824_v15 = vld [vmem:[%s8423_s4 + $0x18] sm:$0xff] }
  0x63   :  { %5400 = vmatpush3.bf16.msra.mxu1 %v5397_v17  ;;  %5370 = vmatprep.subr.bf16.mxu0 %v5369_v23  ;;  %v304_v17 = vld [vmem:[#allocation4 + $0x280] sm:$0xff]  ;;  %v302_v23 = vld [vmem:[#allocation4 + $0x270] sm:$0xff] }
  0x64   :  { %5402 = vmatprep.subr.bf16.mxu1 %v5401_v26  ;;  %v5457_v25 = vpack.c.bf16 %v307_v18, %v304_v17  ;;  %v5427_v30 = vpack.c.bf16 %v305_v24, %v302_v23  ;;  %v242_v17 = vld [vmem:[#allocation4 + $0x90] sm:$0xff]  ;;  %v245_v18 = vld [vmem:[#allocation4 + $0xa8] sm:$0xff] }
  0x65   :  { %443 = vmatmul.mubr.f32.gmra.mrb[14].mxu0 %v335_v2  ;;  %v293_v2 = vld [vmem:[#allocation4 + $0x228] sm:$0xff]  ;;  %v250_v23 = vld [vmem:[#allocation4 + $0xd0] sm:$0xff] }
  0x66   :  { %5372 = vmatpush1.bf16.msra.mxu0 %v5371_v31  ;;  %618 = vmatprep.mubr.f32.mxu0 %v8434_v0  ;;  %v5419_v9 = vpack.c.bf16 %v293_v2, %v290_v1  ;;  %v240_v1 = vld [vmem:[#allocation4 + $0x80] sm:$0xff]  ;;  %v238_v2 = vld [vmem:[#allocation4 + $0x70] sm:$0xff]  ;;  %v253_v24 = vld [vmem:[#allocation4 + $0xe8] sm:$0xff] }
  0x67   :  { %5404 = vmatpush3.bf16.msra.mxu1 %v5401_v26  ;;  %5406 = vmatprep.subr.bf16.mxu0 %v5405_v32  ;;  %v309_v26 = vld [vmem:[#allocation4 + $0x2a8] sm:$0xff]  ;;  %v308_v32 = vld [vmem:[#allocation4 + $0x2a0] sm:$0xff] }
  0x68   :  { %5438 = vmatprep.subr.bf16.mxu1 %v5437_v35  ;;  %v5429_v31 = vpack.c.bf16 %v312_v27, %v309_v26  ;;  %v5431_v39 = vpack.c.bf16 %v311_v33, %v308_v32  ;;  %v248_v27 = vld [vmem:[#allocation4 + $0xc0] sm:$0xff]  ;;  %v258_v32 = vld [vmem:[#allocation4 + $0x110] sm:$0xff] }
  0x69   :  { %619 = vmatmul.mubr.f32.vlgmr.msra.gmra.mrb[0].mxu0 %v7179_v4  ;;  %v297_v4 = vld [vmem:[#allocation4 + $0x248] sm:$0xff]  ;;  %v827_v33 = vld [vmem:[%s8423_s4 + $0x30] sm:$0xff]  ;;  %v5487_v37 = vpack.c.bf16 %v251_v28, %v248_v27  ;;  %v817_v27 = vld [vmem:[%s8422_s3 + $0x20] sm:$0xff] }
  0x6a   :  { %4618 = vmatmul.mubr.f32.vlgmr.msra.gmra.mrb[0].mxu1 %v321_v41  ;;  %5408 = vmatpush1.bf16.msra.mxu0 %v5407_v40  ;;  %v5421_v11 = vpack.c.bf16 %v300_v5, %v297_v4  ;;  %v1323_v28 = vld [vmem:[%s8428_s9 + $0x70] sm:$0xff] }
  0x6b   :  { %5440 = vmatpush3.bf16.msra.mxu1 %v5437_v35  ;;  %624 = vmatprep.mubr.f32.mxu0 %v8434_v0  ;;  %v315_v35 = vld [vmem:[#allocation4 + $0x2d8] sm:$0xff] }
  0x6c   :  { %5410 = vmatprep.subr.bf16.mxu0 %v5409_v44  ;;  %5442 = vmatprep.subr.bf16.mxu1 %v5441_v45  ;;  %v5433_v40 = vpack.c.bf16 %v318_v36, %v315_v35  ;;  %v225_v44 = vld [vmem:[#allocation4 + $0x8] sm:$0xff]  ;;  %v259_v35 = vld [vmem:[#allocation4 + $0x118] sm:$0xff] }
  0x6d   :  { %625 = vmatmul.mubr.f32.gmra.mrb[2].mxu0 %v321_v41  ;;  %4620 = vmatprep.mubr.f32.mxu1 %v322_v54  ;;  %v314_v41 = vld [vmem:[#allocation4 + $0x2d0] sm:$0xff]  ;;  %v828_v36 = vld [vmem:[%s8423_s4 + $0x38] sm:$0xff] }
  0x6e   :  { %5412 = vmatpush1.bf16.msra.mxu0 %v5411_v50  ;;  %630 = vmatprep.mubr.f32.mxu0 %v8434_v0  ;;  %v5435_v48 = vpack.c.bf16 %v317_v42, %v314_v41  ;;  %v224_v50 = vld [vmem:[#allocation4] sm:$0xff]  ;;  %v257_v41 = vld [vmem:[#allocation4 + $0x108] sm:$0xff] }
  0x6f   :  { %5444 = vmatpush3.bf16.msra.mxu1 %v5441_v45  ;;  %5414 = vmatprep.subr.bf16.mxu0 %v5413_v51  ;;  %v228_v45 = vld [vmem:[#allocation4 + $0x20] sm:$0xff]  ;;  %v227_v51 = vld [vmem:[#allocation4 + $0x18] sm:$0xff] }
  0x70   :  { %5446 = vmatprep.subr.bf16.mxu1 %v5445_v55  ;;  %4621 = vmatmul.mubr.f32.gmra.mrb[2].mxu1 %v323_v62  ;;  %v5469_v49 = vpack.c.bf16 %v228_v45, %v225_v44  ;;  %v5471_v57 = vpack.c.bf16 %v227_v51, %v224_v50  ;;  %v264_v44 = vld [vmem:[#allocation4 + $0x140] sm:$0xff]  ;;  %v262_v45 = vld [vmem:[#allocation4 + $0x130] sm:$0xff]  ;;  %v263_v50 = vld [vmem:[#allocation4 + $0x138] sm:$0xff] }
  0x71   :  { %631 = vmatmul.mubr.f32.gmra.mrb[4].mxu0 %v322_v54  ;;  %4623 = vmatprep.mubr.f32.mxu1 %v324_v61  ;;  %v234_v54 = vld [vmem:[#allocation4 + $0x50] sm:$0xff]  ;;  %v5525_v51 = vpack.c.bf16 %v265_v46, %v262_v45  ;;  %v1336_v45 = vld [vmem:[%s8428_s9 + $0xd8] sm:$0xff] }
  0x72   :  { %5416 = vmatpush1.bf16.msra.mxu0 %v5415_v60  ;;  %636 = vmatprep.mubr.f32.mxu0 %v8434_v0  ;;  %v233_v60 = vld [vmem:[#allocation4 + $0x48] sm:$0xff]  ;;  %v1340_v46 = vld [vmem:[%s8428_s9 + $0xf8] sm:$0xff] }
  0x73   :  { %5448 = vmatpush3.bf16.msra.mxu1 %v5445_v55  ;;  %5418 = vmatprep.subr.bf16.mxu0 %v5417_v63  ;;  %v232_v55 = vld [vmem:[#allocation4 + $0x40] sm:$0xff]  ;;  %v237_v63 = vld [vmem:[#allocation4 + $0x68] sm:$0xff]  ;;  %v5475_v4 = vpack.c.bf16 %v233_v60, %v230_v59 }
  0x74   :  { %5450 = vmatprep.subr.bf16.mxu1 %v5449_v3  ;;  %4624 = vmatmul.mubr.f32.gmra.mrb[4].mxu1 %v325_v8  ;;  %v5477_v5 = vpack.c.bf16 %v240_v1, %v237_v63  ;;  %v269_v59 = vld [vmem:[#allocation4 + $0x168] sm:$0xff] }
  0x75   :  { %637 = vmatmul.mubr.f32.gmra.mrb[6].mxu0 %v323_v62  ;;  %4626 = vmatprep.mubr.f32.mxu1 %v326_v10  ;;  %v5505_v62 = vpack.c.bf16 %v235_v56, %v232_v55  ;;  %v271_v55 = vld [vmem:[#allocation4 + $0x178] sm:$0xff] }
  0x76   :  { %5420 = vmatpush1.bf16.msra.mxu0 %v5419_v9  ;;  %642 = vmatprep.mubr.f32.mxu0 %v8434_v0 }
  0x77   :  { %5452 = vmatpush3.bf16.msra.mxu1 %v5449_v3  ;;  %5422 = vmatprep.subr.bf16.mxu0 %v5421_v11  ;;  %v241_v3 = vld [vmem:[#allocation4 + $0x88] sm:$0xff]  ;;  %v246_v11 = vld [vmem:[#allocation4 + $0xb0] sm:$0xff] }
  0x78   :  { %5454 = vmatprep.subr.bf16.mxu1 %v5453_v14  ;;  %4627 = vmatmul.mubr.f32.gmra.mrb[6].mxu1 %v327_v19  ;;  %v5509_v9 = vpack.c.bf16 %v241_v3, %v238_v2  ;;  %v1309_v2 = vld [vmem:[%s8428_s9] sm:$0xff]  ;;  %v1312_v3 = vld [vmem:[%s8428_s9 + $0x18] sm:$0xff] }
  0x79   :  { %643 = vmatmul.mubr.f32.gmra.mrb[8].mxu0 %v324_v61  ;;  %4661 = vmatprep.mubr.f32.mxu1 %v7257_v21  ;;  %v5473_v61 = vpack.c.bf16 %v234_v54, %v231_v53  ;;  %v270_v53 = vld [vmem:[#allocation4 + $0x170] sm:$0xff]  ;;  %v268_v54 = vld [vmem:[#allocation4 + $0x160] sm:$0xff] }
  0x7a   :  { %5424 = vmatpush1.bf16.msra.mxu0 %v5423_v20  ;;  %648 = vmatprep.mubr.f32.mxu0 %v8434_v0  ;;  %v825_v20 = vld [vmem:[%s8423_s4 + $0x20] sm:$0xff]  ;;  %v5529_v60 = vpack.c.bf16 %v271_v55, %v268_v54  ;;  %v1339_v54 = vld [vmem:[%s8428_s9 + $0xf0] sm:$0xff]  ;;  %v1342_v55 = vld [vmem:[%s8428_s9 + $0x108] sm:$0xff] }
  0x7b   :  { %5456 = vmatpush3.bf16.msra.mxu1 %v5453_v14  ;;  %5426 = vmatprep.subr.bf16.mxu0 %v5425_v22  ;;  %v5479_v14 = vpack.c.bf16 %v239_v7, %v236_v6  ;;  %v252_v22 = vld [vmem:[#allocation4 + $0xe0] sm:$0xff]  ;;  %v1311_v6 = vld [vmem:[%s8428_s9 + $0x10] sm:$0xff]  ;;  %v1314_v7 = vld [vmem:[%s8428_s9 + $0x28] sm:$0xff] }
  0x7c   :  { %5458 = vmatprep.subr.bf16.mxu1 %v5457_v25 }
  0x7d   :  { %649 = vmatmul.mubr.f32.gmra.mrb[10].mxu0 %v325_v8  ;;  %v823_v8 = vld [vmem:[%s8423_s4 + $0x10] sm:$0xff] }
  0x7e   :  { %5428 = vmatpush1.bf16.msra.mxu0 %v5427_v30  ;;  %654 = vmatprep.mubr.f32.mxu0 %v8434_v0  ;;  %v5517_v30 = vpack.c.bf16 %v253_v24, %v250_v23  ;;  %v1324_v23 = vld [vmem:[%s8428_s9 + $0x78] sm:$0xff] }
  0x7f   :  { %5460 = vmatpush3.bf16.msra.mxu1 %v5457_v25  ;;  %5430 = vmatprep.subr.bf16.mxu0 %v5429_v31  ;;  %v5483_v25 = vpack.c.bf16 %v245_v18, %v242_v17  ;;  %v255_v31 = vld [vmem:[#allocation4 + $0xf8] sm:$0xff]  ;;  %v1317_v17 = vld [vmem:[%s8428_s9 + $0x40] sm:$0xff] }
  0x80   :  { %5462 = vmatprep.subr.bf16.mxu1 %v5461_v34  ;;  %v1320_v18 = vld [vmem:[%s8428_s9 + $0x58] sm:$0xff] }
  0x81   :  { %655 = vmatmul.mubr.f32.gmra.mrb[12].mxu0 %v326_v10  ;;  %v243_v10 = vld [vmem:[#allocation4 + $0x98] sm:$0xff] }
  0x82   :  { %5432 = vmatpush1.bf16.msra.mxu0 %v5431_v39  ;;  %660 = vmatprep.mubr.f32.mxu0 %v8434_v0  ;;  %v5481_v16 = vpack.c.bf16 %v246_v11, %v243_v10  ;;  %v5489_v39 = vpack.c.bf16 %v258_v32, %v255_v31  ;;  %v1315_v11 = vld [vmem:[%s8428_s9 + $0x30] sm:$0xff]  ;;  %v1328_v24 = vld [vmem:[%s8428_s9 + $0x98] sm:$0xff] }
  0x83   :  { %5464 = vmatpush3.bf16.msra.mxu1 %v5461_v34  ;;  %5434 = vmatprep.subr.bf16.mxu0 %v5433_v40  ;;  %v256_v34 = vld [vmem:[#allocation4 + $0x100] sm:$0xff]  ;;  %v254_v40 = vld [vmem:[#allocation4 + $0xf0] sm:$0xff]  ;;  %v816_v31 = vld [vmem:[%s8422_s3 + $0x18] sm:$0xff] }
  0x84   :  { %5466 = vmatprep.subr.bf16.mxu1 %v5465_v43  ;;  %v5521_v42 = vpack.c.bf16 %v259_v35, %v256_v34  ;;  %v5491_v47 = vpack.c.bf16 %v257_v41, %v254_v40  ;;  %v1330_v34 = vld [vmem:[%s8428_s9 + $0xa8] sm:$0xff]  ;;  %v1329_v40 = vld [vmem:[%s8428_s9 + $0xa0] sm:$0xff]  ;;  %v1332_v41 = vld [vmem:[%s8428_s9 + $0xb8] sm:$0xff] }
  0x85   :  { %661 = vmatmul.mubr.f32.gmra.mrb[14].mxu0 %v327_v19  ;;  %v5513_v19 = vpack.c.bf16 %v247_v13, %v244_v12  ;;  %v1318_v12 = vld [vmem:[%s8428_s9 + $0x48] sm:$0xff] }
  0x86   :  { %5436 = vmatpush1.bf16.msra.mxu0 %v5435_v48  ;;  %893 = vmatprep.mubr.f32.mxu0 %v8434_v0  ;;  %v1322_v13 = vld [vmem:[%s8428_s9 + $0x68] sm:$0xff] }
  0x87   :  { %5468 = vmatpush3.bf16.msra.mxu1 %v5465_v43  ;;  %5470 = vmatprep.subr.bf16.mxu0 %v5469_v49  ;;  %v261_v43 = vld [vmem:[#allocation4 + $0x128] sm:$0xff]  ;;  %v260_v49 = vld [vmem:[#allocation4 + $0x120] sm:$0xff] }
  0x88   :  { %5502 = vmatprep.subr.bf16.mxu1 %v5501_v52  ;;  %v5493_v48 = vpack.c.bf16 %v264_v44, %v261_v43  ;;  %v5495_v56 = vpack.c.bf16 %v263_v50, %v260_v49  ;;  %v1334_v35 = vld [vmem:[%s8428_s9 + $0xc8] sm:$0xff]  ;;  %v1333_v44 = vld [vmem:[%s8428_s9 + $0xc0] sm:$0xff]  ;;  %v7457_v49 = vpack.c.bf16 %v1332_v41, %v1329_v40  ;;  %v1335_v50 = vld [vmem:[%s8428_s9 + $0xd0] sm:$0xff] }
  0x89   :  { %894 = vmatmul.mubr.f32.vlgmr.msra.gmra.mrb[16].mxu0 %v7257_v21  ;;  %v249_v21 = vld [vmem:[#allocation4 + $0xc8] sm:$0xff]  ;;  %v1364_v40 = vld [vmem:[#allocation6 + $0x30] sm:$0xff] }
  0x8a   :  { %4662 = vmatmul.mubr.f32.vlgmr.msra.gmra.mrb[8].mxu1 %v822_v58  ;;  %5472 = vmatpush1.bf16.msra.mxu0 %v5471_v57  ;;  %v5485_v26 = vpack.c.bf16 %v252_v22, %v249_v21  ;;  %v1321_v22 = vld [vmem:[%s8428_s9 + $0x60] sm:$0xff]  ;;  %v1367_v41 = vld [vmem:[#allocation6 + $0x48] sm:$0xff] }
  0x8b   :  { %5504 = vmatpush3.bf16.msra.mxu1 %v5501_v52  ;;  %899 = vmatprep.mubr.f32.mxu0 %v8434_v0  ;;  %v267_v52 = vld [vmem:[#allocation4 + $0x158] sm:$0xff] }
  0x8c   :  { %5474 = vmatprep.subr.bf16.mxu0 %v5473_v61  ;;  %5506 = vmatprep.subr.bf16.mxu1 %v5505_v62  ;;  %v5497_v57 = vpack.c.bf16 %v270_v53, %v267_v52  ;;  %v1310_v61 = vld [vmem:[%s8428_s9 + $0x8] sm:$0xff]  ;;  %v7468_v52 = vpack.c.bf16 %v1336_v45, %v1333_v44  ;;  %v1374_v45 = vld [vmem:[#allocation6 + $0x80] sm:$0xff] }
  0x8d   :  { %900 = vmatmul.mubr.f32.gmra.mrb[18].mxu0 %v822_v58  ;;  %4664 = vmatprep.mubr.f32.mxu1 %v823_v8  ;;  %v266_v58 = vld [vmem:[#allocation4 + $0x150] sm:$0xff]  ;;  %v1371_v44 = vld [vmem:[#allocation6 + $0x68] sm:$0xff] }
  0x8e   :  { %5476 = vmatpush1.bf16.msra.mxu0 %v5475_v4  ;;  %905 = vmatprep.mubr.f32.mxu0 %v8434_v0  ;;  %v5499_v63 = vpack.c.bf16 %v269_v59, %v266_v58  ;;  %v1316_v4 = vld [vmem:[%s8428_s9 + $0x38] sm:$0xff]  ;;  %v1341_v59 = vld [vmem:[%s8428_s9 + $0x100] sm:$0xff] }
  0x8f   :  { %5508 = vmatpush3.bf16.msra.mxu1 %v5505_v62  ;;  %5478 = vmatprep.subr.bf16.mxu0 %v5477_v5  ;;  %v1313_v62 = vld [vmem:[%s8428_s9 + $0x20] sm:$0xff]  ;;  %v1319_v5 = vld [vmem:[%s8428_s9 + $0x50] sm:$0xff] }
  0x90   :  { %5510 = vmatprep.subr.bf16.mxu1 %v5509_v9  ;;  %4665 = vmatmul.mubr.f32.gmra.mrb[10].mxu1 %v824_v15  ;;  %v7305_v1 = vpack.c.bf16 %v1313_v62, %v1310_v61  ;;  %v7332_v10 = vpack.c.bf16 %v1319_v5, %v1316_v4  ;;  %v7500_v61 = vpack.c.bf16 %v1342_v55, %v1339_v54  ;;  %v1355_v4 = vld [vmem:[%s8428_s9 + $0x170] sm:$0xff]  ;;  %v1370_v54 = vld [vmem:[#allocation6 + $0x60] sm:$0xff]  ;;  %v1373_v55 = vld [vmem:[#allocation6 + $0x78] sm:$0xff] }
  0x91   :  { %906 = vmatmul.mubr.f32.gmra.mrb[20].mxu0 %v823_v8  ;;  %4667 = vmatprep.mubr.f32.mxu1 %v825_v20  ;;  %v7326_v8 = vpack.c.bf16 %v1312_v3, %v1309_v2  ;;  %v1348_v2 = vld [vmem:[%s8428_s9 + $0x138] sm:$0xff] }
  0x92   :  { %5480 = vmatpush1.bf16.msra.mxu0 %v5479_v14  ;;  %911 = vmatprep.mubr.f32.mxu0 %v8434_v0  ;;  %v1325_v14 = vld [vmem:[%s8428_s9 + $0x80] sm:$0xff]  ;;  %8469 = vst [vmem:[#allocation12_spill] sm:$0xff] %v7500_v61  ;;  %v1352_v3 = vld [vmem:[%s8428_s9 + $0x158] sm:$0xff] }
  0x93   :  { %5512 = vmatpush3.bf16.msra.mxu1 %v5509_v9  ;;  %5482 = vmatprep.subr.bf16.mxu0 %v5481_v16  ;;  %v814_v9 = vld [vmem:[%s8422_s3 + $0x8] sm:$0xff]  ;;  %v7347_v16 = vpack.c.bf16 %v1314_v7, %v1311_v6  ;;  %v7364_v21 = vpack.c.bf16 %v1325_v14, %v1322_v13  ;;  %v1347_v6 = vld [vmem:[%s8428_s9 + $0x130] sm:$0xff] }
  0x94   :  { %5514 = vmatprep.subr.bf16.mxu1 %v5513_v19  ;;  %4668 = vmatmul.mubr.f32.gmra.mrb[12].mxu1 %v826_v29  ;;  %v1350_v7 = vld [vmem:[%s8428_s9 + $0x148] sm:$0xff] }
  0x95   :  { %912 = vmatmul.mubr.f32.gmra.mrb[22].mxu0 %v824_v15  ;;  %4670 = vmatprep.mubr.f32.mxu1 %v827_v33  ;;  %v8436_v15 = vmov 0.0|0.0   ;;  %v1354_v13 = vld [vmem:[%s8428_s9 + $0x168] sm:$0xff] }
  0x96   :  { %5484 = vmatpush1.bf16.msra.mxu0 %v5483_v25  ;;  %917 = vmatprep.mubr.f32.mxu0 %v8434_v0  ;;  %v1331_v25 = vld [vmem:[%s8428_s9 + $0xb0] sm:$0xff]  ;;  %v1359_v14 = vld [vmem:[#allocation6 + $0x8] sm:$0xff] }
  0x97   :  { %5516 = vmatpush3.bf16.msra.mxu1 %v5513_v19  ;;  %5486 = vmatprep.subr.bf16.mxu0 %v5485_v26  ;;  %v7357_v19 = vpack.c.bf16 %v1318_v12, %v1315_v11  ;;  %v7379_v26 = vpack.c.bf16 %v1320_v18, %v1317_v17  ;;  %v7399_v32 = vpack.c.bf16 %v1331_v25, %v1328_v24  ;;  %v1351_v12 = vld [vmem:[%s8428_s9 + $0x150] sm:$0xff]  ;;  %v1362_v17 = vld [vmem:[#allocation6 + $0x20] sm:$0xff] }
  0x98   :  { %5518 = vmatprep.subr.bf16.mxu1 %v5517_v30  ;;  %4671 = vmatmul.mubr.f32.gmra.mrb[14].mxu1 %v828_v36  ;;  %v7532_v11 = vpack.c.bf16 %v1355_v4, %v1352_v3  ;;  %v7541_v18 = vpack.c.bf16 %v1350_v7, %v1347_v6  ;;  %v7553_v24 = vpack.c.bf16 %v1354_v13, %v1351_v12  ;;  %v1376_v4 = vld [vmem:[#allocation6 + $0x90] sm:$0xff]  ;;  %v1379_v6 = vld [vmem:[#allocation6 + $0xa8] sm:$0xff]  ;;  %v1386_v12 = vld [vmem:[#allocation6 + $0xe0] sm:$0xff] }
  0x99   :  { %918 = vmatmul.mubr.f32.gmra.mrb[24].mxu0 %v825_v20  ;;  %4705 = vmatprep.mubr.f32.mxu1 %v7293_v38  ;;  %v815_v20 = vld [vmem:[%s8422_s3 + $0x10] sm:$0xff]  ;;  %v7556_v25 = vpack.c.bf16 %v1362_v17, %v1359_v14  ;;  %v1383_v7 = vld [vmem:[#allocation6 + $0xc8] sm:$0xff]  ;;  %v1378_v14 = vld [vmem:[#allocation6 + $0xa0] sm:$0xff] }
  0x9a   :  { %5488 = vmatpush1.bf16.msra.mxu0 %v5487_v37  ;;  %923 = vmatprep.mubr.f32.mxu0 %v8434_v0  ;;  %v818_v37 = vld [vmem:[%s8422_s3 + $0x28] sm:$0xff]  ;;  %8473 = vst [vmem:[#allocation16_spill] sm:$0xff] %v7532_v11  ;;  %8474 = vst [vmem:[#allocation17_spill] sm:$0xff] %v7541_v18  ;;  %v1381_v17 = vld [vmem:[#allocation6 + $0xb8] sm:$0xff] }
  0x9b   :  { %5520 = vmatpush3.bf16.msra.mxu1 %v5517_v30  ;;  %5490 = vmatprep.subr.bf16.mxu0 %v5489_v39  ;;  %v7393_v30 = vpack.c.bf16 %v1324_v23, %v1321_v22  ;;  %v7422_v39 = vld [vmem:[%s8422_s3 + $0x30] sm:$0xff]  ;;  %v1353_v22 = vld [vmem:[%s8428_s9 + $0x160] sm:$0xff]  ;;  %v1356_v23 = vld [vmem:[%s8428_s9 + $0x178] sm:$0xff]  ;;  %8475 = vst [vmem:[#allocation18_spill] sm:$0xff] %v7553_v24 }
  0x9c   :  { %5522 = vmatprep.subr.bf16.mxu1 %v5521_v42  ;;  %8476 = vst [vmem:[#allocation19_spill] sm:$0xff] %v7556_v25 }
  0x9d   :  { %924 = vmatmul.mubr.f32.gmra.mrb[26].mxu0 %v826_v29  ;;  %v1326_v29 = vld [vmem:[%s8428_s9 + $0x88] sm:$0xff] }
  0x9e   :  { %5492 = vmatpush1.bf16.msra.mxu0 %v5491_v47  ;;  %929 = vmatprep.mubr.f32.mxu0 %v8434_v0  ;;  %v1343_v47 = vld [vmem:[%s8428_s9 + $0x110] sm:$0xff] }
  0x9f   :  { %5524 = vmatpush3.bf16.msra.mxu1 %v5521_v42  ;;  %5494 = vmatprep.subr.bf16.mxu0 %v5493_v48  ;;  %v7454_v48 = vld [vmem:[%s8422_s3 + $0x38] sm:$0xff]  ;;  %v7471_v53 = vpack.c.bf16 %v1343_v47, %v1340_v46  ;;  %v1366_v47 = vld [vmem:[#allocation6 + $0x40] sm:$0xff] }
  0xa0   :  { %5526 = vmatprep.subr.bf16.mxu1 %v5525_v51 }
  0xa1   :  { %930 = vmatmul.mubr.f32.gmra.mrb[28].mxu0 %v827_v33  ;;  %v1327_v33 = vld [vmem:[%s8428_s9 + $0x90] sm:$0xff]  ;;  %8467 = vst [vmem:[#allocation10_spill] sm:$0xff] %v7471_v53 }
  0xa2   :  { %5496 = vmatpush1.bf16.msra.mxu0 %v5495_v56  ;;  %935 = vmatprep.mubr.f32.mxu0 %v8434_v0  ;;  %v7433_v42 = vpack.c.bf16 %v1330_v34, %v1327_v33  ;;  %v1346_v56 = vld [vmem:[%s8428_s9 + $0x128] sm:$0xff]  ;;  %v7559_v33 = vpack.c.bf16 %v1356_v23, %v1353_v22  ;;  %v1360_v34 = vld [vmem:[#allocation6 + $0x10] sm:$0xff]  ;;  %v7606_v22 = vpack.c.bf16 %v1386_v12, %v1383_v7  ;;  %v1382_v23 = vld [vmem:[#allocation6 + $0xc0] sm:$0xff] }
  0xa3   :  { %5528 = vmatpush3.bf16.msra.mxu1 %v5525_v51  ;;  %5498 = vmatprep.subr.bf16.mxu0 %v5497_v57  ;;  %v1338_v51 = vld [vmem:[%s8428_s9 + $0xe8] sm:$0xff]  ;;  %v1349_v57 = vld [vmem:[%s8428_s9 + $0x140] sm:$0xff]  ;;  %v1396_v12 = vld [vmem:[#allocation6 + $0x130] sm:$0xff] }
  0xa4   :  { %5530 = vmatprep.subr.bf16.mxu1 %v5529_v60  ;;  %v7487_v58 = vpack.c.bf16 %v1338_v51, %v1335_v50  ;;  %v7503_v62 = vpack.c.bf16 %v1349_v57, %v1346_v56  ;;  %8477 = vst [vmem:[#allocation20_spill] sm:$0xff] %v7559_v33  ;;  %v7579_v50 = vpack.c.bf16 %v1367_v41, %v1364_v40  ;;  %v1377_v56 = vld [vmem:[#allocation6 + $0x98] sm:$0xff]  ;;  %v1380_v57 = vld [vmem:[#allocation6 + $0xb0] sm:$0xff] }
  0xa5   :  { %936 = vmatmul.mubr.f32.gmra.mrb[30].mxu0 %v828_v36  ;;  %v1337_v36 = vld [vmem:[%s8428_s9 + $0xe0] sm:$0xff]  ;;  %v7583_v51 = vpack.c.bf16 %v1374_v45, %v1371_v44  ;;  %v7596_v3 = vpack.c.bf16 %v1380_v57, %v1377_v56  ;;  %v1388_v41 = vld [vmem:[#allocation6 + $0xf0] sm:$0xff]  ;;  %v1391_v44 = vld [vmem:[#allocation6 + $0x108] sm:$0xff] }
  0xa6   :  { %5500 = vmatpush1.bf16.msra.mxu0 %v5499_v63  ;;  %1111 = vmatprep.mubr.f32.mxu0 %v8434_v0  ;;  %v7436_v43 = vpack.c.bf16 %v1337_v36, %v1334_v35  ;;  %8468 = vst [vmem:[#allocation11_spill] sm:$0xff] %v7487_v58  ;;  %8470 = vst [vmem:[#allocation13_spill] sm:$0xff] %v7503_v62  ;;  %v1345_v63 = vld [vmem:[%s8428_s9 + $0x120] sm:$0xff]  ;;  %v1363_v35 = vld [vmem:[#allocation6 + $0x28] sm:$0xff]  ;;  %v7623_v56 = vpack.c.bf16 %v1391_v44, %v1388_v41 }
  0xa7   :  { %5532 = vmatpush3.bf16.msra.mxu1 %v5529_v60  ;;  %5534 = vmatprep.subr.bf16.mxu0 %v7305_v1  ;;  %v1344_v60 = vld [vmem:[%s8428_s9 + $0x118] sm:$0xff]  ;;  %v124_v36 = vld [vmem:[%s8419_s0] sm:$0xff]  ;;  %v7574_v46 = vpack.c.bf16 %v1363_v35, %v1360_v34  ;;  %v1384_v34 = vld [vmem:[#allocation6 + $0xd0] sm:$0xff] }
  0xa8   :  { %5565 = vmatprep.subr.bf16.mxu1 %v8436_v15  ;;  %v7518_v5 = vpack.c.bf16 %v1344_v60, %v1341_v59  ;;  %v1372_v60 = vld [vmem:[#allocation6 + $0x70] sm:$0xff]  ;;  %v1387_v35 = vld [vmem:[#allocation6 + $0xe8] sm:$0xff] }
  0xa9   :  { %1112 = vmatmul.mubr.f32.vlgmr.msra.gmra.mrb[16].mxu0 %v7293_v38  ;;  %v7417_v38 = vpack.c.bf16 %v1326_v29, %v1323_v28  ;;  %v1361_v28 = vld [vmem:[#allocation6 + $0x18] sm:$0xff]  ;;  %v1395_v45 = vld [vmem:[#allocation6 + $0x128] sm:$0xff] }
  0xaa   :  { %4706 = vmatmul.mubr.f32.vlgmr.msra.gmra.mrb[8].mxu1 %v814_v9  ;;  %5536 = vmatpush1.bf16.msra.mxu0 %v7326_v8  ;;  %8471 = vst [vmem:[#allocation14_spill] sm:$0xff] %v7518_v5  ;;  %v1365_v29 = vld [vmem:[#allocation6 + $0x38] sm:$0xff] }
  0xab   :  { %1117 = vmatprep.mubr.f32.mxu0 %v8434_v0  ;;  %5538 = vmatprep.subr.bf16.mxu0 %v7332_v10 }
  0xac   :  { %4708 = vmatprep.mubr.f32.mxu1 %v815_v20  ;;  %5567 = vmatpush3.bf16.msra.mxu1 %v7347_v16 }
  0xad   :  { %1118 = vmatmul.mubr.f32.gmra.mrb[18].mxu0 %v814_v9  ;;  %5568 = vmatprep.subr.bf16.mxu1 %v8436_v15  ;;  %v7529_v9 = vpack.c.bf16 %v1348_v2, %v1345_v63  ;;  %v1375_v63 = vld [vmem:[#allocation6 + $0x88] sm:$0xff]  ;;  %v7593_v2 = vpack.c.bf16 %v1373_v55, %v1370_v54  ;;  %v1390_v54 = vld [vmem:[#allocation6 + $0x100] sm:$0xff]  ;;  %v1393_v55 = vld [vmem:[#allocation6 + $0x118] sm:$0xff] }
  0xae   :  { %5540 = vmatpush1.bf16.msra.mxu0 %v7357_v19  ;;  %1123 = vmatprep.mubr.f32.mxu0 %v8434_v0  ;;  %v7599_v13 = vpack.c.bf16 %v1375_v63, %v1372_v60  ;;  %v1394_v60 = vld [vmem:[#allocation6 + $0x120] sm:$0xff]  ;;  %v1397_v63 = vld [vmem:[#allocation6 + $0x138] sm:$0xff]  ;;  %v7629_v7 = vpack.c.bf16 %v1393_v55, %v1390_v54 }
  0xaf   :  { %5542 = vmatprep.subr.bf16.mxu0 %v7364_v21  ;;  %4709 = vmatmul.mubr.f32.gmra.mrb[10].mxu1 %v816_v31  ;;  %8472 = vst [vmem:[#allocation15_spill] sm:$0xff] %v7529_v9  ;;  %v772_v55 = vld [vmem:[%s8426_s7] sm:$0x7] }
  0xb0   :  { %4711 = vmatprep.mubr.f32.mxu1 %v817_v27  ;;  %5570 = vmatpush3.bf16.msra.mxu1 %v7379_v26 }
  0xb1   :  { %1124 = vmatmul.mubr.f32.gmra.mrb[20].mxu0 %v815_v20  ;;  %5571 = vmatprep.subr.bf16.mxu1 %v8436_v15  ;;  %v6797_v20 = vmov 0  }
  0xb2   :  { %5544 = vmatpush1.bf16.msra.mxu0 %v7393_v30  ;;  %1129 = vmatprep.mubr.f32.mxu0 %v8434_v0 }
  0xb3   :  { %5546 = vmatprep.subr.bf16.mxu0 %v7399_v32  ;;  %4712 = vmatmul.mubr.f32.gmra.mrb[12].mxu1 %v818_v37 }
  0xb4   :  { %4714 = vmatprep.mubr.f32.mxu1 %v7422_v39  ;;  %5573 = vmatpush3.bf16.msra.mxu1 %v7417_v38 }
  0xb5   :  { %1130 = vmatmul.mubr.f32.gmra.mrb[22].mxu0 %v816_v31  ;;  %5574 = vmatprep.subr.bf16.mxu1 %v8436_v15  ;;  %v1368_v31 = vld [vmem:[#allocation6 + $0x50] sm:$0xff] }
  0xb6   :  { %5548 = vmatpush1.bf16.msra.mxu0 %v7433_v42  ;;  %1135 = vmatprep.mubr.f32.mxu0 %v8434_v0 }
  0xb7   :  { %5550 = vmatprep.subr.bf16.mxu0 %v7436_v43  ;;  %4715 = vmatmul.mubr.f32.gmra.mrb[14].mxu1 %v7454_v48 }
  0xb8   :  { %5576 = vmatpush3.bf16.msra.mxu1 %v7457_v49  ;;  %4749 = vmatprep.mubr.msk.f32.mxu1 %vm6796_vm0, %v8434_v0 }
  0xb9   :  { %1136 = vmatmul.mubr.f32.gmra.mrb[24].mxu0 %v817_v27  ;;  %5577 = vmatprep.subr.bf16.mxu1 %v8436_v15  ;;  %v1358_v27 = vld [vmem:[#allocation6] sm:$0xff] }
  0xba   :  { %5552 = vmatpush1.bf16.msra.mxu0 %v7468_v52  ;;  %1141 = vmatprep.mubr.f32.mxu0 %v8434_v0 }
  0xbb   :  { %5554 = vmatprep.subr.bf16.mxu0 %v7471_v53  ;;  %6581 = vset.pattern.permute.xlu0 %v6797_v20  ;;  %v7603_v20 = vpack.c.bf16 %v1379_v6, %v1376_v4  ;;  %v1401_v4 = vld [vmem:[#allocation6 + $0x158] sm:$0xff]  ;;  %v1404_v6 = vld [vmem:[#allocation6 + $0x170] sm:$0xff] }
  0xbc   :  { %5579 = vmatpush3.bf16.msra.mxu1 %v7487_v58  ;;  %126 = vperm.xlu0 %6581, %v124_v36  }
  0xbd   :  { %1142 = vmatmul.mubr.f32.gmra.mrb[26].mxu0 %v818_v37  ;;  %5580 = vmatprep.subr.bf16.mxu1 %v8436_v15  ;;  %v7568_v37 = vpack.c.bf16 %v1361_v28, %v1358_v27  ;;  %v1385_v27 = vld [vmem:[#allocation6 + $0xd8] sm:$0xff] }
  0xbe   :  { %5556 = vmatpush1.bf16.msra.mxu0 %v7500_v61  ;;  %1147 = vmatprep.mubr.f32.mxu0 %v8434_v0  ;;  %v1389_v28 = vld [vmem:[#allocation6 + $0xf8] sm:$0xff]  ;;  %v7613_v36 = vpack.c.bf16 %v1385_v27, %v1382_v23  ;;  %v7636_v23 = vpack.c.bf16 %v1404_v6, %v1401_v4  ;;  %v1400_v27 = vld [vmem:[#allocation6 + $0x150] sm:$0xff] }
  0xbf   :  { %5558 = vmatprep.subr.bf16.mxu0 %v7503_v62 }
  0xc0   :  { %5582 = vmatpush3.bf16.msra.mxu1 %v7518_v5 }
  0xc1   :  { %1148 = vmatmul.mubr.f32.gmra.mrb[28].mxu0 %v7422_v39  ;;  %5583 = vmatprep.subr.bf16.mxu1 %v8436_v15  ;;  %v7571_v39 = vpack.c.bf16 %v1368_v31, %v1365_v29  ;;  %v1392_v29 = vld [vmem:[#allocation6 + $0x110] sm:$0xff]  ;;  %v7609_v31 = vpack.c.bf16 %v1381_v17, %v1378_v14  ;;  %v1399_v14 = vld [vmem:[#allocation6 + $0x148] sm:$0xff]  ;;  %v7633_v17 = vpack.c.bf16 %v1397_v63, %v1394_v60 }
  0xc2   :  { %5560 = vmatpush1.bf16.msra.mxu0 %v7529_v9  ;;  %1153 = vmatprep.mubr.f32.mxu0 %v8434_v0  ;;  %v7616_v40 = vpack.c.bf16 %v1392_v29, %v1389_v28  ;;  %v1403_v28 = vld [vmem:[#allocation6 + $0x168] sm:$0xff]  ;;  %v7639_v29 = vpack.c.bf16 %v1399_v14, %v1396_v12 }
  0xc3   :  { %5562 = vmatprep.subr.bf16.mxu0 %v7532_v11  ;;  %v7643_v41 = vpack.c.bf16 %v1403_v28, %v1400_v27 }
  0xc4   :  { %5585 = vmatpush3.bf16.msra.mxu1 %v7541_v18 }
  0xc5   :  { %1154 = vmatmul.mubr.f32.gmra.mrb[30].mxu0 %v7454_v48  ;;  %5586 = vmatprep.subr.bf16.mxu1 %v8436_v15  ;;  %v1369_v48 = vld [vmem:[#allocation6 + $0x58] sm:$0xff] }
  0xc6   :  { %5564 = vmatpush1.bf16.msra.mxu0 %v7553_v24  ;;  %1489 = vmatprep.mubr.f32.mxu0 %v8434_v0  ;;  %v7587_v59 = vpack.c.bf16 %v1369_v48, %v1366_v47  ;;  %v1398_v47 = vld [vmem:[#allocation6 + $0x140] sm:$0xff]  ;;  %v7619_v48 = vpack.c.bf16 %v1387_v35, %v1384_v34  ;;  %v1405_v35 = vld [vmem:[#allocation6 + $0x178] sm:$0xff] }
  0xc7   :  { %5590 = vmatprep.subr.bf16.mxu0 %v7556_v25  ;;  %v7626_v57 = vpack.c.bf16 %v1398_v47, %v1395_v45  ;;  %v1402_v34 = vld [vmem:[#allocation6 + $0x160] sm:$0xff]  ;;  %v774_v45 = vlaneseq }
  0xc8   :  { %5588 = vmatpush3.bf16.msra.mxu1 %v7559_v33  ;;  %v7647_v44 = vpack.c.bf16 %v1405_v35, %v1402_v34 }
  0xc9   :  { %1490 = vmatmul.mubr.f32.vlgmr.msra.gmra.mrb[0].mxu0 %v8434_v0  ;;  %5621 = vmatprep.subr.bf16.mxu1 %v8436_v15  ;;  %v775_v47 = vshrl.u32 %v774_v45, 7 }
  0xca   :  { %5592 = vmatpush1.bf16.msra.mxu0 %v7568_v37  ;;  %1670 = vmatprep.mubr.f32.mxu0 %v8434_v0 }
  0xcb   :  { %5594 = vmatprep.subr.bf16.mxu0 %v7571_v39  ;;  %4750 = vmatmul.mubr.f32.vlgmr.msra.gmra.mrb[16].mxu1 %v8434_v0  ;;  %v7691_v54 = vsub.s32 2, %v775_v47 }
  0xcc   :  { %5623 = vmatpush3.bf16.msra.mxu1 %v7574_v46  ;;  %4784 = vmatprep.mubr.msk.f32.mxu1 %vm6796_vm0, %v8434_v0 }
  0xcd   :  { %5624 = vmatprep.subr.bf16.mxu1 %v8436_v15  ;;  %v7697_v60 = vrot.slane %v772_v55, %v7691_v54 }
  0xce   :  { %5596 = vmatpush1.bf16.msra.mxu0 %v7579_v50 }
  0xcf   :  { %5598 = vmatprep.subr.bf16.mxu0 %v7583_v51 }
  0xd0   :  { %5626 = vmatpush3.bf16.msra.mxu1 %v7587_v59 }
  0xd1   :  { %5627 = vmatprep.subr.bf16.mxu1 %v8436_v15 }
  0xd2   :  { %5600 = vmatpush1.bf16.msra.mxu0 %v7593_v2 }
  0xd3   :  { %5602 = vmatprep.subr.bf16.mxu0 %v7596_v3 }
  0xd4   :  { %5629 = vmatpush3.bf16.msra.mxu1 %v7599_v13 }
  0xd5   :  { %5630 = vmatprep.subr.bf16.mxu1 %v8436_v15 }
  0xd6   :  { %5604 = vmatpush1.bf16.msra.mxu0 %v7603_v20 }
  0xd7   :  { %5606 = vmatprep.subr.bf16.mxu0 %v7606_v22 }
  0xd8   :  { %5632 = vmatpush3.bf16.msra.mxu1 %v7609_v31 }
  0xd9   :  { %5633 = vmatprep.subr.bf16.mxu1 %v8436_v15 }
  0xda   :  { %5608 = vmatpush1.bf16.msra.mxu0 %v7613_v36 }
  0xdb   :  { %5610 = vmatprep.subr.bf16.mxu0 %v7616_v40 }
  0xdc   :  { %5635 = vmatpush3.bf16.msra.mxu1 %v7619_v48 }
  0xdd   :  { %5636 = vmatprep.subr.bf16.mxu1 %v8436_v15 }
  0xde   :  { %5612 = vmatpush1.bf16.msra.mxu0 %v7623_v56 }
  0xdf   :  { %5614 = vmatprep.subr.bf16.mxu0 %v7626_v57 }
  0xe0   :  { %5638 = vmatpush3.bf16.msra.mxu1 %v7629_v7 }
  0xe1   :  { %5639 = vmatprep.subr.bf16.mxu1 %v8436_v15 }
  0xe2   :  { %5616 = vmatpush1.bf16.msra.mxu0 %v7633_v17 }
  0xe3   :  { %5618 = vmatprep.subr.bf16.mxu0 %v7636_v23 }
  0xe4   :  { %5641 = vmatpush3.bf16.msra.mxu1 %v7639_v29 }
  0xe5   :  { %5642 = vmatprep.subr.bf16.mxu1 %v8436_v15 }
  0xe6   :  { %5620 = vmatpush1.bf16.msra.mxu0 %v7643_v41 }
  0xe7   :  { %5646 = vmatprep.subr.bf16.mxu0 %v7305_v1 }
  0xe8   :  { %5644 = vmatpush3.bf16.msra.mxu1 %v7647_v44 }
  0xe9   :  { %1671 = vmatmul.mubr.f32.vlgmr.msra.gmra.mrb[30].mxu0 %v8434_v0  ;;  %5677 = vmatprep.subr.bf16.mxu1 %v8436_v15 }
  0xea   :  { %5648 = vmatpush1.bf16.msra.mxu0 %v7326_v8  ;;  %1836 = vmatprep.mubr.f32.mxu0 %v8434_v0 }
  0xeb   :  { %4785 = vmatmul.mubr.f32.vlgmr.msra.gmra.mrb[18].mxu1 %v8434_v0  ;;  %5650 = vmatprep.subr.bf16.mxu0 %v7332_v10 }
  0xec   :  { %5679 = vmatpush3.bf16.msra.mxu1 %v7347_v16  ;;  %4819 = vmatprep.mubr.msk.f32.mxu1 %vm6796_vm0, %v8434_v0 }
  0xed   :  { %5680 = vmatprep.subr.bf16.mxu1 %v8436_v15 }
  0xee   :  { %5652 = vmatpush1.bf16.msra.mxu0 %v7357_v19 }
  0xef   :  { %5654 = vmatprep.subr.bf16.mxu0 %v7364_v21 }
  0xf0   :  { %5682 = vmatpush3.bf16.msra.mxu1 %v7379_v26 }
  0xf1   :  { %5683 = vmatprep.subr.bf16.mxu1 %v8436_v15 }
  0xf2   :  { %5656 = vmatpush1.bf16.msra.mxu0 %v7393_v30 }
  0xf3   :  { %5658 = vmatprep.subr.bf16.mxu0 %v7399_v32 }
  0xf4   :  { %5685 = vmatpush3.bf16.msra.mxu1 %v7417_v38 }
  0xf5   :  { %5686 = vmatprep.subr.bf16.mxu1 %v8436_v15 }
  0xf6   :  { %5660 = vmatpush1.bf16.msra.mxu0 %v7433_v42 }
  0xf7   :  { %5662 = vmatprep.subr.bf16.mxu0 %v7436_v43 }
  0xf8   :  { %5688 = vmatpush3.bf16.msra.mxu1 %v7457_v49 }
  0xf9   :  { %5689 = vmatprep.subr.bf16.mxu1 %v8436_v15 }
  0xfa   :  { %5664 = vmatpush1.bf16.msra.mxu0 %v7468_v52 }
  0xfb   :  { %5666 = vmatprep.subr.bf16.mxu0 %v7471_v53 }
  0xfc   :  { %5691 = vmatpush3.bf16.msra.mxu1 %v7487_v58 }
  0xfd   :  { %5692 = vmatprep.subr.bf16.mxu1 %v8436_v15 }
  0xfe   :  { %5668 = vmatpush1.bf16.msra.mxu0 %v7500_v61 }
  0xff   :  { %5670 = vmatprep.subr.bf16.mxu0 %v7503_v62 }
 0x100   :  { %5694 = vmatpush3.bf16.msra.mxu1 %v7518_v5 }
 0x101   :  { %5695 = vmatprep.subr.bf16.mxu1 %v8436_v15 }
 0x102   :  { %5672 = vmatpush1.bf16.msra.mxu0 %v7529_v9 }
 0x103   :  { %5674 = vmatprep.subr.bf16.mxu0 %v7532_v11 }
 0x104   :  { %5697 = vmatpush3.bf16.msra.mxu1 %v7541_v18 }
 0x105   :  { %5698 = vmatprep.subr.bf16.mxu1 %v8436_v15 }
 0x106   :  { %5676 = vmatpush1.bf16.msra.mxu0 %v7553_v24 }
 0x107   :  { %5702 = vmatprep.subr.bf16.mxu0 %v7556_v25 }
 0x108   :  { %5700 = vmatpush3.bf16.msra.mxu1 %v7559_v33 }
 0x109   :  { %5733 = vmatprep.subr.bf16.mxu1 %v8436_v15 }
 0x13d   :  { %v4619_v63 = vpop.f32.mrb[0].mxu1 }
 0x13e   :  { %v7700_v4 = vadd.f32 %v4619_v63, %v7697_v60  ;;  %v733_v6 = vpop.f32.mrb[1].mxu1 }
 0x140   :  { %8478 = vst [vmem:[#allocation21_spill] sm:$0xff] %v7700_v4 }
 0x143   :  { %v4622_v12 = vpop.f32.mrb[2].mxu1 }
 0x144   :  { %v7703_v14 = vadd.f32 %v4622_v12, %v7697_v60  ;;  %v743_v27 = vpop.f32.mrb[3].mxu1 }
 0x145   :  { %v7706_v28 = vadd.f32 %v7697_v60, %v743_v27  ;;  %v1265_v27 = vld [vmem:[%s8427_s8] sm:$0x7] }
 0x146   :  { %8479 = vst [vmem:[#allocation22_spill] sm:$0xff] %v7703_v14  ;;  %v7724_v14 = vrot.slane %v1265_v27, %v7691_v54 }
 0x147   :  { %8480 = vst [vmem:[#allocation23_spill] sm:$0xff] %v7706_v28  ;;  %v4625_v34 = vpop.f32.mrb[4].mxu1 }
 0x148   :  { %v7709_v35 = vadd.f32 %v4625_v34, %v7697_v60  ;;  %v753_v45 = vpop.f32.mrb[5].mxu1 }
 0x149   :  { %v7712_v0 = vadd.f32 %v7697_v60, %v753_v45 }
 0x14a   :  { %8481 = vst [vmem:[#allocation24_spill] sm:$0xff] %v7709_v35 }
 0x14b   :  { %8482 = vst [vmem:[#allocation25_spill] sm:$0xff] %v7712_v0  ;;  %v4628_v15 = vpop.f32.mrb[6].mxu1 }
 0x14c   :  { %v7715_v63 = vadd.f32 %v4628_v15, %v7697_v60  ;;  %v763_v4 = vpop.f32.mrb[7].mxu1 }
 0x14d   :  { %v7718_v12 = vadd.f32 %v7697_v60, %v763_v4 }
 0x14e   :  { %8483 = vst [vmem:[#allocation26_spill] sm:$0xff] %v7715_v63 }
 0x14f   :  { %8484 = vst [vmem:[#allocation27_spill] sm:$0xff] %v7718_v12 }
 0x17d   :  { %v4707_v34 = vpop.f32.mrb[8].mxu1 }
 0x17e   :  { %v7727_v35 = vadd.f32 %v4707_v34, %v7724_v14  ;;  %v1226_v45 = vpop.f32.mrb[9].mxu1 }
 0x17f   :  { %v7730_v0 = vadd.f32 %v7724_v14, %v1226_v45 }
 0x180   :  { %8485 = vst [vmem:[#allocation28_spill] sm:$0xff] %v7727_v35 }
 0x181   :  { %8486 = vst [vmem:[#allocation29_spill] sm:$0xff] %v7730_v0 }
 0x182   :  { %v4710_v15 = vpop.f32.mrb[10].mxu1 }
 0x183   :  { %v7733_v63 = vadd.f32 %v4710_v15, %v7724_v14  ;;  %v1236_v4 = vpop.f32.mrb[11].mxu1  ;;  %v776_v15 = vsub.s32 0, %v775_v47 }
 0x184   :  { %v7736_v12 = vadd.f32 %v7724_v14, %v1236_v4  ;;  %v1357_v4 = vld [vmem:[%s8430_s11] sm:$0x7] }
 0x185   :  { %8487 = vst [vmem:[#allocation30_spill] sm:$0xff] %v7733_v63  ;;  %v777_v63 = vrot.slane %v772_v55, %v776_v15  ;;  %v1413_v24 = vrot.slane %v1357_v4, %v776_v15 }
 0x186   :  { %8488 = vst [vmem:[#allocation31_spill] sm:$0xff] %v7736_v12  ;;  %v4713_v28 = vpop.f32.mrb[12].mxu1  ;;  %v780_v12 = vsub.s32 1, %v775_v47 }
 0x187   :  { %v7739_v25 = vadd.f32 %v4713_v28, %v7724_v14  ;;  %v1246_v33 = vpop.f32.mrb[13].mxu1  ;;  %v7752_v11 = vadd.f32 %v1413_v24, %v777_v63  ;;  %v7759_v24 = vrot.slane %v1357_v4, %v7691_v54 }
 0x188   :  { %v7742_v34 = vadd.f32 %v7724_v14, %v1246_v33  ;;  %v781_v28 = vrot.slane %v772_v55, %v780_v12 }
 0x189   :  { %8489 = vst [vmem:[#allocation32_spill] sm:$0xff] %v7739_v25  ;;  %v1417_v25 = vrot.slane %v1357_v4, %v780_v12  ;;  %8492 = vst [vmem:[#allocation35_spill] sm:$0xff] %v7752_v11 }
 0x18a   :  { %8490 = vst [vmem:[#allocation33_spill] sm:$0xff] %v7742_v34  ;;  %v7744_v35 = vpop.f32.mrb[14].mxu1  ;;  %8494 = vst [vmem:[#allocation37_spill] sm:$0xff] %v7759_v24 }
 0x18b   :  { %v1256_v45 = vpop.f32.mrb[15].mxu1  ;;  %v7754_v34 = vadd.f32 %v1417_v25, %v781_v28  ;;  %v1406_v25 = vld [vmem:[%s8431_s12] sm:$0x7] }
 0x18c   :  { %v7747_v0 = vadd.f32 %v7724_v14, %v1256_v45  ;;  %v1594_v28 = vrot.slane %v1406_v25, %v776_v15 }
 0x18d   :  { %8493 = vst [vmem:[#allocation36_spill] sm:$0xff] %v7754_v34 }
 0x18e   :  { %8491 = vst [vmem:[#allocation34_spill] sm:$0xff] %v7747_v0 }
 0x19c   :  { %v1491_v33 = vpop.f32.mrb[0].mxu0 }
 0x19d   :  { %v6430_v18 = vadd.f32 %v7752_v11, %v1491_v33  ;;  %v1493_v9 = vpop.f32.mrb[1].mxu0 }
 0x19e   :  { %v1562_v45 = vpop.f32.mrb[16].mxu1  ;;  %v6432_v5 = vadd.f32 %v7754_v34, %v1493_v9 }
 0x19f   :  { %v4121_v0 = vmul.f32 -1.442695, %v6430_v18  ;;  %v4751_v62 = vpop.f32.mrb[17].mxu1  ;;  %v1563_v18 = vadd.f32 %v1562_v45, %v7759_v24 }
 0x1a0   :  { %v4122_v61 = vmul.f32 -1.442695, %v6432_v5  ;;  %v1270_v62 = vrot.slane %v1265_v27, %v776_v15  ;;  %v1598_v5 = vrot.slane %v1406_v25, %v780_v12 }
 0x1a1   :  { %6582 = vpow2.f32 %v4121_v0  ;;  %v1274_v0 = vrot.slane %v1265_v27, %v780_v12 }
 0x1a2   :  { %6584 = vpow2.f32 %v4122_v61  ;;  %v791_v61 = vadd.f32 %v7697_v60, %v733_v6  ;;  %v7766_v33 = vadd.f32 %v1594_v28, %v1270_v62 }
 0x1a3   :  { %v7768_v34 = vadd.f32 %v1598_v5, %v1274_v0 }
 0x1ab   :  { %v6583_v47 = vpop.eup %6582 }
 0x1ac   :  { %v1570_v53 = vadd.f32 1.0, %v6583_v47  ;;  %v6585_v55 = vpop.eup %6584 }
 0x1ad   :  { %v1577_v63 = vadd.f32 1.0, %v6585_v55 }
 0x1ae   :  { %6586 = vrcp.f32 %v1570_v53 }
 0x1af   :  { %6588 = vrcp.f32 %v1577_v63  ;;  %v7772_v63 = vpop.permute.xlu0 %126 }
 0x1b0   :  { %vm4123_vm1 = vcmp.gt.s32.totalorder %v7772_v63, 0  ;;  %vm4126_vm2 = vcmp.gt.s32.totalorder %v7772_v63, 7  ;;  %vm4129_vm3 = vcmp.gt.s32.totalorder %v7772_v63, 1  ;;  %vm4132_vm4 = vcmp.gt.s32.totalorder %v7772_v63, 6 }
 0x1b1   :  { %vm4135_vm5 = vcmp.gt.s32.totalorder %v7772_v63, 2  ;;  %vm4138_vm6 = vcmp.gt.s32.totalorder %v7772_v63, 5  ;;  %vm4141_vm7 = vcmp.gt.s32.totalorder %v7772_v63, 3  ;;  %vm4144_vm8 = vcmp.gt.s32.totalorder %v7772_v63, 4 }
 0x1b8   :  { %v6587_v9 = vpop.eup %6586 }
 0x1b9   :  { %v1580_v53 = vmul.f32 %v6587_v9, %v1563_v18  ;;  %v6589_v12 = vpop.eup %6588 }
 0x1ba   :  { %v1583_v6 = vsub.f32 1.0, %v6589_v12  ;;  %v1585_v28 = vmul.f32 0.0, %v6589_v12 }
 0x1bb   :  { %v1581_v4 = vadd.f32 %v1580_v53, %v791_v61  ;;  %v7793_v61 = vrot.slane %v1406_v25, %v7691_v54  ;;  %v1305_v54 = vadd.f32 %v7744_v35, %v7724_v14 }
 0x1bc   :  { %v1672_v47 = vpop.f32.mrb[30].mxu0 }
 0x1bd   :  { %6590 = vtanh.f32 %v1581_v4  ;;  %v6490_v55 = vadd.f32 %v7766_v33, %v1672_v47  ;;  %v1674_v11 = vpop.f32.mrb[31].mxu0 }
 0x1be   :  { %v1743_v45 = vpop.f32.mrb[18].mxu1  ;;  %v6492_v27 = vadd.f32 %v7768_v34, %v1674_v11  ;;  %v8495_v11 = vmov 0.0|0.0  }
 0x1bf   :  { %v4124_v24 = vmul.f32 -1.442695, %v6490_v55  ;;  %v4786_v15 = vpop.f32.mrb[19].mxu1  ;;  %v1744_v47 = vadd.f32 %v1743_v45, %v7793_v61 }
 0x1c0   :  { %v4125_v60 = vmul.f32 -1.442695, %v6492_v27 }
 0x1c1   :  { %6592 = vpow2.f32 %v4124_v24  ;;  %v8496_v24 = vmov 0.0  }
 0x1c2   :  { %6594 = vpow2.f32 %v4125_v60 }
 0x1c7   :  { %v6591_v18 = vpop.eup %6590 }
 0x1c8   :  { %v1584_v62 = vmul.f32 %v6591_v18, %v1583_v6  ;;  %v8497_v6 = vld [vmem:[#allocation10_spill] sm:$0xff]  ;;  %v8498_v18 = vld [vmem:[#allocation12_spill] sm:$0xff] }
 0x1ca   :  { %v7775_v9 = vadd.f32 %v1585_v28, %v1584_v62  ;;  %v8499_v62 = vld [vmem:[#allocation14_spill] sm:$0xff]  ;;  %v8500_v28 = vld [vmem:[#allocation13_spill] sm:$0xff] }
 0x1cb   :  { %v6593_v0 = vpop.eup %6592 }
 0x1cc   :  { %v1751_v5 = vadd.f32 1.0, %v6593_v0  ;;  %4169 = vmatmul.mubr.msk.f32.vlgmr.msra.gmra.mrb[2].mxu0 %vm4123_vm1, %v7775_v9  ;;  %4820 = vmatmul.mubr.msk.f32.vlgmr.msra.gmra.mrb[20].mxu1 %vm4123_vm1, %v7775_v9  ;;  %v6595_v53 = vpop.eup %6594  ;;  %v8501_v0 = vld [vmem:[#allocation15_spill] sm:$0xff] }
 0x1cd   :  { %5704 = vmatpush1.bf16.msra.mxu0 %v7568_v37  ;;  %5735 = vmatpush3.bf16.msra.mxu1 %v7574_v46  ;;  %v1758_v4 = vadd.f32 1.0, %v6595_v53  ;;  %v8503_v53 = vld [vmem:[#allocation16_spill] sm:$0xff] }
 0x1ce   :  { %6596 = vrcp.f32 %v1751_v5  ;;  %5706 = vmatprep.subr.bf16.mxu0 %v7571_v39  ;;  %5736 = vmatprep.subr.bf16.mxu1 %v8495_v11  ;;  %v8502_v5 = vld [vmem:[#allocation17_spill] sm:$0xff] }
 0x1cf   :  { %2002 = vmatprep.mubr.f32.mxu0 %v8496_v24  ;;  %4854 = vmatprep.mubr.msk.f32.mxu1 %vm6796_vm0, %v8496_v24  ;;  %6598 = vrcp.f32 %v1758_v4  ;;  %v8504_v4 = vld [vmem:[#allocation18_spill] sm:$0xff] }
 0x1d1   :  { %5708 = vmatpush1.bf16.msra.mxu0 %v7579_v50  ;;  %5738 = vmatpush3.bf16.msra.mxu1 %v7587_v59 }
 0x1d2   :  { %5710 = vmatprep.subr.bf16.mxu0 %v7583_v51  ;;  %5739 = vmatprep.subr.bf16.mxu1 %v8495_v11 }
 0x1d5   :  { %5712 = vmatpush1.bf16.msra.mxu0 %v7593_v2  ;;  %5741 = vmatpush3.bf16.msra.mxu1 %v7599_v13 }
 0x1d6   :  { %5714 = vmatprep.subr.bf16.mxu0 %v7596_v3  ;;  %5742 = vmatprep.subr.bf16.mxu1 %v8495_v11 }
 0x1d8   :  { %v6597_v55 = vpop.eup %6596 }
 0x1d9   :  { %v1761_v25 = vmul.f32 %v6597_v55, %v1744_v47  ;;  %5716 = vmatpush1.bf16.msra.mxu0 %v7603_v20  ;;  %5744 = vmatpush3.bf16.msra.mxu1 %v7609_v31  ;;  %v6599_v14 = vpop.eup %6598  ;;  %v8505_v47 = vld [vmem:[#allocation20_spill] sm:$0xff]  ;;  %v8506_v55 = vld [vmem:[#allocation19_spill] sm:$0xff] }
 0x1da   :  { %5718 = vmatprep.subr.bf16.mxu0 %v7606_v22  ;;  %5745 = vmatprep.subr.bf16.mxu1 %v8495_v11  ;;  %v1764_v35 = vsub.f32 1.0, %v6599_v14  ;;  %v1766_v12 = vmul.f32 0.0, %v6599_v14 }
 0x1db   :  { %v1762_v45 = vadd.f32 %v1761_v25, %v1305_v54 }
 0x1dd   :  { %6600 = vtanh.f32 %v1762_v45  ;;  %5720 = vmatpush1.bf16.msra.mxu0 %v7613_v36  ;;  %5747 = vmatpush3.bf16.msra.mxu1 %v7619_v48  ;;  %v8507_v45 = vld [vmem:[#allocation35_spill] sm:$0xff] }
 0x1de   :  { %5722 = vmatprep.subr.bf16.mxu0 %v7616_v40  ;;  %5748 = vmatprep.subr.bf16.mxu1 %v8495_v11 }
 0x1e1   :  { %5724 = vmatpush1.bf16.msra.mxu0 %v7623_v56  ;;  %5750 = vmatpush3.bf16.msra.mxu1 %v7629_v7 }
 0x1e2   :  { %5726 = vmatprep.subr.bf16.mxu0 %v7626_v57  ;;  %5751 = vmatprep.subr.bf16.mxu1 %v8495_v11 }
 0x1e5   :  { %5728 = vmatpush1.bf16.msra.mxu0 %v7633_v17  ;;  %5753 = vmatpush3.bf16.msra.mxu1 %v7639_v29 }
 0x1e6   :  { %5730 = vmatprep.subr.bf16.mxu0 %v7636_v23  ;;  %5754 = vmatprep.subr.bf16.mxu1 %v8495_v11 }
 0x1e7   :  { %v6601_v15 = vpop.eup %6600 }
 0x1e8   :  { %v1765_v27 = vmul.f32 %v6601_v15, %v1764_v35 }
 0x1e9   :  { %5732 = vmatpush1.bf16.msra.mxu0 %v7643_v41  ;;  %5756 = vmatpush3.bf16.msra.mxu1 %v7647_v44 }
 0x1ea   :  { %v7822_v60 = vadd.f32 %v1766_v12, %v1765_v27  ;;  %5758 = vmatprep.subr.bf16.mxu0 %v7305_v1  ;;  %5789 = vmatprep.subr.bf16.mxu1 %v8495_v11  ;;  %v8508_v27 = vld [vmem:[#allocation36_spill] sm:$0xff] }
 0x1ec   :  { %4171 = vmatmul.mubr.msk.f32.vlgmr.msra.gmra.mrb[28].mxu0 %vm4126_vm2, %v7822_v60  ;;  %4855 = vmatmul.mubr.msk.f32.vlgmr.msra.gmra.mrb[22].mxu1 %vm4126_vm2, %v7822_v60 }
 0x1ed   :  { %5760 = vmatpush1.bf16.msra.mxu0 %v7326_v8  ;;  %5791 = vmatpush3.bf16.msra.mxu1 %v7347_v16 }
 0x1ee   :  { %5762 = vmatprep.subr.bf16.mxu0 %v7332_v10  ;;  %5792 = vmatprep.subr.bf16.mxu1 %v8495_v11 }
 0x1ef   :  { %2168 = vmatprep.mubr.f32.mxu0 %v8496_v24  ;;  %4889 = vmatprep.mubr.msk.f32.mxu1 %vm6796_vm0, %v8496_v24 }
 0x1f1   :  { %5764 = vmatpush1.bf16.msra.mxu0 %v7357_v19  ;;  %5794 = vmatpush3.bf16.msra.mxu1 %v7379_v26 }
 0x1f2   :  { %5766 = vmatprep.subr.bf16.mxu0 %v7364_v21  ;;  %5795 = vmatprep.subr.bf16.mxu1 %v8495_v11 }
 0x1f5   :  { %5768 = vmatpush1.bf16.msra.mxu0 %v7393_v30  ;;  %5797 = vmatpush3.bf16.msra.mxu1 %v7417_v38 }
 0x1f6   :  { %5770 = vmatprep.subr.bf16.mxu0 %v7399_v32  ;;  %5798 = vmatprep.subr.bf16.mxu1 %v8495_v11 }
 0x1f9   :  { %5772 = vmatpush1.bf16.msra.mxu0 %v7433_v42  ;;  %5800 = vmatpush3.bf16.msra.mxu1 %v7457_v49 }
 0x1fa   :  { %5774 = vmatprep.subr.bf16.mxu0 %v7436_v43  ;;  %5801 = vmatprep.subr.bf16.mxu1 %v8495_v11 }
 0x1fd   :  { %5776 = vmatpush1.bf16.msra.mxu0 %v7468_v52  ;;  %5803 = vmatpush3.bf16.msra.mxu1 %v7487_v58 }
 0x1fe   :  { %5778 = vmatprep.subr.bf16.mxu0 %v8497_v6  ;;  %5804 = vmatprep.subr.bf16.mxu1 %v8495_v11 }
 0x201   :  { %5780 = vmatpush1.bf16.msra.mxu0 %v8498_v18  ;;  %5806 = vmatpush3.bf16.msra.mxu1 %v8499_v62 }
 0x202   :  { %5782 = vmatprep.subr.bf16.mxu0 %v8500_v28  ;;  %5807 = vmatprep.subr.bf16.mxu1 %v8495_v11 }
 0x205   :  { %5784 = vmatpush1.bf16.msra.mxu0 %v8501_v0  ;;  %5809 = vmatpush3.bf16.msra.mxu1 %v8502_v5 }
 0x206   :  { %5786 = vmatprep.subr.bf16.mxu0 %v8503_v53  ;;  %5810 = vmatprep.subr.bf16.mxu1 %v8495_v11 }
 0x209   :  { %5788 = vmatpush1.bf16.msra.mxu0 %v8504_v4  ;;  %5812 = vmatpush3.bf16.msra.mxu1 %v8505_v47 }
 0x20a   :  { %5814 = vmatprep.subr.bf16.mxu0 %v8506_v55  ;;  %5845 = vmatprep.subr.bf16.mxu1 %v8495_v11  ;;  %v8509_v55 = vld [vmem:[#allocation37_spill] sm:$0xff] }
 0x29f   :  { %v1838_v54 = vpop.f32.mrb[2].mxu0  ;;  %v1909_v25 = vpop.f32.mrb[20].mxu1 }
 0x2a0   :  { %v6434_v14 = vadd.f32 %v8507_v45, %v1838_v54  ;;  %v1840_v35 = vpop.f32.mrb[3].mxu0  ;;  %v4821_v15 = vpop.f32.mrb[21].mxu1  ;;  %v1910_v62 = vadd.f32 %v1909_v25, %v8509_v55  ;;  %v1589_v54 = vsel %vm4123_vm1, %v7775_v9, 0.0 }
 0x2a1   :  { %v6436_v12 = vadd.f32 %v8508_v27, %v1840_v35 }
 0x2a2   :  { %v4127_v5 = vmul.f32 -1.442695, %v6434_v14  ;;  %v8510_v14 = vld [vmem:[#allocation21_spill] sm:$0xff] }
 0x2a3   :  { %v4128_v53 = vmul.f32 -1.442695, %v6436_v12 }
 0x2a4   :  { %6602 = vpow2.f32 %v4127_v5 }
 0x2a5   :  { %6604 = vpow2.f32 %v4128_v53 }
 0x2ae   :  { %v6603_v0 = vpop.eup %6602 }
 0x2af   :  { %v6605_v4 = vpop.eup %6604  ;;  %v1917_v28 = vadd.f32 1.0, %v6603_v0 }
 0x2b0   :  { %v1924_v47 = vadd.f32 1.0, %v6605_v4 }
 0x2b1   :  { %6606 = vrcp.f32 %v1917_v28 }
 0x2b2   :  { %6608 = vrcp.f32 %v1924_v47 }
 0x2bb   :  { %v6607_v18 = vpop.eup %6606 }
 0x2bc   :  { %v6609_v6 = vpop.eup %6608  ;;  %v1927_v58 = vmul.f32 %v6607_v18, %v1910_v62 }
 0x2bd   :  { %v1932_v35 = vmul.f32 %v6609_v6, %v1589_v54  ;;  %v1930_v18 = vsub.f32 1.0, %v6609_v6 }
 0x2be   :  { %v1928_v15 = vadd.f32 %v1927_v58, %v8510_v14 }
 0x2bf   :  { %v2004_v5 = vpop.f32.mrb[28].mxu0  ;;  %v2075_v53 = vpop.f32.mrb[22].mxu1 }
 0x2c0   :  { %6610 = vtanh.f32 %v1928_v15  ;;  %v6486_v0 = vadd.f32 %v7766_v33, %v2004_v5  ;;  %v2006_v4 = vpop.f32.mrb[29].mxu0  ;;  %v4856_v28 = vpop.f32.mrb[23].mxu1  ;;  %v2076_v6 = vadd.f32 %v2075_v53, %v7793_v61 }
 0x2c1   :  { %v6488_v47 = vadd.f32 %v7768_v34, %v2006_v4  ;;  %v8511_v4 = vld [vmem:[#allocation34_spill] sm:$0xff] }
 0x2c2   :  { %v4130_v25 = vmul.f32 -1.442695, %v6486_v0 }
 0x2c3   :  { %v4131_v12 = vmul.f32 -1.442695, %v6488_v47 }
 0x2c4   :  { %6612 = vpow2.f32 %v4130_v25 }
 0x2c5   :  { %6614 = vpow2.f32 %v4131_v12 }
 0x2ca   :  { %v6611_v62 = vpop.eup %6610 }
 0x2cb   :  { %v1931_v55 = vmul.f32 %v6611_v62, %v1930_v18  ;;  %v8512_v18 = vld [vmem:[#allocation11_spill] sm:$0xff]  ;;  %v8513_v62 = vld [vmem:[#allocation10_spill] sm:$0xff] }
 0x2cd   :  { %v1933_v9 = vadd.f32 %v1932_v35, %v1931_v55  ;;  %v1771_v35 = vsel %vm4126_vm2, %v7822_v60, 0.0 }
 0x2ce   :  { %v6613_v27 = vpop.eup %6612 }
 0x2cf   :  { %v6615_v58 = vpop.eup %6614  ;;  %v2083_v14 = vadd.f32 1.0, %v6613_v27  ;;  %v7880_v15 = vsel %vm4129_vm3, %v1933_v9, %v1589_v54  ;;  %v8514_v9 = vld [vmem:[#allocation12_spill] sm:$0xff] }
 0x2d0   :  { %v2090_v5 = vadd.f32 1.0, %v6615_v58  ;;  %2169 = vmatmul.mubr.f32.vlgmr.msra.gmra.mrb[4].mxu0 %v7880_v15  ;;  %4890 = vmatmul.mubr.f32.vlgmr.msra.gmra.mrb[24].mxu1 %v7880_v15  ;;  %v8515_v58 = vld [vmem:[#allocation14_spill] sm:$0xff] }
 0x2d1   :  { %6616 = vrcp.f32 %v2083_v14  ;;  %5816 = vmatpush1.bf16.msra.mxu0 %v7568_v37  ;;  %5847 = vmatpush3.bf16.msra.mxu1 %v7574_v46  ;;  %v8516_v14 = vld [vmem:[#allocation13_spill] sm:$0xff] }
 0x2d2   :  { %6618 = vrcp.f32 %v2090_v5  ;;  %5818 = vmatprep.subr.bf16.mxu0 %v7571_v39  ;;  %5848 = vmatprep.subr.bf16.mxu1 %v8495_v11  ;;  %v8517_v5 = vld [vmem:[#allocation15_spill] sm:$0xff] }
 0x2d3   :  { %2334 = vmatprep.mubr.f32.mxu0 %v8496_v24  ;;  %4924 = vmatprep.mubr.msk.f32.mxu1 %vm6796_vm0, %v8496_v24 }
 0x2d5   :  { %5820 = vmatpush1.bf16.msra.mxu0 %v7579_v50  ;;  %5850 = vmatpush3.bf16.msra.mxu1 %v7587_v59 }
 0x2d6   :  { %5822 = vmatprep.subr.bf16.mxu0 %v7583_v51  ;;  %5851 = vmatprep.subr.bf16.mxu1 %v8495_v11 }
 0x2d9   :  { %5824 = vmatpush1.bf16.msra.mxu0 %v7593_v2  ;;  %5853 = vmatpush3.bf16.msra.mxu1 %v7599_v13 }
 0x2da   :  { %5826 = vmatprep.subr.bf16.mxu0 %v7596_v3  ;;  %5854 = vmatprep.subr.bf16.mxu1 %v8495_v11 }
 0x2db   :  { %v6617_v55 = vpop.eup %6616 }
 0x2dc   :  { %v6619_v27 = vpop.eup %6618  ;;  %v2093_v54 = vmul.f32 %v6617_v55, %v2076_v6  ;;  %v8518_v6 = vld [vmem:[#allocation17_spill] sm:$0xff]  ;;  %v8519_v55 = vld [vmem:[#allocation16_spill] sm:$0xff] }
 0x2dd   :  { %5828 = vmatpush1.bf16.msra.mxu0 %v7603_v20  ;;  %5856 = vmatpush3.bf16.msra.mxu1 %v7609_v31  ;;  %v2098_v0 = vmul.f32 %v6619_v27, %v1771_v35  ;;  %v2096_v60 = vsub.f32 1.0, %v6619_v27  ;;  %v8520_v27 = vld [vmem:[#allocation18_spill] sm:$0xff] }
 0x2de   :  { %v2094_v28 = vadd.f32 %v2093_v54, %v8511_v4  ;;  %5830 = vmatprep.subr.bf16.mxu0 %v7606_v22  ;;  %5857 = vmatprep.subr.bf16.mxu1 %v8495_v11  ;;  %v8521_v54 = vld [vmem:[#allocation20_spill] sm:$0xff] }
 0x2e0   :  { %6620 = vtanh.f32 %v2094_v28 }
 0x2e1   :  { %5832 = vmatpush1.bf16.msra.mxu0 %v7613_v36  ;;  %5859 = vmatpush3.bf16.msra.mxu1 %v7619_v48 }
 0x2e2   :  { %5834 = vmatprep.subr.bf16.mxu0 %v7616_v40  ;;  %5860 = vmatprep.subr.bf16.mxu1 %v8495_v11 }
 0x2e5   :  { %5836 = vmatpush1.bf16.msra.mxu0 %v7623_v56  ;;  %5862 = vmatpush3.bf16.msra.mxu1 %v7629_v7 }
 0x2e6   :  { %5838 = vmatprep.subr.bf16.mxu0 %v7626_v57  ;;  %5863 = vmatprep.subr.bf16.mxu1 %v8495_v11 }
 0x2e9   :  { %5840 = vmatpush1.bf16.msra.mxu0 %v7633_v17  ;;  %5865 = vmatpush3.bf16.msra.mxu1 %v7639_v29 }
 0x2ea   :  { %v6621_v53 = vpop.eup %6620  ;;  %5842 = vmatprep.subr.bf16.mxu0 %v7636_v23  ;;  %5866 = vmatprep.subr.bf16.mxu1 %v8495_v11 }
 0x2eb   :  { %v2097_v47 = vmul.f32 %v6621_v53, %v2096_v60 }
 0x2ed   :  { %5844 = vmatpush1.bf16.msra.mxu0 %v7643_v41  ;;  %5868 = vmatpush3.bf16.msra.mxu1 %v7647_v44  ;;  %v2099_v25 = vadd.f32 %v2098_v0, %v2097_v47 }
 0x2ee   :  { %5870 = vmatprep.subr.bf16.mxu0 %v7305_v1  ;;  %5901 = vmatprep.subr.bf16.mxu1 %v8495_v11 }
 0x2ef   :  { %v7927_v12 = vsel %vm4132_vm4, %v2099_v25, %v1771_v35  ;;  %v8522_v35 = vld [vmem:[#allocation19_spill] sm:$0xff]  ;;  %v8523_v25 = vld [vmem:[#allocation36_spill] sm:$0xff] }
 0x2f0   :  { %2335 = vmatmul.mubr.f32.vlgmr.msra.gmra.mrb[26].mxu0 %v7927_v12  ;;  %4925 = vmatmul.mubr.f32.vlgmr.msra.gmra.mrb[26].mxu1 %v7927_v12 }
 0x2f1   :  { %5872 = vmatpush1.bf16.msra.mxu0 %v7326_v8  ;;  %5903 = vmatpush3.bf16.msra.mxu1 %v7347_v16 }
 0x2f2   :  { %5874 = vmatprep.subr.bf16.mxu0 %v7332_v10  ;;  %5904 = vmatprep.subr.bf16.mxu1 %v8495_v11 }
 0x2f3   :  { %2500 = vmatprep.mubr.f32.mxu0 %v8496_v24  ;;  %4959 = vmatprep.mubr.msk.f32.mxu1 %vm6796_vm0, %v8496_v24 }
 0x2f5   :  { %5876 = vmatpush1.bf16.msra.mxu0 %v7357_v19  ;;  %5906 = vmatpush3.bf16.msra.mxu1 %v7379_v26 }
 0x2f6   :  { %5878 = vmatprep.subr.bf16.mxu0 %v7364_v21  ;;  %5907 = vmatprep.subr.bf16.mxu1 %v8495_v11 }
 0x2f9   :  { %5880 = vmatpush1.bf16.msra.mxu0 %v7393_v30  ;;  %5909 = vmatpush3.bf16.msra.mxu1 %v7417_v38 }
 0x2fa   :  { %5882 = vmatprep.subr.bf16.mxu0 %v7399_v32  ;;  %5910 = vmatprep.subr.bf16.mxu1 %v8495_v11 }
 0x2fd   :  { %5884 = vmatpush1.bf16.msra.mxu0 %v7433_v42  ;;  %5912 = vmatpush3.bf16.msra.mxu1 %v7457_v49 }
 0x2fe   :  { %5886 = vmatprep.subr.bf16.mxu0 %v7436_v43  ;;  %5913 = vmatprep.subr.bf16.mxu1 %v8495_v11 }
 0x301   :  { %5888 = vmatpush1.bf16.msra.mxu0 %v7468_v52  ;;  %5915 = vmatpush3.bf16.msra.mxu1 %v8512_v18  ;;  %v8525_v18 = vld [vmem:[#allocation23_spill] sm:$0xff] }
 0x302   :  { %5890 = vmatprep.subr.bf16.mxu0 %v8513_v62  ;;  %5916 = vmatprep.subr.bf16.mxu1 %v8495_v11 }
 0x305   :  { %5892 = vmatpush1.bf16.msra.mxu0 %v8514_v9  ;;  %5918 = vmatpush3.bf16.msra.mxu1 %v8515_v58 }
 0x306   :  { %5894 = vmatprep.subr.bf16.mxu0 %v8516_v14  ;;  %5919 = vmatprep.subr.bf16.mxu1 %v8495_v11 }
 0x309   :  { %5896 = vmatpush1.bf16.msra.mxu0 %v8517_v5  ;;  %5921 = vmatpush3.bf16.msra.mxu1 %v8518_v6 }
 0x30a   :  { %5898 = vmatprep.subr.bf16.mxu0 %v8519_v55  ;;  %5922 = vmatprep.subr.bf16.mxu1 %v8495_v11 }
 0x30d   :  { %5900 = vmatpush1.bf16.msra.mxu0 %v8520_v27  ;;  %5924 = vmatpush3.bf16.msra.mxu1 %v8521_v54 }
 0x30e   :  { %5926 = vmatprep.subr.bf16.mxu0 %v8522_v35  ;;  %5957 = vmatprep.subr.bf16.mxu1 %v8495_v11  ;;  %v8524_v35 = vld [vmem:[#allocation37_spill] sm:$0xff] }
 0x3a3   :  { %v2170_v0 = vpop.f32.mrb[4].mxu0  ;;  %v2241_v4 = vpop.f32.mrb[24].mxu1 }
 0x3a4   :  { %v6438_v28 = vadd.f32 %v8507_v45, %v2170_v0  ;;  %v2172_v60 = vpop.f32.mrb[5].mxu0  ;;  %v4891_v53 = vpop.f32.mrb[25].mxu1  ;;  %v2242_v58 = vadd.f32 %v2241_v4, %v8524_v35 }
 0x3a5   :  { %v6440_v6 = vadd.f32 %v8523_v25, %v2172_v60 }
 0x3a6   :  { %v4133_v47 = vmul.f32 -1.442695, %v6438_v28 }
 0x3a7   :  { %v4134_v55 = vmul.f32 -1.442695, %v6440_v6 }
 0x3a8   :  { %6622 = vpow2.f32 %v4133_v47 }
 0x3a9   :  { %6624 = vpow2.f32 %v4134_v55 }
 0x3b2   :  { %v6623_v5 = vpop.eup %6622 }
 0x3b3   :  { %v2249_v27 = vadd.f32 1.0, %v6623_v5  ;;  %v6625_v54 = vpop.eup %6624 }
 0x3b4   :  { %v2256_v14 = vadd.f32 1.0, %v6625_v54 }
 0x3b5   :  { %6626 = vrcp.f32 %v2249_v27 }
 0x3b6   :  { %6628 = vrcp.f32 %v2256_v14 }
 0x3bf   :  { %v6627_v9 = vpop.eup %6626 }
 0x3c0   :  { %v2259_v62 = vmul.f32 %v6627_v9, %v2242_v58  ;;  %v6629_v27 = vpop.eup %6628 }
 0x3c1   :  { %v2262_v47 = vsub.f32 1.0, %v6629_v27  ;;  %v2264_v58 = vmul.f32 %v6629_v27, %v7880_v15 }
 0x3c2   :  { %v2260_v0 = vadd.f32 %v2259_v62, %v8525_v18 }
 0x3c3   :  { %v2336_v45 = vpop.f32.mrb[26].mxu0  ;;  %v2407_v53 = vpop.f32.mrb[26].mxu1 }
 0x3c4   :  { %6630 = vtanh.f32 %v2260_v0  ;;  %v6482_v28 = vadd.f32 %v7766_v33, %v2336_v45  ;;  %v2338_v60 = vpop.f32.mrb[27].mxu0  ;;  %v4926_v6 = vpop.f32.mrb[27].mxu1 }
 0x3c5   :  { %v6484_v5 = vadd.f32 %v7768_v34, %v2338_v60 }
 0x3c6   :  { %v4136_v55 = vmul.f32 -1.442695, %v6482_v28  ;;  %v2408_v28 = vadd.f32 %v2407_v53, %v7793_v61 }
 0x3c7   :  { %v4137_v54 = vmul.f32 -1.442695, %v6484_v5 }
 0x3c8   :  { %6632 = vpow2.f32 %v4136_v55  ;;  %v8526_v55 = vld [vmem:[#allocation32_spill] sm:$0xff] }
 0x3c9   :  { %6634 = vpow2.f32 %v4137_v54 }
 0x3ce   :  { %v6631_v4 = vpop.eup %6630 }
 0x3cf   :  { %v2263_v9 = vmul.f32 %v6631_v4, %v2262_v47 }
 0x3d1   :  { %v2265_v18 = vadd.f32 %v2264_v58, %v2263_v9 }
 0x3d2   :  { %v6633_v62 = vpop.eup %6632 }
 0x3d3   :  { %v2415_v14 = vadd.f32 1.0, %v6633_v62  ;;  %v7977_v45 = vsel %vm4135_vm5, %v2265_v18, %v7880_v15  ;;  %v6635_v15 = vpop.eup %6634  ;;  %v8528_v18 = vld [vmem:[#allocation10_spill] sm:$0xff]  ;;  %v8529_v62 = vld [vmem:[#allocation12_spill] sm:$0xff] }
 0x3d4   :  { %2501 = vmatmul.mubr.f32.vlgmr.msra.gmra.mrb[6].mxu0 %v7977_v45  ;;  %4960 = vmatmul.mubr.f32.vlgmr.msra.gmra.mrb[28].mxu1 %v7977_v45  ;;  %v2422_v0 = vadd.f32 1.0, %v6635_v15  ;;  %v8531_v15 = vld [vmem:[#allocation13_spill] sm:$0xff] }
 0x3d5   :  { %6636 = vrcp.f32 %v2415_v14  ;;  %5928 = vmatpush1.bf16.msra.mxu0 %v7568_v37  ;;  %5959 = vmatpush3.bf16.msra.mxu1 %v7574_v46  ;;  %v8530_v14 = vld [vmem:[#allocation14_spill] sm:$0xff] }
 0x3d6   :  { %5930 = vmatprep.subr.bf16.mxu0 %v7571_v39  ;;  %5960 = vmatprep.subr.bf16.mxu1 %v8495_v11  ;;  %6638 = vrcp.f32 %v2422_v0  ;;  %v8532_v0 = vld [vmem:[#allocation15_spill] sm:$0xff] }
 0x3d7   :  { %2666 = vmatprep.mubr.f32.mxu0 %v8496_v24  ;;  %4994 = vmatprep.mubr.msk.f32.mxu1 %vm6796_vm0, %v8496_v24 }
 0x3d9   :  { %5932 = vmatpush1.bf16.msra.mxu0 %v7579_v50  ;;  %5962 = vmatpush3.bf16.msra.mxu1 %v7587_v59 }
 0x3da   :  { %5934 = vmatprep.subr.bf16.mxu0 %v7583_v51  ;;  %5963 = vmatprep.subr.bf16.mxu1 %v8495_v11 }
 0x3dd   :  { %5936 = vmatpush1.bf16.msra.mxu0 %v7593_v2  ;;  %5965 = vmatpush3.bf16.msra.mxu1 %v7599_v13 }
 0x3de   :  { %5938 = vmatprep.subr.bf16.mxu0 %v7596_v3  ;;  %5966 = vmatprep.subr.bf16.mxu1 %v8495_v11 }
 0x3df   :  { %v6637_v60 = vpop.eup %6636 }
 0x3e0   :  { %v2425_v6 = vmul.f32 %v6637_v60, %v2408_v28  ;;  %v6639_v53 = vpop.eup %6638  ;;  %v8533_v28 = vld [vmem:[#allocation17_spill] sm:$0xff]  ;;  %v8534_v60 = vld [vmem:[#allocation16_spill] sm:$0xff] }
 0x3e1   :  { %5940 = vmatpush1.bf16.msra.mxu0 %v7603_v20  ;;  %5968 = vmatpush3.bf16.msra.mxu1 %v7609_v31  ;;  %v2428_v27 = vsub.f32 1.0, %v6639_v53  ;;  %v2430_v4 = vmul.f32 %v6639_v53, %v7927_v12 }
 0x3e2   :  { %v2426_v5 = vadd.f32 %v2425_v6, %v8526_v55  ;;  %5942 = vmatprep.subr.bf16.mxu0 %v7606_v22  ;;  %5969 = vmatprep.subr.bf16.mxu1 %v8495_v11  ;;  %v8535_v6 = vld [vmem:[#allocation18_spill] sm:$0xff]  ;;  %v8536_v55 = vld [vmem:[#allocation20_spill] sm:$0xff] }
 0x3e4   :  { %6640 = vtanh.f32 %v2426_v5  ;;  %v8537_v5 = vld [vmem:[#allocation19_spill] sm:$0xff] }
 0x3e5   :  { %5944 = vmatpush1.bf16.msra.mxu0 %v7613_v36  ;;  %5971 = vmatpush3.bf16.msra.mxu1 %v7619_v48 }
 0x3e6   :  { %5946 = vmatprep.subr.bf16.mxu0 %v7616_v40  ;;  %5972 = vmatprep.subr.bf16.mxu1 %v8495_v11 }
 0x3e9   :  { %5948 = vmatpush1.bf16.msra.mxu0 %v7623_v56  ;;  %5974 = vmatpush3.bf16.msra.mxu1 %v7629_v7 }
 0x3ea   :  { %5950 = vmatprep.subr.bf16.mxu0 %v7626_v57  ;;  %5975 = vmatprep.subr.bf16.mxu1 %v8495_v11 }
 0x3ed   :  { %5952 = vmatpush1.bf16.msra.mxu0 %v7633_v17  ;;  %5977 = vmatpush3.bf16.msra.mxu1 %v7639_v29 }
 0x3ee   :  { %v6641_v54 = vpop.eup %6640  ;;  %5954 = vmatprep.subr.bf16.mxu0 %v7636_v23  ;;  %5978 = vmatprep.subr.bf16.mxu1 %v8495_v11 }
 0x3ef   :  { %v2429_v47 = vmul.f32 %v6641_v54, %v2428_v27  ;;  %v8538_v54 = vld [vmem:[#allocation35_spill] sm:$0xff] }
 0x3f1   :  { %5956 = vmatpush1.bf16.msra.mxu0 %v7643_v41  ;;  %5980 = vmatpush3.bf16.msra.mxu1 %v7647_v44  ;;  %v2431_v9 = vadd.f32 %v2430_v4, %v2429_v47 }
 0x3f2   :  { %5982 = vmatprep.subr.bf16.mxu0 %v7305_v1  ;;  %6013 = vmatprep.subr.bf16.mxu1 %v8495_v11 }
 0x3f3   :  { %v8023_v58 = vsel %vm4138_vm6, %v2431_v9, %v7927_v12  ;;  %v8527_v12 = vld [vmem:[#allocation11_spill] sm:$0xff] }
 0x3f4   :  { %2667 = vmatmul.mubr.f32.vlgmr.msra.gmra.mrb[24].mxu0 %v8023_v58  ;;  %4995 = vmatmul.mubr.f32.vlgmr.msra.gmra.mrb[30].mxu1 %v8023_v58 }
 0x3f5   :  { %5984 = vmatpush1.bf16.msra.mxu0 %v7326_v8  ;;  %6015 = vmatpush3.bf16.msra.mxu1 %v7347_v16 }
 0x3f6   :  { %5986 = vmatprep.subr.bf16.mxu0 %v7332_v10  ;;  %6016 = vmatprep.subr.bf16.mxu1 %v8495_v11 }
 0x3f7   :  { %2832 = vmatprep.mubr.f32.mxu0 %v8496_v24  ;;  %5029 = vmatprep.mubr.msk.f32.mxu1 %vm6796_vm0, %v8496_v24 }
 0x3f9   :  { %5988 = vmatpush1.bf16.msra.mxu0 %v7357_v19  ;;  %6018 = vmatpush3.bf16.msra.mxu1 %v7379_v26 }
 0x3fa   :  { %5990 = vmatprep.subr.bf16.mxu0 %v7364_v21  ;;  %6019 = vmatprep.subr.bf16.mxu1 %v8495_v11 }
 0x3fd   :  { %5992 = vmatpush1.bf16.msra.mxu0 %v7393_v30  ;;  %6021 = vmatpush3.bf16.msra.mxu1 %v7417_v38 }
 0x3fe   :  { %5994 = vmatprep.subr.bf16.mxu0 %v7399_v32  ;;  %6022 = vmatprep.subr.bf16.mxu1 %v8495_v11 }
 0x401   :  { %5996 = vmatpush1.bf16.msra.mxu0 %v7433_v42  ;;  %6024 = vmatpush3.bf16.msra.mxu1 %v7457_v49 }
 0x402   :  { %5998 = vmatprep.subr.bf16.mxu0 %v7436_v43  ;;  %6025 = vmatprep.subr.bf16.mxu1 %v8495_v11 }
 0x405   :  { %6000 = vmatpush1.bf16.msra.mxu0 %v7468_v52  ;;  %6027 = vmatpush3.bf16.msra.mxu1 %v8527_v12  ;;  %v8539_v12 = vld [vmem:[#allocation22_spill] sm:$0xff] }
 0x406   :  { %6002 = vmatprep.subr.bf16.mxu0 %v8528_v18  ;;  %6028 = vmatprep.subr.bf16.mxu1 %v8495_v11 }
 0x409   :  { %6004 = vmatpush1.bf16.msra.mxu0 %v8529_v62  ;;  %6030 = vmatpush3.bf16.msra.mxu1 %v8530_v14 }
 0x40a   :  { %6006 = vmatprep.subr.bf16.mxu0 %v8531_v15  ;;  %6031 = vmatprep.subr.bf16.mxu1 %v8495_v11 }
 0x40d   :  { %6008 = vmatpush1.bf16.msra.mxu0 %v8532_v0  ;;  %6033 = vmatpush3.bf16.msra.mxu1 %v8533_v28 }
 0x40e   :  { %6010 = vmatprep.subr.bf16.mxu0 %v8534_v60  ;;  %6034 = vmatprep.subr.bf16.mxu1 %v8495_v11 }
 0x411   :  { %6012 = vmatpush1.bf16.msra.mxu0 %v8535_v6  ;;  %6036 = vmatpush3.bf16.msra.mxu1 %v8536_v55 }
 0x412   :  { %6038 = vmatprep.subr.bf16.mxu0 %v8537_v5  ;;  %6069 = vmatprep.subr.bf16.mxu1 %v8495_v11 }
 0x4a7   :  { %v2502_v53 = vpop.f32.mrb[6].mxu0  ;;  %v2573_v27 = vpop.f32.mrb[28].mxu1 }
 0x4a8   :  { %v6442_v47 = vadd.f32 %v8538_v54, %v2502_v53  ;;  %v2504_v4 = vpop.f32.mrb[7].mxu0  ;;  %v4961_v9 = vpop.f32.mrb[29].mxu1  ;;  %v2574_v5 = vadd.f32 %v2573_v27, %v8524_v35 }
 0x4a9   :  { %v6444_v28 = vadd.f32 %v8523_v25, %v2504_v4 }
 0x4aa   :  { %v4139_v0 = vmul.f32 -1.442695, %v6442_v47 }
 0x4ab   :  { %v4140_v60 = vmul.f32 -1.442695, %v6444_v28 }
 0x4ac   :  { %6642 = vpow2.f32 %v4139_v0 }
 0x4ad   :  { %6644 = vpow2.f32 %v4140_v60 }
 0x4b6   :  { %v6643_v15 = vpop.eup %6642 }
 0x4b7   :  { %v2581_v6 = vadd.f32 1.0, %v6643_v15  ;;  %v6645_v55 = vpop.eup %6644 }
 0x4b8   :  { %v2588_v14 = vadd.f32 1.0, %v6645_v55 }
 0x4b9   :  { %6646 = vrcp.f32 %v2581_v6 }
 0x4ba   :  { %6648 = vrcp.f32 %v2588_v14 }
 0x4c3   :  { %v6647_v62 = vpop.eup %6646 }
 0x4c4   :  { %v2591_v18 = vmul.f32 %v6647_v62, %v2574_v5  ;;  %v6649_v6 = vpop.eup %6648 }
 0x4c5   :  { %v2594_v4 = vsub.f32 1.0, %v6649_v6  ;;  %v2596_v14 = vmul.f32 %v6649_v6, %v7977_v45 }
 0x4c6   :  { %v2592_v53 = vadd.f32 %v2591_v18, %v8539_v12 }
 0x4c7   :  { %v2668_v54 = vpop.f32.mrb[24].mxu0  ;;  %v2739_v9 = vpop.f32.mrb[30].mxu1 }
 0x4c8   :  { %6650 = vtanh.f32 %v2592_v53  ;;  %v6478_v47 = vadd.f32 %v7766_v33, %v2668_v54  ;;  %v2670_v0 = vpop.f32.mrb[25].mxu0  ;;  %v4996_v28 = vpop.f32.mrb[31].mxu1 }
 0x4c9   :  { %v6480_v15 = vadd.f32 %v7768_v34, %v2670_v0 }
 0x4ca   :  { %v4142_v60 = vmul.f32 -1.442695, %v6478_v47  ;;  %v2740_v47 = vadd.f32 %v2739_v9, %v7793_v61 }
 0x4cb   :  { %v4143_v55 = vmul.f32 -1.442695, %v6480_v15 }
 0x4cc   :  { %6652 = vpow2.f32 %v4142_v60  ;;  %v8540_v60 = vld [vmem:[#allocation33_spill] sm:$0xff] }
 0x4cd   :  { %6654 = vpow2.f32 %v4143_v55 }
 0x4d2   :  { %v6651_v27 = vpop.eup %6650 }
 0x4d3   :  { %v2595_v62 = vmul.f32 %v6651_v27, %v2594_v4 }
 0x4d5   :  { %v2597_v12 = vadd.f32 %v2596_v14, %v2595_v62 }
 0x4d6   :  { %v6653_v18 = vpop.eup %6652 }
 0x4d7   :  { %v2747_v5 = vadd.f32 1.0, %v6653_v18  ;;  %v8073_v54 = vsel %vm4141_vm7, %v2597_v12, %v7977_v45  ;;  %v6655_v45 = vpop.eup %6654  ;;  %v8542_v12 = vld [vmem:[#allocation10_spill] sm:$0xff]  ;;  %v8543_v18 = vld [vmem:[#allocation12_spill] sm:$0xff] }
 0x4d8   :  { %2833 = vmatmul.mubr.f32.vlgmr.msra.gmra.mrb[8].mxu0 %v8073_v54  ;;  %5030 = vmatmul.mubr.f32.vlgmr.msra.gmra.mrb[32].mxu1 %v8073_v54  ;;  %v2754_v53 = vadd.f32 1.0, %v6655_v45  ;;  %v8545_v45 = vld [vmem:[#allocation13_spill] sm:$0xff] }
 0x4d9   :  { %6656 = vrcp.f32 %v2747_v5  ;;  %6040 = vmatpush1.bf16.msra.mxu0 %v7568_v37  ;;  %6071 = vmatpush3.bf16.msra.mxu1 %v7574_v46  ;;  %v8544_v5 = vld [vmem:[#allocation14_spill] sm:$0xff] }
 0x4da   :  { %6042 = vmatprep.subr.bf16.mxu0 %v7571_v39  ;;  %6072 = vmatprep.subr.bf16.mxu1 %v8495_v11  ;;  %6658 = vrcp.f32 %v2754_v53  ;;  %v8546_v53 = vld [vmem:[#allocation15_spill] sm:$0xff] }
 0x4db   :  { %2998 = vmatprep.mubr.f32.mxu0 %v8496_v24  ;;  %5064 = vmatprep.mubr.msk.f32.mxu1 %vm6796_vm0, %v8496_v24 }
 0x4dd   :  { %6044 = vmatpush1.bf16.msra.mxu0 %v7579_v50  ;;  %6074 = vmatpush3.bf16.msra.mxu1 %v7587_v59 }
 0x4de   :  { %6046 = vmatprep.subr.bf16.mxu0 %v7583_v51  ;;  %6075 = vmatprep.subr.bf16.mxu1 %v8495_v11 }
 0x4e1   :  { %6048 = vmatpush1.bf16.msra.mxu0 %v7593_v2  ;;  %6077 = vmatpush3.bf16.msra.mxu1 %v7599_v13 }
 0x4e2   :  { %6050 = vmatprep.subr.bf16.mxu0 %v7596_v3  ;;  %6078 = vmatprep.subr.bf16.mxu1 %v8495_v11 }
 0x4e3   :  { %v6657_v0 = vpop.eup %6656 }
 0x4e4   :  { %v2757_v28 = vmul.f32 %v6657_v0, %v2740_v47  ;;  %v6659_v9 = vpop.eup %6658  ;;  %v8547_v47 = vld [vmem:[#allocation17_spill] sm:$0xff]  ;;  %v8548_v0 = vld [vmem:[#allocation16_spill] sm:$0xff] }
 0x4e5   :  { %6052 = vmatpush1.bf16.msra.mxu0 %v7603_v20  ;;  %6080 = vmatpush3.bf16.msra.mxu1 %v7609_v31  ;;  %v2760_v6 = vsub.f32 1.0, %v6659_v9  ;;  %v2762_v27 = vmul.f32 %v6659_v9, %v8023_v58 }
 0x4e6   :  { %v2758_v15 = vadd.f32 %v2757_v28, %v8540_v60  ;;  %6054 = vmatprep.subr.bf16.mxu0 %v7606_v22  ;;  %6081 = vmatprep.subr.bf16.mxu1 %v8495_v11  ;;  %v8549_v28 = vld [vmem:[#allocation18_spill] sm:$0xff]  ;;  %v8550_v60 = vld [vmem:[#allocation20_spill] sm:$0xff] }
 0x4e8   :  { %6660 = vtanh.f32 %v2758_v15  ;;  %v8551_v15 = vld [vmem:[#allocation19_spill] sm:$0xff] }
 0x4e9   :  { %6056 = vmatpush1.bf16.msra.mxu0 %v7613_v36  ;;  %6083 = vmatpush3.bf16.msra.mxu1 %v7619_v48 }
 0x4ea   :  { %6058 = vmatprep.subr.bf16.mxu0 %v7616_v40  ;;  %6084 = vmatprep.subr.bf16.mxu1 %v8495_v11 }
 0x4ed   :  { %6060 = vmatpush1.bf16.msra.mxu0 %v7623_v56  ;;  %6086 = vmatpush3.bf16.msra.mxu1 %v7629_v7 }
 0x4ee   :  { %6062 = vmatprep.subr.bf16.mxu0 %v7626_v57  ;;  %6087 = vmatprep.subr.bf16.mxu1 %v8495_v11 }
 0x4f1   :  { %6064 = vmatpush1.bf16.msra.mxu0 %v7633_v17  ;;  %6089 = vmatpush3.bf16.msra.mxu1 %v7639_v29 }
 0x4f2   :  { %v6661_v55 = vpop.eup %6660  ;;  %6066 = vmatprep.subr.bf16.mxu0 %v7636_v23  ;;  %6090 = vmatprep.subr.bf16.mxu1 %v8495_v11 }
 0x4f3   :  { %v2761_v4 = vmul.f32 %v6661_v55, %v2760_v6  ;;  %v8552_v55 = vld [vmem:[#allocation35_spill] sm:$0xff] }
 0x4f5   :  { %6068 = vmatpush1.bf16.msra.mxu0 %v7643_v41  ;;  %6092 = vmatpush3.bf16.msra.mxu1 %v7647_v44  ;;  %v2763_v62 = vadd.f32 %v2762_v27, %v2761_v4 }
 0x4f6   :  { %6094 = vmatprep.subr.bf16.mxu0 %v7305_v1  ;;  %6125 = vmatprep.subr.bf16.mxu1 %v8495_v11 }
 0x4f7   :  { %v8119_v14 = vsel %vm4144_vm8, %v2763_v62, %v8023_v58  ;;  %v8541_v58 = vld [vmem:[#allocation11_spill] sm:$0xff] }
 0x4f8   :  { %2999 = vmatmul.mubr.f32.vlgmr.msra.gmra.mrb[22].mxu0 %v8119_v14  ;;  %5065 = vmatmul.mubr.f32.vlgmr.msra.gmra.mrb[34].mxu1 %v8119_v14 }
 0x4f9   :  { %6096 = vmatpush1.bf16.msra.mxu0 %v7326_v8  ;;  %6127 = vmatpush3.bf16.msra.mxu1 %v7347_v16 }
 0x4fa   :  { %6098 = vmatprep.subr.bf16.mxu0 %v7332_v10  ;;  %6128 = vmatprep.subr.bf16.mxu1 %v8495_v11 }
 0x4fb   :  { %3164 = vmatprep.mubr.f32.mxu0 %v8496_v24  ;;  %5099 = vmatprep.mubr.msk.f32.mxu1 %vm6796_vm0, %v8496_v24 }
 0x4fd   :  { %6100 = vmatpush1.bf16.msra.mxu0 %v7357_v19  ;;  %6130 = vmatpush3.bf16.msra.mxu1 %v7379_v26 }
 0x4fe   :  { %6102 = vmatprep.subr.bf16.mxu0 %v7364_v21  ;;  %6131 = vmatprep.subr.bf16.mxu1 %v8495_v11 }
 0x501   :  { %6104 = vmatpush1.bf16.msra.mxu0 %v7393_v30  ;;  %6133 = vmatpush3.bf16.msra.mxu1 %v7417_v38 }
 0x502   :  { %6106 = vmatprep.subr.bf16.mxu0 %v7399_v32  ;;  %6134 = vmatprep.subr.bf16.mxu1 %v8495_v11 }
 0x505   :  { %6108 = vmatpush1.bf16.msra.mxu0 %v7433_v42  ;;  %6136 = vmatpush3.bf16.msra.mxu1 %v7457_v49 }
 0x506   :  { %6110 = vmatprep.subr.bf16.mxu0 %v7436_v43  ;;  %6137 = vmatprep.subr.bf16.mxu1 %v8495_v11 }
 0x509   :  { %6112 = vmatpush1.bf16.msra.mxu0 %v7468_v52  ;;  %6139 = vmatpush3.bf16.msra.mxu1 %v8541_v58  ;;  %v8553_v58 = vld [vmem:[#allocation25_spill] sm:$0xff] }
 0x50a   :  { %6114 = vmatprep.subr.bf16.mxu0 %v8542_v12  ;;  %6140 = vmatprep.subr.bf16.mxu1 %v8495_v11 }
 0x50d   :  { %6116 = vmatpush1.bf16.msra.mxu0 %v8543_v18  ;;  %6142 = vmatpush3.bf16.msra.mxu1 %v8544_v5 }
 0x50e   :  { %6118 = vmatprep.subr.bf16.mxu0 %v8545_v45  ;;  %6143 = vmatprep.subr.bf16.mxu1 %v8495_v11 }
 0x511   :  { %6120 = vmatpush1.bf16.msra.mxu0 %v8546_v53  ;;  %6145 = vmatpush3.bf16.msra.mxu1 %v8547_v47 }
 0x512   :  { %6122 = vmatprep.subr.bf16.mxu0 %v8548_v0  ;;  %6146 = vmatprep.subr.bf16.mxu1 %v8495_v11 }
 0x515   :  { %6124 = vmatpush1.bf16.msra.mxu0 %v8549_v28  ;;  %6148 = vmatpush3.bf16.msra.mxu1 %v8550_v60 }
 0x516   :  { %6150 = vmatprep.subr.bf16.mxu0 %v8551_v15  ;;  %6181 = vmatprep.subr.bf16.mxu1 %v8495_v11 }
 0x5ab   :  { %v2834_v9 = vpop.f32.mrb[8].mxu0  ;;  %v2905_v6 = vpop.f32.mrb[32].mxu1 }
 0x5ac   :  { %v6446_v4 = vadd.f32 %v8552_v55, %v2834_v9  ;;  %v2836_v27 = vpop.f32.mrb[9].mxu0  ;;  %v5031_v62 = vpop.f32.mrb[33].mxu1  ;;  %v2906_v15 = vadd.f32 %v2905_v6, %v8524_v35 }
 0x5ad   :  { %v6448_v47 = vadd.f32 %v8523_v25, %v2836_v27 }
 0x5ae   :  { %v4145_v53 = vmul.f32 -1.442695, %v6446_v4 }
 0x5af   :  { %v4146_v0 = vmul.f32 -1.442695, %v6448_v47 }
 0x5b0   :  { %6662 = vpow2.f32 %v4145_v53 }
 0x5b1   :  { %6664 = vpow2.f32 %v4146_v0 }
 0x5ba   :  { %v6663_v45 = vpop.eup %6662 }
 0x5bb   :  { %v2913_v28 = vadd.f32 1.0, %v6663_v45  ;;  %v6665_v60 = vpop.eup %6664 }
 0x5bc   :  { %v2920_v5 = vadd.f32 1.0, %v6665_v60 }
 0x5bd   :  { %6666 = vrcp.f32 %v2913_v28 }
 0x5be   :  { %6668 = vrcp.f32 %v2920_v5 }
 0x5c7   :  { %v6667_v18 = vpop.eup %6666 }
 0x5c8   :  { %v2923_v12 = vmul.f32 %v6667_v18, %v2906_v15  ;;  %v6669_v28 = vpop.eup %6668 }
 0x5c9   :  { %v2926_v27 = vsub.f32 1.0, %v6669_v28  ;;  %v2928_v5 = vmul.f32 %v6669_v28, %v8073_v54 }
 0x5ca   :  { %v2924_v9 = vadd.f32 %v2923_v12, %v8553_v58 }
 0x5cb   :  { %v3000_v55 = vpop.f32.mrb[22].mxu0  ;;  %v3071_v62 = vpop.f32.mrb[34].mxu1 }
 0x5cc   :  { %6670 = vtanh.f32 %v2924_v9  ;;  %v6474_v4 = vadd.f32 %v7766_v33, %v3000_v55  ;;  %v3002_v53 = vpop.f32.mrb[23].mxu0  ;;  %v5066_v47 = vpop.f32.mrb[35].mxu1 }
 0x5cd   :  { %v6476_v45 = vadd.f32 %v7768_v34, %v3002_v53 }
 0x5ce   :  { %v4148_v0 = vmul.f32 -1.442695, %v6474_v4  ;;  %v3072_v4 = vadd.f32 %v3071_v62, %v7793_v61 }
 0x5cf   :  { %v4149_v60 = vmul.f32 -1.442695, %v6476_v45 }
 0x5d0   :  { %6672 = vpow2.f32 %v4148_v0  ;;  %v8554_v0 = vld [vmem:[#allocation30_spill] sm:$0xff] }
 0x5d1   :  { %6674 = vpow2.f32 %v4149_v60 }
 0x5d6   :  { %v6671_v6 = vpop.eup %6670 }
 0x5d7   :  { %v2927_v18 = vmul.f32 %v6671_v6, %v2926_v27 }
 0x5d9   :  { %v2929_v58 = vadd.f32 %v2928_v5, %v2927_v18 }
 0x5da   :  { %v6673_v12 = vpop.eup %6672 }
 0x5db   :  { %v3079_v15 = vadd.f32 1.0, %v6673_v12  ;;  %v8168_v55 = vsel %vm4144_vm8, %v2929_v58, %v8073_v54  ;;  %v6675_v54 = vpop.eup %6674  ;;  %v8556_v58 = vld [vmem:[#allocation10_spill] sm:$0xff]  ;;  %v8557_v12 = vld [vmem:[#allocation12_spill] sm:$0xff] }
 0x5dc   :  { %3165 = vmatmul.mubr.f32.vlgmr.msra.gmra.mrb[10].mxu0 %v8168_v55  ;;  %5100 = vmatmul.mubr.f32.vlgmr.msra.gmra.mrb[36].mxu1 %v8168_v55  ;;  %v3086_v9 = vadd.f32 1.0, %v6675_v54  ;;  %v8559_v54 = vld [vmem:[#allocation13_spill] sm:$0xff] }
 0x5dd   :  { %6676 = vrcp.f32 %v3079_v15  ;;  %6152 = vmatpush1.bf16.msra.mxu0 %v7568_v37  ;;  %6183 = vmatpush3.bf16.msra.mxu1 %v7574_v46  ;;  %v8558_v15 = vld [vmem:[#allocation14_spill] sm:$0xff] }
 0x5de   :  { %6154 = vmatprep.subr.bf16.mxu0 %v7571_v39  ;;  %6184 = vmatprep.subr.bf16.mxu1 %v8495_v11  ;;  %6678 = vrcp.f32 %v3086_v9  ;;  %v8560_v9 = vld [vmem:[#allocation15_spill] sm:$0xff] }
 0x5df   :  { %3330 = vmatprep.mubr.f32.mxu0 %v8496_v24  ;;  %5134 = vmatprep.mubr.msk.f32.mxu1 %vm6796_vm0, %v8496_v24 }
 0x5e1   :  { %6156 = vmatpush1.bf16.msra.mxu0 %v7579_v50  ;;  %6186 = vmatpush3.bf16.msra.mxu1 %v7587_v59 }
 0x5e2   :  { %6158 = vmatprep.subr.bf16.mxu0 %v7583_v51  ;;  %6187 = vmatprep.subr.bf16.mxu1 %v8495_v11 }
 0x5e5   :  { %6160 = vmatpush1.bf16.msra.mxu0 %v7593_v2  ;;  %6189 = vmatpush3.bf16.msra.mxu1 %v7599_v13 }
 0x5e6   :  { %6162 = vmatprep.subr.bf16.mxu0 %v7596_v3  ;;  %6190 = vmatprep.subr.bf16.mxu1 %v8495_v11 }
 0x5e7   :  { %v6677_v53 = vpop.eup %6676 }
 0x5e8   :  { %v3089_v47 = vmul.f32 %v6677_v53, %v3072_v4  ;;  %v6679_v62 = vpop.eup %6678  ;;  %v8561_v4 = vld [vmem:[#allocation17_spill] sm:$0xff]  ;;  %v8562_v53 = vld [vmem:[#allocation16_spill] sm:$0xff] }
 0x5e9   :  { %6164 = vmatpush1.bf16.msra.mxu0 %v7603_v20  ;;  %6192 = vmatpush3.bf16.msra.mxu1 %v7609_v31  ;;  %v3092_v28 = vsub.f32 1.0, %v6679_v62  ;;  %v3094_v6 = vmul.f32 %v6679_v62, %v8119_v14 }
 0x5ea   :  { %v3090_v45 = vadd.f32 %v3089_v47, %v8554_v0  ;;  %6166 = vmatprep.subr.bf16.mxu0 %v7606_v22  ;;  %6193 = vmatprep.subr.bf16.mxu1 %v8495_v11  ;;  %v8563_v47 = vld [vmem:[#allocation18_spill] sm:$0xff]  ;;  %v8564_v0 = vld [vmem:[#allocation20_spill] sm:$0xff] }
 0x5ec   :  { %6680 = vtanh.f32 %v3090_v45  ;;  %v8565_v45 = vld [vmem:[#allocation19_spill] sm:$0xff] }
 0x5ed   :  { %6168 = vmatpush1.bf16.msra.mxu0 %v7613_v36  ;;  %6195 = vmatpush3.bf16.msra.mxu1 %v7619_v48 }
 0x5ee   :  { %6170 = vmatprep.subr.bf16.mxu0 %v7616_v40  ;;  %6196 = vmatprep.subr.bf16.mxu1 %v8495_v11 }
 0x5f1   :  { %6172 = vmatpush1.bf16.msra.mxu0 %v7623_v56  ;;  %6198 = vmatpush3.bf16.msra.mxu1 %v7629_v7 }
 0x5f2   :  { %6174 = vmatprep.subr.bf16.mxu0 %v7626_v57  ;;  %6199 = vmatprep.subr.bf16.mxu1 %v8495_v11 }
 0x5f5   :  { %6176 = vmatpush1.bf16.msra.mxu0 %v7633_v17  ;;  %6201 = vmatpush3.bf16.msra.mxu1 %v7639_v29 }
 0x5f6   :  { %v6681_v60 = vpop.eup %6680  ;;  %6178 = vmatprep.subr.bf16.mxu0 %v7636_v23  ;;  %6202 = vmatprep.subr.bf16.mxu1 %v8495_v11 }
 0x5f7   :  { %v3093_v27 = vmul.f32 %v6681_v60, %v3092_v28  ;;  %v8566_v60 = vld [vmem:[#allocation35_spill] sm:$0xff] }
 0x5f9   :  { %6180 = vmatpush1.bf16.msra.mxu0 %v7643_v41  ;;  %6204 = vmatpush3.bf16.msra.mxu1 %v7647_v44  ;;  %v3095_v18 = vadd.f32 %v3094_v6, %v3093_v27 }
 0x5fa   :  { %6206 = vmatprep.subr.bf16.mxu0 %v7305_v1  ;;  %6237 = vmatprep.subr.bf16.mxu1 %v8495_v11 }
 0x5fb   :  { %v8213_v5 = vsel %vm4141_vm7, %v3095_v18, %v8119_v14  ;;  %v8555_v14 = vld [vmem:[#allocation11_spill] sm:$0xff] }
 0x5fc   :  { %3331 = vmatmul.mubr.f32.vlgmr.msra.gmra.mrb[20].mxu0 %v8213_v5  ;;  %5135 = vmatmul.mubr.f32.vlgmr.msra.gmra.mrb[38].mxu1 %v8213_v5 }
 0x5fd   :  { %6208 = vmatpush1.bf16.msra.mxu0 %v7326_v8  ;;  %6239 = vmatpush3.bf16.msra.mxu1 %v7347_v16 }
 0x5fe   :  { %6210 = vmatprep.subr.bf16.mxu0 %v7332_v10  ;;  %6240 = vmatprep.subr.bf16.mxu1 %v8495_v11 }
 0x5ff   :  { %3496 = vmatprep.mubr.f32.mxu0 %v8496_v24  ;;  %5169 = vmatprep.mubr.msk.f32.mxu1 %vm6796_vm0, %v8496_v24 }
 0x601   :  { %6212 = vmatpush1.bf16.msra.mxu0 %v7357_v19  ;;  %6242 = vmatpush3.bf16.msra.mxu1 %v7379_v26 }
 0x602   :  { %6214 = vmatprep.subr.bf16.mxu0 %v7364_v21  ;;  %6243 = vmatprep.subr.bf16.mxu1 %v8495_v11 }
 0x605   :  { %6216 = vmatpush1.bf16.msra.mxu0 %v7393_v30  ;;  %6245 = vmatpush3.bf16.msra.mxu1 %v7417_v38 }
 0x606   :  { %6218 = vmatprep.subr.bf16.mxu0 %v7399_v32  ;;  %6246 = vmatprep.subr.bf16.mxu1 %v8495_v11 }
 0x609   :  { %6220 = vmatpush1.bf16.msra.mxu0 %v7433_v42  ;;  %6248 = vmatpush3.bf16.msra.mxu1 %v7457_v49 }
 0x60a   :  { %6222 = vmatprep.subr.bf16.mxu0 %v7436_v43  ;;  %6249 = vmatprep.subr.bf16.mxu1 %v8495_v11 }
 0x60d   :  { %6224 = vmatpush1.bf16.msra.mxu0 %v7468_v52  ;;  %6251 = vmatpush3.bf16.msra.mxu1 %v8555_v14  ;;  %v8567_v14 = vld [vmem:[#allocation24_spill] sm:$0xff] }
 0x60e   :  { %6226 = vmatprep.subr.bf16.mxu0 %v8556_v58  ;;  %6252 = vmatprep.subr.bf16.mxu1 %v8495_v11 }
 0x611   :  { %6228 = vmatpush1.bf16.msra.mxu0 %v8557_v12  ;;  %6254 = vmatpush3.bf16.msra.mxu1 %v8558_v15 }
 0x612   :  { %6230 = vmatprep.subr.bf16.mxu0 %v8559_v54  ;;  %6255 = vmatprep.subr.bf16.mxu1 %v8495_v11 }
 0x615   :  { %6232 = vmatpush1.bf16.msra.mxu0 %v8560_v9  ;;  %6257 = vmatpush3.bf16.msra.mxu1 %v8561_v4 }
 0x616   :  { %6234 = vmatprep.subr.bf16.mxu0 %v8562_v53  ;;  %6258 = vmatprep.subr.bf16.mxu1 %v8495_v11 }
 0x619   :  { %6236 = vmatpush1.bf16.msra.mxu0 %v8563_v47  ;;  %6260 = vmatpush3.bf16.msra.mxu1 %v8564_v0 }
 0x61a   :  { %6262 = vmatprep.subr.bf16.mxu0 %v8565_v45  ;;  %6293 = vmatprep.subr.bf16.mxu1 %v8495_v11 }
 0x6af   :  { %v3166_v62 = vpop.f32.mrb[10].mxu0  ;;  %v3237_v28 = vpop.f32.mrb[36].mxu1 }
 0x6b0   :  { %v6450_v27 = vadd.f32 %v8566_v60, %v3166_v62  ;;  %v3168_v6 = vpop.f32.mrb[11].mxu0  ;;  %v5101_v18 = vpop.f32.mrb[37].mxu1  ;;  %v3238_v45 = vadd.f32 %v3237_v28, %v8524_v35 }
 0x6b1   :  { %v6452_v4 = vadd.f32 %v8523_v25, %v3168_v6 }
 0x6b2   :  { %v4151_v9 = vmul.f32 -1.442695, %v6450_v27 }
 0x6b3   :  { %v4152_v53 = vmul.f32 -1.442695, %v6452_v4 }
 0x6b4   :  { %6682 = vpow2.f32 %v4151_v9 }
 0x6b5   :  { %6684 = vpow2.f32 %v4152_v53 }
 0x6be   :  { %v6683_v54 = vpop.eup %6682 }
 0x6bf   :  { %v3245_v47 = vadd.f32 1.0, %v6683_v54  ;;  %v6685_v0 = vpop.eup %6684 }
 0x6c0   :  { %v3252_v15 = vadd.f32 1.0, %v6685_v0 }
 0x6c1   :  { %6686 = vrcp.f32 %v3245_v47 }
 0x6c2   :  { %6688 = vrcp.f32 %v3252_v15 }
 0x6cb   :  { %v6687_v12 = vpop.eup %6686 }
 0x6cc   :  { %v3255_v58 = vmul.f32 %v6687_v12, %v3238_v45  ;;  %v6689_v47 = vpop.eup %6688 }
 0x6cd   :  { %v3258_v6 = vsub.f32 1.0, %v6689_v47  ;;  %v3260_v15 = vmul.f32 %v6689_v47, %v8168_v55 }
 0x6ce   :  { %v3256_v62 = vadd.f32 %v3255_v58, %v8567_v14 }
 0x6cf   :  { %v3332_v60 = vpop.f32.mrb[20].mxu0  ;;  %v3403_v18 = vpop.f32.mrb[38].mxu1 }
 0x6d0   :  { %6690 = vtanh.f32 %v3256_v62  ;;  %v6470_v27 = vadd.f32 %v7766_v33, %v3332_v60  ;;  %v3334_v9 = vpop.f32.mrb[21].mxu0  ;;  %v5136_v4 = vpop.f32.mrb[39].mxu1 }
 0x6d1   :  { %v6472_v54 = vadd.f32 %v7768_v34, %v3334_v9 }
 0x6d2   :  { %v4154_v53 = vmul.f32 -1.442695, %v6470_v27  ;;  %v3404_v27 = vadd.f32 %v3403_v18, %v7793_v61 }
 0x6d3   :  { %v4155_v0 = vmul.f32 -1.442695, %v6472_v54 }
 0x6d4   :  { %6692 = vpow2.f32 %v4154_v53  ;;  %v8568_v53 = vld [vmem:[#allocation31_spill] sm:$0xff] }
 0x6d5   :  { %6694 = vpow2.f32 %v4155_v0 }
 0x6da   :  { %v6691_v28 = vpop.eup %6690 }
 0x6db   :  { %v3259_v12 = vmul.f32 %v6691_v28, %v3258_v6 }
 0x6dd   :  { %v3261_v14 = vadd.f32 %v3260_v15, %v3259_v12 }
 0x6de   :  { %v6693_v58 = vpop.eup %6692 }
 0x6df   :  { %v3411_v45 = vadd.f32 1.0, %v6693_v58  ;;  %v8262_v60 = vsel %vm4138_vm6, %v3261_v14, %v8168_v55  ;;  %v6695_v55 = vpop.eup %6694 }
 0x6e0   :  { %3497 = vmatmul.mubr.f32.vlgmr.msra.gmra.mrb[12].mxu0 %v8262_v60  ;;  %5170 = vmatmul.mubr.f32.vlgmr.msra.gmra.mrb[40].mxu1 %v8262_v60  ;;  %v3418_v62 = vadd.f32 1.0, %v6695_v55 }
 0x6e1   :  { %6696 = vrcp.f32 %v3411_v45  ;;  %6264 = vmatpush1.bf16.msra.mxu0 %v7568_v37  ;;  %6295 = vmatpush3.bf16.msra.mxu1 %v7574_v46 }
 0x6e2   :  { %6266 = vmatprep.subr.bf16.mxu0 %v7571_v39  ;;  %6296 = vmatprep.subr.bf16.mxu1 %v8495_v11  ;;  %6698 = vrcp.f32 %v3418_v62 }
 0x6e3   :  { %3662 = vmatprep.mubr.f32.mxu0 %v8496_v24  ;;  %5204 = vmatprep.mubr.msk.f32.mxu1 %vm6796_vm0, %v8496_v24 }
 0x6e5   :  { %6268 = vmatpush1.bf16.msra.mxu0 %v7579_v50  ;;  %6298 = vmatpush3.bf16.msra.mxu1 %v7587_v59 }
 0x6e6   :  { %6270 = vmatprep.subr.bf16.mxu0 %v7583_v51  ;;  %6299 = vmatprep.subr.bf16.mxu1 %v8495_v11 }
 0x6e9   :  { %6272 = vmatpush1.bf16.msra.mxu0 %v7593_v2  ;;  %6301 = vmatpush3.bf16.msra.mxu1 %v7599_v13 }
 0x6ea   :  { %6274 = vmatprep.subr.bf16.mxu0 %v7596_v3  ;;  %6302 = vmatprep.subr.bf16.mxu1 %v8495_v11 }
 0x6eb   :  { %v6697_v9 = vpop.eup %6696 }
 0x6ec   :  { %v3421_v4 = vmul.f32 %v6697_v9, %v3404_v27  ;;  %v6699_v18 = vpop.eup %6698 }
 0x6ed   :  { %6276 = vmatpush1.bf16.msra.mxu0 %v7603_v20  ;;  %6304 = vmatpush3.bf16.msra.mxu1 %v7609_v31  ;;  %v3424_v47 = vsub.f32 1.0, %v6699_v18  ;;  %v3426_v28 = vmul.f32 %v6699_v18, %v8213_v5 }
 0x6ee   :  { %v3422_v54 = vadd.f32 %v3421_v4, %v8568_v53  ;;  %6278 = vmatprep.subr.bf16.mxu0 %v7606_v22  ;;  %6305 = vmatprep.subr.bf16.mxu1 %v8495_v11 }
 0x6f0   :  { %6700 = vtanh.f32 %v3422_v54 }
 0x6f1   :  { %6280 = vmatpush1.bf16.msra.mxu0 %v7613_v36  ;;  %6307 = vmatpush3.bf16.msra.mxu1 %v7619_v48 }
 0x6f2   :  { %6282 = vmatprep.subr.bf16.mxu0 %v7616_v40  ;;  %6308 = vmatprep.subr.bf16.mxu1 %v8495_v11 }
 0x6f5   :  { %6284 = vmatpush1.bf16.msra.mxu0 %v7623_v56  ;;  %6310 = vmatpush3.bf16.msra.mxu1 %v7629_v7 }
 0x6f6   :  { %6286 = vmatprep.subr.bf16.mxu0 %v7626_v57  ;;  %6311 = vmatprep.subr.bf16.mxu1 %v8495_v11 }
 0x6f9   :  { %6288 = vmatpush1.bf16.msra.mxu0 %v7633_v17  ;;  %6313 = vmatpush3.bf16.msra.mxu1 %v7639_v29 }
 0x6fa   :  { %v6701_v0 = vpop.eup %6700  ;;  %6290 = vmatprep.subr.bf16.mxu0 %v7636_v23  ;;  %6314 = vmatprep.subr.bf16.mxu1 %v8495_v11 }
 0x6fb   :  { %v3425_v6 = vmul.f32 %v6701_v0, %v3424_v47  ;;  %v8581_v0 = vld [vmem:[#allocation27_spill] sm:$0xff] }
 0x6fd   :  { %6292 = vmatpush1.bf16.msra.mxu0 %v7643_v41  ;;  %6316 = vmatpush3.bf16.msra.mxu1 %v7647_v44  ;;  %v3427_v12 = vadd.f32 %v3426_v28, %v3425_v6 }
 0x6fe   :  { %6318 = vmatprep.subr.bf16.mxu0 %v7305_v1  ;;  %6349 = vmatprep.subr.bf16.mxu1 %v8495_v11  ;;  %v8569_v1 = vld [vmem:[#allocation11_spill] sm:$0xff] }
 0x6ff   :  { %v8307_v15 = vsel %vm4135_vm5, %v3427_v12, %v8213_v5 }
 0x700   :  { %3663 = vmatmul.mubr.f32.vlgmr.msra.gmra.mrb[18].mxu0 %v8307_v15  ;;  %5205 = vmatmul.mubr.f32.vlgmr.msra.gmra.mrb[42].mxu1 %v8307_v15 }
 0x701   :  { %6320 = vmatpush1.bf16.msra.mxu0 %v7326_v8  ;;  %6351 = vmatpush3.bf16.msra.mxu1 %v7347_v16  ;;  %v8570_v8 = vld [vmem:[#allocation10_spill] sm:$0xff] }
 0x702   :  { %6322 = vmatprep.subr.bf16.mxu0 %v7332_v10  ;;  %6352 = vmatprep.subr.bf16.mxu1 %v8495_v11  ;;  %v8571_v10 = vld [vmem:[#allocation12_spill] sm:$0xff]  ;;  %v8572_v16 = vld [vmem:[#allocation14_spill] sm:$0xff] }
 0x703   :  { %3828 = vmatprep.mubr.f32.mxu0 %v8496_v24  ;;  %5239 = vmatprep.mubr.msk.f32.mxu1 %vm6796_vm0, %v8496_v24 }
 0x705   :  { %6324 = vmatpush1.bf16.msra.mxu0 %v7357_v19  ;;  %6354 = vmatpush3.bf16.msra.mxu1 %v7379_v26  ;;  %v8573_v19 = vld [vmem:[#allocation13_spill] sm:$0xff] }
 0x706   :  { %6326 = vmatprep.subr.bf16.mxu0 %v7364_v21  ;;  %6355 = vmatprep.subr.bf16.mxu1 %v8495_v11  ;;  %v8574_v21 = vld [vmem:[#allocation15_spill] sm:$0xff]  ;;  %v8575_v26 = vld [vmem:[#allocation17_spill] sm:$0xff] }
 0x709   :  { %6328 = vmatpush1.bf16.msra.mxu0 %v7393_v30  ;;  %6357 = vmatpush3.bf16.msra.mxu1 %v7417_v38  ;;  %v8576_v30 = vld [vmem:[#allocation16_spill] sm:$0xff] }
 0x70a   :  { %6330 = vmatprep.subr.bf16.mxu0 %v7399_v32  ;;  %6358 = vmatprep.subr.bf16.mxu1 %v8495_v11  ;;  %v8577_v32 = vld [vmem:[#allocation18_spill] sm:$0xff]  ;;  %v8578_v38 = vld [vmem:[#allocation20_spill] sm:$0xff] }
 0x70d   :  { %6332 = vmatpush1.bf16.msra.mxu0 %v7433_v42  ;;  %6360 = vmatpush3.bf16.msra.mxu1 %v7457_v49  ;;  %v8579_v42 = vld [vmem:[#allocation19_spill] sm:$0xff] }
 0x70e   :  { %6334 = vmatprep.subr.bf16.mxu0 %v7436_v43  ;;  %6361 = vmatprep.subr.bf16.mxu1 %v8495_v11 }
 0x711   :  { %6336 = vmatpush1.bf16.msra.mxu0 %v7468_v52  ;;  %6363 = vmatpush3.bf16.msra.mxu1 %v8569_v1  ;;  %v8580_v52 = vld [vmem:[#allocation35_spill] sm:$0xff] }
 0x712   :  { %6338 = vmatprep.subr.bf16.mxu0 %v8570_v8  ;;  %6364 = vmatprep.subr.bf16.mxu1 %v8495_v11 }
 0x715   :  { %6340 = vmatpush1.bf16.msra.mxu0 %v8571_v10  ;;  %6366 = vmatpush3.bf16.msra.mxu1 %v8572_v16 }
 0x716   :  { %6342 = vmatprep.subr.bf16.mxu0 %v8573_v19  ;;  %6367 = vmatprep.subr.bf16.mxu1 %v8495_v11 }
 0x719   :  { %6344 = vmatpush1.bf16.msra.mxu0 %v8574_v21  ;;  %6369 = vmatpush3.bf16.msra.mxu1 %v8575_v26 }
 0x71a   :  { %6346 = vmatprep.subr.bf16.mxu0 %v8576_v30  ;;  %6370 = vmatprep.subr.bf16.mxu1 %v8495_v11 }
 0x71d   :  { %6348 = vmatpush1.bf16.msra.mxu0 %v8577_v32  ;;  %6372 = vmatpush3.bf16.msra.mxu1 %v8578_v38 }
 0x71e   :  { %6374 = vmatprep.subr.bf16.mxu0 %v8579_v42  ;;  %6405 = vmatprep.subr.bf16.mxu1 %v8495_v11 }
 0x7b3   :  { %v3498_v43 = vpop.f32.mrb[12].mxu0  ;;  %v3569_v49 = vpop.f32.mrb[40].mxu1 }
 0x7b4   :  { %v6454_v5 = vadd.f32 %v8580_v52, %v3498_v43  ;;  %v3500_v14 = vpop.f32.mrb[13].mxu0  ;;  %v5171_v58 = vpop.f32.mrb[41].mxu1  ;;  %v3570_v54 = vadd.f32 %v3569_v49, %v8524_v35 }
 0x7b5   :  { %v6456_v55 = vadd.f32 %v8523_v25, %v3500_v14 }
 0x7b6   :  { %v4157_v45 = vmul.f32 -1.442695, %v6454_v5 }
 0x7b7   :  { %v4158_v62 = vmul.f32 -1.442695, %v6456_v55  ;;  %v8583_v55 = vld [vmem:[#allocation26_spill] sm:$0xff] }
 0x7b8   :  { %6702 = vpow2.f32 %v4157_v45 }
 0x7b9   :  { %6704 = vpow2.f32 %v4158_v62 }
 0x7c2   :  { %v6703_v27 = vpop.eup %6702 }
 0x7c3   :  { %v3577_v9 = vadd.f32 1.0, %v6703_v27  ;;  %v6705_v4 = vpop.eup %6704 }
 0x7c4   :  { %v3584_v53 = vadd.f32 1.0, %v6705_v4 }
 0x7c5   :  { %6706 = vrcp.f32 %v3577_v9 }
 0x7c6   :  { %6708 = vrcp.f32 %v3584_v53 }
 0x7cf   :  { %v6707_v18 = vpop.eup %6706 }
 0x7d0   :  { %v3587_v47 = vmul.f32 %v6707_v18, %v3570_v54  ;;  %v6709_v21 = vpop.eup %6708 }
 0x7d1   :  { %v3590_v30 = vsub.f32 1.0, %v6709_v21  ;;  %v3592_v42 = vmul.f32 %v6709_v21, %v8262_v60 }
 0x7d2   :  { %v3588_v6 = vadd.f32 %v3587_v47, %v8581_v0 }
 0x7d3   :  { %v3664_v28 = vpop.f32.mrb[18].mxu0  ;;  %v3735_v12 = vpop.f32.mrb[42].mxu1 }
 0x7d4   :  { %6710 = vtanh.f32 %v3588_v6  ;;  %v6466_v1 = vadd.f32 %v7766_v33, %v3664_v28  ;;  %v3666_v8 = vpop.f32.mrb[19].mxu0  ;;  %v5206_v10 = vpop.f32.mrb[43].mxu1 }
 0x7d5   :  { %v6468_v19 = vadd.f32 %v7768_v34, %v3666_v8 }
 0x7d6   :  { %v4160_v16 = vmul.f32 -1.442695, %v6466_v1 }
 0x7d7   :  { %v4161_v26 = vmul.f32 -1.442695, %v6468_v19 }
 0x7d8   :  { %6712 = vpow2.f32 %v4160_v16 }
 0x7d9   :  { %6714 = vpow2.f32 %v4161_v26  ;;  %v8584_v26 = vld [vmem:[#allocation29_spill] sm:$0xff] }
 0x7de   :  { %v6711_v32 = vpop.eup %6710 }
 0x7df   :  { %v3591_v38 = vmul.f32 %v6711_v32, %v3590_v30 }
 0x7e1   :  { %v3593_v43 = vadd.f32 %v3592_v42, %v3591_v38 }
 0x7e2   :  { %v6713_v49 = vpop.eup %6712 }
 0x7e3   :  { %v3743_v5 = vadd.f32 1.0, %v6713_v49  ;;  %v8356_v14 = vsel %vm4132_vm4, %v3593_v43, %v8262_v60  ;;  %v6715_v60 = vpop.eup %6714 }
 0x7e4   :  { %3829 = vmatmul.mubr.f32.vlgmr.msra.gmra.mrb[14].mxu0 %v8356_v14  ;;  %5240 = vmatmul.mubr.f32.vlgmr.msra.gmra.mrb[44].mxu1 %v8356_v14 }
 0x7e5   :  { %6716 = vrcp.f32 %v3743_v5  ;;  %6376 = vmatpush1.bf16.msra.mxu0 %v7568_v37  ;;  %6407 = vmatpush3.bf16.msra.mxu1 %v7574_v46  ;;  %v3750_v37 = vadd.f32 1.0, %v6715_v60 }
 0x7e6   :  { %6378 = vmatprep.subr.bf16.mxu0 %v7571_v39  ;;  %6408 = vmatprep.subr.bf16.mxu1 %v8495_v11  ;;  %v3736_v39 = vadd.f32 %v3735_v12, %v7793_v61 }
 0x7e7   :  { %3994 = vmatprep.mubr.f32.mxu0 %v8496_v24  ;;  %5274 = vmatprep.mubr.msk.f32.mxu1 %vm6796_vm0, %v8496_v24  ;;  %6718 = vrcp.f32 %v3750_v37 }
 0x7e9   :  { %6380 = vmatpush1.bf16.msra.mxu0 %v7579_v50  ;;  %6410 = vmatpush3.bf16.msra.mxu1 %v7587_v59  ;;  %v8582_v50 = vld [vmem:[#allocation28_spill] sm:$0xff] }
 0x7ea   :  { %6382 = vmatprep.subr.bf16.mxu0 %v7583_v51  ;;  %6411 = vmatprep.subr.bf16.mxu1 %v8495_v11 }
 0x7ed   :  { %6384 = vmatpush1.bf16.msra.mxu0 %v7593_v2  ;;  %6413 = vmatpush3.bf16.msra.mxu1 %v7599_v13 }
 0x7ee   :  { %6386 = vmatprep.subr.bf16.mxu0 %v7596_v3  ;;  %6414 = vmatprep.subr.bf16.mxu1 %v8495_v11 }
 0x7ef   :  { %v6717_v46 = vpop.eup %6716 }
 0x7f0   :  { %v3753_v24 = vmul.f32 %v6717_v46, %v3736_v39 }
 0x7f1   :  { %6388 = vmatpush1.bf16.msra.mxu0 %v7603_v20  ;;  %6416 = vmatpush3.bf16.msra.mxu1 %v7609_v31  ;;  %v6719_v59 = vpop.eup %6718 }
 0x7f2   :  { %v3754_v51 = vadd.f32 %v3753_v24, %v8582_v50  ;;  %6390 = vmatprep.subr.bf16.mxu0 %v7606_v22  ;;  %6417 = vmatprep.subr.bf16.mxu1 %v8495_v11  ;;  %v3756_v2 = vsub.f32 1.0, %v6719_v59  ;;  %v3758_v20 = vmul.f32 %v6719_v59, %v8307_v15 }
 0x7f4   :  { %6720 = vtanh.f32 %v3754_v51 }
 0x7f5   :  { %6392 = vmatpush1.bf16.msra.mxu0 %v7613_v36  ;;  %6419 = vmatpush3.bf16.msra.mxu1 %v7619_v48 }
 0x7f6   :  { %6394 = vmatprep.subr.bf16.mxu0 %v7616_v40  ;;  %6420 = vmatprep.subr.bf16.mxu1 %v8495_v11 }
 0x7f9   :  { %6396 = vmatpush1.bf16.msra.mxu0 %v7623_v56  ;;  %6422 = vmatpush3.bf16.msra.mxu1 %v7629_v7 }
 0x7fa   :  { %6398 = vmatprep.subr.bf16.mxu0 %v7626_v57  ;;  %6423 = vmatprep.subr.bf16.mxu1 %v8495_v11 }
 0x7fd   :  { %6400 = vmatpush1.bf16.msra.mxu0 %v7633_v17  ;;  %6425 = vmatpush3.bf16.msra.mxu1 %v7639_v29 }
 0x7fe   :  { %v6721_v3 = vpop.eup %6720  ;;  %6402 = vmatprep.subr.bf16.mxu0 %v7636_v23  ;;  %6426 = vmatprep.subr.bf16.mxu1 %v8495_v11 }
 0x7ff   :  { %v3757_v13 = vmul.f32 %v6721_v3, %v3756_v2 }
 0x801   :  { %6404 = vmatpush1.bf16.msra.mxu0 %v7643_v41  ;;  %6428 = vmatpush3.bf16.msra.mxu1 %v7647_v44  ;;  %v3759_v22 = vadd.f32 %v3758_v20, %v3757_v13 }
 0x803   :  { %v3763_v31 = vsel %vm4129_vm3, %v3759_v22, %v8307_v15 }
 0x804   :  { %3995 = vmatmul.mubr.f32.vlgmr.msra.gmra.mrb[16].mxu0 %v3763_v31  ;;  %5275 = vmatmul.mubr.f32.vlgmr.msra.gmra.mrb[46].mxu1 %v3763_v31 }
 0x8b7   :  { %v3830_v36 = vpop.f32.mrb[14].mxu0  ;;  %v3901_v40 = vpop.f32.mrb[44].mxu1 }
 0x8b8   :  { %v6458_v48 = vadd.f32 %v8580_v52, %v3830_v36  ;;  %v3832_v56 = vpop.f32.mrb[15].mxu0  ;;  %v5241_v57 = vpop.f32.mrb[45].mxu1  ;;  %v3902_v15 = vadd.f32 %v3901_v40, %v8524_v35 }
 0x8b9   :  { %v6460_v17 = vadd.f32 %v8523_v25, %v3832_v56 }
 0x8ba   :  { %v4163_v7 = vmul.f32 -1.442695, %v6458_v48 }
 0x8bb   :  { %v4164_v23 = vmul.f32 -1.442695, %v6460_v17 }
 0x8bc   :  { %6722 = vpow2.f32 %v4163_v7 }
 0x8bd   :  { %6724 = vpow2.f32 %v4164_v23 }
 0x8c6   :  { %v6723_v29 = vpop.eup %6722 }
 0x8c7   :  { %v3909_v41 = vadd.f32 1.0, %v6723_v29  ;;  %v6725_v44 = vpop.eup %6724 }
 0x8c8   :  { %v3916_v11 = vadd.f32 1.0, %v6725_v44 }
 0x8c9   :  { %6726 = vrcp.f32 %v3909_v41 }
 0x8ca   :  { %6728 = vrcp.f32 %v3916_v11 }
 0x8d3   :  { %v6727_v58 = vpop.eup %6726 }
 0x8d4   :  { %v3919_v45 = vmul.f32 %v6727_v58, %v3902_v15  ;;  %v6729_v18 = vpop.eup %6728 }
 0x8d5   :  { %v3922_v0 = vsub.f32 1.0, %v6729_v18  ;;  %v3924_v28 = vmul.f32 %v6729_v18, %v8356_v14 }
 0x8d6   :  { %v3920_v52 = vadd.f32 %v3919_v45, %v8583_v55 }
 0x8d7   :  { %v3996_v62 = vpop.f32.mrb[16].mxu0  ;;  %v4067_v27 = vpop.f32.mrb[46].mxu1 }
 0x8d8   :  { %6730 = vtanh.f32 %v3920_v52  ;;  %v6462_v25 = vadd.f32 %v7766_v33, %v3996_v62  ;;  %v3998_v9 = vpop.f32.mrb[17].mxu0  ;;  %v5276_v4 = vpop.f32.mrb[47].mxu1  ;;  %v4068_v16 = vadd.f32 %v4067_v27, %v7793_v61 }
 0x8d9   :  { %v6464_v54 = vadd.f32 %v7768_v34, %v3998_v9 }
 0x8da   :  { %v4166_v53 = vmul.f32 -1.442695, %v6462_v25 }
 0x8db   :  { %v4167_v47 = vmul.f32 -1.442695, %v6464_v54 }
 0x8dc   :  { %6732 = vpow2.f32 %v4166_v53 }
 0x8dd   :  { %6734 = vpow2.f32 %v4167_v47 }
 0x8e2   :  { %v6731_v35 = vpop.eup %6730 }
 0x8e3   :  { %v3923_v6 = vmul.f32 %v6731_v35, %v3922_v0 }
 0x8e5   :  { %v3925_v12 = vadd.f32 %v3924_v28, %v3923_v6 }
 0x8e6   :  { %v6733_v1 = vpop.eup %6732 }
 0x8e7   :  { %v3929_v33 = vsel %vm4126_vm2, %v3925_v12, %v8356_v14  ;;  %v4075_v8 = vadd.f32 1.0, %v6733_v1  ;;  %v6735_v34 = vpop.eup %6734 }
 0x8e8   :  { %4097 = vst [vmem:[%s8432_s13] sm:$0xff] %v3929_v33  ;;  %v4082_v10 = vadd.f32 1.0, %v6735_v34 }
 0x8e9   :  { %6736 = vrcp.f32 %v4075_v8 }
 0x8ea   :  { %6738 = vrcp.f32 %v4082_v10 }
 0x8f3   :  { %v6737_v19 = vpop.eup %6736 }
 0x8f4   :  { %v4085_v21 = vmul.f32 %v6737_v19, %v4068_v16  ;;  %v6739_v32 = vpop.eup %6738 }
 0x8f5   :  { %v4088_v38 = vsub.f32 1.0, %v6739_v32  ;;  %v4090_v49 = vmul.f32 %v6739_v32, %v3763_v31 }
 0x8f6   :  { %v4086_v30 = vadd.f32 %v4085_v21, %v8584_v26 }
 0x8f8   :  { %6740 = vtanh.f32 %v4086_v30 }
 0x902   :  { %v6741_v42 = vpop.eup %6740 }
 0x903   :  { %v4089_v43 = vmul.f32 %v6741_v42, %v4088_v38 }
 0x905   :  { %v4091_v5 = vadd.f32 %v4090_v49, %v4089_v43 }
 0x907   :  { %v4094_v14 = vsel %vm4123_vm1, %v4091_v5, %v3763_v31 }
 0x908   :  { %4098 = vst [vmem:[%s8433_s14] sm:$0xff] %v4094_v14 }
 0x909   :  { %4107 = vsyncpa [#allocation5], 1 }
 0x90a   :  { %4108 = vsyncpa [#allocation7], 1 }

</bundles_post_ra>
